<compile_context>
chip_gen: v5e
topology: v5e:2x2
jax: 0.10.0
libtpu: 0.0.40
codegen_flags: <defaults>
</compile_context>

<pallas_src>
import functools

import jax
import jax.numpy as jnp
from jax.experimental import pallas as pl
from jax.experimental.pallas import tpu as pltpu


def _residual_block_kernel(x_ref, bw1_ref, s1_ref, b1_ref,
                           bw2_ref, s2_ref, b2_ref,
                           wfc1t_ref, wfc2wc_ref,
                           out_ref,
                           pad_ref,
                           *, H, W, C, d, Bblk):
    """One grid step processes Bblk batch elements, fully resident in VMEM."""
    WC = W * C
    Hp = H + 2 * d
    WpC = (W + 2 * d) * C
    M = Bblk * H
    inv_hw = 1.0 / (H * W)

    # Zero the top/bottom padding rows (dense, 640-lane aligned stores).
    # Left/right padding columns are rewritten inside conv_bn.  Done every grid
    # step (megacore-safe: each core owns its own scratch).
    pad_ref[:, 0:d, :] = jnp.zeros((Bblk, d, WpC), jnp.float32)
    pad_ref[:, d + H:Hp, :] = jnp.zeros((Bblk, d, WpC), jnp.float32)

    zcol = jnp.zeros((Bblk, H, d * C), jnp.float32)   # hoisted, reused by both convs

    def conv_bn(src_3d, bw_ref, s_ref, b_ref):
        # Fill the padded interior rows: [zeros | src | zeros].
        pad_ref[:, d:d + H, 0:d * C] = zcol
        pad_ref[:, d:d + H, d * C:d * C + WC] = src_3d
        pad_ref[:, d:d + H, d * C + WC:WpC] = zcol
        # Dilated 3x3 conv = three lane-dense (M, WpC) @ (WpC, WC) matmuls;
        # bw_ref[ky] is the block-banded matrix folding the kx/ci taps.
        acc = None
        for ky in range(3):
            slab = pad_ref[:, ky * d:ky * d + H, :].reshape(M, WpC)
            term = jnp.dot(slab, bw_ref[ky], preferred_element_type=jnp.float32)
            acc = term if acc is None else acc + term
        # Folded BatchNorm (inference semantics), tiled to the W*C lane layout.
        return acc * s_ref[...] + b_ref[...]                    # (M, WC)

    # conv1 -> BN1 -> ReLU
    h1 = jnp.maximum(conv_bn(x_ref[...], bw1_ref, s1_ref, b1_ref), 0.0)
    # conv2 -> BN2
    h2 = conv_bn(h1.reshape(Bblk, H, WC), bw2_ref, s2_ref, b2_ref)

    # ---------------- SE layer, vectorized over the batch block -----------------
    h2_3d = h2.reshape(Bblk, H, WC)
    colsum = jnp.sum(h2_3d, axis=1)                             # (Bblk, WC)
    pooled = jnp.zeros((Bblk, C), jnp.float32)
    for w in range(W):                                          # fold W lane-groups
        pooled = pooled + colsum[:, w * C:(w + 1) * C]
    pooled = pooled * inv_hw                                    # (Bblk, C)

    # fc1 (bias-free) + ReLU on the VPU: (Bblk, C) x (Cr, C) -> (Bblk, Cr)
    mid = jnp.maximum(
        jnp.sum(pooled[:, None, :] * wfc1t_ref[...][None, :, :], axis=2), 0.0)
    # fc2 (bias-free) pre-tiled to the lane-flat layout: (Bblk, Cr) x (Cr, WC)
    gate_wc = jax.nn.sigmoid(
        jnp.sum(mid[:, :, None] * wfc2wc_ref[...][None, :, :], axis=1))  # (Bblk, WC)

    # ---------------- SE scale + residual add, one lane-dense store -------------
    out_ref[...] = h2_3d * gate_wc[:, None, :] + x_ref[...]


def _pick_batch_block(B, cap=16):
    # Keep grid >= 2 whenever possible so both v7x TensorCores get work.
    cap = max(1, min(cap, B // 2)) if B >= 2 else 1
    for cand in range(cap, 0, -1):
        if B % cand == 0:
            return cand
    return 1


def residual_block_new(x_nchw, params, *, dilation):
    """x_nchw: (B, C, H, W) float32. Returns (B, C, H, W)."""
    B, C, H, W = x_nchw.shape
    d = dilation
    Hp, Wp = H + 2 * d, W + 2 * d
    WC, WpC = W * C, Wp * C
    Bblk = _pick_batch_block(B)

    # NCHW -> NHWC, lane-flattened to (B, H, W*C).  Padding happens in-kernel.
    x_flat = jnp.transpose(x_nchw, (0, 2, 3, 1)).astype(jnp.float32).reshape(B, H, WC)

    def band_weights(w):
        """(3,3,Cin,Cout) HWIO -> (3, Wp*C, W*C) block-banded matrices.

        bw[ky, wi*C+ci, wo*C+co] = w[ky, kx, ci, co] when wi == wo + kx*d else 0,
        so the conv over (kx, ci) becomes one lane-dense matmul per ky.
        (Size scales with W^2; fine at these demo shapes.)
        """
        wf = w.astype(jnp.float32)
        wi = jnp.arange(Wp)[:, None]
        wo = jnp.arange(W)[None, :]
        mats = []
        for ky in range(3):
            t = jnp.zeros((Wp, C, W, C), jnp.float32)
            for kx in range(3):
                sel = (wi == wo + kx * d).astype(jnp.float32)          # (Wp, W)
                t = t + sel[:, None, :, None] * wf[ky, kx][None, :, None, :]
            mats.append(t.reshape(WpC, WC))
        return jnp.stack(mats)                                         # (3, WpC, WC)

    bw1 = band_weights(params["w1"])
    bw2 = band_weights(params["w2"])

    def fold_bn(gamma, beta, mean, var, eps=1e-5):
        scale = (gamma / jnp.sqrt(var + eps)).astype(jnp.float32)
        bias = (beta - mean * scale).astype(jnp.float32)
        # Tile per-channel params across the lane-flattened W*C layout.
        return jnp.tile(scale, W).reshape(1, WC), jnp.tile(bias, W).reshape(1, WC)

    s1, b1 = fold_bn(params["bn1_gamma"], params["bn1_beta"],
                     params["bn1_mean"], params["bn1_var"])
    s2, b2 = fold_bn(params["bn2_gamma"], params["bn2_beta"],
                     params["bn2_mean"], params["bn2_var"])

    wfc1t = params["w_fc1"].astype(jnp.float32).T                      # (Cr, C)
    wfc2wc = jnp.tile(params["w_fc2"].astype(jnp.float32), (1, W))     # (Cr, W*C)
    Cr = wfc1t.shape[0]

    kernel = functools.partial(_residual_block_kernel,
                               H=H, W=W, C=C, d=d, Bblk=Bblk)

    cost = pl.CostEstimate(
        flops=int(2 * (2 * B * H * 3 * WpC * WC) + 4 * B * C * Cr),
        transcendentals=int(B * WC),
        bytes_accessed=int(2 * x_flat.size * 4 + (bw1.size + bw2.size) * 4
                           + (wfc1t.size + wfc2wc.size) * 4),
    )

    out_flat = pl.pallas_call(
        kernel,
        out_shape=jax.ShapeDtypeStruct((B, H, WC), jnp.float32),
        grid_spec=pltpu.PrefetchScalarGridSpec(
            num_scalar_prefetch=0,
            grid=(B // Bblk,),
            in_specs=[
                pl.BlockSpec((Bblk, H, WC), lambda i: (i, 0, 0)),      # x (lane-flat NHWC)
                pl.BlockSpec((3, WpC, WC), lambda i: (0, 0, 0)),       # conv1 banded weights
                pl.BlockSpec((1, WC), lambda i: (0, 0)),               # bn1 scale (tiled)
                pl.BlockSpec((1, WC), lambda i: (0, 0)),               # bn1 bias (tiled)
                pl.BlockSpec((3, WpC, WC), lambda i: (0, 0, 0)),       # conv2 banded weights
                pl.BlockSpec((1, WC), lambda i: (0, 0)),               # bn2 scale (tiled)
                pl.BlockSpec((1, WC), lambda i: (0, 0)),               # bn2 bias (tiled)
                pl.BlockSpec((Cr, C), lambda i: (0, 0)),               # SE fc1 (transposed)
                pl.BlockSpec((Cr, WC), lambda i: (0, 0)),              # SE fc2 (lane-tiled)
            ],
            out_specs=pl.BlockSpec((Bblk, H, WC), lambda i: (i, 0, 0)),
            scratch_shapes=[
                pltpu.VMEM((Bblk, Hp, WpC), jnp.float32),              # shared pad buffer
            ],
        ),
        compiler_params=pltpu.CompilerParams(
            dimension_semantics=("parallel",),
            vmem_limit_bytes=32 * 1024 * 1024),
        cost_estimate=cost,
    )(x_flat, bw1, s1, b1, bw2, s2, b2, wfc1t, wfc2wc)

    out_nhwc = out_flat.reshape(B, H, W, C)
    return jnp.transpose(out_nhwc, (0, 3, 1, 2))


# ------------------------------- pure-JAX reference -----------------------------
def residual_block_reference(x_nchw, params, *, dilation):
    d = dilation
    x = jnp.transpose(x_nchw, (0, 2, 3, 1)).astype(jnp.float32)        # NHWC
    dn = ("NHWC", "HWIO", "NHWC")

    def conv(z, w):
        return jax.lax.conv_general_dilated(
            z, w, window_strides=(1, 1), padding=[(d, d), (d, d)],
            rhs_dilation=(d, d), dimension_numbers=dn)

    def bn(z, gamma, beta, mean, var, eps=1e-5):
        return (z - mean) / jnp.sqrt(var + eps) * gamma + beta

    h = jax.nn.relu(bn(conv(x, params["w1"]), params["bn1_gamma"],
                       params["bn1_beta"], params["bn1_mean"], params["bn1_var"]))
    h = bn(conv(h, params["w2"]), params["bn2_gamma"],
           params["bn2_beta"], params["bn2_mean"], params["bn2_var"])
    y = jnp.mean(h, axis=(1, 2))                                       # (B, C)
    y = jax.nn.relu(y @ params["w_fc1"])
    y = jax.nn.sigmoid(y @ params["w_fc2"])                            # (B, C)
    out = h * y[:, None, None, :] + x
    return jnp.transpose(out, (0, 3, 1, 2))


def make_params(key, C, reduction=16):
    Cr = max(C // reduction, 1)
    ks = jax.random.split(key, 10)
    return {
        "w1": jax.random.normal(ks[0], (3, 3, C, C), jnp.float32) * 0.1,
        "w2": jax.random.normal(ks[1], (3, 3, C, C), jnp.float32) * 0.1,
        "bn1_gamma": jax.random.uniform(ks[2], (C,), jnp.float32, 0.5, 1.5),
        "bn1_beta": jax.random.normal(ks[3], (C,), jnp.float32) * 0.1,
        "bn1_mean": jax.random.normal(ks[4], (C,), jnp.float32) * 0.1,
        "bn1_var": jax.random.uniform(ks[5], (C,), jnp.float32, 0.5, 1.5),
        "bn2_gamma": jax.random.uniform(ks[6], (C,), jnp.float32, 0.5, 1.5),
        "bn2_beta": jax.random.normal(ks[7], (C,), jnp.float32) * 0.1,
        "bn2_mean": jnp.zeros((C,), jnp.float32),
        "bn2_var": jnp.ones((C,), jnp.float32),
        "w_fc1": jax.random.normal(ks[8], (C, Cr), jnp.float32) * 0.3,
        "w_fc2": jax.random.normal(ks[9], (Cr, C), jnp.float32) * 0.3,
    }


if __name__ == "__main__":
    key = jax.random.PRNGKey(0)
    B, C, H, W = 2, 32, 16, 16          # in_num == out_num (required for residual add)
    dilation = 2

    kx, kp = jax.random.split(key)
    x = jax.random.normal(kx, (B, C, H, W), jnp.float32)
    params = make_params(kp, C, reduction=16)

    out = residual_block_new(x, params, dilation=dilation)
    out = jax.block_until_ready(out)

    ref = residual_block_reference(x, params, dilation=dilation)
    ref = jax.block_until_ready(ref)

    assert out.shape == (B, C, H, W)
    assert jnp.allclose(out, ref, rtol=5e-3, atol=5e-3), (
        float(jnp.max(jnp.abs(out - ref))))

    print("KERNEL_OK")
</pallas_src>

<mosaic_0001>
module attributes {stable_mosaic.version = 11 : i64} {
  func.func @_residual_block_kernel(%arg0: i32, %arg1: memref<1x16x512xf32, #tpu.memory_space<vmem>>, %arg2: memref<3x640x512xf32, #tpu.memory_space<vmem>>, %arg3: memref<1x512xf32, #tpu.memory_space<vmem>>, %arg4: memref<1x512xf32, #tpu.memory_space<vmem>>, %arg5: memref<3x640x512xf32, #tpu.memory_space<vmem>>, %arg6: memref<1x512xf32, #tpu.memory_space<vmem>>, %arg7: memref<1x512xf32, #tpu.memory_space<vmem>>, %arg8: memref<2x32xf32, #tpu.memory_space<vmem>>, %arg9: memref<2x512xf32, #tpu.memory_space<vmem>>, %arg10: memref<1x16x512xf32, #tpu.memory_space<vmem>>, %arg11: memref<1x20x640xf32, #tpu.memory_space<vmem>>) attributes {dimension_semantics = [#tpu.dimension_semantics<parallel>], iteration_bounds = array<i64: 2>, scalar_prefetch = 0 : i64, scratch_operands = 1 : i64, tpu.core_type = #tpu.core_type<tc>, window_params = [{transform_indices = @transform_0, window_bounds = array<i64: 1, 16, 512>}, {pipeline_mode = #tpu.pipeline_mode<synchronous>, transform_indices = @transform_1, window_bounds = array<i64: 3, 640, 512>}, {pipeline_mode = #tpu.pipeline_mode<synchronous>, transform_indices = @transform_2, window_bounds = array<i64: 1, 512>}, {pipeline_mode = #tpu.pipeline_mode<synchronous>, transform_indices = @transform_3, window_bounds = array<i64: 1, 512>}, {pipeline_mode = #tpu.pipeline_mode<synchronous>, transform_indices = @transform_4, window_bounds = array<i64: 3, 640, 512>}, {pipeline_mode = #tpu.pipeline_mode<synchronous>, transform_indices = @transform_5, window_bounds = array<i64: 1, 512>}, {pipeline_mode = #tpu.pipeline_mode<synchronous>, transform_indices = @transform_6, window_bounds = array<i64: 1, 512>}, {pipeline_mode = #tpu.pipeline_mode<synchronous>, transform_indices = @transform_7, window_bounds = array<i64: 2, 32>}, {pipeline_mode = #tpu.pipeline_mode<synchronous>, transform_indices = @transform_8, window_bounds = array<i64: 2, 512>}, {transform_indices = @transform_9, window_bounds = array<i64: 1, 16, 512>}]} {
    %cst = arith.constant 0.000000e+00 : f32
    %0 = vector.broadcast %cst : f32 to vector<1x2x640xf32>
    %c0 = arith.constant 0 : index
    %c0_0 = arith.constant 0 : index
    %c0_1 = arith.constant 0 : index
    %1 = vector.load %arg11[%c0, %c0_0, %c0_1] : memref<1x20x640xf32, #tpu.memory_space<vmem>>, vector<1x2x640xf32>
    tpu.vector_store %arg11[%c0, %c0_0, %c0_1], %0 {strides = array<i32>} : memref<1x20x640xf32, #tpu.memory_space<vmem>>, vector<1x2x640xf32>,
    %cst_2 = arith.constant 0.000000e+00 : f32
    %2 = vector.broadcast %cst_2 : f32 to vector<1x2x640xf32>
    %c0_3 = arith.constant 0 : index
    %c18 = arith.constant 18 : index
    %c0_4 = arith.constant 0 : index
    %3 = vector.load %arg11[%c0_3, %c18, %c0_4] : memref<1x20x640xf32, #tpu.memory_space<vmem>>, vector<1x2x640xf32>
    tpu.vector_store %arg11[%c0_3, %c18, %c0_4], %2 {strides = array<i32>} : memref<1x20x640xf32, #tpu.memory_space<vmem>>, vector<1x2x640xf32>,
    %cst_5 = arith.constant 0.000000e+00 : f32
    %4 = vector.broadcast %cst_5 : f32 to vector<1x16x64xf32>
    %c0_6 = arith.constant 0 : index
    %c0_7 = arith.constant 0 : index
    %c0_8 = arith.constant 0 : index
    %5 = vector.load %arg1[%c0_6, %c0_7, %c0_8] : memref<1x16x512xf32, #tpu.memory_space<vmem>>, vector<1x16x512xf32>
    %c0_9 = arith.constant 0 : index
    %c2 = arith.constant 2 : index
    %c0_10 = arith.constant 0 : index
    %6 = vector.load %arg11[%c0_9, %c2, %c0_10] : memref<1x20x640xf32, #tpu.memory_space<vmem>>, vector<1x16x64xf32>
    tpu.vector_store %arg11[%c0_9, %c2, %c0_10], %4 {strides = array<i32>} : memref<1x20x640xf32, #tpu.memory_space<vmem>>, vector<1x16x64xf32>,
    %c0_11 = arith.constant 0 : index
    %c2_12 = arith.constant 2 : index
    %c64 = arith.constant 64 : index
    %7 = vector.load %arg11[%c0_11, %c2_12, %c64] : memref<1x20x640xf32, #tpu.memory_space<vmem>>, vector<1x16x512xf32>
    tpu.vector_store %arg11[%c0_11, %c2_12, %c64], %5 {strides = array<i32>} : memref<1x20x640xf32, #tpu.memory_space<vmem>>, vector<1x16x512xf32>,
    %c0_13 = arith.constant 0 : index
    %c2_14 = arith.constant 2 : index
    %c576 = arith.constant 576 : index
    %8 = vector.load %arg11[%c0_13, %c2_14, %c576] : memref<1x20x640xf32, #tpu.memory_space<vmem>>, vector<1x16x64xf32>
    tpu.vector_store %arg11[%c0_13, %c2_14, %c576], %4 {strides = array<i32>} : memref<1x20x640xf32, #tpu.memory_space<vmem>>, vector<1x16x64xf32>,
    %c0_15 = arith.constant 0 : index
    %c0_16 = arith.constant 0 : index
    %c0_17 = arith.constant 0 : index
    %9 = vector.load %arg11[%c0_15, %c0_16, %c0_17] : memref<1x20x640xf32, #tpu.memory_space<vmem>>, vector<1x16x640xf32>
    %10 = vector.shape_cast %9 : vector<1x16x640xf32> to vector<16x640xf32>
    %c0_18 = arith.constant 0 : index
    %c0_19 = arith.constant 0 : index
    %c0_20 = arith.constant 0 : index
    %11 = vector.load %arg2[%c0_18, %c0_19, %c0_20] : memref<3x640x512xf32, #tpu.memory_space<vmem>>, vector<1x640x512xf32>
    %12 = vector.shape_cast %11 : vector<1x640x512xf32> to vector<640x512xf32>
    %cst_21 = arith.constant dense<0.000000e+00> : vector<16x512xf32>
    %13 = tpu.matmul %10, %12, %cst_21 {dimension_numbers = #tpu.dot_dimension_numbers<[1], [0], [0], [1], [0, 0, 1, 1], [], []>} : vector<16x640xf32>, vector<640x512xf32>, vector<16x512xf32> -> vector<16x512xf32>
    %c0_22 = arith.constant 0 : index
    %c2_23 = arith.constant 2 : index
    %c0_24 = arith.constant 0 : index
    %14 = vector.load %arg11[%c0_22, %c2_23, %c0_24] : memref<1x20x640xf32, #tpu.memory_space<vmem>>, vector<1x16x640xf32>
    %15 = vector.shape_cast %14 : vector<1x16x640xf32> to vector<16x640xf32>
    %c1 = arith.constant 1 : index
    %c0_25 = arith.constant 0 : index
    %c0_26 = arith.constant 0 : index
    %16 = vector.load %arg2[%c1, %c0_25, %c0_26] : memref<3x640x512xf32, #tpu.memory_space<vmem>>, vector<1x640x512xf32>
    %17 = vector.shape_cast %16 : vector<1x640x512xf32> to vector<640x512xf32>
    %cst_27 = arith.constant dense<0.000000e+00> : vector<16x512xf32>
    %18 = tpu.matmul %15, %17, %cst_27 {dimension_numbers = #tpu.dot_dimension_numbers<[1], [0], [0], [1], [0, 0, 1, 1], [], []>} : vector<16x640xf32>, vector<640x512xf32>, vector<16x512xf32> -> vector<16x512xf32>
    %19 = arith.addf %13, %18 : vector<16x512xf32>
    %c0_28 = arith.constant 0 : index
    %c4 = arith.constant 4 : index
    %c0_29 = arith.constant 0 : index
    %20 = vector.load %arg11[%c0_28, %c4, %c0_29] : memref<1x20x640xf32, #tpu.memory_space<vmem>>, vector<1x16x640xf32>
    %21 = vector.shape_cast %20 : vector<1x16x640xf32> to vector<16x640xf32>
    %c2_30 = arith.constant 2 : index
    %c0_31 = arith.constant 0 : index
    %c0_32 = arith.constant 0 : index
    %22 = vector.load %arg2[%c2_30, %c0_31, %c0_32] : memref<3x640x512xf32, #tpu.memory_space<vmem>>, vector<1x640x512xf32>
    %23 = vector.shape_cast %22 : vector<1x640x512xf32> to vector<640x512xf32>
    %cst_33 = arith.constant dense<0.000000e+00> : vector<16x512xf32>
    %24 = tpu.matmul %21, %23, %cst_33 {dimension_numbers = #tpu.dot_dimension_numbers<[1], [0], [0], [1], [0, 0, 1, 1], [], []>} : vector<16x640xf32>, vector<640x512xf32>, vector<16x512xf32> -> vector<16x512xf32>
    %25 = arith.addf %19, %24 : vector<16x512xf32>
    %c0_34 = arith.constant 0 : index
    %c0_35 = arith.constant 0 : index
    %26 = vector.load %arg3[%c0_34, %c0_35] : memref<1x512xf32, #tpu.memory_space<vmem>>, vector<1x512xf32>
    %27 = vector.broadcast %26 : vector<1x512xf32> to vector<16x512xf32>
    %28 = arith.mulf %25, %27 : vector<16x512xf32>
    %c0_36 = arith.constant 0 : index
    %c0_37 = arith.constant 0 : index
    %29 = vector.load %arg4[%c0_36, %c0_37] : memref<1x512xf32, #tpu.memory_space<vmem>>, vector<1x512xf32>
    %30 = vector.broadcast %29 : vector<1x512xf32> to vector<16x512xf32>
    %31 = arith.addf %28, %30 : vector<16x512xf32>
    %cst_38 = arith.constant 0.000000e+00 : f32
    %32 = vector.broadcast %cst_38 : f32 to vector<16x512xf32>
    %33 = arith.maximumf %31, %32 : vector<16x512xf32>
    %34 = vector.shape_cast %33 : vector<16x512xf32> to vector<1x16x512xf32>
    %c0_39 = arith.constant 0 : index
    %c2_40 = arith.constant 2 : index
    %c0_41 = arith.constant 0 : index
    %35 = vector.load %arg11[%c0_39, %c2_40, %c0_41] : memref<1x20x640xf32, #tpu.memory_space<vmem>>, vector<1x16x64xf32>
    tpu.vector_store %arg11[%c0_39, %c2_40, %c0_41], %4 {strides = array<i32>} : memref<1x20x640xf32, #tpu.memory_space<vmem>>, vector<1x16x64xf32>,
    %c0_42 = arith.constant 0 : index
    %c2_43 = arith.constant 2 : index
    %c64_44 = arith.constant 64 : index
    %36 = vector.load %arg11[%c0_42, %c2_43, %c64_44] : memref<1x20x640xf32, #tpu.memory_space<vmem>>, vector<1x16x512xf32>
    tpu.vector_store %arg11[%c0_42, %c2_43, %c64_44], %34 {strides = array<i32>} : memref<1x20x640xf32, #tpu.memory_space<vmem>>, vector<1x16x512xf32>,
    %c0_45 = arith.constant 0 : index
    %c2_46 = arith.constant 2 : index
    %c576_47 = arith.constant 576 : index
    %37 = vector.load %arg11[%c0_45, %c2_46, %c576_47] : memref<1x20x640xf32, #tpu.memory_space<vmem>>, vector<1x16x64xf32>
    tpu.vector_store %arg11[%c0_45, %c2_46, %c576_47], %4 {strides = array<i32>} : memref<1x20x640xf32, #tpu.memory_space<vmem>>, vector<1x16x64xf32>,
    %c0_48 = arith.constant 0 : index
    %c0_49 = arith.constant 0 : index
    %c0_50 = arith.constant 0 : index
    %38 = vector.load %arg11[%c0_48, %c0_49, %c0_50] : memref<1x20x640xf32, #tpu.memory_space<vmem>>, vector<1x16x640xf32>
    %39 = vector.shape_cast %38 : vector<1x16x640xf32> to vector<16x640xf32>
    %c0_51 = arith.constant 0 : index
    %c0_52 = arith.constant 0 : index
    %c0_53 = arith.constant 0 : index
    %40 = vector.load %arg5[%c0_51, %c0_52, %c0_53] : memref<3x640x512xf32, #tpu.memory_space<vmem>>, vector<1x640x512xf32>
    %41 = vector.shape_cast %40 : vector<1x640x512xf32> to vector<640x512xf32>
    %cst_54 = arith.constant dense<0.000000e+00> : vector<16x512xf32>
    %42 = tpu.matmul %39, %41, %cst_54 {dimension_numbers = #tpu.dot_dimension_numbers<[1], [0], [0], [1], [0, 0, 1, 1], [], []>} : vector<16x640xf32>, vector<640x512xf32>, vector<16x512xf32> -> vector<16x512xf32>
    %c0_55 = arith.constant 0 : index
    %c2_56 = arith.constant 2 : index
    %c0_57 = arith.constant 0 : index
    %43 = vector.load %arg11[%c0_55, %c2_56, %c0_57] : memref<1x20x640xf32, #tpu.memory_space<vmem>>, vector<1x16x640xf32>
    %44 = vector.shape_cast %43 : vector<1x16x640xf32> to vector<16x640xf32>
    %c1_58 = arith.constant 1 : index
    %c0_59 = arith.constant 0 : index
    %c0_60 = arith.constant 0 : index
    %45 = vector.load %arg5[%c1_58, %c0_59, %c0_60] : memref<3x640x512xf32, #tpu.memory_space<vmem>>, vector<1x640x512xf32>
    %46 = vector.shape_cast %45 : vector<1x640x512xf32> to vector<640x512xf32>
    %cst_61 = arith.constant dense<0.000000e+00> : vector<16x512xf32>
    %47 = tpu.matmul %44, %46, %cst_61 {dimension_numbers = #tpu.dot_dimension_numbers<[1], [0], [0], [1], [0, 0, 1, 1], [], []>} : vector<16x640xf32>, vector<640x512xf32>, vector<16x512xf32> -> vector<16x512xf32>
    %48 = arith.addf %42, %47 : vector<16x512xf32>
    %c0_62 = arith.constant 0 : index
    %c4_63 = arith.constant 4 : index
    %c0_64 = arith.constant 0 : index
    %49 = vector.load %arg11[%c0_62, %c4_63, %c0_64] : memref<1x20x640xf32, #tpu.memory_space<vmem>>, vector<1x16x640xf32>
    %50 = vector.shape_cast %49 : vector<1x16x640xf32> to vector<16x640xf32>
    %c2_65 = arith.constant 2 : index
    %c0_66 = arith.constant 0 : index
    %c0_67 = arith.constant 0 : index
    %51 = vector.load %arg5[%c2_65, %c0_66, %c0_67] : memref<3x640x512xf32, #tpu.memory_space<vmem>>, vector<1x640x512xf32>
    %52 = vector.shape_cast %51 : vector<1x640x512xf32> to vector<640x512xf32>
    %cst_68 = arith.constant dense<0.000000e+00> : vector<16x512xf32>
    %53 = tpu.matmul %50, %52, %cst_68 {dimension_numbers = #tpu.dot_dimension_numbers<[1], [0], [0], [1], [0, 0, 1, 1], [], []>} : vector<16x640xf32>, vector<640x512xf32>, vector<16x512xf32> -> vector<16x512xf32>
    %54 = arith.addf %48, %53 : vector<16x512xf32>
    %c0_69 = arith.constant 0 : index
    %c0_70 = arith.constant 0 : index
    %55 = vector.load %arg6[%c0_69, %c0_70] : memref<1x512xf32, #tpu.memory_space<vmem>>, vector<1x512xf32>
    %56 = vector.broadcast %55 : vector<1x512xf32> to vector<16x512xf32>
    %57 = arith.mulf %54, %56 : vector<16x512xf32>
    %c0_71 = arith.constant 0 : index
    %c0_72 = arith.constant 0 : index
    %58 = vector.load %arg7[%c0_71, %c0_72] : memref<1x512xf32, #tpu.memory_space<vmem>>, vector<1x512xf32>
    %59 = vector.broadcast %58 : vector<1x512xf32> to vector<16x512xf32>
    %60 = arith.addf %57, %59 : vector<16x512xf32>
    %61 = vector.shape_cast %60 : vector<16x512xf32> to vector<1x16x512xf32>
    %cst_73 = arith.constant dense<0.000000e+00> : vector<1x512xf32>
    %62 = vector.multi_reduction <add>, %61, %cst_73 [1] : vector<1x16x512xf32> to vector<1x512xf32>
    %cst_74 = arith.constant 0.000000e+00 : f32
    %63 = vector.broadcast %cst_74 : f32 to vector<1x32xf32>
    %64 = vector.extract_strided_slice %62 {offsets = [0, 0], sizes = [1, 32], strides = [1, 1]} : vector<1x512xf32> to vector<1x32xf32>
    %65 = arith.addf %63, %64 : vector<1x32xf32>
    %66 = vector.extract_strided_slice %62 {offsets = [0, 32], sizes = [1, 32], strides = [1, 1]} : vector<1x512xf32> to vector<1x32xf32>
    %67 = arith.addf %65, %66 : vector<1x32xf32>
    %68 = vector.extract_strided_slice %62 {offsets = [0, 64], sizes = [1, 32], strides = [1, 1]} : vector<1x512xf32> to vector<1x32xf32>
    %69 = arith.addf %67, %68 : vector<1x32xf32>
    %70 = vector.extract_strided_slice %62 {offsets = [0, 96], sizes = [1, 32], strides = [1, 1]} : vector<1x512xf32> to vector<1x32xf32>
    %71 = arith.addf %69, %70 : vector<1x32xf32>
    %72 = vector.extract_strided_slice %62 {offsets = [0, 128], sizes = [1, 32], strides = [1, 1]} : vector<1x512xf32> to vector<1x32xf32>
    %73 = arith.addf %71, %72 : vector<1x32xf32>
    %74 = vector.extract_strided_slice %62 {offsets = [0, 160], sizes = [1, 32], strides = [1, 1]} : vector<1x512xf32> to vector<1x32xf32>
    %75 = arith.addf %73, %74 : vector<1x32xf32>
    %76 = vector.extract_strided_slice %62 {offsets = [0, 192], sizes = [1, 32], strides = [1, 1]} : vector<1x512xf32> to vector<1x32xf32>
    %77 = arith.addf %75, %76 : vector<1x32xf32>
    %78 = vector.extract_strided_slice %62 {offsets = [0, 224], sizes = [1, 32], strides = [1, 1]} : vector<1x512xf32> to vector<1x32xf32>
    %79 = arith.addf %77, %78 : vector<1x32xf32>
    %80 = vector.extract_strided_slice %62 {offsets = [0, 256], sizes = [1, 32], strides = [1, 1]} : vector<1x512xf32> to vector<1x32xf32>
    %81 = arith.addf %79, %80 : vector<1x32xf32>
    %82 = vector.extract_strided_slice %62 {offsets = [0, 288], sizes = [1, 32], strides = [1, 1]} : vector<1x512xf32> to vector<1x32xf32>
    %83 = arith.addf %81, %82 : vector<1x32xf32>
    %84 = vector.extract_strided_slice %62 {offsets = [0, 320], sizes = [1, 32], strides = [1, 1]} : vector<1x512xf32> to vector<1x32xf32>
    %85 = arith.addf %83, %84 : vector<1x32xf32>
    %86 = vector.extract_strided_slice %62 {offsets = [0, 352], sizes = [1, 32], strides = [1, 1]} : vector<1x512xf32> to vector<1x32xf32>
    %87 = arith.addf %85, %86 : vector<1x32xf32>
    %88 = vector.extract_strided_slice %62 {offsets = [0, 384], sizes = [1, 32], strides = [1, 1]} : vector<1x512xf32> to vector<1x32xf32>
    %89 = arith.addf %87, %88 : vector<1x32xf32>
    %90 = vector.extract_strided_slice %62 {offsets = [0, 416], sizes = [1, 32], strides = [1, 1]} : vector<1x512xf32> to vector<1x32xf32>
    %91 = arith.addf %89, %90 : vector<1x32xf32>
    %92 = vector.extract_strided_slice %62 {offsets = [0, 448], sizes = [1, 32], strides = [1, 1]} : vector<1x512xf32> to vector<1x32xf32>
    %93 = arith.addf %91, %92 : vector<1x32xf32>
    %94 = vector.extract_strided_slice %62 {offsets = [0, 480], sizes = [1, 32], strides = [1, 1]} : vector<1x512xf32> to vector<1x32xf32>
    %95 = arith.addf %93, %94 : vector<1x32xf32>
    %cst_75 = arith.constant 3.906250e-03 : f32
    %96 = vector.broadcast %cst_75 : f32 to vector<1x32xf32>
    %97 = arith.mulf %95, %96 : vector<1x32xf32>
    %98 = vector.shape_cast %97 : vector<1x32xf32> to vector<1x1x32xf32>
    %c0_76 = arith.constant 0 : index
    %c0_77 = arith.constant 0 : index
    %99 = vector.load %arg8[%c0_76, %c0_77] : memref<2x32xf32, #tpu.memory_space<vmem>>, vector<2x32xf32>
    %100 = vector.shape_cast %99 : vector<2x32xf32> to vector<1x2x32xf32>
    %101 = vector.broadcast %98 : vector<1x1x32xf32> to vector<1x2x32xf32>
    %102 = arith.mulf %101, %100 : vector<1x2x32xf32>
    %cst_78 = arith.constant dense<0.000000e+00> : vector<1x2xf32>
    %103 = vector.multi_reduction <add>, %102, %cst_78 [2] : vector<1x2x32xf32> to vector<1x2xf32>
    %cst_79 = arith.constant 0.000000e+00 : f32
    %104 = vector.broadcast %cst_79 : f32 to vector<1x2xf32>
    %105 = arith.maximumf %103, %104 : vector<1x2xf32>
    %106 = vector.shape_cast %105 : vector<1x2xf32> to vector<1x2x1xf32>
    %c0_80 = arith.constant 0 : index
    %c0_81 = arith.constant 0 : index
    %107 = vector.load %arg9[%c0_80, %c0_81] : memref<2x512xf32, #tpu.memory_space<vmem>>, vector<2x512xf32>
    %108 = vector.shape_cast %107 : vector<2x512xf32> to vector<1x2x512xf32>
    %109 = vector.broadcast %106 : vector<1x2x1xf32> to vector<1x2x512xf32>
    %110 = arith.mulf %109, %108 : vector<1x2x512xf32>
    %cst_82 = arith.constant dense<0.000000e+00> : vector<1x512xf32>
    %111 = vector.multi_reduction <add>, %110, %cst_82 [1] : vector<1x2x512xf32> to vector<1x512xf32>
    %112 = arith.negf %111 : vector<1x512xf32>
    %113 = math.exp %112 : vector<1x512xf32>
    %cst_83 = arith.constant 1.000000e+00 : f32
    %114 = vector.broadcast %cst_83 : f32 to vector<1x512xf32>
    %115 = arith.addf %114, %113 : vector<1x512xf32>
    %116 = arith.divf %114, %115 : vector<1x512xf32>
    %117 = vector.shape_cast %116 : vector<1x512xf32> to vector<1x1x512xf32>
    %118 = vector.broadcast %117 : vector<1x1x512xf32> to vector<1x16x512xf32>
    %119 = arith.mulf %61, %118 : vector<1x16x512xf32>
    %c0_84 = arith.constant 0 : index
    %c0_85 = arith.constant 0 : index
    %c0_86 = arith.constant 0 : index
    %120 = vector.load %arg1[%c0_84, %c0_85, %c0_86] : memref<1x16x512xf32, #tpu.memory_space<vmem>>, vector<1x16x512xf32>
    %121 = arith.addf %119, %120 : vector<1x16x512xf32>
    %c0_87 = arith.constant 0 : index
    %c0_88 = arith.constant 0 : index
    %c0_89 = arith.constant 0 : index
    %122 = vector.load %arg10[%c0_87, %c0_88, %c0_89] : memref<1x16x512xf32, #tpu.memory_space<vmem>>, vector<1x16x512xf32>
    tpu.vector_store %arg10[%c0_87, %c0_88, %c0_89], %121 {strides = array<i32>} : memref<1x16x512xf32, #tpu.memory_space<vmem>>, vector<1x16x512xf32>,
    return
  }
  func.func @transform_0(%arg0: i32) -> (i32, i32, i32) {
    %c0_i32 = arith.constant 0 : i32
    %c0_i32_0 = arith.constant 0 : i32
    %c0_i32_1 = arith.constant 0 : i32
    return %arg0, %c0_i32, %c0_i32_0 : i32, i32, i32
  }
  func.func @transform_1(%arg0: i32) -> (i32, i32, i32) {
    %c0_i32 = arith.constant 0 : i32
    %c0_i32_0 = arith.constant 0 : i32
    %c0_i32_1 = arith.constant 0 : i32
    %c0_i32_2 = arith.constant 0 : i32
    return %c0_i32, %c0_i32_0, %c0_i32_1 : i32, i32, i32
  }
  func.func @transform_2(%arg0: i32) -> (i32, i32) {
    %c0_i32 = arith.constant 0 : i32
    %c0_i32_0 = arith.constant 0 : i32
    %c0_i32_1 = arith.constant 0 : i32
    return %c0_i32, %c0_i32_0 : i32, i32
  }
  func.func @transform_3(%arg0: i32) -> (i32, i32) {
    %c0_i32 = arith.constant 0 : i32
    %c0_i32_0 = arith.constant 0 : i32
    %c0_i32_1 = arith.constant 0 : i32
    return %c0_i32, %c0_i32_0 : i32, i32
  }
  func.func @transform_4(%arg0: i32) -> (i32, i32, i32) {
    %c0_i32 = arith.constant 0 : i32
    %c0_i32_0 = arith.constant 0 : i32
    %c0_i32_1 = arith.constant 0 : i32
    %c0_i32_2 = arith.constant 0 : i32
    return %c0_i32, %c0_i32_0, %c0_i32_1 : i32, i32, i32
  }
  func.func @transform_5(%arg0: i32) -> (i32, i32) {
    %c0_i32 = arith.constant 0 : i32
    %c0_i32_0 = arith.constant 0 : i32
    %c0_i32_1 = arith.constant 0 : i32
    return %c0_i32, %c0_i32_0 : i32, i32
  }
  func.func @transform_6(%arg0: i32) -> (i32, i32) {
    %c0_i32 = arith.constant 0 : i32
    %c0_i32_0 = arith.constant 0 : i32
    %c0_i32_1 = arith.constant 0 : i32
    return %c0_i32, %c0_i32_0 : i32, i32
  }
  func.func @transform_7(%arg0: i32) -> (i32, i32) {
    %c0_i32 = arith.constant 0 : i32
    %c0_i32_0 = arith.constant 0 : i32
    %c0_i32_1 = arith.constant 0 : i32
    return %c0_i32, %c0_i32_0 : i32, i32
  }
  func.func @transform_8(%arg0: i32) -> (i32, i32) {
    %c0_i32 = arith.constant 0 : i32
    %c0_i32_0 = arith.constant 0 : i32
    %c0_i32_1 = arith.constant 0 : i32
    return %c0_i32, %c0_i32_0 : i32, i32
  }
  func.func @transform_9(%arg0: i32) -> (i32, i32, i32) {
    %c0_i32 = arith.constant 0 : i32
    %c0_i32_0 = arith.constant 0 : i32
    %c0_i32_1 = arith.constant 0 : i32
    return %arg0, %c0_i32, %c0_i32_0 : i32, i32, i32
  }
}

</mosaic_0001>

<bundles_post_ra>
// kernel: tpu_custom_call.1
= control target key start
LH: loop header
LB: loop body
LE: loop exit
PB: predicated region body
PF: predicated region fallthrough
CT: control target
= control target key end

     0   :  { %s8092_s0 = inlined_call_operand.hbm [shape: f32[2,16,512], index: 0, kind: input, shape index: {}]   ;;  %s8093_s1 = inlined_call_operand.hbm [shape: f32[3,640,512], index: 1, kind: input, shape index: {}]   ;;  %s8094_s2 = inlined_call_operand.hbm [shape: f32[1,512], index: 2, kind: input, shape index: {}]   ;;  %s8095_s3 = inlined_call_operand.hbm [shape: f32[1,512], index: 3, kind: input, shape index: {}]   ;;  %s8096_s4 = inlined_call_operand.hbm [shape: f32[3,640,512], index: 4, kind: input, shape index: {}]   ;;  %s8097_s5 = inlined_call_operand.hbm [shape: f32[1,512], index: 5, kind: input, shape index: {}]   ;;  %s8098_s6 = inlined_call_operand.hbm [shape: f32[1,512], index: 6, kind: input, shape index: {}]   ;;  %s8099_s7 = inlined_call_operand.hbm [shape: f32[2,32], index: 7, kind: input, shape index: {}]   ;;  %s8100_s8 = inlined_call_operand.hbm [shape: f32[2,512], index: 8, kind: input, shape index: {}]   ;;  %s8101_s9 = inlined_call_operand.hbm [shape: f32[2,16,512], index: 9, kind: output, shape index: {}]  }
   0x1   :  { %8106 = sst [smem:[#allocation57_spill]] %s8093_s1 }
   0x2   :  { %8107 = sst [smem:[#allocation58_spill]] %s8094_s2 }
   0x3   :  { %8108 = sst [smem:[#allocation59_spill]] %s8095_s3 }
   0x4   :  { %8109 = sst [smem:[#allocation60_spill]] %s8096_s4 }
   0x5   :  { %14 = vsyncpa [#allocation4], 0 }
   0x6   :  { %16 = vsyncpa [#allocation4 + $0x1], 0 }
   0x7   :  { %17 = vsyncpa [#allocation7], 0 }
   0x8   :  { %18 = vsyncpa [#allocation10], 0 }
   0x9   :  { %19 = vsyncpa [#allocation13], 0 }
   0xa   :  { %20 = vsyncpa [#allocation16], 0 }
   0xb   :  { %21 = vsyncpa [#allocation5], 0 }
   0xc   :  { %23 = vsyncpa [#allocation5 + $0x1], 0  ;;  %s6741_s30 = smov 0   ;;  %s6743_s10 = smov 0  }
   0xd   :  { %s6745_s11 = smov 0   ;;  %s6747_s12 = smov 0  }
   0xe LB: > { %s8110_s1 = sld [smem:[#allocation57_spill]]  ;;  %s6765_s16 = sadd.s32 4294967295, %s6674_s12   ;;  %s6674_s12 = sphi %s6747_s12, %s8200_s12   ;;  %s6670_s11 = sphi %s6745_s11, %s8199_s11   ;;  %s6666_s10 = sphi %s6743_s10, %s8198_s10   ;;  %s6662_s30 = sphi %s6741_s30, %s8197_s30  }
   0xf   : > { %p6118_p0 = scmp.ge.s32.totalorder %s6674_s12, 1  ;;  %p50_p1 = scmp.eq.s32.totalorder %s6765_s16, 0 }
  0x10   : > { %p254_p2 = scmp.lt.s32.totalorder %s6674_s12, 3  ;;  %s6676_s18 = smov [#allocation6]  }
  0x11   : > { %s267_s19 = sshll.u32 %s6676_s18, 4  ;;  %s8112_s3 = sld [smem:[#allocation59_spill]]  ;;  %s268_s19 = int_to_ptr.vmem [resolvable:$true] %s267_s19 }
  0x12   : > { %p6770_p3 = pnand %p6118_p0, %p254_p2  ;;  %s318_s26 = sshll.u32 %s8097_s5, 4  ;;  %s319_s26 = int_to_ptr.hbm [resolvable:$true] %s318_s26 }
  0x13   : > { %s6677_s27 = smov [#allocation9]   ;;  %s8102_s29 = smov 512  }
  0x14   : > { %s265_s15 = sshll.u32 %s8110_s1, 4  ;;  %p6189_p4 = pneg %p6770_p3  ;;  %s266_s15 = int_to_ptr.hbm [resolvable:$true] %s265_s15 }
  0x15   : > { %s294_s28 = sshll.u32 %s6677_s27, 4  ;;  %s8103_s13 = smov 32   ;;  %s295_s28 = int_to_ptr.vmem [resolvable:$true] %s294_s28 }
  0x16   : > { %p6782_p6 = pnand %p6189_p4, %p50_p1  ;;  %s342_s20 = sshll.u32 %s8099_s7, 4  ;;  %s343_s20 = int_to_ptr.hbm [resolvable:$true] %s342_s20 }
  0x17   : > { %s292_s22 = sshll.u32 %s8112_s3, 4  ;;  %s6680_s21 = smov [#allocation12]   ;;  %s293_s22 = int_to_ptr.hbm [resolvable:$true] %s292_s22 }
  0x18   : > { %6192 = dma.hbm_to_vmem [thread:$0]  (!%p6782_p6), %s266_s15, 122880, %s268_s19, [#allocation7], %s8102_s29, %s8102_s29, %s8103_s13  }
  0x19   : > { %6198 = dma.hbm_to_vmem [thread:$0]  (!%p6782_p6), %s293_s22, 64, %s295_s28, [#allocation10]  }
  0x1a   : > { %s320_s24 = sshll.u32 %s6680_s21, 4  ;;  %s6681_s25 = smov [#allocation15]   ;;  %s321_s24 = int_to_ptr.vmem [resolvable:$true] %s320_s24 }
  0x1b   : > { %6204 = dma.hbm_to_vmem [thread:$0]  (!%p6782_p6), %s319_s26, 64, %s321_s24, [#allocation13]  }
  0x1c   : > { %s344_s27 = sshll.u32 %s6681_s25, 4  ;;  %s8114_s2 = sld [smem:[#allocation58_spill]]  ;;  %s345_s27 = int_to_ptr.vmem [resolvable:$true] %s344_s27 }
  0x1d   : > { %6210 = dma.hbm_to_vmem [thread:$0]  (!%p6782_p6), %s343_s20, 32, %s345_s27, [#allocation16]  }
  0x1e   : > { %s8115_s4 = sld [smem:[#allocation60_spill]]  ;;  %s6682_s14 = smov [#allocation8]  }
  0x1f   : > { %s282_s18 = sshll.u32 %s6682_s14, 4  ;;  %s6683_s26 = smov [#allocation11]   ;;  %s283_s18 = int_to_ptr.vmem [resolvable:$true] %s282_s18 }
  0x20   : > { %s305_s1 = sshll.u32 %s6683_s26, 4  ;;  %s330_s20 = sshll.u32 %s8098_s6, 4  ;;  %s306_s1 = int_to_ptr.vmem [resolvable:$true] %s305_s1  ;;  %s331_s20 = int_to_ptr.hbm [resolvable:$true] %s330_s20 }
  0x21   : > { %s354_s27 = sshll.u32 %s8100_s8, 4  ;;  %s6685_s22 = smov [#allocation17]   ;;  %s355_s27 = int_to_ptr.hbm [resolvable:$true] %s354_s27 }
  0x22   : > { %s280_s15 = sshll.u32 %s8114_s2, 4  ;;  %s6117_s14 = sadd.s32 4294967294, %s6674_s12   ;;  %s281_s15 = int_to_ptr.hbm [resolvable:$true] %s280_s15 }
  0x23   : > { %6195 = dma.hbm_to_vmem [thread:$0]  (!%p6782_p6), %s281_s15, 64, %s283_s18, [#allocation7]  }
  0x24   : > { %s303_s28 = sshll.u32 %s8115_s4, 4  ;;  %s6684_s15 = smov [#allocation14]   ;;  %s304_s28 = int_to_ptr.hbm [resolvable:$true] %s303_s28 }
  0x25   : > { %6201 = dma.hbm_to_vmem [thread:$0]  (!%p6782_p6), %s304_s28, 122880, %s306_s1, [#allocation10], %s8102_s29, %s8102_s29, %s8103_s13  }
  0x26   : > { %s332_s19 = sshll.u32 %s6684_s15, 4  ;;  %s356_s28 = sshll.u32 %s6685_s22, 4  ;;  %s333_s19 = int_to_ptr.vmem [resolvable:$true] %s332_s19  ;;  %s357_s28 = int_to_ptr.vmem [resolvable:$true] %s356_s28 }
  0x27   : > { %6207 = dma.hbm_to_vmem [thread:$0]  (!%p6782_p6), %s331_s20, 64, %s333_s19, [#allocation13]  }
  0x28   : > { %6213 = dma.hbm_to_vmem [thread:$0]  (!%p6782_p6), %s355_s27, 128, %s357_s28, [#allocation16]  }
  0x29   : > { %s6828_s18 = sadd.s32 1, %s6674_s12   ;;  %s36_s1 = sadd.s32 1, %s6670_s11 }
  0x2a   : > { %s33_s26 = ssub.s32 %s6674_s12, %s6828_s18  ;;  %p43_p8 = scmp.ne.s32.totalorder %s6670_s11, %s6666_s10 }
  0x2b   : > { %p34_p7 = scmp.eq.s32.totalorder %s33_s26, 0  ;;  %p44_p9 = scmp.eq.s32.totalorder %s6674_s12, 0 }
  0x2c   : > { %p49_p10 = scmp.ne.s32.totalorder %s6666_s10, %s6662_s30  ;;  %p241_p13 = scmp.eq.s32.totalorder %s6765_s16, 1 }
  0x2d   : > { %s6839_s3 = scalar_select %p34_p7, %s6670_s11, %s36_s1  }
  0x2e   : > { %p6841_p11 = por %p44_p9, %p43_p8  ;;  %p6847_p12 = por %p50_p1, %p49_p10 }
  0x2f   : > { %p247_p0 = scmp.eq.s32.totalorder %s6117_s14, 1  ;;  %p6230_p2 = scmp.lt.s32.totalorder %s6674_s12, 2 }
  0x30   : > { %s367_s20 = sand.u32 1, %s6670_s11   ;;  %p6854_p4 = por %p241_p13, %p43_p8 }
  0x31   : > { %p6858_p6 = por %p247_p0, %p49_p10  ;;  %s6128_s27 = sshll.u32 %s367_s20, 6 }
  0x32   : > { %s6151_s15 = sshll.u32 %s6674_s12, 6  ;;  %s371_s26 = scalar_lea.vmem [#allocation3], %s6128_s27 }
  0x33   : > { %s376_s28 = scalar_lea.hbm %s8092_s0, %s6151_s15  ;;  %s379_s1 = sshll.u32 %s371_s26, 4  ;;  %s380_s1 = int_to_ptr.vmem [resolvable:$true] %s379_s1 }
  0x34   : > { %s377_s29 = sshll.u32 %s376_s28, 4  ;;  %p6868_p7 = pnand %p6230_p2, %p6841_p11  ;;  %s378_s29 = int_to_ptr.hbm [resolvable:$true] %s377_s29 }
  0x35   : > { %s368_s13 = scalar_lea.sflag [#allocation4], %s367_s20  ;;  %s6562_s2 = sshra.s32 %s378_s29, 4  ;;  %s6563_s2 = int_to_ptr.hbm [resolvable:$true] %s6562_s2 }
  0x36   : > { %s6564_s4 = scalar_lea.hbm %s6563_s2, 64  ;;  %p6566_p9 = pneg %p6868_p7 }
  0x37   : > { %p6565_p8 = scmp.ne.s32.totalorder %s6563_s2, %s6564_s4  ;;  %s6569_s19 = scalar_lea.hbm %s8092_s0, 128 }
  0x38   : > { %p6570_p11 = scmp.lt.s32.totalorder %s6563_s2, %s8092_s0  ;;  %p6571_p0 = scmp.lt.s32.totalorder %s6569_s19, %s6564_s4 }
  0x39   : > { %p6567_p10 = pnand %p6566_p9, %p6565_p8 }
  0x3a   : > { %p6572_p2 = por %p6571_p0, %p6570_p11 }
  0x3b   : > { %p6568_p13 = pneg %p6567_p10 }
  0x3d   : > { %p6573_p5 = pnand %p6572_p2, %p6568_p13 }
  0x3f   : > { %6576 = shalt.err (!%p6573_p5)
}
  0x40   : > { %s8121_s20 = smov 32   ;;  %s8122_s28 = smov 512  }
  0x41   : > { %6217 = dma.hbm_to_vmem [thread:$0]  (!%p6868_p7), %s378_s29, 1024, %s380_s1, %s368_s13, %s8122_s28, %s8122_s28, %s8121_s20  }
  0x42   : > { %391 = sbr.rel (%p6770_p3) target bundleno = 1945 (0x799), region = 56 }
  0x47   : > { %s6888_s26 = sand.u32 1, %s6666_s10  }
  0x48   : > { %s6132_s2 = sshll.u32 %s6888_s26, 6  ;;  %s394_s4 = scalar_lea.sflag [#allocation4], %s6888_s26 }
  0x49   : > { %s6894_s27 = scalar_lea.vmem [#allocation3], %s6132_s2 }
  0x4a   : > { %6637 = dma.done.wait (%p6847_p12), %s394_s4, 1024  }
  0x4b   : > { %6639 = vsyncadd (%p6847_p12), %s394_s4, 4294966272 }
  0x4c   : > { %6641 = dma.done.wait (%p50_p1), [#allocation7], 122944  }
  0x4d   : > { %6643 = vsyncadd (%p50_p1), [#allocation7], 4294844352 }
  0x4e   : > { %6645 = dma.done.wait (%p50_p1), [#allocation10], 122944  }
  0x4f   : > { %6647 = vsyncadd (%p50_p1), [#allocation10], 4294844352 }
  0x50   : > { %6649 = dma.done.wait (%p50_p1), [#allocation13], 128  }
  0x51   : > { %6651 = vsyncadd (%p50_p1), [#allocation13], 4294967168 }
  0x52   : > { %6653 = dma.done.wait (%p50_p1), [#allocation16], 160  }
  0x53   : > { %6655 = vsyncadd (%p50_p1), [#allocation16], 4294967136  ;;  %v484_v0 = vld [vmem:[%s6894_s27 + $0x8] sm:$0xff]  ;;  %vm505_vm0 = vcmask 1041408   ;;  %v485_v4 = vld [vmem:[%s6894_s27 + $0x10] sm:$0xff]  ;;  %s6686_s17 = smov 64  }
  0x54   : > { %v6918_v1 = vld [vmem:[%s6894_s27 + $0x28] sm:$0xff]  ;;  %v507_v2 = vrot.slane %v484_v0, 6  ;;  %v486_v5 = vld [vmem:[%s6894_s27 + $0x18] sm:$0xff]  ;;  %v6924_v6 = vld [vmem:[%s6894_s27 + $0x30] sm:$0xff]  ;;  %v508_v15 = vrot.slane %v485_v4, 6  ;;  %v8104_v30 = vmov 0.0  }
  0x55   : > { %v512_v3 = vrot.slane %v6918_v1, 6  ;;  %v509_v7 = vrot.slane %v486_v5, 6  ;;  %v6927_v8 = vld [vmem:[%s6894_s27 + $0x38] sm:$0xff]  ;;  %v1116_v9 = vld [vmem:[#allocation6 + $0xfe0] sm:$0xff]  ;;  %v514_v16 = vrot.slane %v6924_v6, 6  ;;  %vm491_vm1 = vcmask 523266  }
  0x56   : > { %520 = vrot.lane.b32.xlu0 %v507_v2, %s6686_s17  ;;  %1345 = vmatpush.msra.mxu2 %v1116_v9  ;;  %v1180_v11 = vld [vmem:[#allocation6 + $0x11e0] sm:$0xff]  ;;  %v516_v17 = vrot.slane %v6927_v8, 6  ;;  %473 = vst [vmem:[#allocation2] sm:$0x3] %v8104_v30  ;;  %vm493_vm2 = vcmask 523264   ;;  %vm566_vm3 = vcmask 1048066  }
  0x57   : > { %v513_v10 = vsel %vm505_vm0, %v507_v2, %v512_v3  ;;  %v1112_v12 = vld [vmem:[#allocation6 + $0xfc0] sm:$0xff]  ;;  %524 = vrot.lane.b32.xlu2 %v509_v7, %s6686_s17  ;;  %1368 = vmatpush.msra.mxu3 %v1180_v11  ;;  %v515_v27 = vsel %vm505_vm0, %v508_v15, %v514_v16  ;;  %474 = vst [vmem:[#allocation2 + $0x8] sm:$0x3] %v8104_v30  ;;  %vm495_vm4 = vcmask 517120   ;;  %vm572_vm5 = vcmask 1048064   ;;  %s6688_s29 = smov 32  }
  0x58   : > { %528 = vrot.lane.b32.xlu1 %v513_v10, %s6686_s17  ;;  %v1176_v13 = vld [vmem:[#allocation6 + $0x11c0] sm:$0xff]  ;;  %1346 = vmatpush.msra.mxu2 %v1112_v12  ;;  %v517_v29 = vsel %vm505_vm0, %v509_v7, %v516_v17  ;;  %475 = vst [vmem:[#allocation2 + $0x10] sm:$0x3] %v8104_v30  ;;  %vm578_vm6 = vcmask 1041920   ;;  %vm1263_vm7 = vcmask 1045504   ;;  %vm2560_vm8 = vcmask 1043456  }
  0x59   : > { %v1108_v14 = vld [vmem:[#allocation6 + $0xfa0] sm:$0xff]  ;;  %1369 = vmatpush.msra.mxu3 %v1176_v13  ;;  %476 = vst [vmem:[#allocation2 + $0x18] sm:$0x3] %v8104_v30  ;;  %s6689_s13 = smov 96   ;;  %vm5796_vm9 = vcmask 254976   ;;  %s6152_s23 = sshll.u32 %s6765_s16, 6 }
  0x5a   : > { %v988_v18 = vld [vmem:[#allocation6 + $0xbe0] sm:$0xff]  ;;  %1347 = vmatpush.msra.mxu2 %v1108_v14  ;;  %477 = vst [vmem:[#allocation2 + $0x20] sm:$0x3] %v8104_v30  ;;  %s5964_s14 = scalar_lea.hbm %s8101_s9, %s6152_s23  ;;  %s472_s15 = scalar_lea.vmem [#allocation18], %s6132_s2 }
  0x5b   : > { %v1052_v19 = vld [vmem:[#allocation6 + $0xde0] sm:$0xff]  ;;  %1299 = vmatpush.msra.mxu0 %v988_v18  ;;  %478 = vst [vmem:[#allocation2 + $0x50] sm:$0xc] %v8104_v30  ;;  %v1049_v18 = vld [vmem:[#allocation6 + $0xdc8] sm:$0xff]  ;;  %s5965_s19 = sshll.u32 %s472_s15, 4  ;;  %s5967_s22 = sshll.u32 %s5964_s14, 4  ;;  %s5966_s19 = int_to_ptr.vmem [resolvable:$true] %s5965_s19  ;;  %s5968_s22 = int_to_ptr.hbm [resolvable:$true] %s5967_s22 }
  0x5c   : > { %v1172_v20 = vld [vmem:[#allocation6 + $0x11a0] sm:$0xff]  ;;  %1322 = vmatpush.msra.mxu1 %v1052_v19  ;;  %479 = vst [vmem:[#allocation2 + $0x58] sm:$0xc] %v8104_v30  ;;  %v1113_v19 = vld [vmem:[#allocation6 + $0xfc8] sm:$0xff]  ;;  %s5953_s21 = scalar_lea.sflag [#allocation5], %s6888_s26  ;;  %s6606_s20 = sshra.s32 %s5968_s22, 4  ;;  %s6607_s20 = int_to_ptr.hbm [resolvable:$true] %s6606_s20 }
  0x5d   : > { %v1104_v21 = vld [vmem:[#allocation6 + $0xf80] sm:$0xff]  ;;  %1370 = vmatpush.msra.mxu3 %v1172_v20  ;;  %480 = vst [vmem:[#allocation2 + $0x60] sm:$0xc] %v8104_v30  ;;  %s6608_s28 = scalar_lea.hbm %s6607_s20, 64  ;;  %p6613_p12 = scmp.lt.s32.totalorder %s6607_s20, %s8101_s9 }
  0x5e   : > { %v984_v22 = vld [vmem:[#allocation6 + $0xbc0] sm:$0xff]  ;;  %1348 = vmatpush.msra.mxu2 %v1104_v21  ;;  %522 = vrot.lane.b32.xlu0 %v508_v15, %s6686_s17  ;;  %481 = vst [vmem:[#allocation2 + $0x68] sm:$0xc] %v8104_v30  ;;  %v1053_v15 = vld [vmem:[#allocation6 + $0xde8] sm:$0xff]  ;;  %p6609_p1 = scmp.ne.s32.totalorder %s6607_s20, %s6608_s28 }
  0x5f   : > { %v1048_v23 = vld [vmem:[#allocation6 + $0xdc0] sm:$0xff]  ;;  %1300 = vmatpush.msra.mxu0 %v984_v22  ;;  %532 = vrot.lane.b32.xlu2 %v517_v29, %s6686_s17  ;;  %482 = vst [vmem:[#allocation2 + $0x70] sm:$0xc] %v8104_v30  ;;  %v1045_v22 = vld [vmem:[#allocation6 + $0xda8] sm:$0xff] }
  0x60   : > { %v1168_v24 = vld [vmem:[#allocation6 + $0x1180] sm:$0xff]  ;;  %1323 = vmatpush.msra.mxu1 %v1048_v23  ;;  %530 = vrot.lane.b32.xlu1 %v515_v27, %s6686_s17  ;;  %492 = vst.msk [vmem:[#allocation2] sm:$0xfc] %vm491_vm1, %v8104_v30  ;;  %v1109_v23 = vld [vmem:[#allocation6 + $0xfa8] sm:$0xff]  ;;  %p6610_p3 = pnand %p6609_p1, %p6854_p4 }
  0x61   : > { %v980_v25 = vld [vmem:[#allocation6 + $0xba0] sm:$0xff]  ;;  %1371 = vmatpush.msra.mxu3 %v1168_v24  ;;  %v1105_v27 = vld [vmem:[#allocation6 + $0xf88] sm:$0xff]  ;;  %494 = vst.msk [vmem:[#allocation2 + $0x28] sm:$0xff] %vm493_vm2, %v8104_v30 }
  0x62   : > { %v1044_v26 = vld [vmem:[#allocation6 + $0xda0] sm:$0xff]  ;;  %1301 = vmatpush.msra.mxu0 %v980_v25  ;;  %496 = vst.msk [vmem:[#allocation2 + $0x50] sm:$0x3] %vm495_vm4, %v8104_v30  ;;  %p6611_p5 = pneg %p6610_p3 }
  0x63   : > { %v483_v28 = vld [vmem:[%s6894_s27] sm:$0xff]  ;;  %1324 = vmatpush.msra.mxu1 %v1044_v26  ;;  %v1041_v26 = vld [vmem:[#allocation6 + $0xd88] sm:$0xff] }
  0x64   : > { %v6946_v31 = vld [vmem:[%s6894_s27 + $0x20] sm:$0xff]  ;;  %v506_v38 = vrot.slane %v483_v28, 6 }
  0x65   : > { %v1100_v32 = vld [vmem:[#allocation6 + $0xf60] sm:$0xff]  ;;  %v510_v39 = vrot.slane %v6946_v31, 6  ;;  %v989_v31 = vld [vmem:[#allocation6 + $0xbe8] sm:$0xff] }
  0x66   : > { %v1164_v33 = vld [vmem:[#allocation6 + $0x1160] sm:$0xff]  ;;  %1349 = vmatpush.msra.mxu2 %v1100_v32  ;;  %518 = vrot.lane.b32.xlu0 %v506_v38, %s6686_s17  ;;  %v1037_v32 = vld [vmem:[#allocation6 + $0xd68] sm:$0xff] }
  0x67   : > { %v976_v34 = vld [vmem:[#allocation6 + $0xb80] sm:$0xff]  ;;  %1372 = vmatpush.msra.mxu3 %v1164_v33  ;;  %v511_v47 = vsel %vm505_vm0, %v506_v38, %v510_v39  ;;  %536 = vrot.lane.b32.xlu2 %v512_v3, %s6686_s17  ;;  %v1101_v33 = vld [vmem:[#allocation6 + $0xf68] sm:$0xff] }
  0x68   : > { %v1040_v35 = vld [vmem:[#allocation6 + $0xd80] sm:$0xff]  ;;  %1302 = vmatpush.msra.mxu0 %v976_v34  ;;  %526 = vrot.lane.b32.xlu1 %v511_v47, %s6686_s17  ;;  %v973_v47 = vld [vmem:[#allocation6 + $0xb68] sm:$0xff] }
  0x69   : > { %v1096_v36 = vld [vmem:[#allocation6 + $0xf40] sm:$0xff]  ;;  %1325 = vmatpush.msra.mxu1 %v1040_v35  ;;  %v985_v35 = vld [vmem:[#allocation6 + $0xbc8] sm:$0xff] }
  0x6a   : > { %v1160_v37 = vld [vmem:[#allocation6 + $0x1140] sm:$0xff]  ;;  %1350 = vmatpush.msra.mxu2 %v1096_v36  ;;  %v1033_v36 = vld [vmem:[#allocation6 + $0xd48] sm:$0xff] }
  0x6b   : > { %v972_v40 = vld [vmem:[#allocation6 + $0xb60] sm:$0xff]  ;;  %1373 = vmatpush.msra.mxu3 %v1160_v37  ;;  %v1097_v37 = vld [vmem:[#allocation6 + $0xf48] sm:$0xff] }
  0x6c   : > { %v1036_v41 = vld [vmem:[#allocation6 + $0xd60] sm:$0xff]  ;;  %1303 = vmatpush.msra.mxu0 %v972_v40  ;;  %v1029_v40 = vld [vmem:[#allocation6 + $0xd28] sm:$0xff] }
  0x6d   : > { %v1092_v42 = vld [vmem:[#allocation6 + $0xf20] sm:$0xff]  ;;  %1326 = vmatpush.msra.mxu1 %v1036_v41  ;;  %v1093_v41 = vld [vmem:[#allocation6 + $0xf28] sm:$0xff] }
  0x6e   : > { %v1156_v43 = vld [vmem:[#allocation6 + $0x1120] sm:$0xff]  ;;  %1351 = vmatpush.msra.mxu2 %v1092_v42  ;;  %538 = vrot.lane.b32.xlu0 %v514_v16, %s6686_s17  ;;  %v1117_v16 = vld [vmem:[#allocation6 + $0xfe8] sm:$0xff] }
  0x6f   : > { %v968_v44 = vld [vmem:[#allocation6 + $0xb40] sm:$0xff]  ;;  %1374 = vmatpush.msra.mxu3 %v1156_v43  ;;  %534 = vrot.lane.b32.xlu2 %v510_v39, %s6686_s17  ;;  %v981_v39 = vld [vmem:[#allocation6 + $0xba8] sm:$0xff] }
  0x70   : > { %v1032_v45 = vld [vmem:[#allocation6 + $0xd40] sm:$0xff]  ;;  %1304 = vmatpush.msra.mxu0 %v968_v44  ;;  %540 = vrot.lane.b32.xlu1 %v516_v17, %s6686_s17  ;;  %v977_v43 = vld [vmem:[#allocation6 + $0xb88] sm:$0xff] }
  0x71   : > { %v1088_v46 = vld [vmem:[#allocation6 + $0xf00] sm:$0xff]  ;;  %1327 = vmatpush.msra.mxu1 %v1032_v45  ;;  %v1025_v44 = vld [vmem:[#allocation6 + $0xd08] sm:$0xff] }
  0x72   : > { %v1152_v48 = vld [vmem:[#allocation6 + $0x1100] sm:$0xff]  ;;  %1352 = vmatpush.msra.mxu2 %v1088_v46  ;;  %v1089_v45 = vld [vmem:[#allocation6 + $0xf08] sm:$0xff] }
  0x73   : > { %v1084_v49 = vld [vmem:[#allocation6 + $0xee0] sm:$0xff]  ;;  %1375 = vmatpush.msra.mxu3 %v1152_v48  ;;  %v1021_v48 = vld [vmem:[#allocation6 + $0xce8] sm:$0xff] }
  0x74   : > { %v964_v50 = vld [vmem:[#allocation6 + $0xb20] sm:$0xff]  ;;  %1353 = vmatpush.msra.mxu2 %v1084_v49  ;;  %v1085_v49 = vld [vmem:[#allocation6 + $0xee8] sm:$0xff] }
  0x75   : > { %v1028_v51 = vld [vmem:[#allocation6 + $0xd20] sm:$0xff]  ;;  %1305 = vmatpush.msra.mxu0 %v964_v50 }
  0x76   : > { %v1148_v52 = vld [vmem:[#allocation6 + $0x10e0] sm:$0xff]  ;;  %1328 = vmatpush.msra.mxu1 %v1028_v51  ;;  %v969_v51 = vld [vmem:[#allocation6 + $0xb48] sm:$0xff] }
  0x77   : > { %v1080_v53 = vld [vmem:[#allocation6 + $0xec0] sm:$0xff]  ;;  %1376 = vmatpush.msra.mxu3 %v1148_v52  ;;  %v1017_v52 = vld [vmem:[#allocation6 + $0xcc8] sm:$0xff] }
  0x78   : > { %v960_v54 = vld [vmem:[#allocation6 + $0xb00] sm:$0xff]  ;;  %1354 = vmatpush.msra.mxu2 %v1080_v53  ;;  %v1081_v53 = vld [vmem:[#allocation6 + $0xec8] sm:$0xff] }
  0x79   : > { %v1024_v55 = vld [vmem:[#allocation6 + $0xd00] sm:$0xff]  ;;  %1306 = vmatpush.msra.mxu0 %v960_v54 }
  0x7a   : > { %v1144_v56 = vld [vmem:[#allocation6 + $0x10c0] sm:$0xff]  ;;  %1329 = vmatpush.msra.mxu1 %v1024_v55 }
  0x7b   : > { %v1076_v57 = vld [vmem:[#allocation6 + $0xea0] sm:$0xff]  ;;  %1377 = vmatpush.msra.mxu3 %v1144_v56  ;;  %v965_v56 = vld [vmem:[#allocation6 + $0xb28] sm:$0xff] }
  0x7c   : > { %v956_v58 = vld [vmem:[#allocation6 + $0xae0] sm:$0xff]  ;;  %1355 = vmatpush.msra.mxu2 %v1076_v57  ;;  %v1013_v57 = vld [vmem:[#allocation6 + $0xca8] sm:$0xff] }
  0x7d   : > { %v1020_v59 = vld [vmem:[#allocation6 + $0xce0] sm:$0xff]  ;;  %1307 = vmatpush.msra.mxu0 %v956_v58  ;;  %v1077_v58 = vld [vmem:[#allocation6 + $0xea8] sm:$0xff] }
  0x7e   : > { %v1140_v60 = vld [vmem:[#allocation6 + $0x10a0] sm:$0xff]  ;;  %1330 = vmatpush.msra.mxu1 %v1020_v59 }
  0x7f   : > { %v1072_v61 = vld [vmem:[#allocation6 + $0xe80] sm:$0xff]  ;;  %1378 = vmatpush.msra.mxu3 %v1140_v60  ;;  %v961_v60 = vld [vmem:[#allocation6 + $0xb08] sm:$0xff] }
  0x80   : > { %v1136_v62 = vld [vmem:[#allocation6 + $0x1080] sm:$0xff]  ;;  %1356 = vmatpush.msra.mxu2 %v1072_v61  ;;  %v1009_v61 = vld [vmem:[#allocation6 + $0xc88] sm:$0xff] }
  0x81   : > { %v952_v63 = vld [vmem:[#allocation6 + $0xac0] sm:$0xff]  ;;  %1379 = vmatpush.msra.mxu3 %v1136_v62  ;;  %v1073_v62 = vld [vmem:[#allocation6 + $0xe88] sm:$0xff] }
  0x82   : > { %v1016_v0 = vld [vmem:[#allocation6 + $0xcc0] sm:$0xff]  ;;  %1308 = vmatpush.msra.mxu0 %v952_v63 }
  0x83   : > { %v1068_v1 = vld [vmem:[#allocation6 + $0xe60] sm:$0xff]  ;;  %1331 = vmatpush.msra.mxu1 %v1016_v0  ;;  %v957_v0 = vld [vmem:[#allocation6 + $0xae8] sm:$0xff] }
  0x84   : > { %v1132_v2 = vld [vmem:[#allocation6 + $0x1060] sm:$0xff]  ;;  %1357 = vmatpush.msra.mxu2 %v1068_v1  ;;  %v1005_v1 = vld [vmem:[#allocation6 + $0xc68] sm:$0xff] }
  0x85   : > { %v948_v3 = vld [vmem:[#allocation6 + $0xaa0] sm:$0xff]  ;;  %1380 = vmatpush.msra.mxu3 %v1132_v2  ;;  %v1069_v2 = vld [vmem:[#allocation6 + $0xe68] sm:$0xff] }
  0x86   : > { %v1012_v4 = vld [vmem:[#allocation6 + $0xca0] sm:$0xff]  ;;  %1309 = vmatpush.msra.mxu0 %v948_v3 }
  0x87   : > { %v1064_v5 = vld [vmem:[#allocation6 + $0xe40] sm:$0xff]  ;;  %1332 = vmatpush.msra.mxu1 %v1012_v4  ;;  %v953_v4 = vld [vmem:[#allocation6 + $0xac8] sm:$0xff] }
  0x88   : > { %v1128_v6 = vld [vmem:[#allocation6 + $0x1040] sm:$0xff]  ;;  %1358 = vmatpush.msra.mxu2 %v1064_v5  ;;  %v1001_v5 = vld [vmem:[#allocation6 + $0xc48] sm:$0xff] }
  0x89   : > { %v944_v7 = vld [vmem:[#allocation6 + $0xa80] sm:$0xff]  ;;  %1381 = vmatpush.msra.mxu3 %v1128_v6  ;;  %v1065_v6 = vld [vmem:[#allocation6 + $0xe48] sm:$0xff] }
  0x8a   : > { %v1008_v9 = vld [vmem:[#allocation6 + $0xc80] sm:$0xff]  ;;  %1310 = vmatpush.msra.mxu0 %v944_v7 }
  0x8b   : > { %v1060_v8 = vld [vmem:[#allocation6 + $0xe20] sm:$0xff]  ;;  %1333 = vmatpush.msra.mxu1 %v1008_v9 }
  0x8c   : > { %v1124_v10 = vld [vmem:[#allocation6 + $0x1020] sm:$0xff]  ;;  %1359 = vmatpush.msra.mxu2 %v1060_v8  ;;  %v949_v8 = vld [vmem:[#allocation6 + $0xaa8] sm:$0xff] }
  0x8d   : > { %v940_v11 = vld [vmem:[#allocation6 + $0xa60] sm:$0xff]  ;;  %1382 = vmatpush.msra.mxu3 %v1124_v10  ;;  %v997_v10 = vld [vmem:[#allocation6 + $0xc28] sm:$0xff] }
  0x8e   : > { %v1004_v12 = vld [vmem:[#allocation6 + $0xc60] sm:$0xff]  ;;  %1311 = vmatpush.msra.mxu0 %v940_v11  ;;  %v1061_v11 = vld [vmem:[#allocation6 + $0xe28] sm:$0xff] }
  0x8f   : > { %v1056_v13 = vld [vmem:[#allocation6 + $0xe00] sm:$0xff]  ;;  %1334 = vmatpush.msra.mxu1 %v1004_v12 }
  0x90   : > { %v1120_v14 = vld [vmem:[#allocation6 + $0x1000] sm:$0xff]  ;;  %1360 = vmatpush.msra.mxu2 %v1056_v13  ;;  %v945_v13 = vld [vmem:[#allocation6 + $0xa88] sm:$0xff] }
  0x91   : > { %v936_v17 = vld [vmem:[#allocation6 + $0xa40] sm:$0xff]  ;;  %1383 = vmatpush.msra.mxu3 %v1120_v14  ;;  %v993_v14 = vld [vmem:[#allocation6 + $0xc08] sm:$0xff] }
  0x92   : > { %1437 = vmatpush.msrb.mxu2 %v1053_v15  ;;  %1312 = vmatpush.msra.mxu0 %v936_v17  ;;  %v1000_v20 = vld [vmem:[#allocation6 + $0xc40] sm:$0xff]  ;;  %v1057_v15 = vld [vmem:[#allocation6 + $0xe08] sm:$0xff] }
  0x93   : > { %1460 = vmatpush.msrb.mxu3 %v1117_v16  ;;  %v932_v21 = vld [vmem:[#allocation6 + $0xa20] sm:$0xff]  ;;  %1335 = vmatpush.msra.mxu1 %v1000_v20  ;;  %v941_v17 = vld [vmem:[#allocation6 + $0xa68] sm:$0xff] }
  0x94   : > { %1438 = vmatpush.msrb.mxu2 %v1049_v18  ;;  %1313 = vmatpush.msra.mxu0 %v932_v21  ;;  %v996_v24 = vld [vmem:[#allocation6 + $0xc20] sm:$0xff]  ;;  %v937_v20 = vld [vmem:[#allocation6 + $0xa48] sm:$0xff] }
  0x95   : > { %1461 = vmatpush.msrb.mxu3 %v1113_v19  ;;  %v928_v25 = vld [vmem:[#allocation6 + $0xa00] sm:$0xff]  ;;  %1336 = vmatpush.msra.mxu1 %v996_v24  ;;  %v929_v24 = vld [vmem:[#allocation6 + $0xa08] sm:$0xff] }
  0x96   : > { %1439 = vmatpush.msrb.mxu2 %v1045_v22  ;;  %v992_v28 = vld [vmem:[#allocation6 + $0xc00] sm:$0xff]  ;;  %1314 = vmatpush.msra.mxu0 %v928_v25  ;;  %v933_v22 = vld [vmem:[#allocation6 + $0xa28] sm:$0xff] }
  0x97   : > { %1462 = vmatpush.msrb.mxu3 %v1109_v23  ;;  %v1244_v29 = vld [vmem:[#allocation6 + $0x13e0] sm:$0xff]  ;;  %1337 = vmatpush.msra.mxu1 %v992_v28 }
  0x98   : > { %1440 = vmatpush.msrb.mxu2 %v1041_v26  ;;  %v1240_v34 = vld [vmem:[#allocation6 + $0x13c0] sm:$0xff]  ;;  %1391 = vmatpush.msrb.mxu0 %v1244_v29 }
  0x99   : > { %1463 = vmatpush.msrb.mxu3 %v1105_v27  ;;  %1414 = vmatpush.msrb.mxu1 %v989_v31  ;;  %v1236_v38 = vld [vmem:[#allocation6 + $0x13a0] sm:$0xff] }
  0x9a   : > { %1441 = vmatpush.msrb.mxu2 %v1037_v32  ;;  %1392 = vmatpush.msrb.mxu0 %v1240_v34  ;;  %v1232_v42 = vld [vmem:[#allocation6 + $0x1380] sm:$0xff] }
  0x9b   : > { %1464 = vmatpush.msrb.mxu3 %v1101_v33  ;;  %1415 = vmatpush.msrb.mxu1 %v985_v35  ;;  %v1228_v46 = vld [vmem:[#allocation6 + $0x1360] sm:$0xff] }
  0x9c   : > { %1442 = vmatpush.msrb.mxu2 %v1033_v36  ;;  %1393 = vmatpush.msrb.mxu0 %v1236_v38  ;;  %v1224_v50 = vld [vmem:[#allocation6 + $0x1340] sm:$0xff] }
  0x9d   : > { %1465 = vmatpush.msrb.mxu3 %v1097_v37  ;;  %1416 = vmatpush.msrb.mxu1 %v981_v39  ;;  %v1220_v55 = vld [vmem:[#allocation6 + $0x1320] sm:$0xff] }
  0x9e   : > { %1443 = vmatpush.msrb.mxu2 %v1029_v40  ;;  %1394 = vmatpush.msrb.mxu0 %v1232_v42  ;;  %v1216_v59 = vld [vmem:[#allocation6 + $0x1300] sm:$0xff] }
  0x9f   : > { %1466 = vmatpush.msrb.mxu3 %v1093_v41  ;;  %1417 = vmatpush.msrb.mxu1 %v977_v43  ;;  %v1212_v63 = vld [vmem:[#allocation6 + $0x12e0] sm:$0xff] }
  0xa0   : > { %1444 = vmatpush.msrb.mxu2 %v1025_v44  ;;  %1395 = vmatpush.msrb.mxu0 %v1228_v46  ;;  %v1208_v3 = vld [vmem:[#allocation6 + $0x12c0] sm:$0xff] }
  0xa1   : > { %1467 = vmatpush.msrb.mxu3 %v1089_v45  ;;  %1418 = vmatpush.msrb.mxu1 %v973_v47  ;;  %v1204_v9 = vld [vmem:[#allocation6 + $0x12a0] sm:$0xff]  ;;  %v990_v45 = vld [vmem:[#allocation6 + $0xbf0] sm:$0xff] }
  0xa2   : > { %1445 = vmatpush.msrb.mxu2 %v1021_v48  ;;  %1396 = vmatpush.msrb.mxu0 %v1224_v50  ;;  %v1200_v12 = vld [vmem:[#allocation6 + $0x1280] sm:$0xff]  ;;  %v1054_v47 = vld [vmem:[#allocation6 + $0xdf0] sm:$0xff] }
  0xa3   : > { %1468 = vmatpush.msrb.mxu3 %v1085_v49  ;;  %1419 = vmatpush.msrb.mxu1 %v969_v51  ;;  %v1196_v16 = vld [vmem:[#allocation6 + $0x1260] sm:$0xff]  ;;  %v986_v49 = vld [vmem:[#allocation6 + $0xbd0] sm:$0xff] }
  0xa4   : > { %1446 = vmatpush.msrb.mxu2 %v1017_v52  ;;  %1397 = vmatpush.msrb.mxu0 %v1220_v55  ;;  %v1192_v18 = vld [vmem:[#allocation6 + $0x1240] sm:$0xff]  ;;  %v1050_v50 = vld [vmem:[#allocation6 + $0xdd0] sm:$0xff] }
  0xa5   : > { %1469 = vmatpush.msrb.mxu3 %v1081_v53  ;;  %1420 = vmatpush.msrb.mxu1 %v965_v56  ;;  %v1188_v21 = vld [vmem:[#allocation6 + $0x1220] sm:$0xff]  ;;  %v982_v52 = vld [vmem:[#allocation6 + $0xbb0] sm:$0xff] }
  0xa6   : > { %1447 = vmatpush.msrb.mxu2 %v1013_v57  ;;  %1398 = vmatpush.msrb.mxu0 %v1216_v59  ;;  %v1184_v23 = vld [vmem:[#allocation6 + $0x1200] sm:$0xff] }
  0xa7   : > { %1470 = vmatpush.msrb.mxu3 %v1077_v58  ;;  %1421 = vmatpush.msrb.mxu1 %v961_v60  ;;  %v978_v58 = vld [vmem:[#allocation6 + $0xb90] sm:$0xff] }
  0xa8   : > { %1448 = vmatpush.msrb.mxu2 %v1009_v61  ;;  %1399 = vmatpush.msrb.mxu0 %v1212_v63 }
  0xa9   : > { %1471 = vmatpush.msrb.mxu3 %v1073_v62  ;;  %1422 = vmatpush.msrb.mxu1 %v957_v0  ;;  %v1042_v62 = vld [vmem:[#allocation6 + $0xd90] sm:$0xff] }
  0xaa   : > { %1449 = vmatpush.msrb.mxu2 %v1005_v1  ;;  %1400 = vmatpush.msrb.mxu0 %v1208_v3  ;;  %v1245_v3 = vld [vmem:[#allocation6 + $0x13e8] sm:$0xff] }
  0xab   : > { %1472 = vmatpush.msrb.mxu3 %v1069_v2  ;;  %1423 = vmatpush.msrb.mxu1 %v953_v4  ;;  %v1181_v4 = vld [vmem:[#allocation6 + $0x11e8] sm:$0xff] }
  0xac   : > { %1450 = vmatpush.msrb.mxu2 %v1001_v5  ;;  %1401 = vmatpush.msrb.mxu0 %v1204_v9  ;;  %v1038_v9 = vld [vmem:[#allocation6 + $0xd70] sm:$0xff] }
  0xad   : > { %1473 = vmatpush.msrb.mxu3 %v1065_v6  ;;  %1424 = vmatpush.msrb.mxu1 %v949_v8  ;;  %v974_v6 = vld [vmem:[#allocation6 + $0xb70] sm:$0xff]  ;;  %v1241_v8 = vld [vmem:[#allocation6 + $0x13c8] sm:$0xff] }
  0xae   : > { %1451 = vmatpush.msrb.mxu2 %v997_v10  ;;  %1402 = vmatpush.msrb.mxu0 %v1200_v12  ;;  %v1177_v10 = vld [vmem:[#allocation6 + $0x11c8] sm:$0xff] }
  0xaf   : > { %1474 = vmatpush.msrb.mxu3 %v1061_v11  ;;  %1425 = vmatpush.msrb.mxu1 %v945_v13  ;;  %v970_v11 = vld [vmem:[#allocation6 + $0xb50] sm:$0xff] }
  0xb0   : > { %1452 = vmatpush.msrb.mxu2 %v993_v14  ;;  %1403 = vmatpush.msrb.mxu0 %v1196_v16  ;;  %v1034_v13 = vld [vmem:[#allocation6 + $0xd50] sm:$0xff]  ;;  %v1237_v14 = vld [vmem:[#allocation6 + $0x13a8] sm:$0xff] }
  0xb1   : > { %v6982_v54 = vpop.permute.xlu2 %524  ;;  %1475 = vmatpush.msrb.mxu3 %v1057_v15  ;;  %1426 = vmatpush.msrb.mxu1 %v941_v17  ;;  %v1173_v15 = vld [vmem:[#allocation6 + $0x11a8] sm:$0xff]  ;;  %v966_v16 = vld [vmem:[#allocation6 + $0xb30] sm:$0xff] }
  0xb2   : > { %571 = vst.msk [vmem:[#allocation2 + $0x20] sm:$0xfc] %vm491_vm1, %v6982_v54  ;;  %1404 = vmatpush.msrb.mxu0 %v1192_v18  ;;  %v1030_v18 = vld [vmem:[#allocation6 + $0xd30] sm:$0xff] }
  0xb3   : > { %584 = vst.msk [vmem:[#allocation2 + $0x20] sm:$0xfc] %vm566_vm3, %v8104_v30  ;;  %1427 = vmatpush.msrb.mxu1 %v937_v20 }
  0xb4   : > { %1405 = vmatpush.msrb.mxu0 %v1188_v21 }
  0xb5   : > { %1428 = vmatpush.msrb.mxu1 %v933_v22  ;;  %v1169_v22 = vld [vmem:[#allocation6 + $0x1188] sm:$0xff] }
  0xb6   : > { %1406 = vmatpush.msrb.mxu0 %v1184_v23  ;;  %v962_v23 = vld [vmem:[#allocation6 + $0xb10] sm:$0xff] }
  0xb7   : > { %1429 = vmatpush.msrb.mxu1 %v929_v24 }
  0xb9   : > { %v533_v7 = vpop.permute.xlu2 %532 }
  0xba   : > { %577 = vst.msk [vmem:[#allocation2 + $0x48] sm:$0xff] %vm493_vm2, %v533_v7 }
  0xbb   : > { %585 = vst.msk [vmem:[#allocation2 + $0x48] sm:$0xff] %vm572_vm5, %v8104_v30 }
  0xc1   : > { %v537_v19 = vpop.permute.xlu2 %536 }
  0xc8   : > { %v521_v25 = vpop.permute.xlu0 %520 }
  0xc9   : > { %v535_v27 = vpop.permute.xlu2 %534 }
  0xca   : > { %v529_v26 = vpop.permute.xlu1 %528  ;;  %v548_v28 = vsel %vm493_vm2, %v535_v27, %v537_v19  ;;  %579 = vst.msk [vmem:[#allocation2 + $0x50] sm:$0x3] %vm578_vm6, %v535_v27 }
  0xcb   : > { %580 = vst [vmem:[#allocation2 + $0x58] sm:$0x3] %v548_v28 }
  0xd0   : > { %v523_v29 = vpop.permute.xlu0 %522 }
  0xd1   : > { %v543_v31 = vsel %vm493_vm2, %v521_v25, %v523_v29  ;;  %v544_v32 = vsel %vm493_vm2, %v523_v29, %v6982_v54  ;;  %v1046_v54 = vld [vmem:[#allocation6 + $0xdb0] sm:$0xff]  ;;  %v922_v12 = vld [vmem:[#allocation2 + $0x50] sm:$0x3] }
  0xd2   : > { %v531_v33 = vpop.permute.xlu1 %530  ;;  %569 = vst [vmem:[#allocation2 + $0x10] sm:$0xfc] %v543_v31  ;;  %v923_v17 = vld [vmem:[#allocation2 + $0x58] sm:$0x3]  ;;  %v1279_v20 = vrot.slane %v922_v12, 2  ;;  %v1165_v31 = vld [vmem:[#allocation6 + $0x1168] sm:$0xff] }
  0xd3   : > { %570 = vst [vmem:[#allocation2 + $0x18] sm:$0xfc] %v544_v32  ;;  %v6999_v34 = vsel %vm493_vm2, %v529_v26, %v531_v33  ;;  %v7002_v35 = vsel %vm493_vm2, %v531_v33, %v533_v7  ;;  %v1281_v27 = vrot.slane %v923_v17, 2  ;;  %v1201_v17 = vld [vmem:[#allocation6 + $0x1288] sm:$0xff] }
  0xd4   : > { %v1271_v41 = vrot.slane %v6999_v34, 2  ;;  %v1274_v44 = vrot.slane %v7002_v35, 2 }
  0xd8   : > { %v519_v36 = vpop.permute.xlu0 %518 }
  0xd9   : > { %v542_v37 = vsel %vm493_vm2, %v519_v36, %v521_v25  ;;  %567 = vst.msk [vmem:[#allocation2] sm:$0xfc] %vm566_vm3, %v519_v36  ;;  %v919_v39 = vld [vmem:[#allocation2 + $0x10] sm:$0xfc]  ;;  %v1229_v36 = vld [vmem:[#allocation6 + $0x1368] sm:$0xff] }
  0xda   : > { %v527_v38 = vpop.permute.xlu1 %526  ;;  %568 = vst [vmem:[#allocation2 + $0x8] sm:$0xfc] %v542_v37  ;;  %v1270_v40 = vrot.slane %v919_v39, 2  ;;  %v920_v42 = vld [vmem:[#allocation2 + $0x18] sm:$0xfc]  ;;  %v958_v37 = vld [vmem:[#allocation6 + $0xaf0] sm:$0xff] }
  0xdb   : > { %573 = vst.msk [vmem:[#allocation2 + $0x28] sm:$0xff] %vm572_vm5, %v527_v38  ;;  %v1273_v43 = vrot.slane %v920_v42, 2  ;;  %v7022_v51 = vsel %vm493_vm2, %v527_v38, %v529_v26  ;;  %v1026_v26 = vld [vmem:[#allocation6 + $0xd10] sm:$0xff]  ;;  %v921_v39 = vld [vmem:[#allocation2 + $0x20] sm:$0xfc] }
  0xdc   : > { %v7012_v46 = vsel %vm1263_vm7, %v1270_v40, %v1271_v41  ;;  %v1268_v1 = vrot.slane %v7022_v51, 2  ;;  %v7059_v38 = vld [vmem:[#allocation2 + $0x48] sm:$0xff]  ;;  %v1161_v42 = vld [vmem:[#allocation6 + $0x1148] sm:$0xff] }
  0xdd   : > { %1361 = vmatmul.f32.vlgmr.msra.gmra.mxu2 %v7012_v46  ;;  %v7018_v48 = vsel %vm1263_vm7, %v1273_v43, %v1274_v44  ;;  %v1225_v43 = vld [vmem:[#allocation6 + $0x1348] sm:$0xff] }
  0xde   : > { %1384 = vmatmul.f32.vlgmr.msra.gmra.mxu3 %v7018_v48  ;;  %1529 = vmatpush.msra.mxu2 %v990_v45  ;;  %v7065_v40 = vsel %vm1263_vm7, %v1268_v1, %v1281_v27  ;;  %v1018_v45 = vld [vmem:[#allocation6 + $0xcd0] sm:$0xff]  ;;  %v987_v27 = vld [vmem:[#allocation6 + $0xbd8] sm:$0xff] }
  0xdf   : > { %1552 = vmatpush.msra.mxu3 %v1054_v47  ;;  %v1157_v47 = vld [vmem:[#allocation6 + $0x1128] sm:$0xff] }
  0xe0   : > { %1530 = vmatpush.msra.mxu2 %v986_v49  ;;  %v539_v53 = vpop.permute.xlu0 %538  ;;  %v917_v55 = vld [vmem:[#allocation2] sm:$0xfc]  ;;  %v1276_v49 = vrot.slane %v921_v39, 2 }
  0xe1   : > { %1553 = vmatpush.msra.mxu3 %v1050_v50  ;;  %v549_v56 = vsel %vm493_vm2, %v537_v19, %v539_v53  ;;  %v1264_v59 = vrot.slane %v917_v55, 2  ;;  %v918_v60 = vld [vmem:[#allocation2 + $0x8] sm:$0xfc]  ;;  %v1233_v19 = vld [vmem:[#allocation6 + $0x1388] sm:$0xff]  ;;  %v1277_v50 = vrot.slane %v7059_v38, 2 }
  0xe2   : > { %v541_v57 = vpop.permute.xlu1 %540  ;;  %581 = vst [vmem:[#allocation2 + $0x60] sm:$0x3] %v549_v56  ;;  %1531 = vmatpush.msra.mxu2 %v982_v52  ;;  %v7026_v63 = vld [vmem:[#allocation2 + $0x28] sm:$0xff]  ;;  %v1267_v0 = vrot.slane %v918_v60, 2  ;;  %v1221_v52 = vld [vmem:[#allocation6 + $0x1328] sm:$0xff] }
  0xe3   : > { %v550_v61 = vsel %vm493_vm2, %v539_v53, %v541_v57  ;;  %1554 = vmatpush.msra.mxu3 %v1046_v54  ;;  %v1265_v2 = vrot.slane %v7026_v63, 2  ;;  %583 = vst.msk [vmem:[#allocation2 + $0x70] sm:$0x3] %vm495_vm4, %v541_v57  ;;  %v950_v53 = vld [vmem:[#allocation6 + $0xab0] sm:$0xff]  ;;  %v1153_v55 = vld [vmem:[#allocation6 + $0x1108] sm:$0xff] }
  0xe4   : > { %582 = vst [vmem:[#allocation2 + $0x68] sm:$0x3] %v550_v61  ;;  %1532 = vmatpush.msra.mxu2 %v978_v58  ;;  %v7034_v5 = vsel %vm1263_vm7, %v1267_v0, %v1268_v1  ;;  %v1014_v54 = vld [vmem:[#allocation6 + $0xcb0] sm:$0xff]  ;;  %v7070_v56 = vld [vmem:[#allocation2] sm:$0xff]  ;;  %v7077_v61 = vsel %vm1263_vm7, %v1276_v49, %v1277_v50  ;;  %v7079_v0 = vld [vmem:[#allocation2 + $0x50] sm:$0xf] }
  0xe5   : > { %586 = vst.msk [vmem:[#allocation2 + $0x70] sm:$0x3] %vm578_vm6, %v8104_v30  ;;  %1555 = vmatpush.msra.mxu3 %v1042_v62  ;;  %v7039_v7 = vsel %vm1263_vm7, %v1264_v59, %v1265_v2  ;;  %1338 = vmatmul.f32.vlgmr.msra.gmra.mxu1 %v7034_v5  ;;  %v7051_v32 = vsel %vm1263_vm7, %v1265_v2, %v1279_v20  ;;  %v7072_v57 = vld [vmem:[#allocation2] sm:$0xf0]  ;;  %v946_v59 = vld [vmem:[#allocation6 + $0xa90] sm:$0xff]  ;;  %v975_v49 = vld [vmem:[#allocation6 + $0xb78] sm:$0xff] }
  0xe6   : > { %1315 = vmatmul.f32.vlgmr.msra.gmra.mxu0 %v7039_v7  ;;  %3109 = vst.msk [vmem:[#allocation2 + $0x28] sm:$0xff] %vm493_vm2, %v8104_v30  ;;  %1506 = vmatpush.msra.mxu1 %v1245_v3  ;;  %v1217_v58 = vld [vmem:[#allocation6 + $0x1308] sm:$0xff]  ;;  %v1010_v60 = vld [vmem:[#allocation6 + $0xc90] sm:$0xff] }
  0xe7   : > { %1483 = vmatpush.msra.mxu0 %v1181_v4  ;;  %1533 = vmatpush.msra.mxu2 %v974_v6  ;;  %3108 = vst.msk [vmem:[#allocation2] sm:$0xfc] %vm491_vm1, %v8104_v30  ;;  %v1149_v62 = vld [vmem:[#allocation6 + $0x10e8] sm:$0xff]  ;;  %v942_v2 = vld [vmem:[#allocation6 + $0xa70] sm:$0xff] }
  0xe8   : > { %1556 = vmatpush.msra.mxu3 %v1038_v9  ;;  %1507 = vmatpush.msra.mxu1 %v1241_v8  ;;  %3110 = vst.msk [vmem:[#allocation2 + $0x50] sm:$0x3] %vm495_vm4, %v8104_v30  ;;  %v1213_v1 = vld [vmem:[#allocation6 + $0x12e8] sm:$0xff]  ;;  %v1006_v4 = vld [vmem:[#allocation6 + $0xc70] sm:$0xff] }
  0xe9   : > { %1484 = vmatpush.msra.mxu0 %v1177_v10  ;;  %1534 = vmatpush.msra.mxu2 %v970_v11  ;;  %v924_v21 = vld [vmem:[#allocation2 + $0x60] sm:$0x3]  ;;  %v938_v8 = vld [vmem:[#allocation6 + $0xa50] sm:$0xff] }
  0xea   : > { %1557 = vmatpush.msra.mxu3 %v1034_v13  ;;  %1508 = vmatpush.msra.mxu1 %v1237_v14  ;;  %v1283_v24 = vrot.slane %v924_v21, 2  ;;  %v1145_v6 = vld [vmem:[#allocation6 + $0x10c8] sm:$0xff]  ;;  %v1002_v10 = vld [vmem:[#allocation6 + $0xc50] sm:$0xff] }
  0xeb   : > { %v925_v25 = vld [vmem:[#allocation2 + $0x68] sm:$0x3]  ;;  %1485 = vmatpush.msra.mxu0 %v1173_v15  ;;  %1535 = vmatpush.msra.mxu2 %v966_v16  ;;  %v1209_v9 = vld [vmem:[#allocation6 + $0x12c8] sm:$0xff] }
  0xec   : > { %v1285_v28 = vrot.slane %v925_v25, 2  ;;  %1558 = vmatpush.msra.mxu3 %v1030_v18  ;;  %1509 = vmatpush.msra.mxu1 %v1233_v19  ;;  %v7048_v29 = vsel %vm1263_vm7, %v1271_v41, %v1283_v24  ;;  %v1022_v41 = vld [vmem:[#allocation6 + $0xcf0] sm:$0xff]  ;;  %v926_v3 = vld [vmem:[#allocation2 + $0x70] sm:$0x3]  ;;  %v1141_v11 = vld [vmem:[#allocation6 + $0x10a8] sm:$0xff] }
  0xed   : > { %1486 = vmatpush.msra.mxu0 %v1169_v22  ;;  %1536 = vmatpush.msra.mxu2 %v962_v23  ;;  %v1287_v12 = vrot.slane %v926_v3, 2  ;;  %v1205_v13 = vld [vmem:[#allocation6 + $0x12a8] sm:$0xff]  ;;  %v934_v14 = vld [vmem:[#allocation6 + $0xa30] sm:$0xff]  ;;  %v991_v23 = vld [vmem:[#allocation6 + $0xbf8] sm:$0xff] }
  0xee   : > { %v7056_v33 = vsel %vm1263_vm7, %v1274_v44, %v1285_v28  ;;  %1559 = vmatpush.msra.mxu3 %v1026_v26  ;;  %1318 = vmatmul.f32.gmra.mxu0 %v7051_v32  ;;  %v954_v44 = vld [vmem:[#allocation6 + $0xad0] sm:$0xff]  ;;  %v1137_v16 = vld [vmem:[#allocation6 + $0x1088] sm:$0xff]  ;;  %v963_v3 = vld [vmem:[#allocation6 + $0xb18] sm:$0xff] }
  0xef   : > { %1364 = vmatmul.f32.gmra.mxu2 %v7048_v29  ;;  %1487 = vmatpush.msra.mxu0 %v1165_v31  ;;  %v998_v15 = vld [vmem:[#allocation6 + $0xc30] sm:$0xff]  ;;  %v7088_v20 = vsel %vm1263_vm7, %v1277_v50, %v1287_v12  ;;  %v1133_v21 = vld [vmem:[#allocation6 + $0x1068] sm:$0xff] }
  0xf0   : > { %1341 = vmatmul.f32.gmra.mxu1 %v7065_v40  ;;  %1387 = vmatmul.f32.gmra.mxu3 %v7056_v33  ;;  %v930_v18 = vld [vmem:[#allocation6 + $0xa10] sm:$0xff]  ;;  %v1197_v24 = vld [vmem:[#allocation6 + $0x1268] sm:$0xff] }
  0xf1   : > { %1510 = vmatpush.msra.mxu1 %v1229_v36  ;;  %1537 = vmatpush.msra.mxu2 %v958_v37  ;;  %v994_v19 = vld [vmem:[#allocation6 + $0xc10] sm:$0xff]  ;;  %v1129_v25 = vld [vmem:[#allocation6 + $0x1048] sm:$0xff]  ;;  %v983_v37 = vld [vmem:[#allocation6 + $0xbb8] sm:$0xff] }
  0xf2   : > { %1560 = vmatpush.msra.mxu3 %v1022_v41  ;;  %1488 = vmatpush.msra.mxu0 %v1161_v42  ;;  %v1246_v22 = vld [vmem:[#allocation6 + $0x13f0] sm:$0xff]  ;;  %v1193_v28 = vld [vmem:[#allocation6 + $0x1248] sm:$0xff]  ;;  %v979_v42 = vld [vmem:[#allocation6 + $0xb98] sm:$0xff] }
  0xf3   : > { %1511 = vmatpush.msra.mxu1 %v1225_v43  ;;  %1538 = vmatpush.msra.mxu2 %v954_v44  ;;  %v1242_v26 = vld [vmem:[#allocation6 + $0x13d0] sm:$0xff]  ;;  %v1125_v31 = vld [vmem:[#allocation6 + $0x1028] sm:$0xff] }
  0xf4   : > { %1561 = vmatpush.msra.mxu3 %v1018_v45  ;;  %1489 = vmatpush.msra.mxu0 %v1157_v47  ;;  %v1238_v36 = vld [vmem:[#allocation6 + $0x13b0] sm:$0xff]  ;;  %v1189_v38 = vld [vmem:[#allocation6 + $0x1228] sm:$0xff] }
  0xf5   : > { %1512 = vmatpush.msra.mxu1 %v1221_v52  ;;  %1539 = vmatpush.msra.mxu2 %v950_v53  ;;  %v1121_v39 = vld [vmem:[#allocation6 + $0x1008] sm:$0xff]  ;;  %v1234_v41 = vld [vmem:[#allocation6 + $0x1390] sm:$0xff] }
  0xf6   : > { %1562 = vmatpush.msra.mxu3 %v1014_v54  ;;  %1490 = vmatpush.msra.mxu0 %v1153_v55  ;;  %v1185_v43 = vld [vmem:[#allocation6 + $0x1208] sm:$0xff]  ;;  %v1118_v44 = vld [vmem:[#allocation6 + $0xff0] sm:$0xff]  ;;  %v971_v54 = vld [vmem:[#allocation6 + $0xb58] sm:$0xff] }
  0xf7   : > { %1513 = vmatpush.msra.mxu1 %v1217_v58  ;;  %1540 = vmatpush.msra.mxu2 %v946_v59  ;;  %v1182_v45 = vld [vmem:[#allocation6 + $0x11f0] sm:$0xff] }
  0xf8   : > { %1563 = vmatpush.msra.mxu3 %v1010_v60  ;;  %1407 = vmatmul.f32.vlgmr.msrb.gmra.mxu0 %v7077_v61  ;;  %v1230_v47 = vld [vmem:[#allocation6 + $0x1370] sm:$0xff]  ;;  %v967_v60 = vld [vmem:[#allocation6 + $0xb38] sm:$0xff] }
  0xf9   : > { %1453 = vmatmul.f32.vlgmr.msrb.gmra.mxu2 %v7034_v5  ;;  %1491 = vmatpush.msra.mxu0 %v1149_v62  ;;  %v1114_v50 = vld [vmem:[#allocation6 + $0xfd0] sm:$0xff] }
  0xfa   : > { %1430 = vmatmul.f32.vlgmr.msrb.gmra.mxu1 %v7039_v7  ;;  %1476 = vmatmul.f32.vlgmr.msrb.gmra.mxu3 %v7012_v46  ;;  %v1178_v52 = vld [vmem:[#allocation6 + $0x11d0] sm:$0xff] }
  0xfb   : > { %1514 = vmatpush.msra.mxu1 %v1213_v1  ;;  %1541 = vmatpush.msra.mxu2 %v942_v2  ;;  %v1226_v53 = vld [vmem:[#allocation6 + $0x1350] sm:$0xff] }
  0xfc   : > { %1564 = vmatpush.msra.mxu3 %v1006_v4  ;;  %1492 = vmatpush.msra.mxu0 %v1145_v6  ;;  %v1110_v55 = vld [vmem:[#allocation6 + $0xfb0] sm:$0xff] }
  0xfd   : > { %1515 = vmatpush.msra.mxu1 %v1209_v9  ;;  %1542 = vmatpush.msra.mxu2 %v938_v8  ;;  %v1174_v58 = vld [vmem:[#allocation6 + $0x11b0] sm:$0xff]  ;;  %v959_v8 = vld [vmem:[#allocation6 + $0xaf8] sm:$0xff] }
  0xfe   : > { %1565 = vmatpush.msra.mxu3 %v1002_v10  ;;  %1493 = vmatpush.msra.mxu0 %v1141_v11  ;;  %v1222_v59 = vld [vmem:[#allocation6 + $0x1330] sm:$0xff] }
  0xff   : > { %1516 = vmatpush.msra.mxu1 %v1205_v13  ;;  %1543 = vmatpush.msra.mxu2 %v934_v14  ;;  %v1106_v62 = vld [vmem:[#allocation6 + $0xf90] sm:$0xff]  ;;  %v955_v13 = vld [vmem:[#allocation6 + $0xad8] sm:$0xff] }
 0x100   : > { %1566 = vmatpush.msra.mxu3 %v998_v15  ;;  %1494 = vmatpush.msra.mxu0 %v1137_v16  ;;  %v1170_v1 = vld [vmem:[#allocation6 + $0x1190] sm:$0xff] }
 0x101   : > { %1517 = vmatpush.msra.mxu1 %v1201_v17  ;;  %1544 = vmatpush.msra.mxu2 %v930_v18  ;;  %v1218_v2 = vld [vmem:[#allocation6 + $0x1310] sm:$0xff]  ;;  %v951_v17 = vld [vmem:[#allocation6 + $0xab8] sm:$0xff] }
 0x102   : > { %1567 = vmatpush.msra.mxu3 %v994_v19  ;;  %1410 = vmatmul.f32.gmra.mxu0 %v7088_v20  ;;  %v1102_v4 = vld [vmem:[#allocation6 + $0xf70] sm:$0xff] }
 0x103   : > { %1456 = vmatmul.f32.gmra.mxu2 %v7065_v40  ;;  %1495 = vmatpush.msra.mxu0 %v1133_v21  ;;  %v1166_v6 = vld [vmem:[#allocation6 + $0x1170] sm:$0xff] }
 0x104   : > { %1621 = vmatpush.msrb.mxu2 %v1246_v22  ;;  %1644 = vmatpush.msrb.mxu3 %v991_v23  ;;  %v1214_v9 = vld [vmem:[#allocation6 + $0x12f0] sm:$0xff]  ;;  %v947_v22 = vld [vmem:[#allocation6 + $0xa98] sm:$0xff] }
 0x105   : > { %1433 = vmatmul.f32.gmra.mxu1 %v7051_v32  ;;  %1479 = vmatmul.f32.gmra.mxu3 %v7048_v29  ;;  %v1098_v10 = vld [vmem:[#allocation6 + $0xf50] sm:$0xff] }
 0x106   : > { %1518 = vmatpush.msra.mxu1 %v1197_v24  ;;  %1496 = vmatpush.msra.mxu0 %v1129_v25  ;;  %v1162_v11 = vld [vmem:[#allocation6 + $0x1150] sm:$0xff] }
 0x107   : > { %1622 = vmatpush.msrb.mxu2 %v1242_v26  ;;  %1645 = vmatpush.msrb.mxu3 %v987_v27  ;;  %v1210_v12 = vld [vmem:[#allocation6 + $0x12d0] sm:$0xff]  ;;  %v943_v26 = vld [vmem:[#allocation6 + $0xa78] sm:$0xff] }
 0x108   : > { %1519 = vmatpush.msra.mxu1 %v1193_v28  ;;  %1497 = vmatpush.msra.mxu0 %v1125_v31  ;;  %v1094_v14 = vld [vmem:[#allocation6 + $0xf30] sm:$0xff] }
 0x109   : > { %1623 = vmatpush.msrb.mxu2 %v1238_v36  ;;  %1646 = vmatpush.msrb.mxu3 %v983_v37  ;;  %v1158_v15 = vld [vmem:[#allocation6 + $0x1130] sm:$0xff]  ;;  %v939_v36 = vld [vmem:[#allocation6 + $0xa58] sm:$0xff] }
 0x10a   : > { %1520 = vmatpush.msra.mxu1 %v1189_v38  ;;  %1498 = vmatpush.msra.mxu0 %v1121_v39  ;;  %v1206_v16 = vld [vmem:[#allocation6 + $0x12b0] sm:$0xff] }
 0x10b   : > { %1624 = vmatpush.msrb.mxu2 %v1234_v41  ;;  %1647 = vmatpush.msrb.mxu3 %v979_v42  ;;  %v1090_v18 = vld [vmem:[#allocation6 + $0xf10] sm:$0xff]  ;;  %v935_v41 = vld [vmem:[#allocation6 + $0xa38] sm:$0xff] }
 0x10c   : > { %1521 = vmatpush.msra.mxu1 %v1185_v43  ;;  %1575 = vmatpush.msrb.mxu0 %v1118_v44  ;;  %v1154_v19 = vld [vmem:[#allocation6 + $0x1110] sm:$0xff] }
 0x10d   : > { %1499 = vmatmul.f32.vlgmr.msra.gmra.mxu0 %v7018_v48  ;;  %1545 = vmatmul.f32.vlgmr.msra.gmra.mxu2 %v7039_v7  ;;  %v1202_v21 = vld [vmem:[#allocation6 + $0x1290] sm:$0xff] }
 0x10e   : > { %1598 = vmatpush.msrb.mxu1 %v1182_v45  ;;  %1625 = vmatpush.msrb.mxu2 %v1230_v47  ;;  %v1086_v23 = vld [vmem:[#allocation6 + $0xef0] sm:$0xff]  ;;  %v931_v45 = vld [vmem:[#allocation6 + $0xa18] sm:$0xff] }
 0x10f   : > { %1648 = vmatpush.msrb.mxu3 %v975_v49  ;;  %1576 = vmatpush.msrb.mxu0 %v1114_v50  ;;  %v1150_v24 = vld [vmem:[#allocation6 + $0x10f0] sm:$0xff]  ;;  %v1183_v49 = vld [vmem:[#allocation6 + $0x11f8] sm:$0xff] }
 0x110   : > { %1568 = vmatmul.f32.vlgmr.msra.gmra.mxu3 %v7034_v5  ;;  %1522 = vmatmul.f32.vlgmr.msra.gmra.mxu1 %v7077_v61  ;;  %v1198_v25 = vld [vmem:[#allocation6 + $0x1270] sm:$0xff]  ;;  %v1247_v50 = vld [vmem:[#allocation6 + $0x13f8] sm:$0xff] }
 0x111   : > { %1599 = vmatpush.msrb.mxu1 %v1178_v52  ;;  %1626 = vmatpush.msrb.mxu2 %v1226_v53  ;;  %v1082_v27 = vld [vmem:[#allocation6 + $0xed0] sm:$0xff] }
 0x112   : > { %1649 = vmatpush.msrb.mxu3 %v971_v54  ;;  %1577 = vmatpush.msrb.mxu0 %v1110_v55  ;;  %v1146_v28 = vld [vmem:[#allocation6 + $0x10d0] sm:$0xff]  ;;  %v1179_v54 = vld [vmem:[#allocation6 + $0x11d8] sm:$0xff] }
 0x113   : > { %1600 = vmatpush.msrb.mxu1 %v1174_v58  ;;  %1627 = vmatpush.msrb.mxu2 %v1222_v59  ;;  %v1194_v31 = vld [vmem:[#allocation6 + $0x1250] sm:$0xff]  ;;  %v1243_v55 = vld [vmem:[#allocation6 + $0x13d8] sm:$0xff] }
 0x114   : > { %1650 = vmatpush.msrb.mxu3 %v967_v60  ;;  %1578 = vmatpush.msrb.mxu0 %v1106_v62  ;;  %v1078_v37 = vld [vmem:[#allocation6 + $0xeb0] sm:$0xff]  ;;  %v1175_v60 = vld [vmem:[#allocation6 + $0x11b8] sm:$0xff] }
 0x115   : > { %1601 = vmatpush.msrb.mxu1 %v1170_v1  ;;  %1628 = vmatpush.msrb.mxu2 %v1218_v2  ;;  %v1142_v38 = vld [vmem:[#allocation6 + $0x10b0] sm:$0xff]  ;;  %v1239_v62 = vld [vmem:[#allocation6 + $0x13b8] sm:$0xff] }
 0x116   : > { %1651 = vmatpush.msrb.mxu3 %v963_v3  ;;  %1579 = vmatpush.msrb.mxu0 %v1102_v4  ;;  %v1190_v39 = vld [vmem:[#allocation6 + $0x1230] sm:$0xff]  ;;  %v1171_v3 = vld [vmem:[#allocation6 + $0x1198] sm:$0xff] }
 0x117   : > { %1502 = vmatmul.f32.gmra.mxu0 %v7056_v33  ;;  %1548 = vmatmul.f32.gmra.mxu2 %v7051_v32  ;;  %v1074_v42 = vld [vmem:[#allocation6 + $0xe90] sm:$0xff]  ;;  %v1235_v4 = vld [vmem:[#allocation6 + $0x1398] sm:$0xff] }
 0x118   : > { %1602 = vmatpush.msrb.mxu1 %v1166_v6  ;;  %1629 = vmatpush.msrb.mxu2 %v1214_v9  ;;  %v1138_v43 = vld [vmem:[#allocation6 + $0x1090] sm:$0xff]  ;;  %v1055_v6 = vld [vmem:[#allocation6 + $0xdf8] sm:$0xff] }
 0x119   : > { %1652 = vmatpush.msrb.mxu3 %v959_v8  ;;  %1580 = vmatpush.msrb.mxu0 %v1098_v10  ;;  %v1186_v44 = vld [vmem:[#allocation6 + $0x1210] sm:$0xff]  ;;  %v1119_v9 = vld [vmem:[#allocation6 + $0xff8] sm:$0xff] }
 0x11a   : > { %1571 = vmatmul.f32.gmra.mxu3 %v7065_v40  ;;  %1525 = vmatmul.f32.gmra.mxu1 %v7088_v20  ;;  %v1070_v47 = vld [vmem:[#allocation6 + $0xe70] sm:$0xff]  ;;  %v1167_v8 = vld [vmem:[#allocation6 + $0x1178] sm:$0xff] }
 0x11b   : > { %1603 = vmatpush.msrb.mxu1 %v1162_v11  ;;  %1630 = vmatpush.msrb.mxu2 %v1210_v12  ;;  %v1134_v52 = vld [vmem:[#allocation6 + $0x1070] sm:$0xff]  ;;  %v1231_v10 = vld [vmem:[#allocation6 + $0x1378] sm:$0xff] }
 0x11c   : > { %1653 = vmatpush.msrb.mxu3 %v955_v13  ;;  %1581 = vmatpush.msrb.mxu0 %v1094_v14  ;;  %v1066_v53 = vld [vmem:[#allocation6 + $0xe50] sm:$0xff]  ;;  %v1051_v11 = vld [vmem:[#allocation6 + $0xdd8] sm:$0xff] }
 0x11d   : > { %1604 = vmatpush.msrb.mxu1 %v1158_v15  ;;  %1631 = vmatpush.msrb.mxu2 %v1206_v16  ;;  %v1130_v58 = vld [vmem:[#allocation6 + $0x1050] sm:$0xff]  ;;  %v1115_v12 = vld [vmem:[#allocation6 + $0xfd8] sm:$0xff] }
 0x11e   : > { %1654 = vmatpush.msrb.mxu3 %v951_v17  ;;  %1582 = vmatpush.msrb.mxu0 %v1090_v18  ;;  %v1062_v59 = vld [vmem:[#allocation6 + $0xe30] sm:$0xff]  ;;  %v1163_v13 = vld [vmem:[#allocation6 + $0x1158] sm:$0xff] }
 0x11f   : > { %1605 = vmatpush.msrb.mxu1 %v1154_v19  ;;  %1632 = vmatpush.msrb.mxu2 %v1202_v21  ;;  %v1126_v1 = vld [vmem:[#allocation6 + $0x1030] sm:$0xff]  ;;  %v1227_v14 = vld [vmem:[#allocation6 + $0x1358] sm:$0xff] }
 0x120   : > { %1655 = vmatpush.msrb.mxu3 %v947_v22  ;;  %1583 = vmatpush.msrb.mxu0 %v1086_v23  ;;  %v1058_v2 = vld [vmem:[#allocation6 + $0xe10] sm:$0xff]  ;;  %v1047_v15 = vld [vmem:[#allocation6 + $0xdb8] sm:$0xff] }
 0x121   : > { %1606 = vmatpush.msrb.mxu1 %v1150_v24  ;;  %1633 = vmatpush.msrb.mxu2 %v1198_v25  ;;  %v1111_v16 = vld [vmem:[#allocation6 + $0xfb8] sm:$0xff] }
 0x122   : > { %1656 = vmatpush.msrb.mxu3 %v943_v26  ;;  %1584 = vmatpush.msrb.mxu0 %v1082_v27  ;;  %v1159_v17 = vld [vmem:[#allocation6 + $0x1138] sm:$0xff] }
 0x123   : > { %1607 = vmatpush.msrb.mxu1 %v1146_v28  ;;  %1634 = vmatpush.msrb.mxu2 %v1194_v31  ;;  %v1223_v18 = vld [vmem:[#allocation6 + $0x1338] sm:$0xff] }
 0x124   : > { %1657 = vmatpush.msrb.mxu3 %v939_v36  ;;  %1585 = vmatpush.msrb.mxu0 %v1078_v37  ;;  %v1043_v19 = vld [vmem:[#allocation6 + $0xd98] sm:$0xff] }
 0x125   : > { %1608 = vmatpush.msrb.mxu1 %v1142_v38  ;;  %1635 = vmatpush.msrb.mxu2 %v1190_v39  ;;  %v1107_v21 = vld [vmem:[#allocation6 + $0xf98] sm:$0xff] }
 0x126   : > { %1658 = vmatpush.msrb.mxu3 %v935_v41  ;;  %1586 = vmatpush.msrb.mxu0 %v1074_v42  ;;  %v1155_v22 = vld [vmem:[#allocation6 + $0x1118] sm:$0xff] }
 0x127   : > { %1609 = vmatpush.msrb.mxu1 %v1138_v43  ;;  %1636 = vmatpush.msrb.mxu2 %v1186_v44  ;;  %v1039_v23 = vld [vmem:[#allocation6 + $0xd78] sm:$0xff] }
 0x128   : > { %1659 = vmatpush.msrb.mxu3 %v931_v45  ;;  %1587 = vmatpush.msrb.mxu0 %v1070_v47  ;;  %v1103_v24 = vld [vmem:[#allocation6 + $0xf78] sm:$0xff] }
 0x129   : > { %1660 = vmatmul.f32.vlgmr.msrb.gmra.mxu3 %v7039_v7  ;;  %1713 = vmatpush.msra.mxu2 %v1183_v49  ;;  %v1122_v7 = vld [vmem:[#allocation6 + $0x1010] sm:$0xff]  ;;  %v1151_v25 = vld [vmem:[#allocation6 + $0x10f8] sm:$0xff] }
 0x12a   : > { %1736 = vmatpush.msra.mxu3 %v1247_v50  ;;  %1610 = vmatpush.msrb.mxu1 %v1134_v52  ;;  %v1215_v26 = vld [vmem:[#allocation6 + $0x12f8] sm:$0xff] }
 0x12b   : > { %1588 = vmatpush.msrb.mxu0 %v1066_v53  ;;  %1714 = vmatpush.msra.mxu2 %v1179_v54  ;;  %v1035_v27 = vld [vmem:[#allocation6 + $0xd58] sm:$0xff] }
 0x12c   : > { %1737 = vmatpush.msra.mxu3 %v1243_v55  ;;  %1611 = vmatpush.msrb.mxu1 %v1130_v58  ;;  %v1099_v28 = vld [vmem:[#allocation6 + $0xf58] sm:$0xff] }
 0x12d   : > { %1589 = vmatpush.msrb.mxu0 %v1062_v59  ;;  %1715 = vmatpush.msra.mxu2 %v1175_v60  ;;  %v1147_v31 = vld [vmem:[#allocation6 + $0x10d8] sm:$0xff] }
 0x12e   : > { %1738 = vmatpush.msra.mxu3 %v1239_v62  ;;  %1612 = vmatpush.msrb.mxu1 %v1126_v1  ;;  %v1211_v36 = vld [vmem:[#allocation6 + $0x12d8] sm:$0xff] }
 0x12f   : > { %1637 = vmatmul.f32.vlgmr.msrb.gmra.mxu2 %v7077_v61  ;;  %1590 = vmatpush.msrb.mxu0 %v1058_v2  ;;  %v1031_v37 = vld [vmem:[#allocation6 + $0xd38] sm:$0xff] }
 0x130   : > { %1716 = vmatpush.msra.mxu2 %v1171_v3  ;;  %1739 = vmatpush.msra.mxu3 %v1235_v4  ;;  %v1095_v38 = vld [vmem:[#allocation6 + $0xf38] sm:$0xff] }
 0x131   : > { %1591 = vmatmul.f32.vlgmr.msrb.gmra.mxu0 %v7012_v46  ;;  %1613 = vmatpush.msrb.mxu1 %v1122_v7  ;;  %v1143_v39 = vld [vmem:[#allocation6 + $0x10b8] sm:$0xff] }
 0x132   : > { %1667 = vmatpush.msra.mxu0 %v1055_v6  ;;  %1614 = vmatmul.f32.vlgmr.msrb.gmra.mxu1 %v7018_v48  ;;  %v1207_v41 = vld [vmem:[#allocation6 + $0x12b8] sm:$0xff] }
 0x133   : > { %1663 = vmatmul.f32.gmra.mxu3 %v7051_v32  ;;  %1690 = vmatpush.msra.mxu1 %v1119_v9  ;;  %v1219_v32 = vld [vmem:[#allocation6 + $0x1318] sm:$0xff]  ;;  %v849_v9 = vld [vmem:[#allocation6 + $0x7e0] sm:$0xff] }
 0x134   : > { %1717 = vmatpush.msra.mxu2 %v1167_v8  ;;  %1740 = vmatpush.msra.mxu3 %v1231_v10  ;;  %v1027_v42 = vld [vmem:[#allocation6 + $0xd18] sm:$0xff]  ;;  %v785_v8 = vld [vmem:[#allocation6 + $0x5e0] sm:$0xff] }
 0x135   : > { %1668 = vmatpush.msra.mxu0 %v1051_v11  ;;  %1691 = vmatpush.msra.mxu1 %v1115_v12  ;;  %v1091_v43 = vld [vmem:[#allocation6 + $0xf18] sm:$0xff]  ;;  %v845_v12 = vld [vmem:[#allocation6 + $0x7c0] sm:$0xff] }
 0x136   : > { %1718 = vmatpush.msra.mxu2 %v1163_v13  ;;  %1741 = vmatpush.msra.mxu3 %v1227_v14  ;;  %v1139_v44 = vld [vmem:[#allocation6 + $0x1098] sm:$0xff]  ;;  %v781_v13 = vld [vmem:[#allocation6 + $0x5c0] sm:$0xff] }
 0x137   : > { %1669 = vmatpush.msra.mxu0 %v1047_v15  ;;  %1692 = vmatpush.msra.mxu1 %v1111_v16  ;;  %v1203_v45 = vld [vmem:[#allocation6 + $0x1298] sm:$0xff]  ;;  %v841_v16 = vld [vmem:[#allocation6 + $0x7a0] sm:$0xff] }
 0x138   : > { %1719 = vmatpush.msra.mxu2 %v1159_v17  ;;  %1742 = vmatpush.msra.mxu3 %v1223_v18  ;;  %v1023_v47 = vld [vmem:[#allocation6 + $0xcf8] sm:$0xff]  ;;  %v777_v17 = vld [vmem:[#allocation6 + $0x5a0] sm:$0xff] }
 0x139   : > { %1640 = vmatmul.f32.gmra.mxu2 %v7088_v20  ;;  %1670 = vmatpush.msra.mxu0 %v1043_v19  ;;  %v1087_v49 = vld [vmem:[#allocation6 + $0xef8] sm:$0xff] }
 0x13a   : > { %1693 = vmatpush.msra.mxu1 %v1107_v21  ;;  %1720 = vmatpush.msra.mxu2 %v1155_v22  ;;  %v1135_v50 = vld [vmem:[#allocation6 + $0x1078] sm:$0xff]  ;;  %v837_v21 = vld [vmem:[#allocation6 + $0x780] sm:$0xff] }
 0x13b   : > { %1743 = vmatpush.msra.mxu3 %v1219_v32  ;;  %1594 = vmatmul.f32.gmra.mxu0 %v7048_v29  ;;  %v1199_v52 = vld [vmem:[#allocation6 + $0x1278] sm:$0xff]  ;;  %v773_v22 = vld [vmem:[#allocation6 + $0x580] sm:$0xff] }
 0x13c   : > { %1671 = vmatpush.msra.mxu0 %v1039_v23  ;;  %1617 = vmatmul.f32.gmra.mxu1 %v7056_v33  ;;  %v1019_v53 = vld [vmem:[#allocation6 + $0xcd8] sm:$0xff]  ;;  %v657_v32 = vld [vmem:[#allocation6 + $0x1e0] sm:$0xff] }
 0x13d   : > { %1694 = vmatpush.msra.mxu1 %v1103_v24  ;;  %1721 = vmatpush.msra.mxu2 %v1151_v25  ;;  %v1083_v54 = vld [vmem:[#allocation6 + $0xed8] sm:$0xff]  ;;  %v721_v23 = vld [vmem:[#allocation6 + $0x3e0] sm:$0xff] }
 0x13e   : > { %1744 = vmatpush.msra.mxu3 %v1215_v26  ;;  %1672 = vmatpush.msra.mxu0 %v1035_v27  ;;  %v1131_v55 = vld [vmem:[#allocation6 + $0x1058] sm:$0xff]  ;;  %v769_v24 = vld [vmem:[#allocation6 + $0x560] sm:$0xff] }
 0x13f   : > { %1695 = vmatpush.msra.mxu1 %v1099_v28  ;;  %1722 = vmatpush.msra.mxu2 %v1147_v31  ;;  %v1195_v58 = vld [vmem:[#allocation6 + $0x1258] sm:$0xff]  ;;  %v833_v25 = vld [vmem:[#allocation6 + $0x760] sm:$0xff] }
 0x140   : > { %1745 = vmatpush.msra.mxu3 %v1211_v36  ;;  %1673 = vmatpush.msra.mxu0 %v1031_v37  ;;  %v1015_v59 = vld [vmem:[#allocation6 + $0xcb8] sm:$0xff]  ;;  %v653_v26 = vld [vmem:[#allocation6 + $0x1c0] sm:$0xff] }
 0x141   : > { %1696 = vmatpush.msra.mxu1 %v1095_v38  ;;  %1723 = vmatpush.msra.mxu2 %v1143_v39  ;;  %v1079_v60 = vld [vmem:[#allocation6 + $0xeb8] sm:$0xff]  ;;  %v717_v27 = vld [vmem:[#allocation6 + $0x3c0] sm:$0xff] }
 0x142   : > { %1746 = vmatpush.msra.mxu3 %v1207_v41  ;;  %1674 = vmatpush.msra.mxu0 %v1027_v42  ;;  %v1127_v62 = vld [vmem:[#allocation6 + $0x1038] sm:$0xff]  ;;  %v765_v28 = vld [vmem:[#allocation6 + $0x540] sm:$0xff] }
 0x143   : > { %1697 = vmatpush.msra.mxu1 %v1091_v43  ;;  %1724 = vmatpush.msra.mxu2 %v1139_v44  ;;  %v1191_v1 = vld [vmem:[#allocation6 + $0x1238] sm:$0xff]  ;;  %v829_v31 = vld [vmem:[#allocation6 + $0x740] sm:$0xff] }
 0x144   : > { %1747 = vmatpush.msra.mxu3 %v1203_v45  ;;  %1675 = vmatpush.msra.mxu0 %v1023_v47  ;;  %v1011_v2 = vld [vmem:[#allocation6 + $0xc98] sm:$0xff]  ;;  %v649_v36 = vld [vmem:[#allocation6 + $0x1a0] sm:$0xff] }
 0x145   : > { %1698 = vmatpush.msra.mxu1 %v1087_v49  ;;  %1725 = vmatpush.msra.mxu2 %v1135_v50  ;;  %v1075_v3 = vld [vmem:[#allocation6 + $0xe98] sm:$0xff]  ;;  %v761_v37 = vld [vmem:[#allocation6 + $0x520] sm:$0xff] }
 0x146   : > { %1748 = vmatpush.msra.mxu3 %v1199_v52  ;;  %1676 = vmatpush.msra.mxu0 %v1019_v53  ;;  %v1123_v4 = vld [vmem:[#allocation6 + $0x1018] sm:$0xff]  ;;  %v645_v38 = vld [vmem:[#allocation6 + $0x180] sm:$0xff] }
 0x147   : > { %1699 = vmatpush.msra.mxu1 %v1083_v54  ;;  %1726 = vmatpush.msra.mxu2 %v1131_v55  ;;  %v1187_v7 = vld [vmem:[#allocation6 + $0x1218] sm:$0xff]  ;;  %v709_v39 = vld [vmem:[#allocation6 + $0x380] sm:$0xff] }
 0x148   : > { %1749 = vmatpush.msra.mxu3 %v1195_v58  ;;  %1677 = vmatpush.msra.mxu0 %v1015_v59  ;;  %v1007_v6 = vld [vmem:[#allocation6 + $0xc78] sm:$0xff]  ;;  %v821_v41 = vld [vmem:[#allocation6 + $0x700] sm:$0xff] }
 0x149   : > { %1700 = vmatpush.msra.mxu1 %v1079_v60  ;;  %1727 = vmatpush.msra.mxu2 %v1127_v62  ;;  %v1071_v10 = vld [vmem:[#allocation6 + $0xe78] sm:$0xff]  ;;  %v705_v42 = vld [vmem:[#allocation6 + $0x360] sm:$0xff] }
 0x14a   : > { %1750 = vmatpush.msra.mxu3 %v1191_v1  ;;  %1678 = vmatpush.msra.mxu0 %v1011_v2  ;;  %v1003_v11 = vld [vmem:[#allocation6 + $0xc58] sm:$0xff]  ;;  %v753_v43 = vld [vmem:[#allocation6 + $0x4e0] sm:$0xff] }
 0x14b   : > { %1701 = vmatpush.msra.mxu1 %v1075_v3  ;;  %1728 = vmatpush.msra.mxu2 %v1123_v4  ;;  %v1067_v14 = vld [vmem:[#allocation6 + $0xe58] sm:$0xff]  ;;  %v817_v44 = vld [vmem:[#allocation6 + $0x6e0] sm:$0xff] }
 0x14c   : > { %1751 = vmatpush.msra.mxu3 %v1187_v7  ;;  %1679 = vmatpush.msra.mxu0 %v1007_v6  ;;  %v999_v15 = vld [vmem:[#allocation6 + $0xc38] sm:$0xff]  ;;  %v637_v45 = vld [vmem:[#allocation6 + $0x140] sm:$0xff] }
 0x14d   : > { %1729 = vmatmul.f32.vlgmr.msra.gmra.mxu2 %v7018_v48  ;;  %1702 = vmatpush.msra.mxu1 %v1071_v10  ;;  %v1063_v18 = vld [vmem:[#allocation6 + $0xe38] sm:$0xff]  ;;  %v701_v47 = vld [vmem:[#allocation6 + $0x340] sm:$0xff] }
 0x14e   : > { %1828 = vmatpush.msrb.mxu3 %v849_v9  ;;  %1805 = vmatpush.msrb.mxu2 %v785_v8  ;;  %v995_v19 = vld [vmem:[#allocation6 + $0xc18] sm:$0xff]  ;;  %v749_v49 = vld [vmem:[#allocation6 + $0x4c0] sm:$0xff] }
 0x14f   : > { %1680 = vmatpush.msra.mxu0 %v1003_v11  ;;  %1703 = vmatpush.msra.mxu1 %v1067_v14  ;;  %v1059_v48 = vld [vmem:[#allocation6 + $0xe18] sm:$0xff]  ;;  %v813_v50 = vld [vmem:[#allocation6 + $0x6c0] sm:$0xff] }
 0x150   : > { %1829 = vmatpush.msrb.mxu3 %v845_v12  ;;  %1806 = vmatpush.msrb.mxu2 %v781_v13  ;;  %v633_v52 = vld [vmem:[#allocation6 + $0x120] sm:$0xff] }
 0x151   : > { %1681 = vmatpush.msra.mxu0 %v999_v15  ;;  %1704 = vmatpush.msra.mxu1 %v1063_v18  ;;  %v697_v53 = vld [vmem:[#allocation6 + $0x320] sm:$0xff]  ;;  %v786_v18 = vld [vmem:[#allocation6 + $0x5e8] sm:$0xff] }
 0x152   : > { %1830 = vmatpush.msrb.mxu3 %v841_v16  ;;  %1807 = vmatpush.msrb.mxu2 %v777_v17  ;;  %v745_v54 = vld [vmem:[#allocation6 + $0x4a0] sm:$0xff]  ;;  %v7118_v16 = vld [vmem:[#allocation2 + $0x10] sm:$0xff]  ;;  %v722_v17 = vld [vmem:[#allocation6 + $0x3e8] sm:$0xff] }
 0x153   : > { %1682 = vmatpush.msra.mxu0 %v995_v19  ;;  %1705 = vmatpush.msra.mxu1 %v1059_v48  ;;  %v629_v55 = vld [vmem:[#allocation6 + $0x100] sm:$0xff]  ;;  %v718_v48 = vld [vmem:[#allocation6 + $0x3c8] sm:$0xff] }
 0x154   : > { %1831 = vmatpush.msrb.mxu3 %v837_v21  ;;  %1808 = vmatpush.msrb.mxu2 %v773_v22  ;;  %v741_v58 = vld [vmem:[#allocation6 + $0x480] sm:$0xff] }
 0x155   : > { %1683 = vmatmul.f32.vlgmr.msra.gmra.mxu0 %v7034_v5  ;;  %1752 = vmatmul.f32.vlgmr.msra.gmra.mxu3 %v7077_v61  ;;  %v713_v5 = vld [vmem:[#allocation6 + $0x3a0] sm:$0xff] }
 0x156   : > { %1759 = vmatpush.msrb.mxu0 %v657_v32  ;;  %1706 = vmatmul.f32.vlgmr.msra.gmra.mxu1 %v7012_v46  ;;  %v825_v61 = vld [vmem:[#allocation6 + $0x720] sm:$0xff]  ;;  %v782_v32 = vld [vmem:[#allocation6 + $0x5c8] sm:$0xff] }
 0x157   : > { %1732 = vmatmul.f32.gmra.mxu2 %v7056_v33  ;;  %1782 = vmatpush.msrb.mxu1 %v721_v23  ;;  %v757_v46 = vld [vmem:[#allocation6 + $0x500] sm:$0xff] }
 0x158   : > { %1809 = vmatpush.msrb.mxu2 %v769_v24  ;;  %1832 = vmatpush.msrb.mxu3 %v833_v25  ;;  %v641_v33 = vld [vmem:[#allocation6 + $0x160] sm:$0xff]  ;;  %v714_v25 = vld [vmem:[#allocation6 + $0x3a8] sm:$0xff] }
 0x159   : > { %1760 = vmatpush.msrb.mxu0 %v653_v26  ;;  %1783 = vmatpush.msrb.mxu1 %v717_v27  ;;  %v625_v59 = vld [vmem:[#allocation6 + $0xe0] sm:$0xff]  ;;  %v778_v26 = vld [vmem:[#allocation6 + $0x5a8] sm:$0xff] }
 0x15a   : > { %1810 = vmatpush.msrb.mxu2 %v765_v28  ;;  %1833 = vmatpush.msrb.mxu3 %v829_v31  ;;  %v689_v60 = vld [vmem:[#allocation6 + $0x2e0] sm:$0xff]  ;;  %v710_v31 = vld [vmem:[#allocation6 + $0x388] sm:$0xff] }
 0x15b   : > { %1761 = vmatpush.msrb.mxu0 %v649_v36  ;;  %1784 = vmatpush.msrb.mxu1 %v713_v5  ;;  %v737_v62 = vld [vmem:[#allocation6 + $0x460] sm:$0xff]  ;;  %v774_v36 = vld [vmem:[#allocation6 + $0x588] sm:$0xff] }
 0x15c   : > { %1811 = vmatpush.msrb.mxu2 %v761_v37  ;;  %1834 = vmatpush.msrb.mxu3 %v825_v61  ;;  %v801_v1 = vld [vmem:[#allocation6 + $0x660] sm:$0xff]  ;;  %v7125_v61 = vld [vmem:[#allocation2 + $0x8] sm:$0xff] }
 0x15d   : > { %1762 = vmatpush.msrb.mxu0 %v645_v38  ;;  %1785 = vmatpush.msrb.mxu1 %v709_v39  ;;  %v621_v2 = vld [vmem:[#allocation6 + $0xc0] sm:$0xff]  ;;  %v658_v38 = vld [vmem:[#allocation6 + $0x1e8] sm:$0xff] }
 0x15e   : > { %1812 = vmatpush.msrb.mxu2 %v757_v46  ;;  %1835 = vmatpush.msrb.mxu3 %v821_v41  ;;  %v685_v3 = vld [vmem:[#allocation6 + $0x2c0] sm:$0xff]  ;;  %v706_v39 = vld [vmem:[#allocation6 + $0x368] sm:$0xff] }
 0x15f   : > { %1686 = vmatmul.f32.gmra.mxu0 %v7065_v40  ;;  %1755 = vmatmul.f32.gmra.mxu3 %v7088_v20  ;;  %v809_v40 = vld [vmem:[#allocation6 + $0x6a0] sm:$0xff]  ;;  %v770_v46 = vld [vmem:[#allocation6 + $0x568] sm:$0xff] }
 0x160   : > { %1763 = vmatpush.msrb.mxu0 %v641_v33  ;;  %1709 = vmatmul.f32.gmra.mxu1 %v7048_v29  ;;  %v693_v20 = vld [vmem:[#allocation6 + $0x300] sm:$0xff]  ;;  %v654_v33 = vld [vmem:[#allocation6 + $0x1c8] sm:$0xff] }
 0x161   : > { %1786 = vmatpush.msrb.mxu1 %v705_v42  ;;  %1813 = vmatpush.msrb.mxu2 %v753_v43  ;;  %v805_v29 = vld [vmem:[#allocation6 + $0x680] sm:$0xff]  ;;  %v702_v42 = vld [vmem:[#allocation6 + $0x348] sm:$0xff] }
 0x162   : > { %1836 = vmatpush.msrb.mxu3 %v817_v44  ;;  %1764 = vmatpush.msrb.mxu0 %v637_v45  ;;  %v733_v4 = vld [vmem:[#allocation6 + $0x440] sm:$0xff]  ;;  %v766_v43 = vld [vmem:[#allocation6 + $0x548] sm:$0xff] }
 0x163   : > { %1787 = vmatpush.msrb.mxu1 %v701_v47  ;;  %1814 = vmatpush.msrb.mxu2 %v749_v49  ;;  %v797_v7 = vld [vmem:[#allocation6 + $0x640] sm:$0xff]  ;;  %v650_v45 = vld [vmem:[#allocation6 + $0x1a8] sm:$0xff] }
 0x164   : > { %1837 = vmatpush.msrb.mxu3 %v813_v50  ;;  %1765 = vmatpush.msrb.mxu0 %v633_v52  ;;  %v617_v6 = vld [vmem:[#allocation6 + $0xa0] sm:$0xff]  ;;  %v698_v47 = vld [vmem:[#allocation6 + $0x328] sm:$0xff] }
 0x165   : > { %1788 = vmatpush.msrb.mxu1 %v697_v53  ;;  %1815 = vmatpush.msrb.mxu2 %v745_v54  ;;  %v681_v9 = vld [vmem:[#allocation6 + $0x2a0] sm:$0xff]  ;;  %v762_v49 = vld [vmem:[#allocation6 + $0x528] sm:$0xff] }
 0x166   : > { %1838 = vmatpush.msrb.mxu3 %v809_v40  ;;  %1766 = vmatpush.msrb.mxu0 %v629_v55  ;;  %v729_v8 = vld [vmem:[#allocation6 + $0x420] sm:$0xff]  ;;  %v646_v52 = vld [vmem:[#allocation6 + $0x188] sm:$0xff] }
 0x167   : > { %1789 = vmatpush.msrb.mxu1 %v693_v20  ;;  %1816 = vmatpush.msrb.mxu2 %v741_v58  ;;  %v793_v10 = vld [vmem:[#allocation6 + $0x620] sm:$0xff]  ;;  %v694_v53 = vld [vmem:[#allocation6 + $0x308] sm:$0xff] }
 0x168   : > { %1839 = vmatpush.msrb.mxu3 %v805_v29  ;;  %1767 = vmatpush.msrb.mxu0 %v625_v59  ;;  %v613_v11 = vld [vmem:[#allocation6 + $0x80] sm:$0xff]  ;;  %v758_v54 = vld [vmem:[#allocation6 + $0x508] sm:$0xff] }
 0x169   : > { %1790 = vmatpush.msrb.mxu1 %v689_v60  ;;  %1817 = vmatpush.msrb.mxu2 %v737_v62  ;;  %v677_v12 = vld [vmem:[#allocation6 + $0x280] sm:$0xff]  ;;  %v642_v55 = vld [vmem:[#allocation6 + $0x168] sm:$0xff] }
 0x16a   : > { %1840 = vmatpush.msrb.mxu3 %v801_v1  ;;  %1768 = vmatpush.msrb.mxu0 %v621_v2  ;;  %v725_v13 = vld [vmem:[#allocation6 + $0x400] sm:$0xff]  ;;  %v690_v20 = vld [vmem:[#allocation6 + $0x2e8] sm:$0xff] }
 0x16b   : > { %1791 = vmatpush.msrb.mxu1 %v685_v3  ;;  %1818 = vmatpush.msrb.mxu2 %v733_v4  ;;  %v789_v14 = vld [vmem:[#allocation6 + $0x600] sm:$0xff]  ;;  %v754_v58 = vld [vmem:[#allocation6 + $0x4e8] sm:$0xff] }
 0x16c   : > { %1841 = vmatpush.msrb.mxu3 %v797_v7  ;;  %1769 = vmatpush.msrb.mxu0 %v617_v6  ;;  %v609_v15 = vld [vmem:[#allocation6 + $0x60] sm:$0xff]  ;;  %v638_v59 = vld [vmem:[#allocation6 + $0x148] sm:$0xff] }
 0x16d   : > { %1792 = vmatpush.msrb.mxu1 %v681_v9  ;;  %1819 = vmatpush.msrb.mxu2 %v729_v8  ;;  %v7120_v19 = vld [vmem:[#allocation2 + $0x18] sm:$0xff]  ;;  %v686_v60 = vld [vmem:[#allocation6 + $0x2c8] sm:$0xff] }
 0x16e   : > { %1842 = vmatpush.msrb.mxu3 %v793_v10  ;;  %1770 = vmatpush.msrb.mxu0 %v613_v11  ;;  %v673_v21 = vld [vmem:[#allocation6 + $0x260] sm:$0xff]  ;;  %v750_v62 = vld [vmem:[#allocation6 + $0x4c8] sm:$0xff] }
 0x16f   : > { %1793 = vmatpush.msrb.mxu1 %v677_v12  ;;  %1820 = vmatpush.msrb.mxu2 %v725_v13  ;;  %v605_v22 = vld [vmem:[#allocation6 + $0x40] sm:$0xff]  ;;  %v634_v2 = vld [vmem:[#allocation6 + $0x128] sm:$0xff] }
 0x170   : > { %1843 = vmatpush.msrb.mxu3 %v789_v14  ;;  %1771 = vmatpush.msrb.mxu0 %v609_v15  ;;  %v669_v23 = vld [vmem:[#allocation6 + $0x240] sm:$0xff]  ;;  %v682_v3 = vld [vmem:[#allocation6 + $0x2a8] sm:$0xff] }
 0x171   : > { %1821 = vmatmul.f32.vlgmr.msrb.gmra.mxu2 %v7118_v16  ;;  %1844 = vmatmul.f32.vlgmr.msrb.gmra.mxu3 %v7120_v19  ;;  %v601_v24 = vld [vmem:[#allocation6 + $0x20] sm:$0xff]  ;;  %v746_v4 = vld [vmem:[#allocation6 + $0x4a8] sm:$0xff] }
 0x172   : > { %1897 = vmatpush.msra.mxu2 %v722_v17  ;;  %1920 = vmatpush.msra.mxu3 %v786_v18  ;;  %v665_v27 = vld [vmem:[#allocation6 + $0x220] sm:$0xff]  ;;  %v630_v6 = vld [vmem:[#allocation6 + $0x108] sm:$0xff] }
 0x173   : > { %1794 = vmatpush.msrb.mxu1 %v673_v21  ;;  %1772 = vmatpush.msrb.mxu0 %v605_v22  ;;  %v597_v28 = vld [vmem:[#allocation6] sm:$0xff]  ;;  %v678_v9 = vld [vmem:[#allocation6 + $0x288] sm:$0xff] }
 0x174   : > { %1898 = vmatpush.msra.mxu2 %v718_v48  ;;  %1921 = vmatpush.msra.mxu3 %v782_v32  ;;  %v661_v5 = vld [vmem:[#allocation6 + $0x200] sm:$0xff]  ;;  %v742_v8 = vld [vmem:[#allocation6 + $0x488] sm:$0xff] }
 0x175   : > { %1795 = vmatpush.msrb.mxu1 %v669_v23  ;;  %1773 = vmatpush.msrb.mxu0 %v601_v24  ;;  %v913_v37 = vld [vmem:[#allocation6 + $0x9e0] sm:$0xff]  ;;  %v626_v11 = vld [vmem:[#allocation6 + $0xe8] sm:$0xff] }
 0x176   : > { %1899 = vmatpush.msra.mxu2 %v714_v25  ;;  %1922 = vmatpush.msra.mxu3 %v778_v26  ;;  %v909_v41 = vld [vmem:[#allocation6 + $0x9c0] sm:$0xff]  ;;  %v674_v12 = vld [vmem:[#allocation6 + $0x268] sm:$0xff] }
 0x177   : > { %1796 = vmatpush.msrb.mxu1 %v665_v27  ;;  %1774 = vmatpush.msrb.mxu0 %v597_v28  ;;  %v905_v44 = vld [vmem:[#allocation6 + $0x9a0] sm:$0xff]  ;;  %v738_v13 = vld [vmem:[#allocation6 + $0x468] sm:$0xff]  ;;  %v659_v28 = vld [vmem:[#allocation6 + $0x1f0] sm:$0xff] }
 0x178   : > { %1900 = vmatpush.msra.mxu2 %v710_v31  ;;  %1923 = vmatpush.msra.mxu3 %v774_v36  ;;  %v901_v50 = vld [vmem:[#allocation6 + $0x980] sm:$0xff]  ;;  %v622_v15 = vld [vmem:[#allocation6 + $0xc8] sm:$0xff]  ;;  %v723_v31 = vld [vmem:[#allocation6 + $0x3f0] sm:$0xff] }
 0x179   : > { %1775 = vmatmul.f32.vlgmr.msrb.gmra.mxu0 %v7070_v56  ;;  %1797 = vmatpush.msrb.mxu1 %v661_v5  ;;  %v897_v40 = vld [vmem:[#allocation6 + $0x960] sm:$0xff]  ;;  %v670_v17 = vld [vmem:[#allocation6 + $0x248] sm:$0xff] }
 0x17a   : > { %1851 = vmatpush.msra.mxu0 %v913_v37  ;;  %1798 = vmatmul.f32.vlgmr.msrb.gmra.mxu1 %v7125_v61  ;;  %v893_v29 = vld [vmem:[#allocation6 + $0x940] sm:$0xff]  ;;  %v734_v18 = vld [vmem:[#allocation6 + $0x448] sm:$0xff]  ;;  %v655_v37 = vld [vmem:[#allocation6 + $0x1d0] sm:$0xff] }
 0x17b   : > { %1824 = vmatmul.f32.gmra.mxu2 %v6999_v34  ;;  %1847 = vmatmul.f32.gmra.mxu3 %v7002_v35  ;;  %v889_v1 = vld [vmem:[#allocation6 + $0x920] sm:$0xff]  ;;  %v618_v22 = vld [vmem:[#allocation6 + $0xa8] sm:$0xff] }
 0x17c   : > { %1874 = vmatpush.msra.mxu1 %v658_v38  ;;  %1901 = vmatpush.msra.mxu2 %v706_v39  ;;  %v885_v7 = vld [vmem:[#allocation6 + $0x900] sm:$0xff]  ;;  %v666_v48 = vld [vmem:[#allocation6 + $0x228] sm:$0xff]  ;;  %v719_v38 = vld [vmem:[#allocation6 + $0x3d0] sm:$0xff] }
 0x17d   : > { %1924 = vmatpush.msra.mxu3 %v770_v46  ;;  %1852 = vmatpush.msra.mxu0 %v909_v41  ;;  %v881_v10 = vld [vmem:[#allocation6 + $0x8e0] sm:$0xff]  ;;  %v730_v32 = vld [vmem:[#allocation6 + $0x428] sm:$0xff]  ;;  %v651_v41 = vld [vmem:[#allocation6 + $0x1b0] sm:$0xff] }
 0x17e   : > { %1875 = vmatpush.msra.mxu1 %v654_v33  ;;  %1902 = vmatpush.msra.mxu2 %v702_v42  ;;  %v877_v14 = vld [vmem:[#allocation6 + $0x8c0] sm:$0xff]  ;;  %v614_v24 = vld [vmem:[#allocation6 + $0x88] sm:$0xff]  ;;  %v715_v33 = vld [vmem:[#allocation6 + $0x3b0] sm:$0xff] }
 0x17f   : > { %1925 = vmatpush.msra.mxu3 %v766_v43  ;;  %1853 = vmatpush.msra.mxu0 %v905_v44  ;;  %v873_v21 = vld [vmem:[#allocation6 + $0x8a0] sm:$0xff]  ;;  %v662_v25 = vld [vmem:[#allocation6 + $0x208] sm:$0xff]  ;;  %v647_v44 = vld [vmem:[#allocation6 + $0x190] sm:$0xff] }
 0x180   : > { %1876 = vmatpush.msra.mxu1 %v650_v45  ;;  %1903 = vmatpush.msra.mxu2 %v698_v47  ;;  %v869_v23 = vld [vmem:[#allocation6 + $0x880] sm:$0xff]  ;;  %v726_v26 = vld [vmem:[#allocation6 + $0x408] sm:$0xff]  ;;  %v711_v45 = vld [vmem:[#allocation6 + $0x390] sm:$0xff] }
 0x181   : > { %1926 = vmatpush.msra.mxu3 %v762_v49  ;;  %1854 = vmatpush.msra.mxu0 %v901_v50  ;;  %v865_v27 = vld [vmem:[#allocation6 + $0x860] sm:$0xff]  ;;  %v610_v36 = vld [vmem:[#allocation6 + $0x68] sm:$0xff] }
 0x182   : > { %1877 = vmatpush.msra.mxu1 %v646_v52  ;;  %1904 = vmatpush.msra.mxu2 %v694_v53  ;;  %v861_v5 = vld [vmem:[#allocation6 + $0x840] sm:$0xff]  ;;  %v606_v39 = vld [vmem:[#allocation6 + $0x48] sm:$0xff]  ;;  %v643_v53 = vld [vmem:[#allocation6 + $0x170] sm:$0xff] }
 0x183   : > { %1927 = vmatpush.msra.mxu3 %v758_v54  ;;  %1778 = vmatmul.f32.gmra.mxu0 %v7026_v63  ;;  %v857_v46 = vld [vmem:[#allocation6 + $0x820] sm:$0xff]  ;;  %v602_v42 = vld [vmem:[#allocation6 + $0x28] sm:$0xff]  ;;  %v707_v54 = vld [vmem:[#allocation6 + $0x370] sm:$0xff] }
 0x184   : > { %1855 = vmatpush.msra.mxu0 %v897_v40  ;;  %1801 = vmatmul.f32.gmra.mxu1 %v7022_v51  ;;  %v853_v43 = vld [vmem:[#allocation6 + $0x800] sm:$0xff]  ;;  %v7134_v47 = vld [vmem:[#allocation2 + $0x20] sm:$0xff] }
 0x185   : > { %1878 = vmatpush.msra.mxu1 %v642_v55  ;;  %1905 = vmatpush.msra.mxu2 %v690_v20  ;;  %v598_v49 = vld [vmem:[#allocation6 + $0x8] sm:$0xff]  ;;  %v639_v20 = vld [vmem:[#allocation6 + $0x150] sm:$0xff] }
 0x186   : > { %1928 = vmatpush.msra.mxu3 %v754_v58  ;;  %1856 = vmatpush.msra.mxu0 %v893_v29  ;;  %v850_v50 = vld [vmem:[#allocation6 + $0x7e8] sm:$0xff]  ;;  %v703_v58 = vld [vmem:[#allocation6 + $0x350] sm:$0xff] }
 0x187   : > { %1879 = vmatpush.msra.mxu1 %v638_v59  ;;  %1906 = vmatpush.msra.mxu2 %v686_v60  ;;  %v914_v52 = vld [vmem:[#allocation6 + $0x9e8] sm:$0xff]  ;;  %v635_v60 = vld [vmem:[#allocation6 + $0x130] sm:$0xff] }
 0x188   : > { %1929 = vmatpush.msra.mxu3 %v750_v62  ;;  %1857 = vmatpush.msra.mxu0 %v889_v1  ;;  %v846_v40 = vld [vmem:[#allocation6 + $0x7c8] sm:$0xff]  ;;  %v699_v62 = vld [vmem:[#allocation6 + $0x330] sm:$0xff] }
 0x189   : > { %1880 = vmatpush.msra.mxu1 %v634_v2  ;;  %1907 = vmatpush.msra.mxu2 %v682_v3  ;;  %v910_v55 = vld [vmem:[#allocation6 + $0x9c8] sm:$0xff]  ;;  %v631_v3 = vld [vmem:[#allocation6 + $0x110] sm:$0xff] }
 0x18a   : > { %1930 = vmatpush.msra.mxu3 %v746_v4  ;;  %1858 = vmatpush.msra.mxu0 %v885_v7  ;;  %v842_v29 = vld [vmem:[#allocation6 + $0x7a8] sm:$0xff]  ;;  %v695_v4 = vld [vmem:[#allocation6 + $0x310] sm:$0xff] }
 0x18b   : > { %1881 = vmatpush.msra.mxu1 %v630_v6  ;;  %1908 = vmatpush.msra.mxu2 %v678_v9  ;;  %v906_v59 = vld [vmem:[#allocation6 + $0x9a8] sm:$0xff]  ;;  %v627_v9 = vld [vmem:[#allocation6 + $0xf0] sm:$0xff] }
 0x18c   : > { %1931 = vmatpush.msra.mxu3 %v742_v8  ;;  %1859 = vmatpush.msra.mxu0 %v881_v10  ;;  %v838_v1 = vld [vmem:[#allocation6 + $0x788] sm:$0xff]  ;;  %v7140_v8 = vld [vmem:[#allocation2 + $0x48] sm:$0xff] }
 0x18d   : > { %1882 = vmatpush.msra.mxu1 %v626_v11  ;;  %1909 = vmatpush.msra.mxu2 %v674_v12  ;;  %v902_v2 = vld [vmem:[#allocation6 + $0x988] sm:$0xff]  ;;  %v691_v10 = vld [vmem:[#allocation6 + $0x2f0] sm:$0xff] }
 0x18e   : > { %1932 = vmatpush.msra.mxu3 %v738_v13  ;;  %1860 = vmatpush.msra.mxu0 %v877_v14  ;;  %v834_v7 = vld [vmem:[#allocation6 + $0x768] sm:$0xff]  ;;  %v623_v13 = vld [vmem:[#allocation6 + $0xd0] sm:$0xff] }
 0x18f   : > { %1883 = vmatpush.msra.mxu1 %v622_v15  ;;  %1910 = vmatpush.msra.mxu2 %v670_v17  ;;  %v898_v6 = vld [vmem:[#allocation6 + $0x968] sm:$0xff]  ;;  %v687_v14 = vld [vmem:[#allocation6 + $0x2d0] sm:$0xff] }
 0x190   : > { %1933 = vmatpush.msra.mxu3 %v734_v18  ;;  %1861 = vmatpush.msra.mxu0 %v873_v21  ;;  %v830_v11 = vld [vmem:[#allocation6 + $0x748] sm:$0xff]  ;;  %v619_v18 = vld [vmem:[#allocation6 + $0xb0] sm:$0xff] }
 0x191   : > { %1884 = vmatpush.msra.mxu1 %v618_v22  ;;  %1911 = vmatpush.msra.mxu2 %v666_v48  ;;  %v894_v12 = vld [vmem:[#allocation6 + $0x948] sm:$0xff]  ;;  %v683_v21 = vld [vmem:[#allocation6 + $0x2b0] sm:$0xff] }
 0x192   : > { %1934 = vmatpush.msra.mxu3 %v730_v32  ;;  %1862 = vmatpush.msra.mxu0 %v869_v23  ;;  %v826_v15 = vld [vmem:[#allocation6 + $0x728] sm:$0xff]  ;;  %v615_v32 = vld [vmem:[#allocation6 + $0x90] sm:$0xff] }
 0x193   : > { %1885 = vmatpush.msra.mxu1 %v614_v24  ;;  %1912 = vmatpush.msra.mxu2 %v662_v25  ;;  %v890_v17 = vld [vmem:[#allocation6 + $0x928] sm:$0xff]  ;;  %v679_v23 = vld [vmem:[#allocation6 + $0x290] sm:$0xff] }
 0x194   : > { %1935 = vmatpush.msra.mxu3 %v726_v26  ;;  %1863 = vmatpush.msra.mxu0 %v865_v27  ;;  %v822_v22 = vld [vmem:[#allocation6 + $0x708] sm:$0xff]  ;;  %v611_v26 = vld [vmem:[#allocation6 + $0x70] sm:$0xff] }
 0x195   : > { %1913 = vmatmul.f32.vlgmr.msra.gmra.mxu2 %v7125_v61  ;;  %1936 = vmatmul.f32.vlgmr.msra.gmra.mxu3 %v7118_v16  ;;  %v886_v48 = vld [vmem:[#allocation6 + $0x908] sm:$0xff]  ;;  %v675_v27 = vld [vmem:[#allocation6 + $0x270] sm:$0xff] }
 0x196   : > { %1989 = vmatpush.msrb.mxu2 %v659_v28  ;;  %2012 = vmatpush.msrb.mxu3 %v723_v31  ;;  %v818_v24 = vld [vmem:[#allocation6 + $0x6e8] sm:$0xff] }
 0x197   : > { %1886 = vmatpush.msra.mxu1 %v610_v36  ;;  %1864 = vmatpush.msra.mxu0 %v861_v5  ;;  %v882_v25 = vld [vmem:[#allocation6 + $0x8e8] sm:$0xff]  ;;  %v607_v36 = vld [vmem:[#allocation6 + $0x50] sm:$0xff] }
 0x198   : > { %1990 = vmatpush.msrb.mxu2 %v655_v37  ;;  %2013 = vmatpush.msrb.mxu3 %v719_v38  ;;  %v814_v28 = vld [vmem:[#allocation6 + $0x6c8] sm:$0xff]  ;;  %v671_v5 = vld [vmem:[#allocation6 + $0x250] sm:$0xff] }
 0x199   : > { %1887 = vmatpush.msra.mxu1 %v606_v39  ;;  %1865 = vmatpush.msra.mxu0 %v857_v46  ;;  %v878_v31 = vld [vmem:[#allocation6 + $0x8c8] sm:$0xff]  ;;  %v603_v39 = vld [vmem:[#allocation6 + $0x30] sm:$0xff] }
 0x19a   : > { %1991 = vmatpush.msrb.mxu2 %v651_v41  ;;  %2014 = vmatpush.msrb.mxu3 %v715_v33  ;;  %v810_v37 = vld [vmem:[#allocation6 + $0x6a8] sm:$0xff]  ;;  %v667_v46 = vld [vmem:[#allocation6 + $0x230] sm:$0xff] }
 0x19b   : > { %1888 = vmatpush.msra.mxu1 %v602_v42  ;;  %1866 = vmatpush.msra.mxu0 %v853_v43  ;;  %v874_v38 = vld [vmem:[#allocation6 + $0x8a8] sm:$0xff]  ;;  %v599_v42 = vld [vmem:[#allocation6 + $0x10] sm:$0xff] }
 0x19c   : > { %1992 = vmatpush.msrb.mxu2 %v647_v44  ;;  %2015 = vmatpush.msrb.mxu3 %v711_v45  ;;  %v806_v41 = vld [vmem:[#allocation6 + $0x688] sm:$0xff]  ;;  %v663_v43 = vld [vmem:[#allocation6 + $0x210] sm:$0xff] }
 0x19d   : > { %1867 = vmatmul.f32.vlgmr.msra.gmra.mxu0 %v7134_v47  ;;  %1889 = vmatpush.msra.mxu1 %v598_v49  ;;  %v870_v33 = vld [vmem:[#allocation6 + $0x888] sm:$0xff]  ;;  %v915_v45 = vld [vmem:[#allocation6 + $0x9f0] sm:$0xff]  ;;  %v660_v49 = vld [vmem:[#allocation6 + $0x1f8] sm:$0xff] }
 0x19e   : > { %1943 = vmatpush.msrb.mxu0 %v850_v50  ;;  %1890 = vmatmul.f32.vlgmr.msra.gmra.mxu1 %v7070_v56  ;;  %v802_v44 = vld [vmem:[#allocation6 + $0x668] sm:$0xff] }
 0x19f   : > { %1916 = vmatmul.f32.gmra.mxu2 %v7022_v51  ;;  %1939 = vmatmul.f32.gmra.mxu3 %v6999_v34  ;;  %v866_v50 = vld [vmem:[#allocation6 + $0x868] sm:$0xff] }
 0x1a0   : > { %1966 = vmatpush.msrb.mxu1 %v914_v52  ;;  %1993 = vmatpush.msrb.mxu2 %v643_v53  ;;  %v798_v52 = vld [vmem:[#allocation6 + $0x648] sm:$0xff]  ;;  %v911_v53 = vld [vmem:[#allocation6 + $0x9d0] sm:$0xff] }
 0x1a1   : > { %2016 = vmatpush.msrb.mxu3 %v707_v54  ;;  %1944 = vmatpush.msrb.mxu0 %v846_v40  ;;  %v656_v54 = vld [vmem:[#allocation6 + $0x1d8] sm:$0xff]  ;;  %v862_v40 = vld [vmem:[#allocation6 + $0x848] sm:$0xff] }
 0x1a2   : > { %1967 = vmatpush.msrb.mxu1 %v910_v55  ;;  %1994 = vmatpush.msrb.mxu2 %v639_v20  ;;  %v794_v55 = vld [vmem:[#allocation6 + $0x628] sm:$0xff]  ;;  %v907_v20 = vld [vmem:[#allocation6 + $0x9b0] sm:$0xff] }
 0x1a3   : > { %2017 = vmatpush.msrb.mxu3 %v703_v58  ;;  %1945 = vmatpush.msrb.mxu0 %v842_v29  ;;  %v652_v58 = vld [vmem:[#allocation6 + $0x1b8] sm:$0xff]  ;;  %v858_v29 = vld [vmem:[#allocation6 + $0x828] sm:$0xff] }
 0x1a4   : > { %1968 = vmatpush.msrb.mxu1 %v906_v59  ;;  %1995 = vmatpush.msrb.mxu2 %v635_v60  ;;  %v790_v59 = vld [vmem:[#allocation6 + $0x608] sm:$0xff]  ;;  %v903_v60 = vld [vmem:[#allocation6 + $0x990] sm:$0xff] }
 0x1a5   : > { %2018 = vmatpush.msrb.mxu3 %v699_v62  ;;  %1946 = vmatpush.msrb.mxu0 %v838_v1  ;;  %v648_v62 = vld [vmem:[#allocation6 + $0x198] sm:$0xff]  ;;  %v787_v1 = vld [vmem:[#allocation6 + $0x5f0] sm:$0xff] }
 0x1a6   : > { %1969 = vmatpush.msrb.mxu1 %v902_v2  ;;  %1996 = vmatpush.msrb.mxu2 %v631_v3  ;;  %v851_v2 = vld [vmem:[#allocation6 + $0x7f0] sm:$0xff] }
 0x1a7   : > { %2019 = vmatpush.msrb.mxu3 %v695_v4  ;;  %1870 = vmatmul.f32.gmra.mxu0 %v7140_v8  ;;  %v899_v3 = vld [vmem:[#allocation6 + $0x970] sm:$0xff]  ;;  %v644_v4 = vld [vmem:[#allocation6 + $0x178] sm:$0xff] }
 0x1a8   : > { %1947 = vmatpush.msrb.mxu0 %v834_v7  ;;  %1893 = vmatmul.f32.gmra.mxu1 %v7026_v63  ;;  %v783_v7 = vld [vmem:[#allocation6 + $0x5d0] sm:$0xff] }
 0x1a9   : > { %1970 = vmatpush.msrb.mxu1 %v898_v6  ;;  %1997 = vmatpush.msrb.mxu2 %v627_v9  ;;  %v847_v6 = vld [vmem:[#allocation6 + $0x7d0] sm:$0xff] }
 0x1aa   : > { %2020 = vmatpush.msrb.mxu3 %v691_v10  ;;  %1948 = vmatpush.msrb.mxu0 %v830_v11  ;;  %v895_v9 = vld [vmem:[#allocation6 + $0x950] sm:$0xff]  ;;  %v640_v10 = vld [vmem:[#allocation6 + $0x158] sm:$0xff] }
 0x1ab   : > { %1971 = vmatpush.msrb.mxu1 %v894_v12  ;;  %1998 = vmatpush.msrb.mxu2 %v623_v13  ;;  %v779_v11 = vld [vmem:[#allocation6 + $0x5b0] sm:$0xff] }
 0x1ac   : > { %2021 = vmatpush.msrb.mxu3 %v687_v14  ;;  %1949 = vmatpush.msrb.mxu0 %v826_v15  ;;  %v843_v12 = vld [vmem:[#allocation6 + $0x7b0] sm:$0xff]  ;;  %v636_v14 = vld [vmem:[#allocation6 + $0x138] sm:$0xff] }
 0x1ad   : > { %1972 = vmatpush.msrb.mxu1 %v890_v17  ;;  %1999 = vmatpush.msrb.mxu2 %v619_v18  ;;  %v891_v13 = vld [vmem:[#allocation6 + $0x930] sm:$0xff] }
 0x1ae   : > { %2022 = vmatpush.msrb.mxu3 %v683_v21  ;;  %1950 = vmatpush.msrb.mxu0 %v822_v22  ;;  %v775_v15 = vld [vmem:[#allocation6 + $0x590] sm:$0xff]  ;;  %v632_v21 = vld [vmem:[#allocation6 + $0x118] sm:$0xff] }
 0x1af   : > { %1973 = vmatpush.msrb.mxu1 %v886_v48  ;;  %2000 = vmatpush.msrb.mxu2 %v615_v32  ;;  %v839_v17 = vld [vmem:[#allocation6 + $0x790] sm:$0xff] }
 0x1b0   : > { %2023 = vmatpush.msrb.mxu3 %v679_v23  ;;  %1951 = vmatpush.msrb.mxu0 %v818_v24  ;;  %v887_v18 = vld [vmem:[#allocation6 + $0x910] sm:$0xff]  ;;  %v628_v23 = vld [vmem:[#allocation6 + $0xf8] sm:$0xff] }
 0x1b1   : > { %1974 = vmatpush.msrb.mxu1 %v882_v25  ;;  %2001 = vmatpush.msrb.mxu2 %v611_v26  ;;  %v771_v22 = vld [vmem:[#allocation6 + $0x570] sm:$0xff] }
 0x1b2   : > { %2024 = vmatpush.msrb.mxu3 %v675_v27  ;;  %1952 = vmatpush.msrb.mxu0 %v814_v28  ;;  %v835_v48 = vld [vmem:[#allocation6 + $0x770] sm:$0xff]  ;;  %v624_v27 = vld [vmem:[#allocation6 + $0xd8] sm:$0xff] }
 0x1b3   : > { %1975 = vmatpush.msrb.mxu1 %v878_v31  ;;  %2002 = vmatpush.msrb.mxu2 %v607_v36  ;;  %v883_v32 = vld [vmem:[#allocation6 + $0x8f0] sm:$0xff] }
 0x1b4   : > { %2025 = vmatpush.msrb.mxu3 %v671_v5  ;;  %1953 = vmatpush.msrb.mxu0 %v810_v37  ;;  %v767_v24 = vld [vmem:[#allocation6 + $0x550] sm:$0xff]  ;;  %v620_v5 = vld [vmem:[#allocation6 + $0xb8] sm:$0xff] }
 0x1b5   : > { %1976 = vmatpush.msrb.mxu1 %v874_v38  ;;  %2003 = vmatpush.msrb.mxu2 %v603_v39  ;;  %v831_v25 = vld [vmem:[#allocation6 + $0x750] sm:$0xff] }
 0x1b6   : > { %2026 = vmatpush.msrb.mxu3 %v667_v46  ;;  %1954 = vmatpush.msrb.mxu0 %v806_v41  ;;  %v879_v26 = vld [vmem:[#allocation6 + $0x8d0] sm:$0xff]  ;;  %v616_v46 = vld [vmem:[#allocation6 + $0x98] sm:$0xff] }
 0x1b7   : > { %1977 = vmatpush.msrb.mxu1 %v870_v33  ;;  %2004 = vmatpush.msrb.mxu2 %v599_v42  ;;  %v763_v28 = vld [vmem:[#allocation6 + $0x530] sm:$0xff] }
 0x1b8   : > { %2027 = vmatpush.msrb.mxu3 %v663_v43  ;;  %1955 = vmatpush.msrb.mxu0 %v802_v44  ;;  %v827_v31 = vld [vmem:[#allocation6 + $0x730] sm:$0xff]  ;;  %v612_v43 = vld [vmem:[#allocation6 + $0x78] sm:$0xff] }
 0x1b9   : > { %2005 = vmatmul.f32.vlgmr.msrb.gmra.mxu2 %v7070_v56  ;;  %2028 = vmatmul.f32.vlgmr.msrb.gmra.mxu3 %v7125_v61  ;;  %v854_v61 = vld [vmem:[#allocation6 + $0x808] sm:$0xff]  ;;  %v875_v36 = vld [vmem:[#allocation6 + $0x8b0] sm:$0xff] }
 0x1ba   : > { %2081 = vmatpush.msra.mxu2 %v915_v45  ;;  %2104 = vmatpush.msra.mxu3 %v660_v49  ;;  %v759_v37 = vld [vmem:[#allocation6 + $0x510] sm:$0xff] }
 0x1bb   : > { %1978 = vmatpush.msrb.mxu1 %v866_v50  ;;  %1956 = vmatpush.msrb.mxu0 %v798_v52  ;;  %v823_v38 = vld [vmem:[#allocation6 + $0x710] sm:$0xff]  ;;  %v608_v50 = vld [vmem:[#allocation6 + $0x58] sm:$0xff] }
 0x1bc   : > { %2082 = vmatpush.msra.mxu2 %v911_v53  ;;  %2105 = vmatpush.msra.mxu3 %v656_v54  ;;  %v871_v39 = vld [vmem:[#allocation6 + $0x890] sm:$0xff] }
 0x1bd   : > { %1979 = vmatpush.msrb.mxu1 %v862_v40  ;;  %1957 = vmatpush.msrb.mxu0 %v794_v55  ;;  %v755_v41 = vld [vmem:[#allocation6 + $0x4f0] sm:$0xff]  ;;  %v604_v40 = vld [vmem:[#allocation6 + $0x38] sm:$0xff] }
 0x1be   : > { %2083 = vmatpush.msra.mxu2 %v907_v20  ;;  %2106 = vmatpush.msra.mxu3 %v652_v58  ;;  %v819_v33 = vld [vmem:[#allocation6 + $0x6f0] sm:$0xff] }
 0x1bf   : > { %1980 = vmatpush.msrb.mxu1 %v858_v29  ;;  %1958 = vmatpush.msrb.mxu0 %v790_v59  ;;  %v867_v42 = vld [vmem:[#allocation6 + $0x870] sm:$0xff]  ;;  %v600_v29 = vld [vmem:[#allocation6 + $0x18] sm:$0xff] }
 0x1c0   : > { %2084 = vmatpush.msra.mxu2 %v903_v60  ;;  %2107 = vmatpush.msra.mxu3 %v648_v62  ;;  %v751_v44 = vld [vmem:[#allocation6 + $0x4d0] sm:$0xff]  ;;  %v852_v60 = vld [vmem:[#allocation6 + $0x7f8] sm:$0xff] }
 0x1c1   : > { %1959 = vmatmul.f32.vlgmr.msrb.gmra.mxu0 %v7120_v19  ;;  %1981 = vmatpush.msrb.mxu1 %v854_v61  ;;  %v815_v45 = vld [vmem:[#allocation6 + $0x6d0] sm:$0xff]  ;;  %v916_v62 = vld [vmem:[#allocation6 + $0x9f8] sm:$0xff] }
 0x1c2   : > { %2035 = vmatpush.msra.mxu0 %v787_v1  ;;  %2008 = vmatmul.f32.gmra.mxu2 %v7026_v63  ;;  %v863_v49 = vld [vmem:[#allocation6 + $0x850] sm:$0xff] }
 0x1c3   : > { %2031 = vmatmul.f32.gmra.mxu3 %v7022_v51  ;;  %2058 = vmatpush.msra.mxu1 %v851_v2  ;;  %v747_v52 = vld [vmem:[#allocation6 + $0x4b0] sm:$0xff]  ;;  %v848_v2 = vld [vmem:[#allocation6 + $0x7d8] sm:$0xff] }
 0x1c4   : > { %2085 = vmatpush.msra.mxu2 %v899_v3  ;;  %2108 = vmatpush.msra.mxu3 %v644_v4  ;;  %v811_v53 = vld [vmem:[#allocation6 + $0x6b0] sm:$0xff]  ;;  %v912_v3 = vld [vmem:[#allocation6 + $0x9d8] sm:$0xff] }
 0x1c5   : > { %1982 = vmatmul.f32.vlgmr.msrb.gmra.mxu1 %v7134_v47  ;;  %2036 = vmatpush.msra.mxu0 %v783_v7  ;;  %v859_v54 = vld [vmem:[#allocation6 + $0x830] sm:$0xff] }
 0x1c6   : > { %2059 = vmatpush.msra.mxu1 %v847_v6  ;;  %2086 = vmatpush.msra.mxu2 %v895_v9  ;;  %v743_v55 = vld [vmem:[#allocation6 + $0x490] sm:$0xff]  ;;  %v844_v6 = vld [vmem:[#allocation6 + $0x7b8] sm:$0xff] }
 0x1c7   : > { %2109 = vmatpush.msra.mxu3 %v640_v10  ;;  %2037 = vmatpush.msra.mxu0 %v779_v11  ;;  %v807_v20 = vld [vmem:[#allocation6 + $0x690] sm:$0xff]  ;;  %v908_v9 = vld [vmem:[#allocation6 + $0x9b8] sm:$0xff] }
 0x1c8   : > { %2060 = vmatpush.msra.mxu1 %v843_v12  ;;  %2087 = vmatpush.msra.mxu2 %v891_v13  ;;  %v855_v58 = vld [vmem:[#allocation6 + $0x810] sm:$0xff]  ;;  %v840_v12 = vld [vmem:[#allocation6 + $0x798] sm:$0xff] }
 0x1c9   : > { %2110 = vmatpush.msra.mxu3 %v636_v14  ;;  %2038 = vmatpush.msra.mxu0 %v775_v15  ;;  %v739_v59 = vld [vmem:[#allocation6 + $0x470] sm:$0xff]  ;;  %v904_v13 = vld [vmem:[#allocation6 + $0x998] sm:$0xff] }
 0x1ca   : > { %2061 = vmatpush.msra.mxu1 %v839_v17  ;;  %2088 = vmatpush.msra.mxu2 %v887_v18  ;;  %v803_v61 = vld [vmem:[#allocation6 + $0x670] sm:$0xff]  ;;  %v724_v14 = vld [vmem:[#allocation6 + $0x3f8] sm:$0xff] }
 0x1cb   : > { %2111 = vmatpush.msra.mxu3 %v632_v21  ;;  %1962 = vmatmul.f32.gmra.mxu0 %v7002_v35  ;;  %v735_v1 = vld [vmem:[#allocation6 + $0x450] sm:$0xff]  ;;  %v788_v15 = vld [vmem:[#allocation6 + $0x5f8] sm:$0xff] }
 0x1cc   : > { %2039 = vmatpush.msra.mxu0 %v771_v22  ;;  %2062 = vmatpush.msra.mxu1 %v835_v48  ;;  %v799_v4 = vld [vmem:[#allocation6 + $0x650] sm:$0xff]  ;;  %v836_v17 = vld [vmem:[#allocation6 + $0x778] sm:$0xff] }
 0x1cd   : > { %2089 = vmatpush.msra.mxu2 %v883_v32  ;;  %2112 = vmatpush.msra.mxu3 %v628_v23  ;;  %v731_v7 = vld [vmem:[#allocation6 + $0x430] sm:$0xff]  ;;  %v900_v18 = vld [vmem:[#allocation6 + $0x978] sm:$0xff] }
 0x1ce   : > { %1985 = vmatmul.f32.gmra.mxu1 %v7140_v8  ;;  %2040 = vmatpush.msra.mxu0 %v767_v24  ;;  %v795_v10 = vld [vmem:[#allocation6 + $0x630] sm:$0xff]  ;;  %v720_v21 = vld [vmem:[#allocation6 + $0x3d8] sm:$0xff] }
 0x1cf   : > { %2063 = vmatpush.msra.mxu1 %v831_v25  ;;  %2090 = vmatpush.msra.mxu2 %v879_v26  ;;  %v727_v11 = vld [vmem:[#allocation6 + $0x410] sm:$0xff]  ;;  %v784_v22 = vld [vmem:[#allocation6 + $0x5d8] sm:$0xff] }
 0x1d0   : > { %2113 = vmatpush.msra.mxu3 %v624_v27  ;;  %2041 = vmatpush.msra.mxu0 %v763_v28  ;;  %v832_v48 = vld [vmem:[#allocation6 + $0x758] sm:$0xff] }
 0x1d1   : > { %2064 = vmatpush.msra.mxu1 %v827_v31  ;;  %2091 = vmatpush.msra.mxu2 %v875_v36  ;;  %v896_v32 = vld [vmem:[#allocation6 + $0x958] sm:$0xff] }
 0x1d2   : > { %2114 = vmatpush.msra.mxu3 %v620_v5  ;;  %2042 = vmatpush.msra.mxu0 %v759_v37  ;;  %v716_v23 = vld [vmem:[#allocation6 + $0x3b8] sm:$0xff] }
 0x1d3   : > { %2065 = vmatpush.msra.mxu1 %v823_v38  ;;  %2092 = vmatpush.msra.mxu2 %v871_v39  ;;  %v780_v24 = vld [vmem:[#allocation6 + $0x5b8] sm:$0xff] }
 0x1d4   : > { %2115 = vmatpush.msra.mxu3 %v616_v46  ;;  %2043 = vmatpush.msra.mxu0 %v755_v41  ;;  %v892_v25 = vld [vmem:[#allocation6 + $0x938] sm:$0xff] }
 0x1d5   : > { %2066 = vmatpush.msra.mxu1 %v819_v33  ;;  %2093 = vmatpush.msra.mxu2 %v867_v42  ;;  %v712_v26 = vld [vmem:[#allocation6 + $0x398] sm:$0xff] }
 0x1d6   : > { %2116 = vmatpush.msra.mxu3 %v612_v43  ;;  %2044 = vmatpush.msra.mxu0 %v751_v44  ;;  %v824_v27 = vld [vmem:[#allocation6 + $0x718] sm:$0xff] }
 0x1d7   : > { %2067 = vmatpush.msra.mxu1 %v815_v45  ;;  %2094 = vmatpush.msra.mxu2 %v863_v49  ;;  %v888_v28 = vld [vmem:[#allocation6 + $0x918] sm:$0xff] }
 0x1d8   : > { %2117 = vmatpush.msra.mxu3 %v608_v50  ;;  %2045 = vmatpush.msra.mxu0 %v747_v52  ;;  %v708_v31 = vld [vmem:[#allocation6 + $0x378] sm:$0xff] }
 0x1d9   : > { %2068 = vmatpush.msra.mxu1 %v811_v53  ;;  %2095 = vmatpush.msra.mxu2 %v859_v54  ;;  %v772_v36 = vld [vmem:[#allocation6 + $0x578] sm:$0xff] }
 0x1da   : > { %2118 = vmatpush.msra.mxu3 %v604_v40  ;;  %2046 = vmatpush.msra.mxu0 %v743_v55  ;;  %v820_v5 = vld [vmem:[#allocation6 + $0x6f8] sm:$0xff] }
 0x1db   : > { %2069 = vmatpush.msra.mxu1 %v807_v20  ;;  %2096 = vmatpush.msra.mxu2 %v855_v58  ;;  %v884_v37 = vld [vmem:[#allocation6 + $0x8f8] sm:$0xff] }
 0x1dc   : > { %2119 = vmatpush.msra.mxu3 %v600_v29  ;;  %2047 = vmatpush.msra.mxu0 %v739_v59  ;;  %v704_v38 = vld [vmem:[#allocation6 + $0x358] sm:$0xff] }
 0x1dd   : > { %2120 = vmatmul.f32.vlgmr.msra.gmra.mxu3 %v7070_v56  ;;  %2173 = vmatpush.msrb.mxu2 %v852_v60  ;;  %v791_v56 = vld [vmem:[#allocation6 + $0x610] sm:$0xff]  ;;  %v768_v39 = vld [vmem:[#allocation6 + $0x558] sm:$0xff] }
 0x1de   : > { %2196 = vmatpush.msrb.mxu3 %v916_v62  ;;  %2070 = vmatpush.msra.mxu1 %v803_v61  ;;  %v816_v46 = vld [vmem:[#allocation6 + $0x6d8] sm:$0xff] }
 0x1df   : > { %2048 = vmatpush.msra.mxu0 %v735_v1  ;;  %2174 = vmatpush.msrb.mxu2 %v848_v2  ;;  %v880_v41 = vld [vmem:[#allocation6 + $0x8d8] sm:$0xff] }
 0x1e0   : > { %2197 = vmatpush.msrb.mxu3 %v912_v3  ;;  %2071 = vmatpush.msra.mxu1 %v799_v4  ;;  %v700_v33 = vld [vmem:[#allocation6 + $0x338] sm:$0xff] }
 0x1e1   : > { %2049 = vmatpush.msra.mxu0 %v731_v7  ;;  %2175 = vmatpush.msrb.mxu2 %v844_v6  ;;  %v764_v42 = vld [vmem:[#allocation6 + $0x538] sm:$0xff] }
 0x1e2   : > { %2198 = vmatpush.msrb.mxu3 %v908_v9  ;;  %2072 = vmatpush.msra.mxu1 %v795_v10  ;;  %v812_v43 = vld [vmem:[#allocation6 + $0x6b8] sm:$0xff]  ;;  %v2482_v9 = vld [vmem:[#allocation6 + $0x1be0] sm:$0xff] }
 0x1e3   : > { %2097 = vmatmul.f32.vlgmr.msra.gmra.mxu2 %v7134_v47  ;;  %2050 = vmatpush.msra.mxu0 %v727_v11  ;;  %v876_v44 = vld [vmem:[#allocation6 + $0x8b8] sm:$0xff]  ;;  %v2418_v10 = vld [vmem:[#allocation6 + $0x19e0] sm:$0xff] }
 0x1e4   : > { %2176 = vmatpush.msrb.mxu2 %v840_v12  ;;  %2199 = vmatpush.msrb.mxu3 %v904_v13  ;;  %v696_v45 = vld [vmem:[#allocation6 + $0x318] sm:$0xff]  ;;  %v2478_v13 = vld [vmem:[#allocation6 + $0x1bc0] sm:$0xff] }
 0x1e5   : > { %2051 = vmatmul.f32.vlgmr.msra.gmra.mxu0 %v7118_v16  ;;  %2073 = vmatpush.msra.mxu1 %v791_v56  ;;  %v828_v16 = vld [vmem:[#allocation6 + $0x738] sm:$0xff]  ;;  %v6304_v56 = vld [vmem:[#allocation2 + $0x18] sm:$0xff] }
 0x1e6   : > { %2127 = vmatpush.msrb.mxu0 %v724_v14  ;;  %2074 = vmatmul.f32.vlgmr.msra.gmra.mxu1 %v7120_v19  ;;  %v776_v19 = vld [vmem:[#allocation6 + $0x598] sm:$0xff]  ;;  %v2414_v14 = vld [vmem:[#allocation6 + $0x19c0] sm:$0xff] }
 0x1e7   : > { %2123 = vmatmul.f32.gmra.mxu3 %v7026_v63  ;;  %2150 = vmatpush.msrb.mxu1 %v788_v15  ;;  %v760_v49 = vld [vmem:[#allocation6 + $0x518] sm:$0xff] }
 0x1e8   : > { %2177 = vmatpush.msrb.mxu2 %v836_v17  ;;  %2200 = vmatpush.msrb.mxu3 %v900_v18  ;;  %v808_v50 = vld [vmem:[#allocation6 + $0x698] sm:$0xff]  ;;  %v2474_v18 = vld [vmem:[#allocation6 + $0x1ba0] sm:$0xff] }
 0x1e9   : > { %2128 = vmatpush.msrb.mxu0 %v720_v21  ;;  %2151 = vmatpush.msrb.mxu1 %v784_v22  ;;  %v872_v52 = vld [vmem:[#allocation6 + $0x898] sm:$0xff]  ;;  %v2410_v21 = vld [vmem:[#allocation6 + $0x19a0] sm:$0xff] }
 0x1ea   : > { %2178 = vmatpush.msrb.mxu2 %v832_v48  ;;  %2201 = vmatpush.msrb.mxu3 %v896_v32  ;;  %v692_v53 = vld [vmem:[#allocation6 + $0x2f8] sm:$0xff]  ;;  %v7160_v48 = vpop.f32.mrf.mxu0 }
 0x1eb   : > { %2129 = vmatpush.msrb.mxu0 %v716_v23  ;;  %2152 = vmatpush.msrb.mxu1 %v780_v24  ;;  %v756_v54 = vld [vmem:[#allocation6 + $0x4f8] sm:$0xff]  ;;  %v2470_v23 = vld [vmem:[#allocation6 + $0x1b80] sm:$0xff] }
 0x1ec   : > { %2179 = vmatpush.msrb.mxu2 %v828_v16  ;;  %2202 = vmatpush.msrb.mxu3 %v892_v25  ;;  %v804_v40 = vld [vmem:[#allocation6 + $0x678] sm:$0xff]  ;;  %v2406_v24 = vld [vmem:[#allocation6 + $0x1980] sm:$0xff] }
 0x1ed   : > { %2100 = vmatmul.f32.gmra.mxu2 %v7140_v8  ;;  %2130 = vmatpush.msrb.mxu0 %v712_v26  ;;  %v868_v55 = vld [vmem:[#allocation6 + $0x878] sm:$0xff]  ;;  %v2290_v25 = vld [vmem:[#allocation6 + $0x15e0] sm:$0xff]  ;;  %v6305_v26 = vld [vmem:[#allocation2 + $0x8] sm:$0xff] }
 0x1ee   : > { %2153 = vmatpush.msrb.mxu1 %v776_v19  ;;  %2180 = vmatpush.msrb.mxu2 %v824_v27  ;;  %v688_v20 = vld [vmem:[#allocation6 + $0x2d8] sm:$0xff]  ;;  %v2354_v19 = vld [vmem:[#allocation6 + $0x17e0] sm:$0xff] }
 0x1ef   : > { %2203 = vmatpush.msrb.mxu3 %v888_v28  ;;  %2054 = vmatmul.f32.gmra.mxu0 %v6999_v34  ;;  %v752_v58 = vld [vmem:[#allocation6 + $0x4d8] sm:$0xff]  ;;  %v2402_v27 = vld [vmem:[#allocation6 + $0x1960] sm:$0xff] }
 0x1f0   : > { %2131 = vmatpush.msrb.mxu0 %v708_v31  ;;  %2077 = vmatmul.f32.gmra.mxu1 %v7002_v35  ;;  %v800_v29 = vld [vmem:[#allocation6 + $0x658] sm:$0xff]  ;;  %v2466_v28 = vld [vmem:[#allocation6 + $0x1b60] sm:$0xff] }
 0x1f1   : > { %2154 = vmatpush.msrb.mxu1 %v772_v36  ;;  %2181 = vmatpush.msrb.mxu2 %v820_v5  ;;  %v864_v59 = vld [vmem:[#allocation6 + $0x858] sm:$0xff]  ;;  %v2286_v36 = vld [vmem:[#allocation6 + $0x15c0] sm:$0xff] }
 0x1f2   : > { %2204 = vmatpush.msrb.mxu3 %v884_v37  ;;  %2132 = vmatpush.msrb.mxu0 %v704_v38  ;;  %v684_v60 = vld [vmem:[#allocation6 + $0x2b8] sm:$0xff]  ;;  %v2350_v5 = vld [vmem:[#allocation6 + $0x17c0] sm:$0xff] }
 0x1f3   : > { %2155 = vmatpush.msrb.mxu1 %v768_v39  ;;  %2182 = vmatpush.msrb.mxu2 %v816_v46  ;;  %v748_v62 = vld [vmem:[#allocation6 + $0x4b8] sm:$0xff]  ;;  %v2398_v37 = vld [vmem:[#allocation6 + $0x1940] sm:$0xff]  ;;  %v7164_v39 = vpop.f32.mrf.mxu1 }
 0x1f4   : > { %2205 = vmatpush.msrb.mxu3 %v880_v41  ;;  %2133 = vmatpush.msrb.mxu0 %v700_v33  ;;  %v796_v61 = vld [vmem:[#allocation6 + $0x638] sm:$0xff]  ;;  %v2462_v38 = vld [vmem:[#allocation6 + $0x1b40] sm:$0xff] }
 0x1f5   : > { %2156 = vmatpush.msrb.mxu1 %v764_v42  ;;  %2183 = vmatpush.msrb.mxu2 %v812_v43  ;;  %v860_v1 = vld [vmem:[#allocation6 + $0x838] sm:$0xff]  ;;  %v2282_v46 = vld [vmem:[#allocation6 + $0x15a0] sm:$0xff]  ;;  %v7166_v42 = vpop.f32.mrf.mxu0 }
 0x1f6   : > { %2206 = vmatpush.msrb.mxu3 %v876_v44  ;;  %2134 = vmatpush.msrb.mxu0 %v696_v45  ;;  %v680_v2 = vld [vmem:[#allocation6 + $0x298] sm:$0xff]  ;;  %v2346_v41 = vld [vmem:[#allocation6 + $0x17a0] sm:$0xff] }
 0x1f7   : > { %2157 = vmatpush.msrb.mxu1 %v760_v49  ;;  %2184 = vmatpush.msrb.mxu2 %v808_v50  ;;  %v744_v3 = vld [vmem:[#allocation6 + $0x498] sm:$0xff]  ;;  %v2458_v33 = vld [vmem:[#allocation6 + $0x1b20] sm:$0xff] }
 0x1f8   : > { %2207 = vmatpush.msrb.mxu3 %v872_v52  ;;  %2135 = vmatpush.msrb.mxu0 %v692_v53  ;;  %v792_v4 = vld [vmem:[#allocation6 + $0x618] sm:$0xff]  ;;  %v2278_v43 = vld [vmem:[#allocation6 + $0x1580] sm:$0xff]  ;;  %v7168_v52 = vpop.f32.mrf.mxu2 }
 0x1f9   : > { %2158 = vmatpush.msrb.mxu1 %v756_v54  ;;  %2185 = vmatpush.msrb.mxu2 %v804_v40  ;;  %v856_v7 = vld [vmem:[#allocation6 + $0x818] sm:$0xff]  ;;  %v2342_v44 = vld [vmem:[#allocation6 + $0x1780] sm:$0xff] }
 0x1fa   : > { %2208 = vmatpush.msrb.mxu3 %v868_v55  ;;  %2136 = vmatpush.msrb.mxu0 %v688_v20  ;;  %v676_v6 = vld [vmem:[#allocation6 + $0x278] sm:$0xff]  ;;  %v2390_v45 = vld [vmem:[#allocation6 + $0x1900] sm:$0xff] }
 0x1fb   : > { %2159 = vmatpush.msrb.mxu1 %v752_v58  ;;  %2186 = vmatpush.msrb.mxu2 %v800_v29  ;;  %v740_v11 = vld [vmem:[#allocation6 + $0x478] sm:$0xff]  ;;  %v2454_v49 = vld [vmem:[#allocation6 + $0x1b00] sm:$0xff] }
 0x1fc   : > { %2209 = vmatpush.msrb.mxu3 %v864_v59  ;;  %2137 = vmatpush.msrb.mxu0 %v684_v60  ;;  %v672_v12 = vld [vmem:[#allocation6 + $0x258] sm:$0xff]  ;;  %v2274_v50 = vld [vmem:[#allocation6 + $0x1560] sm:$0xff]  ;;  %v7173_v60 = vpop.f32.mrf.mxu3 }
 0x1fd   : > { %2160 = vmatpush.msrb.mxu1 %v748_v62  ;;  %2187 = vmatpush.msrb.mxu2 %v796_v61  ;;  %v736_v15 = vld [vmem:[#allocation6 + $0x458] sm:$0xff]  ;;  %v2338_v53 = vld [vmem:[#allocation6 + $0x1760] sm:$0xff]  ;;  %v7175_v62 = vpop.f32.mrf.mxu1 }
 0x1fe   : > { %2210 = vmatpush.msrb.mxu3 %v860_v1  ;;  %2138 = vmatpush.msrb.mxu0 %v680_v2  ;;  %v668_v17 = vld [vmem:[#allocation6 + $0x238] sm:$0xff]  ;;  %v2386_v54 = vld [vmem:[#allocation6 + $0x18e0] sm:$0xff] }
 0x1ff   : > { %2161 = vmatpush.msrb.mxu1 %v744_v3  ;;  %2188 = vmatpush.msrb.mxu2 %v792_v4  ;;  %v732_v22 = vld [vmem:[#allocation6 + $0x438] sm:$0xff]  ;;  %v2450_v40 = vld [vmem:[#allocation6 + $0x1ae0] sm:$0xff]  ;;  %v7177_v3 = vpop.f32.mrf.mxu0 }
 0x200   : > { %2211 = vmatpush.msrb.mxu3 %v856_v7  ;;  %2139 = vmatpush.msrb.mxu0 %v676_v6  ;;  %v664_v32 = vld [vmem:[#allocation6 + $0x218] sm:$0xff]  ;;  %v2270_v55 = vld [vmem:[#allocation6 + $0x1540] sm:$0xff] }
 0x201   : > { %2189 = vmatmul.f32.vlgmr.msrb.gmra.mxu2 %v6304_v56  ;;  %2162 = vmatpush.msrb.mxu1 %v740_v11  ;;  %v728_v16 = vld [vmem:[#allocation6 + $0x418] sm:$0xff]  ;;  %v2334_v20 = vld [vmem:[#allocation6 + $0x1740] sm:$0xff] }
 0x202   : > { %2665 = vmatpush.msra.mxu3 %v2482_v9  ;;  %2642 = vmatpush.msra.mxu2 %v2418_v10  ;;  %v6306_v31 = vld [vmem:[#allocation2 + $0x10] sm:$0xff]  ;;  %v2382_v58 = vld [vmem:[#allocation6 + $0x18c0] sm:$0xff]  ;;  %v7179_v10 = vpop.f32.mrf.mxu2 }
 0x203   : > { %2140 = vmatpush.msrb.mxu0 %v672_v12  ;;  %2163 = vmatpush.msrb.mxu1 %v736_v15  ;;  %v2446_v29 = vld [vmem:[#allocation6 + $0x1ac0] sm:$0xff] }
 0x204   : > { %2666 = vmatpush.msra.mxu3 %v2478_v13  ;;  %2643 = vmatpush.msra.mxu2 %v2414_v14  ;;  %v2266_v59 = vld [vmem:[#allocation6 + $0x1520] sm:$0xff] }
 0x205   : > { %2141 = vmatpush.msrb.mxu0 %v668_v17  ;;  %2164 = vmatpush.msrb.mxu1 %v732_v22  ;;  %v2330_v61 = vld [vmem:[#allocation6 + $0x1720] sm:$0xff]  ;;  %v2221_v17 = vld [vmem:[#allocation2 + $0x10] sm:$0xf0] }
 0x206   : > { %2667 = vmatpush.msra.mxu3 %v2474_v18  ;;  %2644 = vmatpush.msra.mxu2 %v2410_v21  ;;  %v2378_v1 = vld [vmem:[#allocation6 + $0x18a0] sm:$0xff] }
 0x207   : > { %2142 = vmatpush.msrb.mxu0 %v664_v32  ;;  %2165 = vmatpush.msrb.mxu1 %v728_v16  ;;  %v2262_v2 = vld [vmem:[#allocation6 + $0x1500] sm:$0xff]  ;;  %v7181_v32 = vpop.f32.mrf.mxu3 }
 0x208   : > { %2668 = vmatpush.msra.mxu3 %v2470_v23  ;;  %2645 = vmatpush.msra.mxu2 %v2406_v24  ;;  %v2326_v4 = vld [vmem:[#allocation6 + $0x1700] sm:$0xff] }
 0x209   : > { %2143 = vmatmul.f32.vlgmr.msrb.gmra.mxu0 %v6305_v26  ;;  %2212 = vmatmul.f32.vlgmr.msrb.gmra.mxu3 %v7134_v47  ;;  %v2394_v47 = vld [vmem:[#allocation6 + $0x1920] sm:$0xff]  ;;  %v7183_v26 = vpop.f32.mrf.mxu1 }
 0x20a   : > { %2596 = vmatpush.msra.mxu0 %v2290_v25  ;;  %2166 = vmatmul.f32.vlgmr.msrb.gmra.mxu1 %v6306_v31  ;;  %v2374_v7 = vld [vmem:[#allocation6 + $0x1880] sm:$0xff] }
 0x20b   : > { %2192 = vmatmul.f32.gmra.mxu2 %v7002_v35  ;;  %2619 = vmatpush.msra.mxu1 %v2354_v19  ;;  %v2438_v6 = vld [vmem:[#allocation6 + $0x1a80] sm:$0xff] }
 0x20c   : > { %2646 = vmatpush.msra.mxu2 %v2402_v27  ;;  %2669 = vmatpush.msra.mxu3 %v2466_v28  ;;  %v2258_v9 = vld [vmem:[#allocation6 + $0x14e0] sm:$0xff]  ;;  %v2567_v28 = vrot.slane %v2221_v17, 4 }
 0x20d   : > { %2597 = vmatpush.msra.mxu0 %v2286_v36  ;;  %2620 = vmatpush.msra.mxu1 %v2350_v5  ;;  %v2322_v11 = vld [vmem:[#allocation6 + $0x16e0] sm:$0xff] }
 0x20e   : > { %2647 = vmatpush.msra.mxu2 %v2398_v37  ;;  %2670 = vmatpush.msra.mxu3 %v2462_v38  ;;  %v2370_v12 = vld [vmem:[#allocation6 + $0x1860] sm:$0xff]  ;;  %v7185_v37 = vpop.f32.mrf.mxu0  ;;  %v2568_v38 = vrot.slane %v6999_v34, 4 }
 0x20f   : > { %2598 = vmatpush.msra.mxu0 %v2282_v46  ;;  %2621 = vmatpush.msra.mxu1 %v2346_v41  ;;  %v2434_v13 = vld [vmem:[#allocation6 + $0x1a60] sm:$0xff]  ;;  %v2571_v46 = vrot.slane %v7002_v35, 4  ;;  %v2355_v41 = vld [vmem:[#allocation6 + $0x17e8] sm:$0xff] }
 0x210   : > { %2648 = vmatpush.msra.mxu2 %v2394_v47  ;;  %2671 = vmatpush.msra.mxu3 %v2458_v33  ;;  %v2254_v56 = vld [vmem:[#allocation6 + $0x14c0] sm:$0xff]  ;;  %v2419_v47 = vld [vmem:[#allocation6 + $0x19e8] sm:$0xff]  ;;  %v7189_v33 = vpop.f32.mrf.mxu2 }
 0x211   : > { %2599 = vmatpush.msra.mxu0 %v2278_v43  ;;  %2622 = vmatpush.msra.mxu1 %v2342_v44  ;;  %v2318_v14 = vld [vmem:[#allocation6 + $0x16c0] sm:$0xff]  ;;  %v7194_v43 = vsel %vm2560_vm8, %v2567_v28, %v2568_v38  ;;  %v2399_v28 = vld [vmem:[#allocation6 + $0x1948] sm:$0xff] }
 0x212   : > { %2649 = vmatpush.msra.mxu2 %v2390_v45  ;;  %2672 = vmatpush.msra.mxu3 %v2454_v49  ;;  %v2366_v15 = vld [vmem:[#allocation6 + $0x1840] sm:$0xff]  ;;  %v2331_v35 = vld [vmem:[#allocation6 + $0x1728] sm:$0xff] }
 0x213   : > { %2146 = vmatmul.f32.gmra.mxu0 %v7022_v51  ;;  %2215 = vmatmul.f32.gmra.mxu3 %v7140_v8  ;;  %v2442_v8 = vld [vmem:[#allocation6 + $0x1aa0] sm:$0xff] }
 0x214   : > { %2600 = vmatpush.msra.mxu0 %v2274_v50  ;;  %2169 = vmatmul.f32.gmra.mxu1 %v6999_v34  ;;  %v2430_v18 = vld [vmem:[#allocation6 + $0x1a40] sm:$0xff]  ;;  %v2351_v50 = vld [vmem:[#allocation6 + $0x17c8] sm:$0xff] }
 0x215   : > { %2623 = vmatpush.msra.mxu1 %v2338_v53  ;;  %2650 = vmatpush.msra.mxu2 %v2386_v54  ;;  %v2250_v21 = vld [vmem:[#allocation6 + $0x14a0] sm:$0xff]  ;;  %v2415_v53 = vld [vmem:[#allocation6 + $0x19c8] sm:$0xff]  ;;  %v2220_v54 = vld [vmem:[#allocation2 + $0x8] sm:$0xf0] }
 0x216   : > { %2673 = vmatpush.msra.mxu3 %v2450_v40  ;;  %2601 = vmatpush.msra.mxu0 %v2270_v55  ;;  %v2222_v22 = vld [vmem:[#allocation2 + $0x18] sm:$0xf0] }
 0x217   : > { %2624 = vmatpush.msra.mxu1 %v2334_v20  ;;  %2651 = vmatpush.msra.mxu2 %v2382_v58  ;;  %v2314_v23 = vld [vmem:[#allocation6 + $0x16a0] sm:$0xff]  ;;  %v2570_v31 = vrot.slane %v2222_v22, 4  ;;  %v2226_v20 = vld [vmem:[#allocation2 + $0x60] sm:$0xf] }
 0x218   : > { %2674 = vmatpush.msra.mxu3 %v2446_v29  ;;  %2602 = vmatpush.msra.mxu0 %v2266_v59  ;;  %v2362_v24 = vld [vmem:[#allocation6 + $0x1820] sm:$0xff]  ;;  %v2347_v58 = vld [vmem:[#allocation6 + $0x17a8] sm:$0xff]  ;;  %v2227_v59 = vld [vmem:[#allocation2 + $0x68] sm:$0xf] }
 0x219   : > { %2625 = vmatpush.msra.mxu1 %v2330_v61  ;;  %2652 = vmatpush.msra.mxu2 %v2378_v1  ;;  %v2426_v16 = vld [vmem:[#allocation6 + $0x1a20] sm:$0xff]  ;;  %v7199_v44 = vsel %vm2560_vm8, %v2570_v31, %v2571_v46  ;;  %v2411_v29 = vld [vmem:[#allocation6 + $0x19a8] sm:$0xff]  ;;  %v7203_v61 = vpop.f32.mrf.mxu3 }
 0x21a   : > { %2675 = vmatpush.msra.mxu3 %v2442_v8  ;;  %2603 = vmatpush.msra.mxu0 %v2262_v2  ;;  %v2246_v25 = vld [vmem:[#allocation6 + $0x1480] sm:$0xff]  ;;  %v2561_v2 = vrot.slane %v7072_v57, 4  ;;  %v7210_v57 = vpop.f32.mrf.mxu0  ;;  %v2339_v22 = vld [vmem:[#allocation6 + $0x1768] sm:$0xff] }
 0x21b   : > { %2626 = vmatpush.msra.mxu1 %v2326_v4  ;;  %2653 = vmatpush.msra.mxu2 %v2374_v7  ;;  %v2310_v19 = vld [vmem:[#allocation6 + $0x1680] sm:$0xff]  ;;  %v2562_v4 = vrot.slane %v7026_v63, 4  ;;  %v2343_v7 = vld [vmem:[#allocation6 + $0x1788] sm:$0xff] }
 0x21c   : > { %2676 = vmatpush.msra.mxu3 %v2438_v6  ;;  %2604 = vmatpush.msra.mxu0 %v2258_v9  ;;  %v2358_v27 = vld [vmem:[#allocation6 + $0x1800] sm:$0xff]  ;;  %v2407_v6 = vld [vmem:[#allocation6 + $0x1988] sm:$0xff]  ;;  %v2564_v9 = vrot.slane %v2220_v54, 4 }
 0x21d   : > { %2627 = vmatpush.msra.mxu1 %v2322_v11  ;;  %2654 = vmatpush.msra.mxu2 %v2370_v12  ;;  %v2422_v36 = vld [vmem:[#allocation6 + $0x1a00] sm:$0xff]  ;;  %v7207_v11 = vpop.f32.mrf.mxu1  ;;  %v7215_v17 = vsel %vm2560_vm8, %v2561_v2, %v2562_v4  ;;  %v2319_v63 = vld [vmem:[#allocation6 + $0x16c8] sm:$0xff] }
 0x21e   : > { %2677 = vmatpush.msra.mxu3 %v2434_v13  ;;  %2605 = vmatpush.msra.mxu0 %v2254_v56  ;;  %v2242_v5 = vld [vmem:[#allocation6 + $0x1460] sm:$0xff]  ;;  %v2580_v13 = vrot.slane %v2226_v20, 4  ;;  %v2582_v56 = vrot.slane %v2227_v59, 4  ;;  %v2323_v20 = vld [vmem:[#allocation6 + $0x16e8] sm:$0xff] }
 0x21f   : > { %2628 = vmatpush.msra.mxu1 %v2318_v14  ;;  %2655 = vmatpush.msra.mxu2 %v2366_v15  ;;  %v2306_v45 = vld [vmem:[#allocation6 + $0x1660] sm:$0xff]  ;;  %v2565_v15 = vrot.slane %v7022_v51, 4  ;;  %v2383_v2 = vld [vmem:[#allocation6 + $0x18c8] sm:$0xff] }
 0x220   : > { %2678 = vmatpush.msra.mxu3 %v2430_v18  ;;  %2606 = vmatpush.msra.mxu0 %v2250_v21  ;;  %v2238_v49 = vld [vmem:[#allocation6 + $0x1440] sm:$0xff]  ;;  %v2291_v21 = vld [vmem:[#allocation6 + $0x15e8] sm:$0xff]  ;;  %v7227_v51 = vsel %vm2560_vm8, %v2568_v38, %v2580_v13 }
 0x221   : > { %2629 = vmatpush.msra.mxu1 %v2314_v23  ;;  %2656 = vmatpush.msra.mxu2 %v2362_v24  ;;  %v2302_v40 = vld [vmem:[#allocation6 + $0x1640] sm:$0xff]  ;;  %v7219_v18 = vsel %vm2560_vm8, %v2564_v9, %v2565_v15  ;;  %v7221_v23 = vpop.f32.mrf.mxu2  ;;  %v7232_v24 = vsel %vm2560_vm8, %v2571_v46, %v2582_v56  ;;  %v2395_v46 = vld [vmem:[#allocation6 + $0x1928] sm:$0xff] }
 0x222   : > { %2679 = vmatpush.msra.mxu3 %v2426_v16  ;;  %2607 = vmatpush.msra.mxu0 %v2246_v25  ;;  %v2234_v55 = vld [vmem:[#allocation6 + $0x1420] sm:$0xff]  ;;  %v2403_v16 = vld [vmem:[#allocation6 + $0x1968] sm:$0xff] }
 0x223   : > { %2630 = vmatpush.msra.mxu1 %v2310_v19  ;;  %2657 = vmatpush.msra.mxu2 %v2358_v27  ;;  %v2298_v1 = vld [vmem:[#allocation6 + $0x1620] sm:$0xff]  ;;  %v2287_v19 = vld [vmem:[#allocation6 + $0x15c8] sm:$0xff] }
 0x224   : > { %2680 = vmatpush.msra.mxu3 %v2422_v36  ;;  %2608 = vmatpush.msra.mxu0 %v2242_v5  ;;  %v2230_v8 = vld [vmem:[#allocation6 + $0x1400] sm:$0xff]  ;;  %v2335_v27 = vld [vmem:[#allocation6 + $0x1748] sm:$0xff]  ;;  %v7236_v5 = vpop.f32.mrf.mxu3 }
 0x225   : > { %2658 = vmatmul.f32.vlgmr.msra.gmra.mxu2 %v7194_v43  ;;  %2681 = vmatmul.f32.vlgmr.msra.gmra.mxu3 %v7199_v44  ;;  %v2294_v12 = vld [vmem:[#allocation6 + $0x1600] sm:$0xff]  ;;  %v2283_v36 = vld [vmem:[#allocation6 + $0x15a8] sm:$0xff]  ;;  %v7238_v38 = vpop.f32.mrf.mxu1 }
 0x226   : > { %2734 = vmatpush.msrb.mxu2 %v2355_v41  ;;  %2757 = vmatpush.msrb.mxu3 %v2419_v47  ;;  %v2546_v14 = vld [vmem:[#allocation6 + $0x1de0] sm:$0xff]  ;;  %v2576_v47 = vrot.slane %v7079_v0, 4  ;;  %v2275_v0 = vld [vmem:[#allocation6 + $0x1568] sm:$0xff] }
 0x227   : > { %2631 = vmatpush.msra.mxu1 %v2306_v45  ;;  %2609 = vmatpush.msra.mxu0 %v2238_v49  ;;  %v2542_v25 = vld [vmem:[#allocation6 + $0x1dc0] sm:$0xff]  ;;  %v2279_v45 = vld [vmem:[#allocation6 + $0x1588] sm:$0xff] }
 0x228   : > { %2735 = vmatpush.msrb.mxu2 %v2351_v50  ;;  %2758 = vmatpush.msrb.mxu3 %v2415_v53  ;;  %v2538_v34 = vld [vmem:[#allocation6 + $0x1da0] sm:$0xff]  ;;  %v2327_v49 = vld [vmem:[#allocation6 + $0x1708] sm:$0xff] }
 0x229   : > { %2632 = vmatpush.msra.mxu1 %v2302_v40  ;;  %2610 = vmatpush.msra.mxu0 %v2234_v55  ;;  %v2225_v31 = vld [vmem:[#allocation2 + $0x58] sm:$0xf]  ;;  %v2391_v53 = vld [vmem:[#allocation6 + $0x1908] sm:$0xff]  ;;  %v7241_v40 = vpop.f32.mrf.mxu0  ;;  %v7246_v55 = vsel %vm2560_vm8, %v2562_v4, %v2576_v47 }
 0x22a   : > { %2736 = vmatpush.msrb.mxu2 %v2347_v58  ;;  %2759 = vmatpush.msrb.mxu3 %v2411_v29  ;;  %v2534_v41 = vld [vmem:[#allocation6 + $0x1d80] sm:$0xff]  ;;  %v2578_v50 = vrot.slane %v2225_v31, 4  ;;  %v2387_v29 = vld [vmem:[#allocation6 + $0x18e8] sm:$0xff] }
 0x22b   : > { %2633 = vmatpush.msra.mxu1 %v2298_v1  ;;  %2611 = vmatpush.msra.mxu0 %v2230_v8  ;;  %v2530_v54 = vld [vmem:[#allocation6 + $0x1d60] sm:$0xff]  ;;  %v7252_v1 = vpop.f32.mrf.mxu2  ;;  %v2271_v8 = vld [vmem:[#allocation6 + $0x1548] sm:$0xff] }
 0x22c   : > { %2737 = vmatpush.msrb.mxu2 %v2343_v7  ;;  %2760 = vmatpush.msrb.mxu3 %v2407_v6  ;;  %v7250_v58 = vsel %vm2560_vm8, %v2565_v15, %v2578_v50  ;;  %v2526_v59 = vld [vmem:[#allocation6 + $0x1d40] sm:$0xff]  ;;  %8123 = vst [vmem:[#allocation25_spill] sm:$0xff] %v7252_v1  ;;  %v2267_v7 = vld [vmem:[#allocation6 + $0x1528] sm:$0xff]  ;;  %v7255_v13 = vpop.f32.mrf.mxu3 }
 0x22d   : > { %2612 = vmatmul.f32.vlgmr.msra.gmra.mxu0 %v7215_v17  ;;  %2634 = vmatpush.msra.mxu1 %v2294_v12  ;;  %v2522_v4 = vld [vmem:[#allocation6 + $0x1d20] sm:$0xff]  ;;  %v2315_v6 = vld [vmem:[#allocation6 + $0x16a8] sm:$0xff]  ;;  %8124 = vst [vmem:[#allocation26_spill] sm:$0xff] %v7255_v13  ;;  %v7257_v56 = vpop.f32.mrf.mxu1 }
 0x22e   : > { %2688 = vmatpush.msrb.mxu0 %v2546_v14  ;;  %2635 = vmatmul.f32.vlgmr.msra.gmra.mxu1 %v7219_v18  ;;  %v2379_v9 = vld [vmem:[#allocation6 + $0x18a8] sm:$0xff]  ;;  %v2518_v12 = vld [vmem:[#allocation6 + $0x1d00] sm:$0xff] }
 0x22f   : > { %2661 = vmatmul.f32.gmra.mxu2 %v7227_v51  ;;  %2684 = vmatmul.f32.gmra.mxu3 %v7232_v24  ;;  %v2263_v14 = vld [vmem:[#allocation6 + $0x1508] sm:$0xff] }
 0x230   : > { %2711 = vmatpush.msrb.mxu1 %v2291_v21  ;;  %2738 = vmatpush.msrb.mxu2 %v2339_v22  ;;  %v2311_v15 = vld [vmem:[#allocation6 + $0x1688] sm:$0xff]  ;;  %v2514_v22 = vld [vmem:[#allocation6 + $0x1ce0] sm:$0xff] }
 0x231   : > { %2761 = vmatpush.msrb.mxu3 %v2403_v16  ;;  %2689 = vmatpush.msrb.mxu0 %v2542_v25  ;;  %v2375_v21 = vld [vmem:[#allocation6 + $0x1888] sm:$0xff]  ;;  %v7259_v16 = vpop.f32.mrf.mxu0 }
 0x232   : > { %2712 = vmatpush.msrb.mxu1 %v2287_v19  ;;  %2739 = vmatpush.msrb.mxu2 %v2335_v27  ;;  %8125 = vst [vmem:[#allocation27_spill] sm:$0xff] %v7259_v16  ;;  %v2259_v25 = vld [vmem:[#allocation6 + $0x14e8] sm:$0xff] }
 0x233   : > { %2762 = vmatpush.msrb.mxu3 %v2399_v28  ;;  %2690 = vmatpush.msrb.mxu0 %v2538_v34  ;;  %v2307_v19 = vld [vmem:[#allocation6 + $0x1668] sm:$0xff]  ;;  %v2510_v28 = vld [vmem:[#allocation6 + $0x1cc0] sm:$0xff] }
 0x234   : > { %2713 = vmatpush.msrb.mxu1 %v2283_v36  ;;  %2740 = vmatpush.msrb.mxu2 %v2331_v35  ;;  %v2371_v27 = vld [vmem:[#allocation6 + $0x1868] sm:$0xff]  ;;  %v2506_v35 = vld [vmem:[#allocation6 + $0x1ca0] sm:$0xff] }
 0x235   : > { %2763 = vmatpush.msrb.mxu3 %v2395_v46  ;;  %2691 = vmatpush.msrb.mxu0 %v2534_v41  ;;  %v2255_v34 = vld [vmem:[#allocation6 + $0x14c8] sm:$0xff]  ;;  %v7261_v46 = vpop.f32.mrf.mxu2  ;;  %v7263_v50 = vpop.f32.mrf.mxu1 }
 0x236   : > { %2714 = vmatpush.msrb.mxu1 %v2279_v45  ;;  %2741 = vmatpush.msrb.mxu2 %v2327_v49  ;;  %v2303_v31 = vld [vmem:[#allocation6 + $0x1648] sm:$0xff]  ;;  %8126 = vst [vmem:[#allocation28_spill] sm:$0xff] %v7261_v46  ;;  %v2502_v49 = vld [vmem:[#allocation6 + $0x1c80] sm:$0xff] }
 0x237   : > { %2764 = vmatpush.msrb.mxu3 %v2391_v53  ;;  %2615 = vmatmul.f32.gmra.mxu0 %v7246_v55  ;;  %v2367_v36 = vld [vmem:[#allocation6 + $0x1848] sm:$0xff]  ;;  %8127 = vst [vmem:[#allocation29_spill] sm:$0xff] %v7263_v50 }
 0x238   : > { %2692 = vmatpush.msrb.mxu0 %v2530_v54  ;;  %2638 = vmatmul.f32.gmra.mxu1 %v7250_v58  ;;  %v2251_v41 = vld [vmem:[#allocation6 + $0x14a8] sm:$0xff] }
 0x239   : > { %2715 = vmatpush.msrb.mxu1 %v2275_v0  ;;  %2742 = vmatpush.msrb.mxu2 %v2323_v20  ;;  %v2299_v47 = vld [vmem:[#allocation6 + $0x1628] sm:$0xff]  ;;  %v2498_v20 = vld [vmem:[#allocation6 + $0x1c60] sm:$0xff] }
 0x23a   : > { %2765 = vmatpush.msrb.mxu3 %v2387_v29  ;;  %2693 = vmatpush.msrb.mxu0 %v2526_v59  ;;  %v2363_v45 = vld [vmem:[#allocation6 + $0x1828] sm:$0xff]  ;;  %v7265_v29 = vpop.f32.mrf.mxu3  ;;  %v2292_v59 = vld [vmem:[#allocation6 + $0x15f0] sm:$0xff] }
 0x23b   : > { %2716 = vmatpush.msrb.mxu1 %v2271_v8  ;;  %2743 = vmatpush.msrb.mxu2 %v2319_v63  ;;  %v2247_v53 = vld [vmem:[#allocation6 + $0x1488] sm:$0xff]  ;;  %8128 = vst [vmem:[#allocation30_spill] sm:$0xff] %v7265_v29  ;;  %v2356_v8 = vld [vmem:[#allocation6 + $0x17f0] sm:$0xff] }
 0x23c   : > { %2766 = vmatpush.msrb.mxu3 %v2383_v2  ;;  %2694 = vmatpush.msrb.mxu0 %v2522_v4  ;;  %v2295_v54 = vld [vmem:[#allocation6 + $0x1608] sm:$0xff]  ;;  %v7267_v2 = vpop.f32.mrf.mxu0  ;;  %v2384_v29 = vld [vmem:[#allocation6 + $0x18d0] sm:$0xff] }
 0x23d   : > { %2717 = vmatpush.msrb.mxu1 %v2267_v7  ;;  %2744 = vmatpush.msrb.mxu2 %v2315_v6  ;;  %v2359_v0 = vld [vmem:[#allocation6 + $0x1808] sm:$0xff]  ;;  %8129 = vst [vmem:[#allocation31_spill] sm:$0xff] %v7267_v2  ;;  %v2494_v7 = vld [vmem:[#allocation6 + $0x1c40] sm:$0xff]  ;;  %v2288_v6 = vld [vmem:[#allocation6 + $0x15d0] sm:$0xff] }
 0x23e   : > { %2767 = vmatpush.msrb.mxu3 %v2379_v9  ;;  %2695 = vmatpush.msrb.mxu0 %v2518_v12  ;;  %v2223_v63 = vld [vmem:[#allocation2 + $0x20] sm:$0xf0]  ;;  %v2352_v9 = vld [vmem:[#allocation6 + $0x17d0] sm:$0xff]  ;;  %v7271_v12 = vpop.f32.mrf.mxu2 }
 0x23f   : > { %2718 = vmatpush.msrb.mxu1 %v2263_v14  ;;  %2745 = vmatpush.msrb.mxu2 %v2311_v15  ;;  %v2243_v4 = vld [vmem:[#allocation6 + $0x1468] sm:$0xff]  ;;  %8130 = vst [vmem:[#allocation32_spill] sm:$0xff] %v7271_v12  ;;  %v2490_v15 = vld [vmem:[#allocation6 + $0x1c20] sm:$0xff] }
 0x240   : > { %2768 = vmatpush.msrb.mxu3 %v2375_v21  ;;  %2696 = vmatpush.msrb.mxu0 %v2514_v22  ;;  %v2239_v14 = vld [vmem:[#allocation6 + $0x1448] sm:$0xff]  ;;  %v2573_v21 = vrot.slane %v2223_v63, 4  ;;  %v7273_v22 = vld [vmem:[#allocation2 + $0x48] sm:$0xff] }
 0x241   : > { %2719 = vmatpush.msrb.mxu1 %v2259_v25  ;;  %2746 = vmatpush.msrb.mxu2 %v2307_v19  ;;  %v2574_v25 = vrot.slane %v7273_v22, 4  ;;  %v2284_v19 = vld [vmem:[#allocation6 + $0x15b0] sm:$0xff]  ;;  %v2543_v63 = vld [vmem:[#allocation6 + $0x1dc8] sm:$0xff] }
 0x242   : > { %2769 = vmatpush.msrb.mxu3 %v2371_v27  ;;  %2697 = vmatpush.msrb.mxu0 %v2510_v28  ;;  %v2348_v27 = vld [vmem:[#allocation6 + $0x17b0] sm:$0xff]  ;;  %v2235_v28 = vld [vmem:[#allocation6 + $0x1428] sm:$0xff] }
 0x243   : > { %2720 = vmatpush.msrb.mxu1 %v2255_v34  ;;  %2747 = vmatpush.msrb.mxu2 %v2303_v31  ;;  %v2486_v34 = vld [vmem:[#allocation6 + $0x1c00] sm:$0xff]  ;;  %v2280_v31 = vld [vmem:[#allocation6 + $0x1590] sm:$0xff] }
 0x244   : > { %2770 = vmatpush.msrb.mxu3 %v2367_v36  ;;  %2698 = vmatpush.msrb.mxu0 %v2506_v35  ;;  %v2344_v36 = vld [vmem:[#allocation6 + $0x1790] sm:$0xff]  ;;  %v7276_v35 = vpop.f32.mrf.mxu3 }
 0x245   : > { %2721 = vmatpush.msrb.mxu1 %v2251_v41  ;;  %2748 = vmatpush.msrb.mxu2 %v2299_v47  ;;  %8131 = vst [vmem:[#allocation33_spill] sm:$0xff] %v7276_v35  ;;  %v7278_v41 = vpop.f32.mrf.mxu1  ;;  %v7281_v47 = vsel %vm2560_vm8, %v2573_v21, %v2574_v25  ;;  %v2268_v21 = vld [vmem:[#allocation6 + $0x1530] sm:$0xff] }
 0x246   : > { %2771 = vmatpush.msrb.mxu3 %v2363_v45  ;;  %2699 = vmatpush.msrb.mxu0 %v2502_v49  ;;  %8132 = vst [vmem:[#allocation34_spill] sm:$0xff] %v7278_v41  ;;  %v2231_v45 = vld [vmem:[#allocation6 + $0x1408] sm:$0xff] }
 0x247   : > { %2722 = vmatpush.msrb.mxu1 %v2247_v53  ;;  %2749 = vmatpush.msrb.mxu2 %v2295_v54  ;;  %v2483_v49 = vld [vmem:[#allocation6 + $0x1be8] sm:$0xff]  ;;  %v7283_v53 = vpop.f32.mrf.mxu0 }
 0x248   : > { %2772 = vmatpush.msrb.mxu3 %v2359_v0  ;;  %2700 = vmatpush.msrb.mxu0 %v2498_v20  ;;  %8133 = vst [vmem:[#allocation35_spill] sm:$0xff] %v7283_v53  ;;  %v2547_v54 = vld [vmem:[#allocation6 + $0x1de8] sm:$0xff]  ;;  %v2276_v0 = vld [vmem:[#allocation6 + $0x1570] sm:$0xff]  ;;  %v2228_v20 = vld [vmem:[#allocation2 + $0x70] sm:$0xf] }
 0x249   : > { %2750 = vmatmul.f32.vlgmr.msrb.gmra.mxu2 %v7219_v18  ;;  %2773 = vmatmul.f32.vlgmr.msrb.gmra.mxu3 %v7194_v43 }
 0x24a   : > { %2826 = vmatpush.msra.mxu2 %v2292_v59  ;;  %2849 = vmatpush.msra.mxu3 %v2356_v8  ;;  %v2340_v59 = vld [vmem:[#allocation6 + $0x1770] sm:$0xff]  ;;  %v2479_v8 = vld [vmem:[#allocation6 + $0x1bc8] sm:$0xff] }
 0x24b   : > { %2723 = vmatpush.msrb.mxu1 %v2243_v4  ;;  %2701 = vmatpush.msrb.mxu0 %v2494_v7  ;;  %v2272_v4 = vld [vmem:[#allocation6 + $0x1550] sm:$0xff]  ;;  %v7289_v7 = vpop.f32.mrf.mxu2 }
 0x24c   : > { %2827 = vmatpush.msra.mxu2 %v2288_v6  ;;  %2850 = vmatpush.msra.mxu3 %v2352_v9  ;;  %8134 = vst [vmem:[#allocation36_spill] sm:$0xff] %v7289_v7  ;;  %v2336_v6 = vld [vmem:[#allocation6 + $0x1750] sm:$0xff]  ;;  %v2475_v9 = vld [vmem:[#allocation6 + $0x1ba8] sm:$0xff] }
 0x24d   : > { %2724 = vmatpush.msrb.mxu1 %v2239_v14  ;;  %2702 = vmatpush.msrb.mxu0 %v2490_v15  ;;  %v2584_v14 = vrot.slane %v2228_v20, 4  ;;  %v2539_v15 = vld [vmem:[#allocation6 + $0x1da8] sm:$0xff]  ;;  %v7291_v22 = vpop.f32.mrf.mxu1  ;;  %v2260_v20 = vld [vmem:[#allocation6 + $0x14f0] sm:$0xff] }
 0x24e   : > { %2828 = vmatpush.msra.mxu2 %v2284_v19  ;;  %2851 = vmatpush.msra.mxu3 %v2348_v27  ;;  %8135 = vst [vmem:[#allocation37_spill] sm:$0xff] %v7291_v22  ;;  %v2332_v19 = vld [vmem:[#allocation6 + $0x1730] sm:$0xff]  ;;  %v2471_v27 = vld [vmem:[#allocation6 + $0x1b88] sm:$0xff] }
 0x24f   : > { %2725 = vmatpush.msrb.mxu1 %v2235_v28  ;;  %2703 = vmatpush.msrb.mxu0 %v2486_v34  ;;  %v2535_v28 = vld [vmem:[#allocation6 + $0x1d88] sm:$0xff]  ;;  %v2264_v34 = vld [vmem:[#allocation6 + $0x1510] sm:$0xff] }
 0x250   : > { %2829 = vmatpush.msra.mxu2 %v2280_v31  ;;  %2852 = vmatpush.msra.mxu3 %v2344_v36  ;;  %v7293_v31 = vpop.f32.mrf.mxu3  ;;  %v2328_v36 = vld [vmem:[#allocation6 + $0x1710] sm:$0xff] }
 0x251   : > { %2704 = vmatmul.f32.vlgmr.msrb.gmra.mxu0 %v7281_v47  ;;  %2726 = vmatpush.msrb.mxu1 %v2231_v45  ;;  %8136 = vst [vmem:[#allocation38_spill] sm:$0xff] %v7293_v31  ;;  %v7296_v45 = vsel %vm2560_vm8, %v2574_v25, %v2584_v14  ;;  %v2527_v25 = vld [vmem:[#allocation6 + $0x1d48] sm:$0xff]  ;;  %v2520_v22 = vld [vmem:[#allocation6 + $0x1d10] sm:$0xff] }
 0x252   : > { %2780 = vmatpush.msra.mxu0 %v2483_v49  ;;  %2727 = vmatmul.f32.vlgmr.msrb.gmra.mxu1 %v7215_v17  ;;  %v2467_v49 = vld [vmem:[#allocation6 + $0x1b68] sm:$0xff]  ;;  %v2392_v7 = vld [vmem:[#allocation6 + $0x1910] sm:$0xff] }
 0x253   : > { %2753 = vmatmul.f32.gmra.mxu2 %v7250_v58  ;;  %2776 = vmatmul.f32.gmra.mxu3 %v7227_v51  ;;  %v2523_v14 = vld [vmem:[#allocation6 + $0x1d28] sm:$0xff] }
 0x254   : > { %2803 = vmatpush.msra.mxu1 %v2547_v54  ;;  %2830 = vmatpush.msra.mxu2 %v2276_v0  ;;  %v7298_v54 = vpop.f32.mrf.mxu0  ;;  %v2531_v0 = vld [vmem:[#allocation6 + $0x1d68] sm:$0xff] }
 0x255   : > { %2853 = vmatpush.msra.mxu3 %v2340_v59  ;;  %2781 = vmatpush.msra.mxu0 %v2479_v8  ;;  %8137 = vst [vmem:[#allocation39_spill] sm:$0xff] %v7298_v54  ;;  %v2324_v59 = vld [vmem:[#allocation6 + $0x16f0] sm:$0xff]  ;;  %v2463_v8 = vld [vmem:[#allocation6 + $0x1b48] sm:$0xff] }
 0x256   : > { %2804 = vmatpush.msra.mxu1 %v2543_v63  ;;  %2831 = vmatpush.msra.mxu2 %v2272_v4  ;;  %v7301_v63 = vpop.f32.mrf.mxu2  ;;  %v2256_v4 = vld [vmem:[#allocation6 + $0x14d0] sm:$0xff] }
 0x257   : > { %2854 = vmatpush.msra.mxu3 %v2336_v6  ;;  %2782 = vmatpush.msra.mxu0 %v2475_v9  ;;  %8138 = vst [vmem:[#allocation40_spill] sm:$0xff] %v7301_v63  ;;  %v2320_v6 = vld [vmem:[#allocation6 + $0x16d0] sm:$0xff]  ;;  %v2459_v9 = vld [vmem:[#allocation6 + $0x1b28] sm:$0xff] }
 0x258   : > { %2805 = vmatpush.msra.mxu1 %v2539_v15  ;;  %2832 = vmatpush.msra.mxu2 %v2268_v21  ;;  %v2252_v15 = vld [vmem:[#allocation6 + $0x14b0] sm:$0xff] }
 0x259   : > { %2855 = vmatpush.msra.mxu3 %v2332_v19  ;;  %2783 = vmatpush.msra.mxu0 %v2471_v27  ;;  %v2316_v21 = vld [vmem:[#allocation6 + $0x16b0] sm:$0xff]  ;;  %v2455_v19 = vld [vmem:[#allocation6 + $0x1b08] sm:$0xff]  ;;  %v7304_v27 = vpop.f32.mrf.mxu3 }
 0x25a   : > { %2806 = vmatpush.msra.mxu1 %v2535_v28  ;;  %2833 = vmatpush.msra.mxu2 %v2264_v34  ;;  %8139 = vst [vmem:[#allocation41_spill] sm:$0xff] %v7304_v27  ;;  %v7306_v28 = vpop.f32.mrf.mxu1  ;;  %v2519_v34 = vld [vmem:[#allocation6 + $0x1d08] sm:$0xff]  ;;  %v2408_v63 = vld [vmem:[#allocation6 + $0x1990] sm:$0xff] }
 0x25b   : > { %2856 = vmatpush.msra.mxu3 %v2328_v36  ;;  %2707 = vmatmul.f32.gmra.mxu0 %v7296_v45  ;;  %8140 = vst [vmem:[#allocation42_spill] sm:$0xff] %v7306_v28  ;;  %v2248_v36 = vld [vmem:[#allocation6 + $0x1490] sm:$0xff] }
 0x25c   : > { %2784 = vmatpush.msra.mxu0 %v2467_v49  ;;  %2730 = vmatmul.f32.gmra.mxu1 %v7246_v55  ;;  %v2312_v49 = vld [vmem:[#allocation6 + $0x1690] sm:$0xff] }
 0x25d   : > { %2807 = vmatpush.msra.mxu1 %v2531_v0  ;;  %2834 = vmatpush.msra.mxu2 %v2260_v20  ;;  %v2451_v0 = vld [vmem:[#allocation6 + $0x1ae8] sm:$0xff]  ;;  %v7308_v20 = vpop.f32.mrf.mxu0 }
 0x25e   : > { %2857 = vmatpush.msra.mxu3 %v2324_v59  ;;  %2785 = vmatpush.msra.mxu0 %v2463_v8  ;;  %v2515_v59 = vld [vmem:[#allocation6 + $0x1ce8] sm:$0xff]  ;;  %v2244_v8 = vld [vmem:[#allocation6 + $0x1470] sm:$0xff]  ;;  %v7310_v30 = vpop.f32.mrf.mxu2 }
 0x25f   : > { %2808 = vmatpush.msra.mxu1 %v2527_v25  ;;  %2835 = vmatpush.msra.mxu2 %v2256_v4  ;;  %v2308_v25 = vld [vmem:[#allocation6 + $0x1670] sm:$0xff]  ;;  %v2447_v4 = vld [vmem:[#allocation6 + $0x1ac8] sm:$0xff]  ;;  %8141 = vst [vmem:[#allocation43_spill] sm:$0xff] %v7310_v30  ;;  %v2281_v30 = vld [vmem:[#allocation6 + $0x1598] sm:$0xff] }
 0x260   : > { %2858 = vmatpush.msra.mxu3 %v2320_v6  ;;  %2786 = vmatpush.msra.mxu0 %v2459_v9  ;;  %v2511_v6 = vld [vmem:[#allocation6 + $0x1cc8] sm:$0xff]  ;;  %v2240_v9 = vld [vmem:[#allocation6 + $0x1450] sm:$0xff] }
 0x261   : > { %2809 = vmatpush.msra.mxu1 %v2523_v14  ;;  %2836 = vmatpush.msra.mxu2 %v2252_v15  ;;  %v2304_v14 = vld [vmem:[#allocation6 + $0x1650] sm:$0xff]  ;;  %v2443_v15 = vld [vmem:[#allocation6 + $0x1aa8] sm:$0xff]  ;;  %v7314_v27 = vpop.f32.mrf.mxu3 }
 0x262   : > { %2859 = vmatpush.msra.mxu3 %v2316_v21  ;;  %2787 = vmatpush.msra.mxu0 %v2455_v19  ;;  %v2507_v21 = vld [vmem:[#allocation6 + $0x1ca8] sm:$0xff]  ;;  %v2236_v19 = vld [vmem:[#allocation6 + $0x1430] sm:$0xff]  ;;  %v7312_v28 = vpop.f32.mrf.mxu1  ;;  %8142 = vst [vmem:[#allocation44_spill] sm:$0xff] %v7314_v27 }
 0x263   : > { %2810 = vmatpush.msra.mxu1 %v2519_v34  ;;  %2837 = vmatpush.msra.mxu2 %v2248_v36  ;;  %v2300_v34 = vld [vmem:[#allocation6 + $0x1630] sm:$0xff]  ;;  %v2439_v36 = vld [vmem:[#allocation6 + $0x1a88] sm:$0xff] }
 0x264   : > { %2860 = vmatpush.msra.mxu3 %v2312_v49  ;;  %2788 = vmatpush.msra.mxu0 %v2451_v0  ;;  %v2503_v49 = vld [vmem:[#allocation6 + $0x1c88] sm:$0xff]  ;;  %v2232_v0 = vld [vmem:[#allocation6 + $0x1410] sm:$0xff] }
 0x265   : > { %2811 = vmatpush.msra.mxu1 %v2515_v59  ;;  %2838 = vmatpush.msra.mxu2 %v2244_v8  ;;  %v2296_v59 = vld [vmem:[#allocation6 + $0x1610] sm:$0xff]  ;;  %v2435_v8 = vld [vmem:[#allocation6 + $0x1a68] sm:$0xff] }
 0x266   : > { %2861 = vmatpush.msra.mxu3 %v2308_v25  ;;  %2789 = vmatpush.msra.mxu0 %v2447_v4  ;;  %v2548_v25 = vld [vmem:[#allocation6 + $0x1df0] sm:$0xff]  ;;  %v2293_v4 = vld [vmem:[#allocation6 + $0x15f8] sm:$0xff] }
 0x267   : > { %2812 = vmatpush.msra.mxu1 %v2511_v6  ;;  %2839 = vmatpush.msra.mxu2 %v2240_v9  ;;  %v7316_v6 = vpop.f32.mrf.mxu0  ;;  %v2499_v9 = vld [vmem:[#allocation6 + $0x1c68] sm:$0xff]  ;;  %v2536_v27 = vld [vmem:[#allocation6 + $0x1d90] sm:$0xff] }
 0x268   : > { %2862 = vmatpush.msra.mxu3 %v2304_v14  ;;  %2790 = vmatpush.msra.mxu0 %v2443_v15  ;;  %v2431_v14 = vld [vmem:[#allocation6 + $0x1a48] sm:$0xff]  ;;  %v2544_v15 = vld [vmem:[#allocation6 + $0x1dd0] sm:$0xff] }
 0x269   : > { %2813 = vmatpush.msra.mxu1 %v2507_v21  ;;  %2840 = vmatpush.msra.mxu2 %v2236_v19  ;;  %v2289_v21 = vld [vmem:[#allocation6 + $0x15d8] sm:$0xff]  ;;  %v7320_v19 = vpop.f32.mrf.mxu2  ;;  %v7322_v54 = vpop.f32.mrf.mxu3 }
 0x26a   : > { %2863 = vmatpush.msra.mxu3 %v2300_v34  ;;  %2791 = vmatpush.msra.mxu0 %v2439_v36  ;;  %v2495_v34 = vld [vmem:[#allocation6 + $0x1c48] sm:$0xff]  ;;  %v7324_v31 = vpop.f32.mrf.mxu1 }
 0x26b   : > { %2814 = vmatpush.msra.mxu1 %v2503_v49  ;;  %2841 = vmatpush.msra.mxu2 %v2232_v0  ;;  %v2427_v36 = vld [vmem:[#allocation6 + $0x1a28] sm:$0xff]  ;;  %v2540_v49 = vld [vmem:[#allocation6 + $0x1db0] sm:$0xff]  ;;  %v2285_v0 = vld [vmem:[#allocation6 + $0x15b8] sm:$0xff] }
 0x26c   : > { %2864 = vmatpush.msra.mxu3 %v2296_v59  ;;  %2792 = vmatpush.msra.mxu0 %v2435_v8  ;;  %v2491_v59 = vld [vmem:[#allocation6 + $0x1c28] sm:$0xff] }
 0x26d   : > { %2842 = vmatmul.f32.vlgmr.msra.gmra.mxu2 %v7215_v17  ;;  %2865 = vmatmul.f32.vlgmr.msra.gmra.mxu3 %v7219_v18  ;;  %v2423_v8 = vld [vmem:[#allocation6 + $0x1a08] sm:$0xff] }
 0x26e   : > { %2918 = vmatpush.msrb.mxu2 %v2548_v25  ;;  %2941 = vmatpush.msrb.mxu3 %v2293_v4  ;;  %v2487_v25 = vld [vmem:[#allocation6 + $0x1c08] sm:$0xff]  ;;  %v2420_v4 = vld [vmem:[#allocation6 + $0x19f0] sm:$0xff] }
 0x26f   : > { %2815 = vmatpush.msra.mxu1 %v2499_v9  ;;  %2793 = vmatpush.msra.mxu0 %v2431_v14  ;;  %v7326_v9 = vpop.f32.mrf.mxu0  ;;  %v2484_v14 = vld [vmem:[#allocation6 + $0x1bf0] sm:$0xff] }
 0x270   : > { %2919 = vmatpush.msrb.mxu2 %v2544_v15  ;;  %2942 = vmatpush.msrb.mxu3 %v2289_v21  ;;  %v2532_v15 = vld [vmem:[#allocation6 + $0x1d70] sm:$0xff]  ;;  %v2277_v21 = vld [vmem:[#allocation6 + $0x1578] sm:$0xff] }
 0x271   : > { %2816 = vmatpush.msra.mxu1 %v2495_v34  ;;  %2794 = vmatpush.msra.mxu0 %v2427_v36  ;;  %v2416_v34 = vld [vmem:[#allocation6 + $0x19d0] sm:$0xff]  ;;  %v7336_v53 = vpop.f32.mrf.mxu3 }
 0x272   : > { %2920 = vmatpush.msrb.mxu2 %v2540_v49  ;;  %2943 = vmatpush.msrb.mxu3 %v2285_v0  ;;  %v2480_v36 = vld [vmem:[#allocation6 + $0x1bd0] sm:$0xff]  ;;  %v7331_v0 = vpop.f32.mrf.mxu2 }
 0x273   : > { %2817 = vmatpush.msra.mxu1 %v2491_v59  ;;  %2795 = vmatpush.msra.mxu0 %v2423_v8  ;;  %v2528_v49 = vld [vmem:[#allocation6 + $0x1d50] sm:$0xff] }
 0x274   : > { %2921 = vmatpush.msrb.mxu2 %v2536_v27  ;;  %2944 = vmatpush.msrb.mxu3 %v2281_v30  ;;  %v2273_v30 = vld [vmem:[#allocation6 + $0x1558] sm:$0xff]  ;;  %v2412_v27 = vld [vmem:[#allocation6 + $0x19b0] sm:$0xff] }
 0x275   : > { %2796 = vmatmul.f32.vlgmr.msra.gmra.mxu0 %v7199_v44  ;;  %2818 = vmatpush.msra.mxu1 %v2487_v25  ;;  %v2476_v59 = vld [vmem:[#allocation6 + $0x1bb0] sm:$0xff]  ;;  %v7334_v25 = vpop.f32.mrf.mxu1 }
 0x276   : > { %2872 = vmatpush.msrb.mxu0 %v2420_v4  ;;  %2845 = vmatmul.f32.gmra.mxu2 %v7246_v55  ;;  %v2524_v8 = vld [vmem:[#allocation6 + $0x1d30] sm:$0xff]  ;;  %v2269_v4 = vld [vmem:[#allocation6 + $0x1538] sm:$0xff] }
 0x277   : > { %2868 = vmatmul.f32.gmra.mxu3 %v7250_v58  ;;  %2895 = vmatpush.msrb.mxu1 %v2484_v14  ;;  %v2472_v14 = vld [vmem:[#allocation6 + $0x1b90] sm:$0xff]  ;;  %v7338_v35 = vpop.f32.mrf.mxu0 }
 0x278   : > { %2922 = vmatpush.msrb.mxu2 %v2532_v15  ;;  %2945 = vmatpush.msrb.mxu3 %v2277_v21  ;;  %v2265_v15 = vld [vmem:[#allocation6 + $0x1518] sm:$0xff]  ;;  %v2404_v21 = vld [vmem:[#allocation6 + $0x1970] sm:$0xff] }
 0x279   : > { %2819 = vmatmul.f32.vlgmr.msra.gmra.mxu1 %v7281_v47  ;;  %2873 = vmatpush.msrb.mxu0 %v2416_v34  ;;  %v2468_v34 = vld [vmem:[#allocation6 + $0x1b70] sm:$0xff]  ;;  %v7344_v41 = vpop.f32.mrf.mxu3 }
 0x27a   : > { %2896 = vmatpush.msrb.mxu1 %v2480_v36  ;;  %2923 = vmatpush.msrb.mxu2 %v2528_v49  ;;  %v2516_v36 = vld [vmem:[#allocation6 + $0x1cf0] sm:$0xff]  ;;  %v2261_v49 = vld [vmem:[#allocation6 + $0x14f8] sm:$0xff] }
 0x27b   : > { %2946 = vmatpush.msrb.mxu3 %v2273_v30  ;;  %2874 = vmatpush.msrb.mxu0 %v2412_v27  ;;  %v2400_v30 = vld [vmem:[#allocation6 + $0x1950] sm:$0xff]  ;;  %v7341_v27 = vpop.f32.mrf.mxu2 }
 0x27c   : > { %2897 = vmatpush.msrb.mxu1 %v2476_v59  ;;  %2924 = vmatpush.msrb.mxu2 %v2524_v8  ;;  %v2464_v59 = vld [vmem:[#allocation6 + $0x1b50] sm:$0xff] }
 0x27d   : > { %2947 = vmatpush.msrb.mxu3 %v2269_v4  ;;  %2875 = vmatpush.msrb.mxu0 %v2408_v63  ;;  %v2512_v8 = vld [vmem:[#allocation6 + $0x1cd0] sm:$0xff]  ;;  %v2257_v63 = vld [vmem:[#allocation6 + $0x14d8] sm:$0xff]  ;;  %v7346_v2 = vpop.f32.mrf.mxu1 }
 0x27e   : > { %2898 = vmatpush.msrb.mxu1 %v2472_v14  ;;  %2925 = vmatpush.msrb.mxu2 %v2520_v22  ;;  %v2396_v4 = vld [vmem:[#allocation6 + $0x1930] sm:$0xff] }
 0x27f   : > { %2948 = vmatpush.msrb.mxu3 %v2265_v15  ;;  %2799 = vmatmul.f32.gmra.mxu0 %v7232_v24  ;;  %v2460_v22 = vld [vmem:[#allocation6 + $0x1b30] sm:$0xff]  ;;  %v2253_v15 = vld [vmem:[#allocation6 + $0x14b8] sm:$0xff]  ;;  %v7348_v12 = vpop.f32.mrf.mxu0 }
 0x280   : > { %2876 = vmatpush.msrb.mxu0 %v2404_v21  ;;  %2899 = vmatpush.msrb.mxu1 %v2468_v34  ;;  %v2508_v14 = vld [vmem:[#allocation6 + $0x1cb0] sm:$0xff] }
 0x281   : > { %2926 = vmatpush.msrb.mxu2 %v2516_v36  ;;  %2949 = vmatpush.msrb.mxu3 %v2261_v49  ;;  %v2456_v21 = vld [vmem:[#allocation6 + $0x1b10] sm:$0xff]  ;;  %v2249_v36 = vld [vmem:[#allocation6 + $0x1498] sm:$0xff]  ;;  %v7354_v16 = vpop.f32.mrf.mxu3 }
 0x282   : > { %2822 = vmatmul.f32.gmra.mxu1 %v7296_v45  ;;  %2877 = vmatpush.msrb.mxu0 %v2400_v30  ;;  %v2504_v34 = vld [vmem:[#allocation6 + $0x1c90] sm:$0xff] }
 0x283   : > { %2900 = vmatpush.msrb.mxu1 %v2464_v59  ;;  %2927 = vmatpush.msrb.mxu2 %v2512_v8  ;;  %v2388_v49 = vld [vmem:[#allocation6 + $0x18f0] sm:$0xff]  ;;  %v2245_v8 = vld [vmem:[#allocation6 + $0x1478] sm:$0xff]  ;;  %v7350_v46 = vpop.f32.mrf.mxu2 }
 0x284   : > { %2950 = vmatpush.msrb.mxu3 %v2257_v63  ;;  %2878 = vmatpush.msrb.mxu0 %v2396_v4  ;;  %v2452_v30 = vld [vmem:[#allocation6 + $0x1af0] sm:$0xff] }
 0x285   : > { %2901 = vmatpush.msrb.mxu1 %v2460_v22  ;;  %2928 = vmatpush.msrb.mxu2 %v2508_v14  ;;  %v2500_v59 = vld [vmem:[#allocation6 + $0x1c70] sm:$0xff]  ;;  %v2241_v22 = vld [vmem:[#allocation6 + $0x1458] sm:$0xff]  ;;  %v7352_v50 = vpop.f32.mrf.mxu1 }
 0x286   : > { %2951 = vmatpush.msrb.mxu3 %v2253_v15  ;;  %2879 = vmatpush.msrb.mxu0 %v2392_v7  ;;  %v2448_v63 = vld [vmem:[#allocation6 + $0x1ad0] sm:$0xff] }
 0x287   : > { %2902 = vmatpush.msrb.mxu1 %v2456_v21  ;;  %2929 = vmatpush.msrb.mxu2 %v2504_v34  ;;  %v2496_v4 = vld [vmem:[#allocation6 + $0x1c50] sm:$0xff]  ;;  %v2237_v21 = vld [vmem:[#allocation6 + $0x1438] sm:$0xff] }
 0x288   : > { %2952 = vmatpush.msrb.mxu3 %v2249_v36  ;;  %2880 = vmatpush.msrb.mxu0 %v2388_v49  ;;  %v2380_v14 = vld [vmem:[#allocation6 + $0x18b0] sm:$0xff] }
 0x289   : > { %2903 = vmatpush.msrb.mxu1 %v2452_v30  ;;  %2930 = vmatpush.msrb.mxu2 %v2500_v59  ;;  %v2444_v15 = vld [vmem:[#allocation6 + $0x1ab0] sm:$0xff]  ;;  %v2233_v30 = vld [vmem:[#allocation6 + $0x1418] sm:$0xff] }
 0x28a   : > { %2953 = vmatpush.msrb.mxu3 %v2245_v8  ;;  %2881 = vmatpush.msrb.mxu0 %v2384_v29  ;;  %v2492_v7 = vld [vmem:[#allocation6 + $0x1c30] sm:$0xff]  ;;  %v2485_v29 = vld [vmem:[#allocation6 + $0x1bf8] sm:$0xff] }
 0x28b   : > { %2904 = vmatpush.msrb.mxu1 %v2448_v63  ;;  %2931 = vmatpush.msrb.mxu2 %v2496_v4  ;;  %v2376_v34 = vld [vmem:[#allocation6 + $0x1890] sm:$0xff]  ;;  %v7356_v4 = vpop.f32.mrf.mxu0  ;;  %v7359_v13 = vpop.f32.mrf.mxu2 }
 0x28c   : > { %2954 = vmatpush.msrb.mxu3 %v2241_v22  ;;  %2882 = vmatpush.msrb.mxu0 %v2380_v14  ;;  %v2440_v36 = vld [vmem:[#allocation6 + $0x1a90] sm:$0xff]  ;;  %v2481_v22 = vld [vmem:[#allocation6 + $0x1bd8] sm:$0xff]  ;;  %8143 = vst [vmem:[#allocation45_spill] sm:$0xff] %v7359_v13 }
 0x28d   : > { %v2488_v49 = vld [vmem:[#allocation6 + $0x1c10] sm:$0xff]  ;;  %2905 = vmatpush.msrb.mxu1 %v2444_v15  ;;  %2932 = vmatpush.msrb.mxu2 %v2492_v7  ;;  %v2549_v14 = vld [vmem:[#allocation6 + $0x1df8] sm:$0xff] }
 0x28e   : > { %v2372_v59 = vld [vmem:[#allocation6 + $0x1870] sm:$0xff]  ;;  %2955 = vmatpush.msrb.mxu3 %v2237_v21  ;;  %2883 = vmatpush.msrb.mxu0 %v2376_v34  ;;  %v2477_v21 = vld [vmem:[#allocation6 + $0x1bb8] sm:$0xff] }
 0x28f   : > { %2906 = vmatpush.msrb.mxu1 %v2440_v36  ;;  %2933 = vmatpush.msrb.mxu2 %v2488_v49  ;;  %v2436_v8 = vld [vmem:[#allocation6 + $0x1a70] sm:$0xff]  ;;  %v2545_v34 = vld [vmem:[#allocation6 + $0x1dd8] sm:$0xff] }
 0x290   : > { %v2368_v63 = vld [vmem:[#allocation6 + $0x1850] sm:$0xff]  ;;  %2956 = vmatpush.msrb.mxu3 %v2233_v30  ;;  %2884 = vmatpush.msrb.mxu0 %v2372_v59  ;;  %v2473_v30 = vld [vmem:[#allocation6 + $0x1b98] sm:$0xff] }
 0x291   : > { %2957 = vmatmul.f32.vlgmr.msrb.gmra.mxu3 %v7215_v17  ;;  %3010 = vmatpush.msra.mxu2 %v2485_v29  ;;  %v2432_v15 = vld [vmem:[#allocation6 + $0x1a50] sm:$0xff]  ;;  %v7361_v17 = vpop.f32.mrf.mxu3  ;;  %v7363_v29 = vpop.f32.mrf.mxu1 }
 0x292   : > { %v2364_v7 = vld [vmem:[#allocation6 + $0x1830] sm:$0xff]  ;;  %2907 = vmatpush.msrb.mxu1 %v2436_v8  ;;  %2885 = vmatpush.msrb.mxu0 %v2368_v63  ;;  %8144 = vst [vmem:[#allocation46_spill] sm:$0xff] %v7361_v17  ;;  %v2357_v8 = vld [vmem:[#allocation6 + $0x17f8] sm:$0xff] }
 0x293   : > { %3011 = vmatpush.msra.mxu2 %v2481_v22  ;;  %v2428_v36 = vld [vmem:[#allocation6 + $0x1a30] sm:$0xff]  ;;  %3033 = vmatpush.msra.mxu3 %v2549_v14  ;;  %8145 = vst [vmem:[#allocation47_spill] sm:$0xff] %v7363_v29  ;;  %v2421_v63 = vld [vmem:[#allocation6 + $0x19f8] sm:$0xff]  ;;  %v7366_v22 = vpop.f32.mrf.mxu0 }
 0x294   : > { %2908 = vmatpush.msrb.mxu1 %v2432_v15  ;;  %2886 = vmatpush.msrb.mxu0 %v2364_v7  ;;  %v2360_v49 = vld [vmem:[#allocation6 + $0x1810] sm:$0xff]  ;;  %8146 = vst [vmem:[#allocation48_spill] sm:$0xff] %v7366_v22  ;;  %v2469_v14 = vld [vmem:[#allocation6 + $0x1b78] sm:$0xff] }
 0x295   : > { %3012 = vmatpush.msra.mxu2 %v2477_v21  ;;  %v2424_v59 = vld [vmem:[#allocation6 + $0x1a10] sm:$0xff]  ;;  %3034 = vmatpush.msra.mxu3 %v2545_v34  ;;  %v2353_v15 = vld [vmem:[#allocation6 + $0x17d8] sm:$0xff] }
 0x296   : > { %2909 = vmatpush.msrb.mxu1 %v2428_v36  ;;  %2934 = vmatmul.f32.vlgmr.msrb.gmra.mxu2 %v7281_v47  ;;  %v2417_v7 = vld [vmem:[#allocation6 + $0x19d8] sm:$0xff] }
 0x297   : > { %2887 = vmatpush.msrb.mxu0 %v2360_v49  ;;  %3013 = vmatpush.msra.mxu2 %v2473_v30  ;;  %v2541_v21 = vld [vmem:[#allocation6 + $0x1db8] sm:$0xff]  ;;  %v7371_v30 = vpop.f32.mrf.mxu2 }
 0x298   : > { %2888 = vmatmul.f32.vlgmr.msrb.gmra.mxu0 %v7194_v43  ;;  %2910 = vmatpush.msrb.mxu1 %v2424_v59  ;;  %v2465_v34 = vld [vmem:[#allocation6 + $0x1b58] sm:$0xff]  ;;  %8147 = vst [vmem:[#allocation49_spill] sm:$0xff] %v7371_v30 }
 0x299   : > { %2964 = vmatpush.msra.mxu0 %v2357_v8  ;;  %2911 = vmatmul.f32.vlgmr.msrb.gmra.mxu1 %v7199_v44  ;;  %v2349_v36 = vld [vmem:[#allocation6 + $0x17b8] sm:$0xff]  ;;  %v7373_v13 = vpop.f32.mrf.mxu1 }
 0x29a   : > { %2960 = vmatmul.f32.gmra.mxu3 %v7246_v55  ;;  %2987 = vmatpush.msra.mxu1 %v2421_v63  ;;  %v2413_v49 = vld [vmem:[#allocation6 + $0x19b8] sm:$0xff]  ;;  %8148 = vst [vmem:[#allocation50_spill] sm:$0xff] %v7373_v13 }
 0x29b   : > { %3014 = vmatpush.msra.mxu2 %v2469_v14  ;;  %2965 = vmatpush.msra.mxu0 %v2353_v15  ;;  %v2461_v59 = vld [vmem:[#allocation6 + $0x1b38] sm:$0xff]  ;;  %v7376_v15 = vpop.f32.mrf.mxu3 }
 0x29c   : > { %2988 = vmatpush.msra.mxu1 %v2417_v7  ;;  %3035 = vmatpush.msra.mxu3 %v2541_v21  ;;  %v2345_v22 = vld [vmem:[#allocation6 + $0x1798] sm:$0xff]  ;;  %8149 = vst [vmem:[#allocation51_spill] sm:$0xff] %v7376_v15 }
 0x29d   : > { %3015 = vmatpush.msra.mxu2 %v2465_v34  ;;  %2966 = vmatpush.msra.mxu0 %v2349_v36  ;;  %v2537_v8 = vld [vmem:[#allocation6 + $0x1d98] sm:$0xff]  ;;  %v7379_v36 = vpop.f32.mrf.mxu0 }
 0x29e   : > { %v2409_v17 = vld [vmem:[#allocation6 + $0x1998] sm:$0xff]  ;;  %2989 = vmatpush.msra.mxu1 %v2413_v49  ;;  %2937 = vmatmul.f32.gmra.mxu2 %v7296_v45  ;;  %8150 = vst [vmem:[#allocation52_spill] sm:$0xff] %v7379_v36 }
 0x29f   : > { %v2457_v55 = vld [vmem:[#allocation6 + $0x1b18] sm:$0xff]  ;;  %3016 = vmatpush.msra.mxu2 %v2461_v59  ;;  %2967 = vmatpush.msra.mxu0 %v2345_v22  ;;  %v7382_v15 = vpop.f32.mrf.mxu2 }
 0x2a0   : > { %v2341_v63 = vld [vmem:[#allocation6 + $0x1778] sm:$0xff]  ;;  %3036 = vmatpush.msra.mxu3 %v2537_v8  ;;  %2990 = vmatpush.msra.mxu1 %v2409_v17 }
 0x2a1   : > { %v2533_v14 = vld [vmem:[#allocation6 + $0x1d78] sm:$0xff]  ;;  %3017 = vmatpush.msra.mxu2 %v2457_v55  ;;  %2891 = vmatmul.f32.gmra.mxu0 %v7227_v51  ;;  %v7386_v1 = vpop.f32.mrf.mxu1 }
 0x2a2   : > { %v2453_v7 = vld [vmem:[#allocation6 + $0x1af8] sm:$0xff]  ;;  %2968 = vmatpush.msra.mxu0 %v2341_v63  ;;  %3037 = vmatpush.msra.mxu3 %v2533_v14  ;;  %8152 = vst [vmem:[#allocation54_spill] sm:$0xff] %v7386_v1 }
 0x2a3   : > { %v2405_v21 = vld [vmem:[#allocation6 + $0x1978] sm:$0xff]  ;;  %2914 = vmatmul.f32.gmra.mxu1 %v7232_v24  ;;  %3018 = vmatpush.msra.mxu2 %v2453_v7  ;;  %v7384_v29 = vpop.f32.mrf.mxu3 }
 0x2a4   : > { %v2337_v34 = vld [vmem:[#allocation6 + $0x1758] sm:$0xff]  ;;  %2991 = vmatpush.msra.mxu1 %v2405_v21  ;;  %8151 = vst [vmem:[#allocation53_spill] sm:$0xff] %v7384_v29 }
 0x2a5   : > { %v2529_v49 = vld [vmem:[#allocation6 + $0x1d58] sm:$0xff]  ;;  %2969 = vmatpush.msra.mxu0 %v2337_v34 }
 0x2a6   : > { %v2449_v13 = vld [vmem:[#allocation6 + $0x1ad8] sm:$0xff]  ;;  %3038 = vmatpush.msra.mxu3 %v2529_v49 }
 0x2a7   : > { %v2401_v22 = vld [vmem:[#allocation6 + $0x1958] sm:$0xff]  ;;  %3019 = vmatpush.msra.mxu2 %v2449_v13  ;;  %v7390_v1 = vpop.f32.mrf.mxu2 }
 0x2a8   : > { %v2333_v59 = vld [vmem:[#allocation6 + $0x1738] sm:$0xff]  ;;  %2992 = vmatpush.msra.mxu1 %v2401_v22  ;;  %v7388_v22 = vpop.f32.mrf.mxu0 }
 0x2a9   : > { %v2525_v17 = vld [vmem:[#allocation6 + $0x1d38] sm:$0xff]  ;;  %2970 = vmatpush.msra.mxu0 %v2333_v59  ;;  %8153 = vst [vmem:[#allocation55_spill] sm:$0xff] %v7388_v22  ;;  %v7392_v22 = vpop.f32.mrf.mxu1 }
 0x2aa   : > { %v2445_v8 = vld [vmem:[#allocation6 + $0x1ab8] sm:$0xff]  ;;  %3039 = vmatpush.msra.mxu3 %v2525_v17 }
 0x2ab   : > { %v2397_v55 = vld [vmem:[#allocation6 + $0x1938] sm:$0xff]  ;;  %3020 = vmatpush.msra.mxu2 %v2445_v8 }
 0x2ac   : > { %v2329_v30 = vld [vmem:[#allocation6 + $0x1718] sm:$0xff]  ;;  %2993 = vmatpush.msra.mxu1 %v2397_v55 }
 0x2ad   : > { %v2521_v63 = vld [vmem:[#allocation6 + $0x1d18] sm:$0xff]  ;;  %2971 = vmatpush.msra.mxu0 %v2329_v30 }
 0x2ae   : > { %v2441_v14 = vld [vmem:[#allocation6 + $0x1a98] sm:$0xff]  ;;  %3040 = vmatpush.msra.mxu3 %v2521_v63 }
 0x2af   : > { %v2393_v36 = vld [vmem:[#allocation6 + $0x1918] sm:$0xff]  ;;  %3021 = vmatpush.msra.mxu2 %v2441_v14 }
 0x2b0   : > { %v2325_v7 = vld [vmem:[#allocation6 + $0x16f8] sm:$0xff]  ;;  %2994 = vmatpush.msra.mxu1 %v2393_v36 }
 0x2b1   : > { %v2517_v21 = vld [vmem:[#allocation6 + $0x1cf8] sm:$0xff]  ;;  %2972 = vmatpush.msra.mxu0 %v2325_v7 }
 0x2b2   : > { %v2437_v34 = vld [vmem:[#allocation6 + $0x1a78] sm:$0xff]  ;;  %3041 = vmatpush.msra.mxu3 %v2517_v21 }
 0x2b3   : > { %v2389_v13 = vld [vmem:[#allocation6 + $0x18f8] sm:$0xff]  ;;  %3022 = vmatpush.msra.mxu2 %v2437_v34 }
 0x2b4   : > { %v2321_v49 = vld [vmem:[#allocation6 + $0x16d8] sm:$0xff]  ;;  %2995 = vmatpush.msra.mxu1 %v2389_v13 }
 0x2b5   : > { %v2513_v59 = vld [vmem:[#allocation6 + $0x1cd8] sm:$0xff]  ;;  %2973 = vmatpush.msra.mxu0 %v2321_v49 }
 0x2b6   : > { %v2433_v17 = vld [vmem:[#allocation6 + $0x1a58] sm:$0xff]  ;;  %3042 = vmatpush.msra.mxu3 %v2513_v59 }
 0x2b7   : > { %v2385_v8 = vld [vmem:[#allocation6 + $0x18d8] sm:$0xff]  ;;  %3023 = vmatpush.msra.mxu2 %v2433_v17  ;;  %v7394_v17 = vpop.f32.mrf.mxu3 }
 0x2b8   : > { %v2317_v29 = vld [vmem:[#allocation6 + $0x16b8] sm:$0xff]  ;;  %2996 = vmatpush.msra.mxu1 %v2385_v8  ;;  %8154 = vst [vmem:[#allocation56_spill] sm:$0xff] %v7394_v17  ;;  %v7401_v17 = vpop.f32.mrf.mxu2 }
 0x2b9   : > { %v2509_v55 = vld [vmem:[#allocation6 + $0x1cb8] sm:$0xff]  ;;  %2974 = vmatpush.msra.mxu0 %v2317_v29 }
 0x2ba   : > { %v2429_v30 = vld [vmem:[#allocation6 + $0x1a38] sm:$0xff]  ;;  %3043 = vmatpush.msra.mxu3 %v2509_v55 }
 0x2bb   : > { %v2381_v63 = vld [vmem:[#allocation6 + $0x18b8] sm:$0xff]  ;;  %3024 = vmatpush.msra.mxu2 %v2429_v30  ;;  %v7397_v30 = vpop.f32.mrf.mxu0 }
 0x2bc   : > { %v2313_v14 = vld [vmem:[#allocation6 + $0x1698] sm:$0xff]  ;;  %2997 = vmatpush.msra.mxu1 %v2381_v63 }
 0x2bd   : > { %v2505_v36 = vld [vmem:[#allocation6 + $0x1c98] sm:$0xff]  ;;  %2975 = vmatpush.msra.mxu0 %v2313_v14  ;;  %v1340_v14 = vadd.f32 %v7164_v39, %v7160_v48  ;;  %v7407_v48 = vpop.f32.mrf.mxu1 }
 0x2be   : > { %v2425_v7 = vld [vmem:[#allocation6 + $0x1a18] sm:$0xff]  ;;  %3044 = vmatpush.msra.mxu3 %v2505_v36 }
 0x2bf   : > { %v2377_v21 = vld [vmem:[#allocation6 + $0x1898] sm:$0xff]  ;;  %3025 = vmatpush.msra.mxu2 %v2425_v7 }
 0x2c0   : > { %v2309_v34 = vld [vmem:[#allocation6 + $0x1678] sm:$0xff]  ;;  %2998 = vmatpush.msra.mxu1 %v2377_v21  ;;  %3026 = vmatmul.f32.vlgmr.msra.gmra.mxu2 %v7199_v44 }
 0x2c1   : > { %v2501_v13 = vld [vmem:[#allocation6 + $0x1c78] sm:$0xff]  ;;  %2976 = vmatpush.msra.mxu0 %v2309_v34  ;;  %v1363_v34 = vadd.f32 %v7168_v52, %v1340_v14  ;;  %v1343_v52 = vadd.f32 %v7175_v62, %v7166_v42  ;;  %v7430_v14 = vld [vmem:[#allocation8] sm:$0xf] }
 0x2c2   : > { %v2373_v49 = vld [vmem:[#allocation6 + $0x1878] sm:$0xff]  ;;  %3045 = vmatpush.msra.mxu3 %v2501_v13  ;;  %v7405_v13 = vpop.f32.mrf.mxu3 }
 0x2c3   : > { %v2305_v59 = vld [vmem:[#allocation6 + $0x1658] sm:$0xff]  ;;  %2999 = vmatpush.msra.mxu1 %v2373_v49  ;;  %v2613_v39 = vpop.f32.mrf.mxu0  ;;  %v1386_v49 = vadd.f32 %v7173_v60, %v1363_v34 }
 0x2c4   : > { %v2497_v29 = vld [vmem:[#allocation6 + $0x1c58] sm:$0xff]  ;;  %2977 = vmatpush.msra.mxu0 %v2305_v59 }
 0x2c5   : > { %v2369_v8 = vld [vmem:[#allocation6 + $0x1858] sm:$0xff]  ;;  %3046 = vmatpush.msra.mxu3 %v2497_v29  ;;  %v1409_v59 = vadd.f32 %v7177_v3, %v1386_v49 }
 0x2c6   : > { %v2301_v55 = vld [vmem:[#allocation6 + $0x1638] sm:$0xff]  ;;  %3000 = vmatpush.msra.mxu1 %v2369_v8  ;;  %v2636_v8 = vpop.f32.mrf.mxu1 }
 0x2c7   : > { %v2493_v63 = vld [vmem:[#allocation6 + $0x1c38] sm:$0xff]  ;;  %2978 = vmatpush.msra.mxu0 %v2301_v55  ;;  %v1777_v29 = vadd.f32 %v7308_v20, %v1409_v59  ;;  %v2637_v3 = vadd.f32 %v2636_v8, %v2613_v39 }
 0x2c8   : > { %v2365_v36 = vld [vmem:[#allocation6 + $0x1838] sm:$0xff]  ;;  %3047 = vmatpush.msra.mxu3 %v2493_v63  ;;  %3029 = vmatmul.f32.gmra.mxu2 %v7232_v24 }
 0x2c9   : > { %v2297_v7 = vld [vmem:[#allocation6 + $0x1618] sm:$0xff]  ;;  %3001 = vmatpush.msra.mxu1 %v2365_v36  ;;  %v1800_v60 = vadd.f32 %v7312_v28, %v1777_v29 }
 0x2ca   : > { %v2489_v21 = vld [vmem:[#allocation6 + $0x1c18] sm:$0xff]  ;;  %2979 = vmatpush.msra.mxu0 %v2297_v7 }
 0x2cb   : > { %v2361_v44 = vld [vmem:[#allocation6 + $0x1818] sm:$0xff]  ;;  %3048 = vmatpush.msra.mxu3 %v2489_v21  ;;  %2980 = vmatmul.f32.vlgmr.msra.gmra.mxu0 %v7219_v18  ;;  %v7416_v18 = vpop.f32.mrf.mxu2  ;;  %v2616_v62 = vpop.f32.mrf.mxu0 }
 0x2cc   : > { %3002 = vmatpush.msra.mxu1 %v2361_v44  ;;  %3049 = vmatmul.f32.vlgmr.msra.gmra.mxu3 %v7281_v47  ;;  %v1366_v47 = vadd.f32 %v7179_v10, %v1343_v52 }
 0x2cd   : > { %3003 = vmatmul.f32.vlgmr.msra.gmra.mxu1 %v7194_v43  ;;  %v7423_v43 = vpop.f32.mrf.mxu3 }
 0x2ce   : > { %v1389_v42 = vadd.f32 %v7181_v32, %v1366_v47  ;;  %v7434_v32 = vld [vmem:[#allocation9] sm:$0xf] }
 0x2d0   : > { %v1412_v24 = vadd.f32 %v7185_v37, %v1389_v42 }
 0x2d2   : > { %v1780_v10 = vadd.f32 %v7316_v6, %v1412_v24  ;;  %v3084_v6 = vperm.slane %v7434_v32, 0  ;;  %v1455_v24 = vadd.f32 %v7189_v33, %v7183_v26 }
 0x2d3   : > { %2983 = vmatmul.f32.gmra.mxu0 %v7250_v58  ;;  %v2659_v20 = vpop.f32.mrf.mxu2  ;;  %v1823_v58 = vadd.f32 %v7320_v19, %v1800_v60  ;;  %v2705_v7 = vpop.f32.mrf.mxu0  ;;  %v3066_v19 = vperm.slane %v7430_v14, 0 }
 0x2d4   : > { %3052 = vmatmul.f32.gmra.mxu3 %v7296_v45  ;;  %v2660_v55 = vadd.f32 %v2659_v20, %v2637_v3  ;;  %v2639_v45 = vpop.f32.mrf.mxu1  ;;  %v1803_v28 = vadd.f32 %v7324_v31, %v1780_v10 }
 0x2d5   : > { %3006 = vmatmul.f32.gmra.mxu1 %v7227_v51  ;;  %v2682_v63 = vpop.f32.mrf.mxu3  ;;  %v1846_v51 = vadd.f32 %v7322_v54, %v1823_v58  ;;  %v2640_v21 = vadd.f32 %v2639_v45, %v2616_v62  ;;  %v1478_v58 = vadd.f32 %v7203_v61, %v1455_v24  ;;  %v1458_v45 = vadd.f32 %v7221_v23, %v7207_v11 }
 0x2d6   : > { %v2683_v36 = vadd.f32 %v2682_v63, %v2660_v55  ;;  %v1826_v49 = vadd.f32 %v7331_v0, %v1803_v28 }
 0x2d7   : > { %v1869_v37 = vadd.f32 %v7326_v9, %v1846_v51  ;;  %v1481_v61 = vadd.f32 %v7236_v5, %v1458_v45  ;;  %v8160_v45 = vld [vmem:[#allocation28_spill] sm:$0xff] }
 0x2d8   : > { %v2706_v44 = vadd.f32 %v2705_v7, %v2683_v36  ;;  %v1849_v31 = vadd.f32 %v7336_v53, %v1826_v49  ;;  %v1501_v53 = vadd.f32 %v7210_v57, %v1478_v58 }
 0x2d9   : > { %v1504_v51 = vadd.f32 %v7241_v40, %v1481_v61  ;;  %v8162_v61 = vld [vmem:[#allocation32_spill] sm:$0xff] }
 0x2da   : > { %v3056_v34 = vadd.f32 %v2706_v44, %v1869_v37  ;;  %v1872_v9 = vadd.f32 %v7338_v35, %v1849_v31  ;;  %v1524_v26 = vadd.f32 %v7238_v38, %v1501_v53 }
 0x2db   : > { %v2662_v39 = vpop.f32.mrf.mxu2  ;;  %v2708_v60 = vpop.f32.mrf.mxu0  ;;  %v1527_v37 = vadd.f32 %v7257_v56, %v1504_v51  ;;  %v3067_v56 = vperm.slane %v7430_v14, 1 }
 0x2dc   : > { %v2663_v59 = vadd.f32 %v2662_v39, %v2640_v21  ;;  %v3074_v54 = vmul.f32 %v3066_v19, %v3056_v34  ;;  %v2728_v63 = vpop.f32.mrf.mxu1  ;;  %v1892_v33 = vadd.f32 %v7334_v25, %v1524_v26  ;;  %v8161_v26 = vld [vmem:[#allocation30_spill] sm:$0xff] }
 0x2dd   : > { %v2685_v29 = vpop.f32.mrf.mxu3  ;;  %v1895_v44 = vadd.f32 %v7346_v2, %v1527_v37 }
 0x2de   : > { %v3092_v52 = vadd.f32 %v3084_v6, %v3074_v54  ;;  %v2686_v47 = vadd.f32 %v2685_v29, %v2663_v59  ;;  %v1915_v36 = vadd.f32 %v7341_v27, %v1892_v33  ;;  %v1573_v33 = vadd.f32 %v8161_v26, %v8160_v45 }
 0x2df   : > { %v1918_v5 = vadd.f32 %v7350_v46, %v1895_v44  ;;  %v8166_v44 = vld [vmem:[#allocation46_spill] sm:$0xff] }
 0x2e0   : > { %v3100_v8 = vmax.f32 %v3092_v52, 0.0  ;;  %v2709_v3 = vadd.f32 %v2708_v60, %v2686_v47  ;;  %v1938_v11 = vadd.f32 %v7344_v41, %v1915_v36  ;;  %v3085_v41 = vperm.slane %v7434_v32, 1  ;;  %v8156_v60 = vld [vmem:[#allocation26_spill] sm:$0xff]  ;;  %v8163_v36 = vld [vmem:[#allocation31_spill] sm:$0xff] }
 0x2e1   : > { %v1941_v59 = vadd.f32 %v7354_v16, %v1918_v5  ;;  %v8167_v5 = vld [vmem:[#allocation48_spill] sm:$0xff] }
 0x2e2   : > { %v3119_v42 = vrot.slane %v3100_v8, 6  ;;  %v3060_v62 = vadd.f32 %v2709_v3, %v1872_v9  ;;  %v1961_v25 = vadd.f32 %v7348_v12, %v1938_v11  ;;  %v8157_v3 = vld [vmem:[#allocation47_spill] sm:$0xff]  ;;  %v8165_v11 = vld [vmem:[#allocation34_spill] sm:$0xff] }
 0x2e3   : > { %v2751_v57 = vpop.f32.mrf.mxu2  ;;  %v1964_v12 = vadd.f32 %v7356_v4, %v1941_v59 }
 0x2e4   : > { %3131 = vrot.lane.b32.xlu0 %v3119_v42, %s6686_s17  ;;  %v3078_v0 = vmul.f32 %v3066_v19, %v3060_v62  ;;  %v2752_v28 = vadd.f32 %v2751_v57, %v2728_v63  ;;  %v2731_v7 = vpop.f32.mrf.mxu1  ;;  %v1984_v27 = vadd.f32 %v7352_v50, %v1961_v25  ;;  %v8155_v50 = vld [vmem:[#allocation25_spill] sm:$0xff] }
 0x2e5   : > { %v2774_v21 = vpop.f32.mrf.mxu3  ;;  %v1570_v9 = vadd.f32 %v8156_v60, %v8155_v50  ;;  %v3068_v50 = vperm.slane %v7430_v14, 2  ;;  %v8172_v60 = vld [vmem:[#allocation52_spill] sm:$0xff] }
 0x2e6   : > { %v3096_v20 = vadd.f32 %v3084_v6, %v3078_v0  ;;  %v2775_v23 = vadd.f32 %v2774_v21, %v2752_v28  ;;  %v8158_v0 = vld [vmem:[#allocation27_spill] sm:$0xff]  ;;  %v1596_v28 = vadd.f32 %v8163_v36, %v1573_v33 }
 0x2e8   : > { %v3104_v55 = vmax.f32 %v3096_v20, 0.0  ;;  %v1593_v20 = vadd.f32 %v8158_v0, %v1570_v9 }
 0x2ea   : > { %v7447_v10 = vrot.slane %v3104_v55, 6  ;;  %v8159_v55 = vld [vmem:[#allocation29_spill] sm:$0xff] }
 0x2eb   : > { %v2754_v40 = vpop.f32.mrf.mxu2  ;;  %v1616_v4 = vadd.f32 %v8159_v55, %v1593_v20  ;;  %v8173_v20 = vld [vmem:[#allocation54_spill] sm:$0xff] }
 0x2ec   : > { %v3124_v35 = vsel %vm505_vm0, %v3119_v42, %v7447_v10  ;;  %v2755_v6 = vadd.f32 %v2754_v40, %v2731_v7  ;;  %v1987_v42 = vadd.f32 %v8157_v3, %v1964_v12  ;;  %v8164_v7 = vld [vmem:[#allocation45_spill] sm:$0xff]  ;;  %v8171_v12 = vld [vmem:[#allocation51_spill] sm:$0xff] }
 0x2ed   : > { %3139 = vrot.lane.b32.xlu1 %v3124_v35, %s6686_s17  ;;  %v2777_v2 = vpop.f32.mrf.mxu3  ;;  %v1639_v51 = vadd.f32 %v8162_v61, %v1616_v4 }
 0x2ee   : > { %v2778_v52 = vadd.f32 %v2777_v2, %v2755_v6 }
 0x2ef   : > { %v2007_v37 = vadd.f32 %v8164_v7, %v1639_v51 }
 0x2f2   : > { %v2797_v38 = vpop.f32.mrf.mxu0 }
 0x2f3   : > { %v2798_v19 = vadd.f32 %v2797_v38, %v2775_v23  ;;  %v2843_v63 = vpop.f32.mrf.mxu2  ;;  %v1619_v23 = vadd.f32 %v8165_v11, %v1596_v28  ;;  %v2030_v38 = vadd.f32 %v8166_v44, %v2007_v37  ;;  %v8176_v28 = vld [vmem:[#allocation37_spill] sm:$0xff]  ;;  %v8177_v11 = vld [vmem:[#allocation40_spill] sm:$0xff]  ;;  %v8178_v44 = vld [vmem:[#allocation38_spill] sm:$0xff] }
 0x2f5   : > { %v2866_v25 = vpop.f32.mrf.mxu3  ;;  %v2053_v40 = vadd.f32 %v8167_v5, %v2030_v38  ;;  %v8179_v38 = vld [vmem:[#allocation39_spill] sm:$0xff] }
 0x2f6   : > { %v2820_v34 = vpop.f32.mrf.mxu1  ;;  %v2867_v6 = vadd.f32 %v2866_v25, %v2843_v63  ;;  %v1688_v25 = vadd.f32 %v8179_v38, %v8178_v44  ;;  %v3594_v5 = vld [vmem:[#allocation11 + $0xbc0] sm:$0xff] }
 0x2f7   : > { %v2821_v39 = vadd.f32 %v2820_v34, %v2798_v19  ;;  %v8168_v34 = vld [vmem:[#allocation36_spill] sm:$0xff]  ;;  %v3662_v44 = vld [vmem:[#allocation11 + $0xde0] sm:$0xff] }
 0x2f8   : > { %v3550_v38 = vld [vmem:[#allocation11 + $0xa60] sm:$0xff]  ;;  %3931 = vmatpush.msrb.mxu1 %v3662_v44 }
 0x2f9   : > { %v3057_v49 = vadd.f32 %v2821_v39, %v1984_v27  ;;  %v1642_v27 = vadd.f32 %v8168_v34, %v1619_v23  ;;  %v8169_v39 = vld [vmem:[#allocation49_spill] sm:$0xff]  ;;  %v3774_v44 = vld [vmem:[#allocation11 + $0x1160] sm:$0xff] }
 0x2fb   : > { %v3075_v54 = vmul.f32 %v3067_v56, %v3057_v49  ;;  %v2846_v19 = vpop.f32.mrf.mxu2 }
 0x2fc   : > { %v2800_v29 = vpop.f32.mrf.mxu0 }
 0x2fd   : > { %v2801_v46 = vadd.f32 %v2800_v29, %v2778_v52  ;;  %v3093_v31 = vadd.f32 %v3085_v41, %v3075_v54 }
 0x2ff   : > { %v2823_v47 = vpop.f32.mrf.mxu1  ;;  %v3101_v8 = vmax.f32 %v3093_v31, 0.0 }
 0x300   : > { %v2824_v62 = vadd.f32 %v2823_v47, %v2801_v46  ;;  %v2869_v47 = vpop.f32.mrf.mxu3 }
 0x301   : > { %v3120_v24 = vrot.slane %v3101_v8, 6 }
 0x302   : > { %v3061_v16 = vadd.f32 %v2824_v62, %v1987_v42  ;;  %v3086_v42 = vperm.slane %v7434_v32, 2  ;;  %v2870_v62 = vadd.f32 %v2869_v47, %v2846_v19  ;;  %v3598_v19 = vld [vmem:[#allocation11 + $0xbe0] sm:$0xff] }
 0x303   : > { %3133 = vrot.lane.b32.xlu0 %v3120_v24, %s6686_s17  ;;  %3908 = vmatpush.msrb.mxu0 %v3598_v19 }
 0x304   : > { %v3079_v58 = vmul.f32 %v3067_v56, %v3061_v16  ;;  %v2010_v56 = vadd.f32 %v8169_v39, %v1642_v27  ;;  %v8180_v27 = vld [vmem:[#allocation41_spill] sm:$0xff]  ;;  %v8181_v39 = vld [vmem:[#allocation42_spill] sm:$0xff] }
 0x305   : > { %3909 = vmatpush.msrb.mxu0 %v3594_v5 }
 0x306   : > { %v3097_v53 = vadd.f32 %v3085_v41, %v3079_v58  ;;  %v8170_v41 = vld [vmem:[#allocation50_spill] sm:$0xff]  ;;  %v2033_v29 = vadd.f32 %v8171_v12, %v2010_v56  ;;  %v1711_v56 = vadd.f32 %v8181_v39, %v1688_v25 }
 0x307   : > { %v2076_v59 = vadd.f32 %v8170_v41, %v2053_v40  ;;  %v8182_v41 = vld [vmem:[#allocation53_spill] sm:$0xff]  ;;  %v3658_v25 = vld [vmem:[#allocation11 + $0xdc0] sm:$0xff] }
 0x308   : > { %v3105_v35 = vmax.f32 %v3097_v53, 0.0  ;;  %v2056_v9 = vadd.f32 %v8172_v60, %v2033_v29  ;;  %v3590_v29 = vld [vmem:[#allocation11 + $0xba0] sm:$0xff]  ;;  %3932 = vmatpush.msrb.mxu1 %v3658_v25 }
 0x309   : > { %v2099_v31 = vadd.f32 %v7382_v15, %v2076_v59  ;;  %v8174_v15 = vld [vmem:[#allocation33_spill] sm:$0xff]  ;;  %3910 = vmatpush.msrb.mxu0 %v3590_v29  ;;  %v3650_v39 = vld [vmem:[#allocation11 + $0xd80] sm:$0xff] }
 0x30a   : > { %v7478_v57 = vrot.slane %v3105_v35, 6  ;;  %v2079_v16 = vadd.f32 %v8173_v20, %v2056_v9  ;;  %v8175_v35 = vld [vmem:[#allocation35_spill] sm:$0xff] }
 0x30b   : > { %v1685_v45 = vadd.f32 %v8175_v35, %v8174_v15  ;;  %v3842_v25 = vld [vmem:[#allocation11 + $0x1380] sm:$0xff] }
 0x30c   : > { %v3126_v21 = vsel %vm505_vm0, %v3120_v24, %v7478_v57  ;;  %v2102_v33 = vadd.f32 %v7390_v1, %v2079_v16  ;;  %v3574_v16 = vld [vmem:[#allocation11 + $0xb20] sm:$0xff] }
 0x30d   : > { %3141 = vrot.lane.b32.xlu2 %v3126_v21, %s6686_s17  ;;  %v1708_v7 = vadd.f32 %v8176_v28, %v1685_v45 }
 0x30f   : > { %v1731_v23 = vadd.f32 %v8177_v11, %v1708_v7  ;;  %v3558_v7 = vld [vmem:[#allocation11 + $0xaa0] sm:$0xff] }
 0x314   : > { %v2958_v40 = vpop.f32.mrf.mxu3 }
 0x315   : > { %v2889_v49 = vpop.f32.mrf.mxu0 }
 0x316   : > { %v2890_v2 = vadd.f32 %v2889_v49, %v2867_v6  ;;  %v2912_v54 = vpop.f32.mrf.mxu1  ;;  %v1754_v6 = vadd.f32 %v8180_v27, %v1731_v23  ;;  %v3542_v27 = vld [vmem:[#allocation11 + $0xa20] sm:$0xff] }
 0x318   : > { %v2913_v52 = vadd.f32 %v2912_v54, %v2890_v2  ;;  %v2122_v59 = vadd.f32 %v8182_v41, %v1754_v6  ;;  %v8183_v2 = vld [vmem:[#allocation43_spill] sm:$0xff] }
 0x319   : > { %v2935_v46 = vpop.f32.mrf.mxu2  ;;  %v1734_v54 = vadd.f32 %v8183_v2, %v1711_v56  ;;  %v3654_v6 = vld [vmem:[#allocation11 + $0xda0] sm:$0xff] }
 0x31a   : > { %v2936_v8 = vadd.f32 %v2935_v46, %v2913_v52  ;;  %v8184_v52 = vld [vmem:[#allocation55_spill] sm:$0xff]  ;;  %3933 = vmatpush.msrb.mxu1 %v3654_v6 }
 0x31b   : > { %v2145_v12 = vadd.f32 %v8184_v52, %v2122_v59  ;;  %v3586_v46 = vld [vmem:[#allocation11 + $0xb80] sm:$0xff]  ;;  %v3655_v6 = vld [vmem:[#allocation11 + $0xda8] sm:$0xff] }
 0x31c   : > { %v3058_v3 = vadd.f32 %v2936_v8, %v2099_v31  ;;  %v3582_v31 = vld [vmem:[#allocation11 + $0xb60] sm:$0xff]  ;;  %3911 = vmatpush.msrb.mxu0 %v3586_v46  ;;  %v8185_v8 = vld [vmem:[#allocation44_spill] sm:$0xff]  ;;  %3934 = vmatpush.msrb.mxu1 %v3650_v39 }
 0x31d   : > { %v2961_v47 = vpop.f32.mrf.mxu3  ;;  %v2168_v60 = vadd.f32 %v7392_v22, %v2145_v12  ;;  %v3570_v22 = vld [vmem:[#allocation11 + $0xb00] sm:$0xff] }
 0x31e   : > { %v3076_v24 = vmul.f32 %v3068_v50, %v3058_v3  ;;  %v2892_v0 = vpop.f32.mrf.mxu0  ;;  %v3578_v3 = vld [vmem:[#allocation11 + $0xb40] sm:$0xff]  ;;  %3912 = vmatpush.msrb.mxu0 %v3582_v31 }
 0x31f   : > { %v2893_v58 = vadd.f32 %v2892_v0, %v2870_v62  ;;  %v8186_v62 = vld [vmem:[#allocation56_spill] sm:$0xff]  ;;  %v3726_v41 = vld [vmem:[#allocation11 + $0xfe0] sm:$0xff] }
 0x320   : > { %v2915_v55 = vpop.f32.mrf.mxu1  ;;  %v3094_v4 = vadd.f32 %v3086_v42, %v3076_v24  ;;  %3913 = vmatpush.msrb.mxu0 %v3578_v3  ;;  %v3646_v59 = vld [vmem:[#allocation11 + $0xd60] sm:$0xff]  ;;  %3954 = vmatpush.msrb.mxu2 %v3726_v41 }
 0x321   : > { %v2916_v53 = vadd.f32 %v2915_v55, %v2893_v58  ;;  %v2938_v63 = vpop.f32.mrf.mxu2  ;;  %v2191_v55 = vadd.f32 %v7401_v17, %v2168_v60  ;;  %v3642_v12 = vld [vmem:[#allocation11 + $0xd40] sm:$0xff]  ;;  %3935 = vmatpush.msrb.mxu1 %v3646_v59 }
 0x322   : > { %v3102_v26 = vmax.f32 %v3094_v4, 0.0  ;;  %3914 = vmatpush.msrb.mxu0 %v3574_v16  ;;  %v3714_v46 = vld [vmem:[#allocation11 + $0xf80] sm:$0xff] }
 0x323   : > { %v2939_v61 = vadd.f32 %v2938_v63, %v2916_v53  ;;  %v3566_v63 = vld [vmem:[#allocation11 + $0xae0] sm:$0xff]  ;;  %v2214_v35 = vadd.f32 %v7405_v13, %v2191_v55  ;;  %3936 = vmatpush.msrb.mxu1 %v3642_v12 }
 0x324   : > { %v3121_v51 = vrot.slane %v3102_v26, 6  ;;  %3915 = vmatpush.msrb.mxu0 %v3570_v22  ;;  %v3638_v31 = vld [vmem:[#allocation11 + $0xd20] sm:$0xff] }
 0x325   : > { %v3062_v36 = vadd.f32 %v2939_v61, %v2102_v33  ;;  %v3069_v33 = vperm.slane %v7430_v14, 3  ;;  %3937 = vmatpush.msrb.mxu1 %v3638_v31  ;;  %v3630_v60 = vld [vmem:[#allocation11 + $0xce0] sm:$0xff] }
 0x326   : > { %3135 = vrot.lane.b32.xlu1 %v3121_v51, %s6686_s17  ;;  %3916 = vmatpush.msrb.mxu0 %v3566_v63  ;;  %v3710_v3 = vld [vmem:[#allocation11 + $0xf60] sm:$0xff] }
 0x327   : > { %v3080_v37 = vmul.f32 %v3068_v50, %v3062_v36  ;;  %v1757_v50 = vadd.f32 %v8185_v8, %v1734_v54  ;;  %v3718_v54 = vld [vmem:[#allocation11 + $0xfa0] sm:$0xff] }
 0x328   : > { %v3634_v8 = vld [vmem:[#allocation11 + $0xd00] sm:$0xff] }
 0x329   : > { %v3098_v21 = vadd.f32 %v3086_v42, %v3080_v37  ;;  %v2125_v24 = vadd.f32 %v8186_v62, %v1757_v50  ;;  %3938 = vmatpush.msrb.mxu1 %v3634_v8  ;;  %v3706_v62 = vld [vmem:[#allocation11 + $0xf40] sm:$0xff]  ;;  %v3575_v8 = vld [vmem:[#allocation11 + $0xb28] sm:$0xff] }
 0x32a   : > { %v3698_v16 = vld [vmem:[#allocation11 + $0xf00] sm:$0xff] }
 0x32b   : > { %v3106_v34 = vmax.f32 %v3098_v21, 0.0  ;;  %v2148_v4 = vadd.f32 %v7397_v30, %v2125_v24  ;;  %v3087_v30 = vperm.slane %v7434_v32, 3  ;;  %3939 = vmatpush.msrb.mxu1 %v3630_v60  ;;  %v3694_v55 = vld [vmem:[#allocation11 + $0xee0] sm:$0xff] }
 0x32c   : > { %v3606_v63 = vld [vmem:[#allocation11 + $0xc20] sm:$0xff] }
 0x32d   : > { %v3127_v1 = vrot.slane %v3106_v34, 6  ;;  %v2171_v45 = vadd.f32 %v7407_v48, %v2148_v4  ;;  %v3554_v48 = vld [vmem:[#allocation11 + $0xa80] sm:$0xff] }
 0x32e   : > { %v3546_v34 = vld [vmem:[#allocation11 + $0xa40] sm:$0xff] }
 0x32f   : > { %v3128_v49 = vsel %vm505_vm0, %v3121_v51, %v3127_v1  ;;  %v3562_v51 = vld [vmem:[#allocation11 + $0xac0] sm:$0xff]  ;;  %v2194_v21 = vadd.f32 %v7416_v18, %v2171_v45 }
 0x330   : > { %3143 = vrot.lane.b32.xlu0 %v3128_v49, %s6686_s17  ;;  %3917 = vmatpush.msrb.mxu0 %v3562_v51  ;;  %v3538_v49 = vld [vmem:[#allocation11 + $0xa00] sm:$0xff] }
 0x331   : > { %v2217_v5 = vadd.f32 %v7423_v43, %v2194_v21  ;;  %v3722_v43 = vld [vmem:[#allocation11 + $0xfc0] sm:$0xff]  ;;  %v3599_v21 = vld [vmem:[#allocation11 + $0xbe8] sm:$0xff] }
 0x332   : > { %3918 = vmatpush.msrb.mxu0 %v3558_v7  ;;  %3955 = vmatpush.msrb.mxu2 %v3722_v43  ;;  %v3610_v4 = vld [vmem:[#allocation11 + $0xc40] sm:$0xff]  ;;  %v3643_v43 = vld [vmem:[#allocation11 + $0xd48] sm:$0xff] }
 0x333   : > { %v3674_v7 = vld [vmem:[#allocation11 + $0xe40] sm:$0xff] }
 0x334   : > { %3919 = vmatpush.msrb.mxu0 %v3554_v48  ;;  %3956 = vmatpush.msrb.mxu2 %v3718_v54  ;;  %v3670_v48 = vld [vmem:[#allocation11 + $0xe20] sm:$0xff]  ;;  %v3583_v54 = vld [vmem:[#allocation11 + $0xb68] sm:$0xff] }
 0x335   : > { %v3758_v39 = vld [vmem:[#allocation11 + $0x10e0] sm:$0xff] }
 0x336   : > { %3920 = vmatpush.msrb.mxu0 %v3550_v38  ;;  %3957 = vmatpush.msrb.mxu2 %v3714_v46  ;;  %v3591_v38 = vld [vmem:[#allocation11 + $0xba8] sm:$0xff]  ;;  %v3754_v12 = vld [vmem:[#allocation11 + $0x10c0] sm:$0xff] }
 0x337   : > { %v3579_v46 = vld [vmem:[#allocation11 + $0xb48] sm:$0xff]  ;;  %v3750_v31 = vld [vmem:[#allocation11 + $0x10a0] sm:$0xff] }
 0x338   : > { %3151 = vrot.lane.b32.xlu0 %v3127_v1, %s6686_s17  ;;  %3921 = vmatpush.msrb.mxu0 %v3546_v34  ;;  %v3766_v34 = vld [vmem:[#allocation11 + $0x1120] sm:$0xff] }
 0x339   : > { %3958 = vmatpush.msrb.mxu2 %v3710_v3  ;;  %v3746_v60 = vld [vmem:[#allocation11 + $0x1080] sm:$0xff] }
 0x33a   : > { %3922 = vmatpush.msrb.mxu0 %v3542_v27  ;;  %v3762_v27 = vld [vmem:[#allocation11 + $0x1100] sm:$0xff] }
 0x33b   : > { %3959 = vmatpush.msrb.mxu2 %v3706_v62  ;;  %v3742_v62 = vld [vmem:[#allocation11 + $0x1060] sm:$0xff] }
 0x33c   : > { %3923 = vmatpush.msrb.mxu0 %v3538_v49  ;;  %v3647_v49 = vld [vmem:[#allocation11 + $0xd68] sm:$0xff] }
 0x343   : > { %v3027_v0 = vpop.f32.mrf.mxu2 }
 0x348   : > { %v2981_v9 = vpop.f32.mrf.mxu0 }
 0x349   : > { %v2982_v42 = vadd.f32 %v2981_v9, %v2958_v40  ;;  %v3626_v9 = vld [vmem:[#allocation11 + $0xcc0] sm:$0xff] }
 0x34a   : > { %v3004_v20 = vpop.f32.mrf.mxu1  ;;  %3940 = vmatpush.msrb.mxu1 %v3626_v9  ;;  %v3631_v9 = vld [vmem:[#allocation11 + $0xce8] sm:$0xff] }
 0x34b   : > { %v3005_v58 = vadd.f32 %v3004_v20, %v2982_v42  ;;  %v3030_v13 = vpop.f32.mrf.mxu2  ;;  %v3622_v42 = vld [vmem:[#allocation11 + $0xca0] sm:$0xff] }
 0x34c   : > { %v3618_v20 = vld [vmem:[#allocation11 + $0xc80] sm:$0xff]  ;;  %3941 = vmatpush.msrb.mxu1 %v3622_v42  ;;  %v3571_v42 = vld [vmem:[#allocation11 + $0xb08] sm:$0xff] }
 0x34d   : > { %v3028_v53 = vadd.f32 %v3027_v0, %v3005_v58  ;;  %v3702_v0 = vld [vmem:[#allocation11 + $0xf20] sm:$0xff] }
 0x34e   : > { %3960 = vmatpush.msrb.mxu2 %v3702_v0  ;;  %v3614_v58 = vld [vmem:[#allocation11 + $0xc60] sm:$0xff]  ;;  %3942 = vmatpush.msrb.mxu1 %v3618_v20 }
 0x34f   : > { %v3050_v15 = vpop.f32.mrf.mxu3  ;;  %v3822_v20 = vld [vmem:[#allocation11 + $0x12e0] sm:$0xff] }
 0x350   : > { %v3051_v26 = vadd.f32 %v3050_v15, %v3028_v53  ;;  %v2984_v61 = vpop.f32.mrf.mxu0  ;;  %3961 = vmatpush.msrb.mxu2 %v3698_v16  ;;  %v3690_v53 = vld [vmem:[#allocation11 + $0xec0] sm:$0xff]  ;;  %3943 = vmatpush.msrb.mxu1 %v3614_v58  ;;  %v3567_v16 = vld [vmem:[#allocation11 + $0xae8] sm:$0xff] }
 0x351   : > { %v2985_v36 = vadd.f32 %v2984_v61, %v2961_v47  ;;  %v3790_v61 = vld [vmem:[#allocation11 + $0x11e0] sm:$0xff]  ;;  %v3627_v58 = vld [vmem:[#allocation11 + $0xcc8] sm:$0xff] }
 0x352   : > { %v3059_v17 = vadd.f32 %v3051_v26, %v2214_v35  ;;  %v3007_v28 = vpop.f32.mrf.mxu1  ;;  %3962 = vmatpush.msrb.mxu2 %v3694_v55  ;;  %3944 = vmatpush.msrb.mxu1 %v3610_v4  ;;  %v3602_v26 = vld [vmem:[#allocation11 + $0xc00] sm:$0xff]  ;;  %v3623_v4 = vld [vmem:[#allocation11 + $0xca8] sm:$0xff] }
 0x353   : > { %v3008_v37 = vadd.f32 %v3007_v28, %v2985_v36  ;;  %3977 = vmatpush.msrb.mxu3 %v3790_v61  ;;  %v3786_v36 = vld [vmem:[#allocation11 + $0x11c0] sm:$0xff] }
 0x354   : > { %v3077_v11 = vmul.f32 %v3069_v33, %v3059_v17  ;;  %3963 = vmatpush.msrb.mxu2 %v3690_v53  ;;  %3945 = vmatpush.msrb.mxu1 %v3606_v63  ;;  %v3678_v17 = vld [vmem:[#allocation11 + $0xe60] sm:$0xff]  ;;  %v3619_v53 = vld [vmem:[#allocation11 + $0xc88] sm:$0xff] }
 0x355   : > { %v3031_v23 = vadd.f32 %v3030_v13, %v3008_v37  ;;  %v3782_v28 = vld [vmem:[#allocation11 + $0x11a0] sm:$0xff]  ;;  %3978 = vmatpush.msrb.mxu3 %v3786_v36  ;;  %v3595_v13 = vld [vmem:[#allocation11 + $0xbc8] sm:$0xff] }
 0x356   : > { %v3095_v14 = vadd.f32 %v3087_v30, %v3077_v11  ;;  %v7525_v52 = vpop.permute.xlu0 %3131  ;;  %3946 = vmatpush.msrb.mxu1 %v3602_v26  ;;  %v3778_v37 = vld [vmem:[#allocation11 + $0x1180] sm:$0xff] }
 0x357   : > { %v3053_v19 = vpop.f32.mrf.mxu3  ;;  %3179 = vst.msk [vmem:[#allocation2] sm:$0xfc] %vm566_vm3, %v7525_v52  ;;  %3979 = vmatpush.msrb.mxu3 %v3782_v28  ;;  %v3850_v11 = vld [vmem:[#allocation11 + $0x13c0] sm:$0xff]  ;;  %v3615_v28 = vld [vmem:[#allocation11 + $0xc68] sm:$0xff] }
 0x358   : > { %v3054_v32 = vadd.f32 %v3053_v19, %v3031_v23  ;;  %v3103_v40 = vmax.f32 %v3095_v14, 0.0  ;;  %4023 = vmatpush.msra.mxu1 %v3599_v21  ;;  %v3846_v14 = vld [vmem:[#allocation11 + $0x13a0] sm:$0xff]  ;;  %v3611_v21 = vld [vmem:[#allocation11 + $0xc48] sm:$0xff] }
 0x359   : > { %3980 = vmatpush.msrb.mxu3 %v3778_v37  ;;  %v3666_v19 = vld [vmem:[#allocation11 + $0xe00] sm:$0xff]  ;;  %v3551_v37 = vld [vmem:[#allocation11 + $0xa68] sm:$0xff] }
 0x35a   : > { %v3063_v18 = vadd.f32 %v3054_v32, %v2217_v5  ;;  %v3122_v1 = vrot.slane %v3103_v40, 6  ;;  %v3770_v5 = vld [vmem:[#allocation11 + $0x1140] sm:$0xff]  ;;  %4024 = vmatpush.msra.mxu1 %v3595_v13  ;;  %v3663_v32 = vld [vmem:[#allocation11 + $0xde8] sm:$0xff] }
 0x35b   : > { %3981 = vmatpush.msrb.mxu3 %v3774_v44  ;;  %v3587_v40 = vld [vmem:[#allocation11 + $0xb88] sm:$0xff]  ;;  %v3818_v63 = vld [vmem:[#allocation11 + $0x12c0] sm:$0xff] }
 0x35c   : > { %v3081_v56 = vmul.f32 %v3069_v33, %v3063_v18  ;;  %3137 = vrot.lane.b32.xlu1 %v3122_v1, %s6686_s17  ;;  %v3686_v33 = vld [vmem:[#allocation11 + $0xea0] sm:$0xff]  ;;  %4025 = vmatpush.msra.mxu1 %v3591_v38  ;;  %v3603_v44 = vld [vmem:[#allocation11 + $0xc08] sm:$0xff] }
 0x35d   : > { %3964 = vmatpush.msrb.mxu2 %v3686_v33  ;;  %v3838_v18 = vld [vmem:[#allocation11 + $0x1360] sm:$0xff]  ;;  %3982 = vmatpush.msrb.mxu3 %v3770_v5  ;;  %v3719_v38 = vld [vmem:[#allocation11 + $0xfa8] sm:$0xff] }
 0x35e   : > { %v3099_v2 = vadd.f32 %v3087_v30, %v3081_v56  ;;  %v3527_v22 = vld [vmem:[#allocation2] sm:$0xfc]  ;;  %4026 = vmatpush.msra.mxu1 %v3587_v40  ;;  %v3651_v56 = vld [vmem:[#allocation11 + $0xd88] sm:$0xff] }
 0x35f   : > { %v3140_v24 = vpop.permute.xlu1 %3139  ;;  %v3873_v35 = vrot.slane %v3527_v22, 2  ;;  %v3854_v30 = vld [vmem:[#allocation11 + $0x13e0] sm:$0xff]  ;;  %3983 = vmatpush.msrb.mxu3 %v3766_v34  ;;  %v3715_v5 = vld [vmem:[#allocation11 + $0xf88] sm:$0xff] }
 0x360   : > { %v3107_v29 = vmax.f32 %v3099_v2, 0.0  ;;  %3184 = vst.msk [vmem:[#allocation2 + $0x28] sm:$0xff] %vm572_vm5, %v3140_v24  ;;  %4000 = vmatpush.msra.mxu0 %v3854_v30  ;;  %v3639_v2 = vld [vmem:[#allocation11 + $0xd28] sm:$0xff]  ;;  %4027 = vmatpush.msra.mxu1 %v3583_v54  ;;  %v3738_v22 = vld [vmem:[#allocation11 + $0x1040] sm:$0xff] }
 0x361   : > { %3984 = vmatpush.msrb.mxu3 %v3762_v27  ;;  %v3734_v26 = vld [vmem:[#allocation11 + $0x1020] sm:$0xff]  ;;  %v3727_v30 = vld [vmem:[#allocation11 + $0xfe8] sm:$0xff] }
 0x362   : > { %v3129_v47 = vrot.slane %v3107_v29, 6  ;;  %4001 = vmatpush.msra.mxu0 %v3850_v11  ;;  %v3834_v29 = vld [vmem:[#allocation11 + $0x1340] sm:$0xff]  ;;  %4028 = vmatpush.msra.mxu1 %v3579_v46  ;;  %v3723_v11 = vld [vmem:[#allocation11 + $0xfc8] sm:$0xff] }
 0x363   : > { %3985 = vmatpush.msrb.mxu3 %v3758_v39  ;;  %v3814_v33 = vld [vmem:[#allocation11 + $0x12a0] sm:$0xff]  ;;  %v3539_v40 = vld [vmem:[#allocation11 + $0xa08] sm:$0xff] }
 0x364   : > { %3153 = vrot.lane.b32.xlu1 %v3129_v47, %s6686_s17  ;;  %v3130_v50 = vsel %vm505_vm0, %v3122_v1, %v3129_v47  ;;  %4002 = vmatpush.msra.mxu0 %v3846_v14  ;;  %v3659_v1 = vld [vmem:[#allocation11 + $0xdc8] sm:$0xff]  ;;  %v3830_v47 = vld [vmem:[#allocation11 + $0x1320] sm:$0xff] }
 0x365   : > { %3145 = vrot.lane.b32.xlu2 %v3130_v50, %s6686_s17  ;;  %3986 = vmatpush.msrb.mxu3 %v3754_v12  ;;  %v3635_v50 = vld [vmem:[#allocation11 + $0xd08] sm:$0xff]  ;;  %v3730_v61 = vld [vmem:[#allocation11 + $0x1000] sm:$0xff] }
 0x366   : > { %4003 = vmatpush.msra.mxu0 %v3842_v25  ;;  %4029 = vmatpush.msra.mxu1 %v3575_v8  ;;  %v3810_v36 = vld [vmem:[#allocation11 + $0x1280] sm:$0xff]  ;;  %v3547_v14 = vld [vmem:[#allocation11 + $0xa48] sm:$0xff] }
 0x367   : > { %v7535_v15 = vld [vmem:[#allocation2 + $0x28] sm:$0xff]  ;;  %3987 = vmatpush.msrb.mxu3 %v3750_v31  ;;  %v3802_v13 = vld [vmem:[#allocation11 + $0x1240] sm:$0xff] }
 0x368   : > { %v3874_v45 = vrot.slane %v7535_v15, 2  ;;  %4004 = vmatpush.msra.mxu0 %v3838_v18  ;;  %4030 = vmatpush.msra.mxu1 %v3571_v42  ;;  %v3798_v25 = vld [vmem:[#allocation11 + $0x1220] sm:$0xff]  ;;  %v3711_v34 = vld [vmem:[#allocation11 + $0xf68] sm:$0xff] }
 0x369   : > { %3988 = vmatpush.msrb.mxu3 %v3746_v60  ;;  %v3791_v18 = vld [vmem:[#allocation11 + $0x11e8] sm:$0xff] }
 0x36a   : > { %v7543_v51 = vsel %vm1263_vm7, %v3873_v35, %v3874_v45  ;;  %4005 = vmatpush.msra.mxu0 %v3834_v29  ;;  %4031 = vmatpush.msra.mxu1 %v3567_v16  ;;  %v3563_v35 = vld [vmem:[#allocation11 + $0xac8] sm:$0xff] }
 0x36b   : > { %3924 = vmatmul.f32.vlgmr.msrb.gmra.mxu0 %v7543_v51  ;;  %3989 = vmatpush.msrb.mxu3 %v3742_v62  ;;  %v3707_v27 = vld [vmem:[#allocation11 + $0xf48] sm:$0xff] }
 0x36c   : > { %4006 = vmatpush.msra.mxu0 %v3830_v47  ;;  %4032 = vmatpush.msra.mxu1 %v3563_v35  ;;  %v3851_v39 = vld [vmem:[#allocation11 + $0x13c8] sm:$0xff] }
 0x36d   : > { %3149 = vrot.lane.b32.xlu2 %v7478_v57, %s6686_s17  ;;  %v3682_v57 = vld [vmem:[#allocation11 + $0xe80] sm:$0xff]  ;;  %3990 = vmatpush.msrb.mxu3 %v3738_v22  ;;  %v3843_v12 = vld [vmem:[#allocation11 + $0x1388] sm:$0xff] }
 0x36e   : > { %3965 = vmatpush.msrb.mxu2 %v3682_v57  ;;  %v3559_v57 = vld [vmem:[#allocation11 + $0xaa8] sm:$0xff] }
 0x36f   : > { %3991 = vmatpush.msrb.mxu3 %v3734_v26  ;;  %4033 = vmatpush.msra.mxu1 %v3559_v57  ;;  %v3695_v29 = vld [vmem:[#allocation11 + $0xee8] sm:$0xff] }
 0x370   : > { %3966 = vmatpush.msrb.mxu2 %v3678_v17  ;;  %v3555_v17 = vld [vmem:[#allocation11 + $0xa88] sm:$0xff] }
 0x371   : > { %3992 = vmatpush.msrb.mxu3 %v3730_v61  ;;  %4034 = vmatpush.msra.mxu1 %v3555_v17  ;;  %v3775_v31 = vld [vmem:[#allocation11 + $0x1168] sm:$0xff]  ;;  %v3596_v61 = vld [vmem:[#allocation11 + $0xbd0] sm:$0xff] }
 0x372   : > { %3967 = vmatpush.msrb.mxu2 %v3674_v7  ;;  %v3806_v7 = vld [vmem:[#allocation11 + $0x1260] sm:$0xff]  ;;  %v3839_v47 = vld [vmem:[#allocation11 + $0x1368] sm:$0xff] }
 0x373   : > { %4069 = vmatpush.msra.mxu3 %v3727_v30  ;;  %4035 = vmatpush.msra.mxu1 %v3551_v37  ;;  %v3691_v8 = vld [vmem:[#allocation11 + $0xec8] sm:$0xff]  ;;  %v3592_v37 = vld [vmem:[#allocation11 + $0xbb0] sm:$0xff] }
 0x374   : > { %3968 = vmatpush.msrb.mxu2 %v3670_v48  ;;  %v3607_v48 = vld [vmem:[#allocation11 + $0xc28] sm:$0xff] }
 0x375   : > { %3147 = vrot.lane.b32.xlu2 %v7447_v10, %s6686_s17  ;;  %v7546_v10 = vpop.permute.xlu2 %3141  ;;  %v7553_v41 = vpop.permute.xlu0 %3133  ;;  %4070 = vmatpush.msra.mxu3 %v3723_v11  ;;  %v3835_v60 = vld [vmem:[#allocation11 + $0x1348] sm:$0xff]  ;;  %v3588_v11 = vld [vmem:[#allocation11 + $0xb90] sm:$0xff] }
 0x376   : > { %v7550_v23 = vsel %vm493_vm2, %v3140_v24, %v7546_v10  ;;  %3969 = vmatpush.msrb.mxu2 %v3666_v19  ;;  %v3155_v59 = vsel %vm493_vm2, %v7525_v52, %v7553_v41  ;;  %v3826_v52 = vld [vmem:[#allocation11 + $0x1300] sm:$0xff]  ;;  %4036 = vmatpush.msra.mxu1 %v3547_v14  ;;  %v3543_v19 = vld [vmem:[#allocation11 + $0xa28] sm:$0xff] }
 0x377   : > { %3185 = vst [vmem:[#allocation2 + $0x30] sm:$0xff] %v7550_v23  ;;  %v3877_v0 = vrot.slane %v7550_v23, 2  ;;  %4007 = vmatpush.msra.mxu0 %v3826_v52  ;;  %4071 = vmatpush.msra.mxu3 %v3719_v38  ;;  %v3687_v52 = vld [vmem:[#allocation11 + $0xea8] sm:$0xff]  ;;  %v3584_v38 = vld [vmem:[#allocation11 + $0xb70] sm:$0xff] }
 0x378   : > { %4046 = vmatpush.msra.mxu2 %v3663_v32  ;;  %3180 = vst [vmem:[#allocation2 + $0x8] sm:$0xfc] %v3155_v59  ;;  %v3794_v32 = vld [vmem:[#allocation11 + $0x1200] sm:$0xff]  ;;  %4037 = vmatpush.msra.mxu1 %v3543_v19  ;;  %v3847_v59 = vld [vmem:[#allocation11 + $0x13a8] sm:$0xff] }
 0x379   : > { %4008 = vmatpush.msra.mxu0 %v3822_v20  ;;  %4072 = vmatpush.msra.mxu3 %v3715_v5  ;;  %v3683_v42 = vld [vmem:[#allocation11 + $0xe88] sm:$0xff] }
 0x37a   : > { %4047 = vmatpush.msra.mxu2 %v3659_v1  ;;  %v3855_v1 = vld [vmem:[#allocation11 + $0x13e8] sm:$0xff]  ;;  %4038 = vmatpush.msra.mxu1 %v3539_v40  ;;  %v3580_v40 = vld [vmem:[#allocation11 + $0xb50] sm:$0xff] }
 0x37b   : > { %4009 = vmatpush.msra.mxu0 %v3818_v63  ;;  %4073 = vmatpush.msra.mxu3 %v3711_v34  ;;  %v3763_v62 = vld [vmem:[#allocation11 + $0x1108] sm:$0xff]  ;;  %v8187_v34 = vmov 0.0  }
 0x37c   : > { %4048 = vmatpush.msra.mxu2 %v3655_v6  ;;  %v3787_v6 = vld [vmem:[#allocation11 + $0x11c8] sm:$0xff] }
 0x37d   : > { %4010 = vmatpush.msra.mxu0 %v3814_v33  ;;  %4074 = vmatpush.msra.mxu3 %v3707_v27  ;;  %v3827_v16 = vld [vmem:[#allocation11 + $0x1308] sm:$0xff]  ;;  %v3600_v33 = vld [vmem:[#allocation11 + $0xbf0] sm:$0xff] }
 0x37e   : > { %4049 = vmatpush.msra.mxu2 %v3651_v56  ;;  %v3703_v56 = vld [vmem:[#allocation11 + $0xf28] sm:$0xff] }
 0x37f   : > { %v3528_v3 = vld [vmem:[#allocation2 + $0x8] sm:$0xfc]  ;;  %4011 = vmatpush.msra.mxu0 %v3810_v36  ;;  %4075 = vmatpush.msra.mxu3 %v3703_v56 }
 0x380   : > { %4050 = vmatpush.msra.mxu2 %v3647_v49  ;;  %v3876_v24 = vrot.slane %v3528_v3, 2  ;;  %v3783_v49 = vld [vmem:[#allocation11 + $0x11a8] sm:$0xff] }
 0x381   : > { %4012 = vmatpush.msra.mxu0 %v3806_v7  ;;  %v3823_v22 = vld [vmem:[#allocation11 + $0x12e8] sm:$0xff] }
 0x382   : > { %4051 = vmatpush.msra.mxu2 %v3643_v43  ;;  %v7562_v55 = vsel %vm1263_vm7, %v3876_v24, %v3877_v0  ;;  %v3699_v43 = vld [vmem:[#allocation11 + $0xf08] sm:$0xff] }
 0x383   : > { %3947 = vmatmul.f32.vlgmr.msrb.gmra.mxu1 %v7562_v55  ;;  %4013 = vmatpush.msra.mxu0 %v3802_v13  ;;  %v3675_v63 = vld [vmem:[#allocation11 + $0xe48] sm:$0xff] }
 0x384   : > { %4052 = vmatpush.msra.mxu2 %v3639_v2  ;;  %4115 = vmatpush.msrb.mxu1 %v3855_v1  ;;  %v3779_v2 = vld [vmem:[#allocation11 + $0x1188] sm:$0xff]  ;;  %v3576_v1 = vld [vmem:[#allocation11 + $0xb30] sm:$0xff] }
 0x385   : > { %4014 = vmatpush.msra.mxu0 %v3798_v25  ;;  %4076 = vmatpush.msra.mxu3 %v3699_v43  ;;  %v3755_v35 = vld [vmem:[#allocation11 + $0x10c8] sm:$0xff]  ;;  %v3564_v43 = vld [vmem:[#allocation11 + $0xad0] sm:$0xff] }
 0x386   : > { %4053 = vmatpush.msra.mxu2 %v3635_v50  ;;  %4116 = vmatpush.msrb.mxu1 %v3851_v39  ;;  %v3771_v50 = vld [vmem:[#allocation11 + $0x1148] sm:$0xff] }
 0x387   : > { %4015 = vmatpush.msra.mxu0 %v3794_v32  ;;  %4077 = vmatpush.msra.mxu3 %v3695_v29  ;;  %v3671_v36 = vld [vmem:[#allocation11 + $0xe28] sm:$0xff] }
 0x388   : > { %4054 = vmatpush.msra.mxu2 %v3631_v9  ;;  %4117 = vmatpush.msrb.mxu1 %v3847_v59  ;;  %v3767_v9 = vld [vmem:[#allocation11 + $0x1128] sm:$0xff] }
 0x389   : > { %4092 = vmatpush.msrb.mxu0 %v3791_v18  ;;  %4078 = vmatpush.msra.mxu3 %v3691_v8  ;;  %v3751_v17 = vld [vmem:[#allocation11 + $0x10a8] sm:$0xff] }
 0x38a   : > { %4055 = vmatpush.msra.mxu2 %v3627_v58  ;;  %4118 = vmatpush.msrb.mxu1 %v3843_v12  ;;  %v3679_v58 = vld [vmem:[#allocation11 + $0xe68] sm:$0xff]  ;;  %v3556_v12 = vld [vmem:[#allocation11 + $0xa90] sm:$0xff] }
 0x38b   : > { %4093 = vmatpush.msrb.mxu0 %v3787_v6  ;;  %4079 = vmatpush.msra.mxu3 %v3687_v52  ;;  %v3667_v30 = vld [vmem:[#allocation11 + $0xe08] sm:$0xff]  ;;  %v3572_v6 = vld [vmem:[#allocation11 + $0xb10] sm:$0xff] }
 0x38c   : > { %4056 = vmatpush.msra.mxu2 %v3623_v4  ;;  %4119 = vmatpush.msrb.mxu1 %v3839_v47  ;;  %v3759_v4 = vld [vmem:[#allocation11 + $0x10e8] sm:$0xff]  ;;  %v3552_v47 = vld [vmem:[#allocation11 + $0xa70] sm:$0xff] }
 0x38d   : > { %4094 = vmatpush.msrb.mxu0 %v3783_v49  ;;  %4080 = vmatpush.msra.mxu3 %v3683_v42  ;;  %v3747_v7 = vld [vmem:[#allocation11 + $0x1088] sm:$0xff]  ;;  %v3568_v49 = vld [vmem:[#allocation11 + $0xaf0] sm:$0xff] }
 0x38e   : > { %4057 = vmatpush.msra.mxu2 %v3619_v53  ;;  %4120 = vmatpush.msrb.mxu1 %v3835_v60  ;;  %v3743_v13 = vld [vmem:[#allocation11 + $0x1068] sm:$0xff]  ;;  %v3548_v52 = vld [vmem:[#allocation11 + $0xa50] sm:$0xff] }
 0x38f   : > { %4095 = vmatpush.msrb.mxu0 %v3779_v2  ;;  %4081 = vmatpush.msra.mxu3 %v3679_v58  ;;  %v3803_v25 = vld [vmem:[#allocation11 + $0x1248] sm:$0xff]  ;;  %v3560_v2 = vld [vmem:[#allocation11 + $0xab0] sm:$0xff] }
 0x390   : > { %4058 = vmatpush.msra.mxu2 %v3615_v28  ;;  %v3815_v28 = vld [vmem:[#allocation11 + $0x12a8] sm:$0xff]  ;;  %v3664_v58 = vld [vmem:[#allocation11 + $0xdf0] sm:$0xff] }
 0x391   : > { %4096 = vmatpush.msrb.mxu0 %v3775_v31  ;;  %4082 = vmatpush.msra.mxu3 %v3675_v63  ;;  %v3735_v5 = vld [vmem:[#allocation11 + $0x1028] sm:$0xff]  ;;  %v3856_v63 = vld [vmem:[#allocation11 + $0x13f0] sm:$0xff] }
 0x392   : > { %4059 = vmatpush.msra.mxu2 %v3611_v21  ;;  %v3811_v21 = vld [vmem:[#allocation11 + $0x1288] sm:$0xff] }
 0x393   : > { %4097 = vmatpush.msrb.mxu0 %v3771_v50  ;;  %4083 = vmatpush.msra.mxu3 %v3671_v36  ;;  %v3799_v32 = vld [vmem:[#allocation11 + $0x1228] sm:$0xff]  ;;  %v3852_v36 = vld [vmem:[#allocation11 + $0x13d0] sm:$0xff] }
 0x394   : > { %4060 = vmatpush.msra.mxu2 %v3607_v48  ;;  %v3807_v48 = vld [vmem:[#allocation11 + $0x1268] sm:$0xff] }
 0x395   : > { %4098 = vmatpush.msrb.mxu0 %v3767_v9  ;;  %4084 = vmatpush.msra.mxu3 %v3667_v30  ;;  %v3731_v18 = vld [vmem:[#allocation11 + $0x1008] sm:$0xff]  ;;  %v3544_v9 = vld [vmem:[#allocation11 + $0xa30] sm:$0xff] }
 0x396   : > { %4061 = vmatpush.msra.mxu2 %v3603_v44  ;;  %v3739_v44 = vld [vmem:[#allocation11 + $0x1048] sm:$0xff] }
 0x397   : > { %4099 = vmatpush.msrb.mxu0 %v3763_v62  ;;  %v3795_v27 = vld [vmem:[#allocation11 + $0x1208] sm:$0xff] }
 0x398   : > { %v7565_v54 = vpop.permute.xlu1 %3135 }
 0x399   : > { %v3156_v46 = vsel %vm493_vm2, %v7553_v41, %v7565_v54  ;;  %v3831_v41 = vld [vmem:[#allocation11 + $0x1328] sm:$0xff]  ;;  %4100 = vmatpush.msrb.mxu0 %v3759_v4 }
 0x39a   : > { %3181 = vst [vmem:[#allocation2 + $0x10] sm:$0xfc] %v3156_v46  ;;  %4121 = vmatpush.msrb.mxu1 %v3831_v41 }
 0x39b   : > { %4101 = vmatpush.msrb.mxu0 %v3755_v35 }
 0x39c   : > { %4122 = vmatpush.msrb.mxu1 %v3827_v16 }
 0x39d   : > { %4102 = vmatpush.msrb.mxu0 %v3751_v17 }
 0x39e   : > { %4123 = vmatpush.msrb.mxu1 %v3823_v22 }
 0x39f   : > { %4103 = vmatpush.msrb.mxu0 %v3747_v7  ;;  %v3652_v7 = vld [vmem:[#allocation11 + $0xd90] sm:$0xff] }
 0x3a1   : > { %v3529_v3 = vld [vmem:[#allocation2 + $0x10] sm:$0xfc]  ;;  %4104 = vmatpush.msrb.mxu0 %v3743_v13 }
 0x3a2   : > { %v3144_v24 = vpop.permute.xlu0 %3143  ;;  %v3879_v20 = vrot.slane %v3529_v3, 2  ;;  %v3540_v3 = vld [vmem:[#allocation11 + $0xa10] sm:$0xff] }
 0x3a3   : > { %v7572_v53 = vsel %vm493_vm2, %v7546_v10, %v3144_v24  ;;  %v3819_v10 = vld [vmem:[#allocation11 + $0x12c8] sm:$0xff]  ;;  %4105 = vmatpush.msrb.mxu0 %v3739_v44  ;;  %v3648_v13 = vld [vmem:[#allocation11 + $0xd70] sm:$0xff] }
 0x3a4   : > { %3186 = vst [vmem:[#allocation2 + $0x38] sm:$0xff] %v7572_v53  ;;  %v3880_v26 = vrot.slane %v7572_v53, 2  ;;  %4124 = vmatpush.msrb.mxu1 %v3819_v10  ;;  %v3728_v44 = vld [vmem:[#allocation11 + $0xff0] sm:$0xff] }
 0x3a5   : > { %4106 = vmatpush.msrb.mxu0 %v3735_v5  ;;  %v3836_v5 = vld [vmem:[#allocation11 + $0x1350] sm:$0xff] }
 0x3a6   : > { %v7579_v57 = vsel %vm1263_vm7, %v3879_v20, %v3880_v26  ;;  %4125 = vmatpush.msrb.mxu1 %v3815_v28  ;;  %v3656_v28 = vld [vmem:[#allocation11 + $0xdb0] sm:$0xff] }
 0x3a7   : > { %3970 = vmatmul.f32.vlgmr.msrb.gmra.mxu2 %v7579_v57  ;;  %4107 = vmatpush.msrb.mxu0 %v3731_v18  ;;  %v3720_v18 = vld [vmem:[#allocation11 + $0xfb0] sm:$0xff] }
 0x3a8   : > { %4138 = vmatpush.msrb.mxu2 %v3600_v33  ;;  %4126 = vmatpush.msrb.mxu1 %v3811_v21 }
 0x3aa   : > { %4139 = vmatpush.msrb.mxu2 %v3596_v61  ;;  %4127 = vmatpush.msrb.mxu1 %v3807_v48  ;;  %v3152_v39 = vpop.permute.xlu0 %3151  ;;  %v3840_v48 = vld [vmem:[#allocation11 + $0x1370] sm:$0xff] }
 0x3ac   : > { %4140 = vmatpush.msrb.mxu2 %v3592_v37  ;;  %4128 = vmatpush.msrb.mxu1 %v3803_v25  ;;  %v3644_v25 = vld [vmem:[#allocation11 + $0xd50] sm:$0xff] }
 0x3ae   : > { %4141 = vmatpush.msrb.mxu2 %v3588_v11  ;;  %4129 = vmatpush.msrb.mxu1 %v3799_v32  ;;  %v3844_v11 = vld [vmem:[#allocation11 + $0x1390] sm:$0xff] }
 0x3af   : > { %v3788_v32 = vld [vmem:[#allocation11 + $0x11d0] sm:$0xff] }
 0x3b0   : > { %4142 = vmatpush.msrb.mxu2 %v3584_v38  ;;  %4130 = vmatpush.msrb.mxu1 %v3795_v27  ;;  %v3792_v38 = vld [vmem:[#allocation11 + $0x11f0] sm:$0xff] }
 0x3b1   : > { %v3784_v27 = vld [vmem:[#allocation11 + $0x11b0] sm:$0xff] }
 0x3b2   : > { %4143 = vmatpush.msrb.mxu2 %v3580_v40  ;;  %v3640_v40 = vld [vmem:[#allocation11 + $0xd30] sm:$0xff] }
 0x3b4   : > { %4144 = vmatpush.msrb.mxu2 %v3576_v1  ;;  %v3832_v1 = vld [vmem:[#allocation11 + $0x1330] sm:$0xff] }
 0x3b6   : > { %4145 = vmatpush.msrb.mxu2 %v3572_v6  ;;  %v3636_v6 = vld [vmem:[#allocation11 + $0xd10] sm:$0xff] }
 0x3b8   : > { %4146 = vmatpush.msrb.mxu2 %v3568_v49 }
 0x3ba   : > { %4147 = vmatpush.msrb.mxu2 %v3564_v43  ;;  %v3712_v43 = vld [vmem:[#allocation11 + $0xf70] sm:$0xff] }
 0x3bc   : > { %4148 = vmatpush.msrb.mxu2 %v3560_v2  ;;  %v3776_v2 = vld [vmem:[#allocation11 + $0x1170] sm:$0xff] }
 0x3be   : > { %4149 = vmatpush.msrb.mxu2 %v3556_v12  ;;  %v3628_v12 = vld [vmem:[#allocation11 + $0xcd0] sm:$0xff] }
 0x3bf   : > { %v3146_v14 = vpop.permute.xlu2 %3145 }
 0x3c0   : > { %v7583_v19 = vsel %vm493_vm2, %v3144_v24, %v3146_v14  ;;  %3188 = vst.msk [vmem:[#allocation2 + $0x48] sm:$0xff] %vm493_vm2, %v3146_v14  ;;  %4150 = vmatpush.msrb.mxu2 %v3552_v47  ;;  %v3624_v47 = vld [vmem:[#allocation11 + $0xcb0] sm:$0xff] }
 0x3c1   : > { %3187 = vst [vmem:[#allocation2 + $0x40] sm:$0xff] %v7583_v19  ;;  %v3883_v20 = vrot.slane %v7583_v19, 2  ;;  %v3724_v19 = vld [vmem:[#allocation11 + $0xfd0] sm:$0xff] }
 0x3c2   : > { %3195 = vst.msk [vmem:[#allocation2 + $0x48] sm:$0xff] %vm572_vm5, %v8187_v34  ;;  %4151 = vmatpush.msrb.mxu2 %v3548_v52  ;;  %v3620_v52 = vld [vmem:[#allocation11 + $0xc90] sm:$0xff] }
 0x3c4   : > { %4152 = vmatpush.msrb.mxu2 %v3544_v9  ;;  %v3700_v9 = vld [vmem:[#allocation11 + $0xf10] sm:$0xff] }
 0x3c6   : > { %4153 = vmatpush.msrb.mxu2 %v3540_v3  ;;  %v3616_v3 = vld [vmem:[#allocation11 + $0xc70] sm:$0xff] }
 0x3c7   : > { %v3150_v56 = vpop.permute.xlu2 %3149 }
 0x3c8   : > { %v3162_v59 = vsel %vm493_vm2, %v3150_v56, %v3152_v39 }
 0x3c9   : > { %3191 = vst [vmem:[#allocation2 + $0x60] sm:$0x3] %v3162_v59  ;;  %v3206_v33 = vld [vmem:[#allocation2 + $0x48] sm:$0xff]  ;;  %v3632_v59 = vld [vmem:[#allocation11 + $0xcf0] sm:$0xff] }
 0x3ca   : > { %v3886_v30 = vrot.slane %v3206_v33, 2  ;;  %v3604_v33 = vld [vmem:[#allocation11 + $0xc10] sm:$0xff] }
 0x3ce   : > { %v3138_v29 = vpop.permute.xlu1 %3137 }
 0x3cf   : > { %v3157_v46 = vsel %vm493_vm2, %v7565_v54, %v3138_v29  ;;  %3183 = vst.msk [vmem:[#allocation2 + $0x20] sm:$0xfc] %vm491_vm1, %v3138_v29  ;;  %v3148_v31 = vpop.permute.xlu2 %3147  ;;  %v3708_v29 = vld [vmem:[#allocation11 + $0xf50] sm:$0xff] }
 0x3d0   : > { %3182 = vst [vmem:[#allocation2 + $0x18] sm:$0xfc] %v3157_v46  ;;  %v3161_v8 = vsel %vm493_vm2, %v3148_v31, %v3150_v56  ;;  %v3534_v50 = vld [vmem:[#allocation2 + $0x60] sm:$0x3]  ;;  %v3780_v56 = vld [vmem:[#allocation11 + $0x1190] sm:$0xff] }
 0x3d1   : > { %3194 = vst.msk [vmem:[#allocation2 + $0x20] sm:$0xfc] %vm566_vm3, %v8187_v34  ;;  %v3892_v60 = vrot.slane %v3534_v50, 2  ;;  %v3828_v46 = vld [vmem:[#allocation11 + $0x1310] sm:$0xff] }
 0x3d2   : > { %3189 = vst.msk [vmem:[#allocation2 + $0x50] sm:$0x3] %vm578_vm6, %v3148_v31  ;;  %v3772_v31 = vld [vmem:[#allocation11 + $0x1150] sm:$0xff] }
 0x3d3   : > { %3190 = vst [vmem:[#allocation2 + $0x58] sm:$0x3] %v3161_v8  ;;  %v7600_v54 = vsel %vm1263_vm7, %v3880_v26, %v3892_v60  ;;  %v3660_v26 = vld [vmem:[#allocation11 + $0xdd0] sm:$0xff] }
 0x3d4   : > { %3973 = vmatmul.f32.gmra.mxu2 %v7600_v54  ;;  %v3704_v8 = vld [vmem:[#allocation11 + $0xf30] sm:$0xff] }
 0x3d5   : > { %v3824_v50 = vld [vmem:[#allocation11 + $0x12f0] sm:$0xff] }
 0x3d6   : > { %v3154_v41 = vpop.permute.xlu1 %3153  ;;  %v3768_v60 = vld [vmem:[#allocation11 + $0x1130] sm:$0xff] }
 0x3d7   : > { %v3163_v42 = vsel %vm493_vm2, %v3152_v39, %v3154_v41  ;;  %3193 = vst.msk [vmem:[#allocation2 + $0x70] sm:$0x3] %vm495_vm4, %v3154_v41  ;;  %v3530_v62 = vld [vmem:[#allocation2 + $0x18] sm:$0xfc]  ;;  %v3716_v39 = vld [vmem:[#allocation11 + $0xf90] sm:$0xff] }
 0x3d8   : > { %3192 = vst [vmem:[#allocation2 + $0x68] sm:$0x3] %v3163_v42  ;;  %v3882_v24 = vrot.slane %v3530_v62, 2  ;;  %v3531_v61 = vld [vmem:[#allocation2 + $0x20] sm:$0xfc]  ;;  %v3764_v41 = vld [vmem:[#allocation11 + $0x1110] sm:$0xff] }
 0x3d9   : > { %3196 = vst.msk [vmem:[#allocation2 + $0x70] sm:$0x3] %vm578_vm6, %v8187_v34  ;;  %v3532_v16 = vld [vmem:[#allocation2 + $0x50] sm:$0x3]  ;;  %v3885_v15 = vrot.slane %v3531_v61, 2 }
 0x3da   : > { %v3888_v4 = vrot.slane %v3532_v16, 2  ;;  %v7609_v53 = vsel %vm1263_vm7, %v3882_v24, %v3883_v20  ;;  %v3533_v22 = vld [vmem:[#allocation2 + $0x58] sm:$0x3]  ;;  %v3696_v42 = vld [vmem:[#allocation11 + $0xef0] sm:$0xff] }
 0x3db   : > { %3993 = vmatmul.f32.vlgmr.msrb.gmra.mxu3 %v7609_v53  ;;  %v3890_v35 = vrot.slane %v3533_v22, 2  ;;  %v3760_v62 = vld [vmem:[#allocation11 + $0x10f0] sm:$0xff] }
 0x3dc   : > { %v7615_v10 = vsel %vm1263_vm7, %v3874_v45, %v3888_v4  ;;  %4161 = vmatpush.msrb.mxu3 %v3664_v58  ;;  %4062 = vmatmul.f32.vlgmr.msra.gmra.mxu2 %v7562_v55  ;;  %v3848_v45 = vld [vmem:[#allocation11 + $0x13b0] sm:$0xff] }
 0x3dd   : > { %3927 = vmatmul.f32.gmra.mxu0 %v7615_v10  ;;  %v7622_v17 = vsel %vm1263_vm7, %v3877_v0, %v3890_v35  ;;  %4230 = vmatpush.msra.mxu2 %v3856_v63  ;;  %v7629_v0 = vsel %vm1263_vm7, %v3885_v15, %v3886_v30  ;;  %v3820_v24 = vld [vmem:[#allocation11 + $0x12d0] sm:$0xff]  ;;  %v3601_v15 = vld [vmem:[#allocation11 + $0xbf8] sm:$0xff] }
 0x3de   : > { %3950 = vmatmul.f32.gmra.mxu1 %v7622_v17  ;;  %4162 = vmatpush.msrb.mxu3 %v3660_v26  ;;  %v3692_v16 = vld [vmem:[#allocation11 + $0xed0] sm:$0xff] }
 0x3df   : > { %v3535_v37 = vld [vmem:[#allocation2 + $0x68] sm:$0x3]  ;;  %4231 = vmatpush.msra.mxu2 %v3852_v36  ;;  %v3756_v58 = vld [vmem:[#allocation11 + $0x10d0] sm:$0xff] }
 0x3e0   : > { %4163 = vmatpush.msrb.mxu3 %v3656_v28  ;;  %v3894_v21 = vrot.slane %v3535_v37, 2  ;;  %v3536_v14 = vld [vmem:[#allocation2 + $0x70] sm:$0x3]  ;;  %v3597_v37 = vld [vmem:[#allocation11 + $0xbd8] sm:$0xff] }
 0x3e1   : > { %4232 = vmatpush.msra.mxu2 %v3848_v45  ;;  %v3896_v34 = vrot.slane %v3536_v14, 2  ;;  %v3816_v4 = vld [vmem:[#allocation11 + $0x12b0] sm:$0xff] }
 0x3e2   : > { %4164 = vmatpush.msrb.mxu3 %v3652_v7  ;;  %v7626_v23 = vsel %vm1263_vm7, %v3883_v20, %v3894_v21  ;;  %v3612_v20 = vld [vmem:[#allocation11 + $0xc50] sm:$0xff] }
 0x3e3   : > { %3996 = vmatmul.f32.gmra.mxu3 %v7626_v23  ;;  %4233 = vmatpush.msra.mxu2 %v3844_v11  ;;  %v7636_v49 = vsel %vm1263_vm7, %v3886_v30, %v3896_v34  ;;  %v3608_v22 = vld [vmem:[#allocation11 + $0xc30] sm:$0xff]  ;;  %v3665_v34 = vld [vmem:[#allocation11 + $0xdf8] sm:$0xff] }
 0x3e4   : > { %4165 = vmatpush.msrb.mxu3 %v3648_v13  ;;  %4065 = vmatmul.f32.gmra.mxu2 %v7622_v17  ;;  %v3688_v63 = vld [vmem:[#allocation11 + $0xeb0] sm:$0xff] }
 0x3e5   : > { %4016 = vmatmul.f32.vlgmr.msra.gmra.mxu0 %v7629_v0  ;;  %4234 = vmatpush.msra.mxu2 %v3840_v48  ;;  %v3752_v35 = vld [vmem:[#allocation11 + $0x10b0] sm:$0xff]  ;;  %v3593_v48 = vld [vmem:[#allocation11 + $0xbb8] sm:$0xff] }
 0x3e6   : > { %4184 = vmatpush.msra.mxu0 %v3728_v44  ;;  %4039 = vmatmul.f32.vlgmr.msra.gmra.mxu1 %v7543_v51  ;;  %v3812_v26 = vld [vmem:[#allocation11 + $0x1290] sm:$0xff] }
 0x3e7   : > { %4207 = vmatpush.msra.mxu1 %v3792_v38  ;;  %4166 = vmatpush.msrb.mxu3 %v3644_v25  ;;  %v3684_v61 = vld [vmem:[#allocation11 + $0xe90] sm:$0xff]  ;;  %v3589_v25 = vld [vmem:[#allocation11 + $0xb98] sm:$0xff] }
 0x3e8   : > { %4185 = vmatpush.msra.mxu0 %v3724_v19  ;;  %4235 = vmatpush.msra.mxu2 %v3836_v5  ;;  %v3748_v36 = vld [vmem:[#allocation11 + $0x1090] sm:$0xff]  ;;  %v3793_v5 = vld [vmem:[#allocation11 + $0x11f8] sm:$0xff] }
 0x3e9   : > { %4208 = vmatpush.msra.mxu1 %v3788_v32  ;;  %4167 = vmatpush.msrb.mxu3 %v3640_v40  ;;  %v3808_v28 = vld [vmem:[#allocation11 + $0x1270] sm:$0xff]  ;;  %v3585_v40 = vld [vmem:[#allocation11 + $0xb78] sm:$0xff] }
 0x3ea   : > { %4186 = vmatpush.msra.mxu0 %v3720_v18  ;;  %4236 = vmatpush.msra.mxu2 %v3832_v1  ;;  %v3680_v30 = vld [vmem:[#allocation11 + $0xe70] sm:$0xff]  ;;  %v3729_v18 = vld [vmem:[#allocation11 + $0xff8] sm:$0xff] }
 0x3eb   : > { %4209 = vmatpush.msra.mxu1 %v3784_v27  ;;  %4168 = vmatpush.msrb.mxu3 %v3636_v6  ;;  %v3804_v45 = vld [vmem:[#allocation11 + $0x1250] sm:$0xff]  ;;  %v3789_v1 = vld [vmem:[#allocation11 + $0x11d8] sm:$0xff] }
 0x3ec   : > { %4187 = vmatpush.msra.mxu0 %v3716_v39  ;;  %4085 = vmatmul.f32.vlgmr.msra.gmra.mxu3 %v7579_v57  ;;  %v3744_v7 = vld [vmem:[#allocation11 + $0x1070] sm:$0xff]  ;;  %v3581_v27 = vld [vmem:[#allocation11 + $0xb58] sm:$0xff] }
 0x3ed   : > { %4210 = vmatpush.msra.mxu1 %v3780_v56  ;;  %4019 = vmatmul.f32.gmra.mxu0 %v7636_v49  ;;  %v3676_v21 = vld [vmem:[#allocation11 + $0xe50] sm:$0xff]  ;;  %v3661_v6 = vld [vmem:[#allocation11 + $0xdd8] sm:$0xff] }
 0x3ee   : > { %4169 = vmatpush.msrb.mxu3 %v3632_v59  ;;  %4188 = vmatpush.msra.mxu0 %v3712_v43  ;;  %v3800_v11 = vld [vmem:[#allocation11 + $0x1230] sm:$0xff]  ;;  %v3725_v39 = vld [vmem:[#allocation11 + $0xfd8] sm:$0xff] }
 0x3ef   : > { %4042 = vmatmul.f32.gmra.mxu1 %v7615_v10  ;;  %4154 = vmatmul.f32.vlgmr.msrb.gmra.mxu2 %v7543_v51  ;;  %v3740_v13 = vld [vmem:[#allocation11 + $0x1050] sm:$0xff]  ;;  %v3785_v56 = vld [vmem:[#allocation11 + $0x11b8] sm:$0xff] }
 0x3f0   : > { %4211 = vmatpush.msra.mxu1 %v3776_v2  ;;  %4170 = vmatpush.msrb.mxu3 %v3628_v12  ;;  %v3672_v44 = vld [vmem:[#allocation11 + $0xe30] sm:$0xff]  ;;  %v3577_v59 = vld [vmem:[#allocation11 + $0xb38] sm:$0xff] }
 0x3f1   : > { %4189 = vmatpush.msra.mxu0 %v3708_v29  ;;  %4237 = vmatpush.msra.mxu2 %v3828_v46  ;;  %v3796_v14 = vld [vmem:[#allocation11 + $0x1210] sm:$0xff]  ;;  %v3657_v43 = vld [vmem:[#allocation11 + $0xdb8] sm:$0xff] }
 0x3f2   : > { %4212 = vmatpush.msra.mxu1 %v3772_v31  ;;  %4171 = vmatpush.msrb.mxu3 %v3624_v47  ;;  %v3736_v38 = vld [vmem:[#allocation11 + $0x1030] sm:$0xff]  ;;  %v3721_v2 = vld [vmem:[#allocation11 + $0xfb8] sm:$0xff] }
 0x3f3   : > { %4190 = vmatpush.msra.mxu0 %v3704_v8  ;;  %4238 = vmatpush.msra.mxu2 %v3824_v50  ;;  %v3668_v19 = vld [vmem:[#allocation11 + $0xe10] sm:$0xff]  ;;  %v3781_v12 = vld [vmem:[#allocation11 + $0x1198] sm:$0xff] }
 0x3f4   : > { %4213 = vmatpush.msra.mxu1 %v3768_v60  ;;  %4172 = vmatpush.msrb.mxu3 %v3620_v52  ;;  %v3732_v32 = vld [vmem:[#allocation11 + $0x1010] sm:$0xff]  ;;  %v3573_v29 = vld [vmem:[#allocation11 + $0xb18] sm:$0xff] }
 0x3f5   : > { %4191 = vmatpush.msra.mxu0 %v3700_v9  ;;  %4088 = vmatmul.f32.gmra.mxu3 %v7600_v54  ;;  %v3653_v46 = vld [vmem:[#allocation11 + $0xd98] sm:$0xff] }
 0x3f6   : > { %4214 = vmatpush.msra.mxu1 %v3764_v41  ;;  %4108 = vmatmul.f32.vlgmr.msrb.gmra.mxu0 %v7609_v53  ;;  %v3717_v31 = vld [vmem:[#allocation11 + $0xf98] sm:$0xff] }
 0x3f7   : > { %4173 = vmatpush.msrb.mxu3 %v3616_v3  ;;  %4192 = vmatpush.msra.mxu0 %v3696_v42  ;;  %v3777_v47 = vld [vmem:[#allocation11 + $0x1178] sm:$0xff] }
 0x3f8   : > { %4131 = vmatmul.f32.vlgmr.msrb.gmra.mxu1 %v7629_v0  ;;  %4157 = vmatmul.f32.gmra.mxu2 %v7615_v10  ;;  %v3569_v8 = vld [vmem:[#allocation11 + $0xaf8] sm:$0xff] }
 0x3f9   : > { %4215 = vmatpush.msra.mxu1 %v3760_v62  ;;  %4239 = vmatpush.msra.mxu2 %v3820_v24  ;;  %v3649_v50 = vld [vmem:[#allocation11 + $0xd78] sm:$0xff] }
 0x3fa   : > { %4174 = vmatpush.msrb.mxu3 %v3612_v20  ;;  %4193 = vmatpush.msra.mxu0 %v3692_v16  ;;  %v3713_v60 = vld [vmem:[#allocation11 + $0xf78] sm:$0xff] }
 0x3fb   : > { %4216 = vmatpush.msra.mxu1 %v3756_v58  ;;  %4240 = vmatpush.msra.mxu2 %v3816_v4  ;;  %v3773_v52 = vld [vmem:[#allocation11 + $0x1158] sm:$0xff] }
 0x3fc   : > { %4175 = vmatpush.msrb.mxu3 %v3608_v22  ;;  %4194 = vmatpush.msra.mxu0 %v3688_v63  ;;  %v3565_v9 = vld [vmem:[#allocation11 + $0xad8] sm:$0xff] }
 0x3fd   : > { %4217 = vmatpush.msra.mxu1 %v3752_v35  ;;  %4241 = vmatpush.msra.mxu2 %v3812_v26  ;;  %v3645_v41 = vld [vmem:[#allocation11 + $0xd58] sm:$0xff] }
 0x3fe   : > { %4176 = vmatpush.msrb.mxu3 %v3604_v33  ;;  %4195 = vmatpush.msra.mxu0 %v3684_v61  ;;  %v3709_v3 = vld [vmem:[#allocation11 + $0xf58] sm:$0xff] }
 0x3ff   : > { %4218 = vmatpush.msra.mxu1 %v3748_v36  ;;  %4242 = vmatpush.msra.mxu2 %v3808_v28  ;;  %v3769_v42 = vld [vmem:[#allocation11 + $0x1138] sm:$0xff] }
 0x400   : > { %4253 = vmatpush.msra.mxu3 %v3601_v15  ;;  %4111 = vmatmul.f32.gmra.mxu0 %v7626_v23  ;;  %v3561_v62 = vld [vmem:[#allocation11 + $0xab8] sm:$0xff] }
 0x401   : > { %4177 = vmatmul.f32.vlgmr.msrb.gmra.mxu3 %v7562_v55  ;;  %4196 = vmatpush.msra.mxu0 %v3680_v30  ;;  %v3641_v24 = vld [vmem:[#allocation11 + $0xd38] sm:$0xff] }
 0x402   : > { %4134 = vmatmul.f32.gmra.mxu1 %v7636_v49  ;;  %4243 = vmatpush.msra.mxu2 %v3804_v45  ;;  %v3705_v20 = vld [vmem:[#allocation11 + $0xf38] sm:$0xff] }
 0x403   : > { %4219 = vmatpush.msra.mxu1 %v3744_v7  ;;  %4254 = vmatpush.msra.mxu3 %v3597_v37  ;;  %v3765_v16 = vld [vmem:[#allocation11 + $0x1118] sm:$0xff] }
 0x404   : > { %4197 = vmatpush.msra.mxu0 %v3676_v21  ;;  %4244 = vmatpush.msra.mxu2 %v3800_v11  ;;  %v3557_v58 = vld [vmem:[#allocation11 + $0xa98] sm:$0xff] }
 0x405   : > { %4220 = vmatpush.msra.mxu1 %v3740_v13  ;;  %4255 = vmatpush.msra.mxu3 %v3593_v48  ;;  %v3637_v4 = vld [vmem:[#allocation11 + $0xd18] sm:$0xff] }
 0x406   : > { %4198 = vmatpush.msra.mxu0 %v3672_v44  ;;  %4245 = vmatpush.msra.mxu2 %v3796_v14  ;;  %v3701_v22 = vld [vmem:[#allocation11 + $0xf18] sm:$0xff] }
 0x407   : > { %4221 = vmatpush.msra.mxu1 %v3736_v38  ;;  %4256 = vmatpush.msra.mxu3 %v3589_v25  ;;  %v3761_v63 = vld [vmem:[#allocation11 + $0x10f8] sm:$0xff] }
 0x408   : > { %4199 = vmatpush.msra.mxu0 %v3668_v19  ;;  %4246 = vmatmul.f32.vlgmr.msra.gmra.mxu2 %v7629_v0  ;;  %v3553_v35 = vld [vmem:[#allocation11 + $0xa78] sm:$0xff] }
 0x409   : > { %4322 = vmatpush.msrb.mxu2 %v3793_v5  ;;  %4222 = vmatpush.msra.mxu1 %v3732_v32  ;;  %v3633_v26 = vld [vmem:[#allocation11 + $0xcf8] sm:$0xff] }
 0x40a   : > { %4257 = vmatpush.msra.mxu3 %v3585_v40  ;;  %4276 = vmatpush.msrb.mxu0 %v3665_v34  ;;  %v3697_v33 = vld [vmem:[#allocation11 + $0xef8] sm:$0xff] }
 0x40b   : > { %4180 = vmatmul.f32.gmra.mxu3 %v7622_v17  ;;  %4200 = vmatmul.f32.vlgmr.msra.gmra.mxu0 %v7579_v57  ;;  %v3757_v61 = vld [vmem:[#allocation11 + $0x10d8] sm:$0xff] }
 0x40c   : > { %4299 = vmatpush.msrb.mxu1 %v3729_v18  ;;  %4323 = vmatpush.msrb.mxu2 %v3789_v1  ;;  %v3549_v36 = vld [vmem:[#allocation11 + $0xa58] sm:$0xff] }
 0x40d   : > { %4223 = vmatmul.f32.vlgmr.msra.gmra.mxu1 %v7609_v53  ;;  %4258 = vmatpush.msra.mxu3 %v3581_v27  ;;  %v3629_v28 = vld [vmem:[#allocation11 + $0xcd8] sm:$0xff] }
 0x40e   : > { %4277 = vmatpush.msrb.mxu0 %v3661_v6  ;;  %4300 = vmatpush.msrb.mxu1 %v3725_v39  ;;  %v3693_v15 = vld [vmem:[#allocation11 + $0xed8] sm:$0xff] }
 0x40f   : > { %4324 = vmatpush.msrb.mxu2 %v3785_v56  ;;  %4259 = vmatpush.msra.mxu3 %v3577_v59  ;;  %v3753_v30 = vld [vmem:[#allocation11 + $0x10b8] sm:$0xff]  ;;  %v3395_v56 = vld [vmem:[#allocation11 + $0x5e0] sm:$0xff] }
 0x410   : > { %4278 = vmatpush.msrb.mxu0 %v3657_v43  ;;  %4301 = vmatpush.msrb.mxu1 %v3721_v2  ;;  %v3545_v45 = vld [vmem:[#allocation11 + $0xa38] sm:$0xff]  ;;  %v3267_v2 = vld [vmem:[#allocation11 + $0x1e0] sm:$0xff] }
 0x411   : > { %4325 = vmatpush.msrb.mxu2 %v3781_v12  ;;  %4260 = vmatpush.msra.mxu3 %v3573_v29  ;;  %v3625_v7 = vld [vmem:[#allocation11 + $0xcb8] sm:$0xff]  ;;  %v3391_v12 = vld [vmem:[#allocation11 + $0x5c0] sm:$0xff] }
 0x412   : > { %4279 = vmatpush.msrb.mxu0 %v3653_v46  ;;  %4249 = vmatmul.f32.gmra.mxu2 %v7636_v49  ;;  %v3689_v37 = vld [vmem:[#allocation11 + $0xeb8] sm:$0xff]  ;;  %v3331_v29 = vld [vmem:[#allocation11 + $0x3e0] sm:$0xff] }
 0x413   : > { %4302 = vmatpush.msrb.mxu1 %v3717_v31  ;;  %4326 = vmatpush.msrb.mxu2 %v3777_v47  ;;  %v3749_v21 = vld [vmem:[#allocation11 + $0x1098] sm:$0xff]  ;;  %v3263_v31 = vld [vmem:[#allocation11 + $0x1c0] sm:$0xff] }
 0x414   : > { %4261 = vmatpush.msra.mxu3 %v3569_v8  ;;  %4280 = vmatpush.msrb.mxu0 %v3649_v50  ;;  %v3541_v11 = vld [vmem:[#allocation11 + $0xa18] sm:$0xff]  ;;  %v3387_v47 = vld [vmem:[#allocation11 + $0x5a0] sm:$0xff] }
 0x415   : > { %4203 = vmatmul.f32.gmra.mxu0 %v7600_v54  ;;  %4303 = vmatpush.msrb.mxu1 %v3713_v60  ;;  %v3621_v13 = vld [vmem:[#allocation11 + $0xc98] sm:$0xff]  ;;  %v3327_v8 = vld [vmem:[#allocation11 + $0x3c0] sm:$0xff] }
 0x416   : > { %4327 = vmatpush.msrb.mxu2 %v3773_v52  ;;  %4226 = vmatmul.f32.gmra.mxu1 %v7626_v23  ;;  %v3685_v48 = vld [vmem:[#allocation11 + $0xe98] sm:$0xff]  ;;  %v3259_v50 = vld [vmem:[#allocation11 + $0x1a0] sm:$0xff] }
 0x417   : > { %4262 = vmatpush.msra.mxu3 %v3565_v9  ;;  %4281 = vmatpush.msrb.mxu0 %v3645_v41  ;;  %v3745_v44 = vld [vmem:[#allocation11 + $0x1078] sm:$0xff]  ;;  %v3383_v60 = vld [vmem:[#allocation11 + $0x580] sm:$0xff] }
 0x418   : > { %4304 = vmatpush.msrb.mxu1 %v3709_v3  ;;  %4328 = vmatpush.msrb.mxu2 %v3769_v42  ;;  %v3857_v14 = vld [vmem:[#allocation11 + $0x13f8] sm:$0xff]  ;;  %v3255_v52 = vld [vmem:[#allocation11 + $0x180] sm:$0xff] }
 0x419   : > { %4263 = vmatpush.msra.mxu3 %v3561_v62  ;;  %4282 = vmatpush.msrb.mxu0 %v3641_v24  ;;  %v3617_v38 = vld [vmem:[#allocation11 + $0xc78] sm:$0xff]  ;;  %v3319_v9 = vld [vmem:[#allocation11 + $0x380] sm:$0xff] }
 0x41a   : > { %4305 = vmatpush.msrb.mxu1 %v3705_v20  ;;  %4329 = vmatpush.msrb.mxu2 %v3765_v16  ;;  %v3681_v25 = vld [vmem:[#allocation11 + $0xe78] sm:$0xff]  ;;  %v3379_v41 = vld [vmem:[#allocation11 + $0x560] sm:$0xff] }
 0x41b   : > { %4264 = vmatpush.msra.mxu3 %v3557_v58  ;;  %4283 = vmatpush.msrb.mxu0 %v3637_v4  ;;  %v3741_v19 = vld [vmem:[#allocation11 + $0x1058] sm:$0xff]  ;;  %v3251_v3 = vld [vmem:[#allocation11 + $0x160] sm:$0xff] }
 0x41c   : > { %4306 = vmatpush.msrb.mxu1 %v3701_v22  ;;  %4330 = vmatpush.msrb.mxu2 %v3761_v63  ;;  %v3853_v5 = vld [vmem:[#allocation11 + $0x13d8] sm:$0xff]  ;;  %v3315_v42 = vld [vmem:[#allocation11 + $0x360] sm:$0xff] }
 0x41d   : > { %4265 = vmatpush.msra.mxu3 %v3553_v35  ;;  %4284 = vmatpush.msrb.mxu0 %v3633_v26  ;;  %v3613_v32 = vld [vmem:[#allocation11 + $0xc58] sm:$0xff]  ;;  %v3375_v62 = vld [vmem:[#allocation11 + $0x540] sm:$0xff] }
 0x41e   : > { %4307 = vmatpush.msrb.mxu1 %v3697_v33  ;;  %4331 = vmatpush.msrb.mxu2 %v3757_v61  ;;  %v3677_v40 = vld [vmem:[#allocation11 + $0xe58] sm:$0xff]  ;;  %v3247_v20 = vld [vmem:[#allocation11 + $0x140] sm:$0xff] }
 0x41f   : > { %4266 = vmatpush.msra.mxu3 %v3549_v36  ;;  %4285 = vmatpush.msrb.mxu0 %v3629_v28  ;;  %v3737_v34 = vld [vmem:[#allocation11 + $0x1038] sm:$0xff]  ;;  %v3311_v16 = vld [vmem:[#allocation11 + $0x340] sm:$0xff] }
 0x420   : > { %4308 = vmatpush.msrb.mxu1 %v3693_v15  ;;  %4332 = vmatpush.msrb.mxu2 %v3753_v30  ;;  %v3849_v18 = vld [vmem:[#allocation11 + $0x13b8] sm:$0xff]  ;;  %v3371_v58 = vld [vmem:[#allocation11 + $0x520] sm:$0xff] }
 0x421   : > { %4267 = vmatpush.msra.mxu3 %v3545_v45  ;;  %4286 = vmatpush.msrb.mxu0 %v3625_v7  ;;  %v3609_v1 = vld [vmem:[#allocation11 + $0xc38] sm:$0xff]  ;;  %v3243_v22 = vld [vmem:[#allocation11 + $0x120] sm:$0xff] }
 0x422   : > { %4309 = vmatpush.msrb.mxu1 %v3689_v37  ;;  %4333 = vmatpush.msrb.mxu2 %v3749_v21  ;;  %v3673_v27 = vld [vmem:[#allocation11 + $0xe38] sm:$0xff]  ;;  %v3367_v63 = vld [vmem:[#allocation11 + $0x500] sm:$0xff] }
 0x423   : > { %4268 = vmatpush.msra.mxu3 %v3541_v11  ;;  %4287 = vmatpush.msrb.mxu0 %v3621_v13  ;;  %v3733_v6 = vld [vmem:[#allocation11 + $0x1018] sm:$0xff]  ;;  %v3303_v26 = vld [vmem:[#allocation11 + $0x300] sm:$0xff] }
 0x424   : > { %4269 = vmatmul.f32.vlgmr.msra.gmra.mxu3 %v7543_v51  ;;  %4310 = vmatpush.msrb.mxu1 %v3685_v48  ;;  %v3845_v39 = vld [vmem:[#allocation11 + $0x1398] sm:$0xff]  ;;  %v3363_v33 = vld [vmem:[#allocation11 + $0x4e0] sm:$0xff] }
 0x425   : > { %4334 = vmatpush.msrb.mxu2 %v3745_v44  ;;  %4345 = vmatpush.msrb.mxu3 %v3857_v14  ;;  %v3605_v51 = vld [vmem:[#allocation11 + $0xc18] sm:$0xff]  ;;  %v3235_v61 = vld [vmem:[#allocation11 + $0xe0] sm:$0xff] }
 0x426   : > { %4288 = vmatpush.msrb.mxu0 %v3617_v38  ;;  %4311 = vmatpush.msrb.mxu1 %v3681_v25  ;;  %v3669_v59 = vld [vmem:[#allocation11 + $0xe18] sm:$0xff]  ;;  %v3299_v36 = vld [vmem:[#allocation11 + $0x2e0] sm:$0xff] }
 0x427   : > { %4335 = vmatpush.msrb.mxu2 %v3741_v19  ;;  %4346 = vmatpush.msrb.mxu3 %v3853_v5  ;;  %v3841_v43 = vld [vmem:[#allocation11 + $0x1378] sm:$0xff]  ;;  %v3359_v28 = vld [vmem:[#allocation11 + $0x4c0] sm:$0xff] }
 0x428   : > { %4289 = vmatpush.msrb.mxu0 %v3613_v32  ;;  %4312 = vmatpush.msrb.mxu1 %v3677_v40  ;;  %v3837_v46 = vld [vmem:[#allocation11 + $0x1358] sm:$0xff]  ;;  %v3231_v30 = vld [vmem:[#allocation11 + $0xc0] sm:$0xff] }
 0x429   : > { %4336 = vmatpush.msrb.mxu2 %v3737_v34  ;;  %4347 = vmatpush.msrb.mxu3 %v3849_v18  ;;  %v3821_v24 = vld [vmem:[#allocation11 + $0x12d8] sm:$0xff]  ;;  %v3295_v45 = vld [vmem:[#allocation11 + $0x2c0] sm:$0xff] }
 0x42a   : > { %4290 = vmatpush.msrb.mxu0 %v3609_v1  ;;  %4313 = vmatpush.msrb.mxu1 %v3673_v27  ;;  %v3817_v4 = vld [vmem:[#allocation11 + $0x12b8] sm:$0xff]  ;;  %v3355_v7 = vld [vmem:[#allocation11 + $0x4a0] sm:$0xff] }
 0x42b   : > { %4337 = vmatpush.msrb.mxu2 %v3733_v6  ;;  %4348 = vmatpush.msrb.mxu3 %v3845_v39  ;;  %v3813_v35 = vld [vmem:[#allocation11 + $0x1298] sm:$0xff]  ;;  %v3227_v21 = vld [vmem:[#allocation11 + $0xa0] sm:$0xff] }
 0x42c   : > { %4291 = vmatpush.msrb.mxu0 %v3605_v51  ;;  %4338 = vmatmul.f32.vlgmr.msrb.gmra.mxu2 %v7609_v53  ;;  %v3833_v53 = vld [vmem:[#allocation11 + $0x1338] sm:$0xff]  ;;  %v3291_v11 = vld [vmem:[#allocation11 + $0x2a0] sm:$0xff] }
 0x42d   : > { %4414 = vmatpush.msra.mxu2 %v3395_v56  ;;  %4272 = vmatmul.f32.gmra.mxu3 %v7615_v10  ;;  %v3323_v10 = vld [vmem:[#allocation11 + $0x3a0] sm:$0xff]  ;;  %v3805_v15 = vld [vmem:[#allocation11 + $0x1258] sm:$0xff] }
 0x42e   : > { %4292 = vmatmul.f32.vlgmr.msrb.gmra.mxu0 %v7562_v55  ;;  %4314 = vmatpush.msrb.mxu1 %v3669_v59  ;;  %v3829_v55 = vld [vmem:[#allocation11 + $0x1318] sm:$0xff]  ;;  %v3351_v13 = vld [vmem:[#allocation11 + $0x480] sm:$0xff]  ;;  %v3332_v59 = vld [vmem:[#allocation11 + $0x3e8] sm:$0xff] }
 0x42f   : > { %4349 = vmatpush.msrb.mxu3 %v3841_v43  ;;  %4368 = vmatpush.msra.mxu0 %v3267_v2  ;;  %v3801_v37 = vld [vmem:[#allocation11 + $0x1238] sm:$0xff]  ;;  %v3223_v44 = vld [vmem:[#allocation11 + $0x80] sm:$0xff]  ;;  %v7665_v43 = vld [vmem:[#allocation2 + $0x10] sm:$0xff] }
 0x430   : > { %4315 = vmatmul.f32.vlgmr.msrb.gmra.mxu1 %v7579_v57  ;;  %4415 = vmatpush.msra.mxu2 %v3391_v12  ;;  %v3825_v57 = vld [vmem:[#allocation11 + $0x12f8] sm:$0xff]  ;;  %v3287_v14 = vld [vmem:[#allocation11 + $0x280] sm:$0xff] }
 0x431   : > { %4391 = vmatpush.msra.mxu1 %v3331_v29  ;;  %4350 = vmatpush.msrb.mxu3 %v3837_v46  ;;  %v3797_v48 = vld [vmem:[#allocation11 + $0x1218] sm:$0xff]  ;;  %v3347_v38 = vld [vmem:[#allocation11 + $0x460] sm:$0xff] }
 0x432   : > { %4369 = vmatpush.msra.mxu0 %v3263_v31  ;;  %4416 = vmatpush.msra.mxu2 %v3387_v47  ;;  %v3459_v25 = vld [vmem:[#allocation11 + $0x7e0] sm:$0xff]  ;;  %v3328_v31 = vld [vmem:[#allocation11 + $0x3c8] sm:$0xff]  ;;  %v7671_v47 = vpop.f32.mrf.mxu0 }
 0x433   : > { %4392 = vmatpush.msra.mxu1 %v3327_v8  ;;  %4351 = vmatpush.msrb.mxu3 %v3833_v53  ;;  %v3219_v19 = vld [vmem:[#allocation11 + $0x60] sm:$0xff]  ;;  %v3268_v8 = vld [vmem:[#allocation11 + $0x1e8] sm:$0xff] }
 0x434   : > { %4370 = vmatpush.msra.mxu0 %v3259_v50  ;;  %4417 = vmatpush.msra.mxu2 %v3383_v60  ;;  %v3283_v5 = vld [vmem:[#allocation11 + $0x260] sm:$0xff]  ;;  %v7674_v50 = vpop.f32.mrf.mxu1  ;;  %v7676_v60 = vld [vmem:[#allocation2 + $0x8] sm:$0xff] }
 0x435   : > { %4393 = vmatpush.msra.mxu1 %v3323_v10  ;;  %4352 = vmatpush.msrb.mxu3 %v3829_v55  ;;  %v3343_v32 = vld [vmem:[#allocation11 + $0x440] sm:$0xff]  ;;  %v3324_v55 = vld [vmem:[#allocation11 + $0x3a8] sm:$0xff] }
 0x436   : > { %4371 = vmatpush.msra.mxu0 %v3255_v52  ;;  %4341 = vmatmul.f32.gmra.mxu2 %v7626_v23  ;;  %v3307_v23 = vld [vmem:[#allocation11 + $0x320] sm:$0xff]  ;;  %v7678_v52 = vpop.f32.mrf.mxu2 }
 0x437   : > { %4394 = vmatpush.msra.mxu1 %v3319_v9  ;;  %4418 = vmatpush.msra.mxu2 %v3379_v41  ;;  %v3455_v40 = vld [vmem:[#allocation11 + $0x7c0] sm:$0xff] }
 0x438   : > { %4295 = vmatmul.f32.gmra.mxu0 %v7622_v17  ;;  %4353 = vmatpush.msrb.mxu3 %v3825_v57  ;;  %v3239_v17 = vld [vmem:[#allocation11 + $0x100] sm:$0xff]  ;;  %v3320_v57 = vld [vmem:[#allocation11 + $0x388] sm:$0xff] }
 0x439   : > { %4372 = vmatpush.msra.mxu0 %v3251_v3  ;;  %4318 = vmatmul.f32.gmra.mxu1 %v7600_v54  ;;  %v3809_v54 = vld [vmem:[#allocation11 + $0x1278] sm:$0xff]  ;;  %v3215_v34 = vld [vmem:[#allocation11 + $0x40] sm:$0xff]  ;;  %v3260_v3 = vld [vmem:[#allocation11 + $0x1a8] sm:$0xff] }
 0x43a   : > { %4395 = vmatpush.msra.mxu1 %v3315_v42  ;;  %4419 = vmatpush.msra.mxu2 %v3375_v62  ;;  %v3279_v18 = vld [vmem:[#allocation11 + $0x240] sm:$0xff] }
 0x43b   : > { %4354 = vmatpush.msrb.mxu3 %v3821_v24  ;;  %4373 = vmatpush.msra.mxu0 %v3247_v20  ;;  %v3339_v1 = vld [vmem:[#allocation11 + $0x420] sm:$0xff]  ;;  %v3256_v24 = vld [vmem:[#allocation11 + $0x188] sm:$0xff] }
 0x43c   : > { %4396 = vmatpush.msra.mxu1 %v3311_v16  ;;  %4420 = vmatpush.msra.mxu2 %v3371_v58  ;;  %v3451_v27 = vld [vmem:[#allocation11 + $0x7a0] sm:$0xff]  ;;  %v3316_v20 = vld [vmem:[#allocation11 + $0x368] sm:$0xff]  ;;  %v7681_v58 = vld [vmem:[#allocation2 + $0x38] sm:$0xff] }
 0x43d   : > { %4355 = vmatpush.msrb.mxu3 %v3817_v4  ;;  %4374 = vmatpush.msra.mxu0 %v3243_v22  ;;  %v3211_v6 = vld [vmem:[#allocation11 + $0x20] sm:$0xff] }
 0x43e   : > { %4397 = vmatpush.msra.mxu1 %v3307_v23  ;;  %4421 = vmatpush.msra.mxu2 %v3367_v63  ;;  %v3275_v39 = vld [vmem:[#allocation11 + $0x220] sm:$0xff]  ;;  %v3252_v23 = vld [vmem:[#allocation11 + $0x168] sm:$0xff] }
 0x43f   : > { %4356 = vmatpush.msrb.mxu3 %v3813_v35  ;;  %4375 = vmatpush.msra.mxu0 %v3239_v17  ;;  %v3335_v51 = vld [vmem:[#allocation11 + $0x400] sm:$0xff]  ;;  %v3312_v63 = vld [vmem:[#allocation11 + $0x348] sm:$0xff] }
 0x440   : > { %4398 = vmatpush.msra.mxu1 %v3303_v26  ;;  %4422 = vmatpush.msra.mxu2 %v3363_v33  ;;  %v3447_v56 = vld [vmem:[#allocation11 + $0x780] sm:$0xff]  ;;  %v7690_v26 = vld [vmem:[#allocation2 + $0x28] sm:$0xff] }
 0x441   : > { %4357 = vmatpush.msrb.mxu3 %v3809_v54  ;;  %4376 = vmatpush.msra.mxu0 %v3235_v61  ;;  %v3271_v2 = vld [vmem:[#allocation11 + $0x200] sm:$0xff]  ;;  %v7693_v61 = vld [vmem:[#allocation2 + $0x30] sm:$0xff] }
 0x442   : > { %4399 = vmatpush.msra.mxu1 %v3299_v36  ;;  %4423 = vmatpush.msra.mxu2 %v3359_v28  ;;  %v3443_v12 = vld [vmem:[#allocation11 + $0x760] sm:$0xff]  ;;  %v3248_v36 = vld [vmem:[#allocation11 + $0x148] sm:$0xff] }
 0x443   : > { %4358 = vmatpush.msrb.mxu3 %v3805_v15  ;;  %4377 = vmatpush.msra.mxu0 %v3231_v30  ;;  %v3523_v29 = vld [vmem:[#allocation11 + $0x9e0] sm:$0xff]  ;;  %v3308_v28 = vld [vmem:[#allocation11 + $0x328] sm:$0xff] }
 0x444   : > { %4400 = vmatpush.msra.mxu1 %v3295_v45  ;;  %4424 = vmatpush.msra.mxu2 %v3355_v7  ;;  %v7669_v46 = vld [vmem:[#allocation2] sm:$0xff]  ;;  %v3244_v7 = vld [vmem:[#allocation11 + $0x128] sm:$0xff] }
 0x445   : > { %4359 = vmatpush.msrb.mxu3 %v3801_v37  ;;  %4378 = vmatpush.msra.mxu0 %v3227_v21  ;;  %v3439_v53 = vld [vmem:[#allocation11 + $0x740] sm:$0xff]  ;;  %v3304_v37 = vld [vmem:[#allocation11 + $0x308] sm:$0xff] }
 0x446   : > { %4401 = vmatpush.msra.mxu1 %v3291_v11  ;;  %4425 = vmatpush.msra.mxu2 %v3351_v13  ;;  %v3519_v10 = vld [vmem:[#allocation11 + $0x9c0] sm:$0xff]  ;;  %v3240_v13 = vld [vmem:[#allocation11 + $0x108] sm:$0xff] }
 0x447   : > { %4360 = vmatpush.msrb.mxu3 %v3797_v48  ;;  %4379 = vmatpush.msra.mxu0 %v3223_v44  ;;  %v3435_v9 = vld [vmem:[#allocation11 + $0x720] sm:$0xff]  ;;  %v3300_v48 = vld [vmem:[#allocation11 + $0x2e8] sm:$0xff] }
 0x448   : > { %4361 = vmatmul.f32.vlgmr.msrb.gmra.mxu3 %v7629_v0  ;;  %4402 = vmatpush.msra.mxu1 %v3287_v14  ;;  %v3207_v0 = vld [vmem:[#allocation11] sm:$0xff] }
 0x449   : > { %4426 = vmatpush.msra.mxu2 %v3347_v38  ;;  %4437 = vmatpush.msra.mxu3 %v3459_v25  ;;  %v3515_v41 = vld [vmem:[#allocation11 + $0x9a0] sm:$0xff]  ;;  %v3236_v25 = vld [vmem:[#allocation11 + $0xe8] sm:$0xff] }
 0x44a   : > { %4380 = vmatpush.msra.mxu0 %v3219_v19  ;;  %4403 = vmatpush.msra.mxu1 %v3283_v5  ;;  %v3431_v42 = vld [vmem:[#allocation11 + $0x700] sm:$0xff]  ;;  %v3296_v19 = vld [vmem:[#allocation11 + $0x2c8] sm:$0xff] }
 0x44b   : > { %4427 = vmatpush.msra.mxu2 %v3343_v32  ;;  %4438 = vmatpush.msra.mxu3 %v3455_v40  ;;  %v3511_v62 = vld [vmem:[#allocation11 + $0x980] sm:$0xff] }
 0x44c   : > { %4381 = vmatpush.msra.mxu0 %v3215_v34  ;;  %4404 = vmatpush.msra.mxu1 %v3279_v18  ;;  %v3427_v16 = vld [vmem:[#allocation11 + $0x6e0] sm:$0xff]  ;;  %v3232_v34 = vld [vmem:[#allocation11 + $0xc8] sm:$0xff] }
 0x44d   : > { %4428 = vmatpush.msra.mxu2 %v3339_v1  ;;  %4439 = vmatpush.msra.mxu3 %v3451_v27  ;;  %v3507_v4 = vld [vmem:[#allocation11 + $0x960] sm:$0xff]  ;;  %v3292_v18 = vld [vmem:[#allocation11 + $0x2a8] sm:$0xff] }
 0x44e   : > { %4382 = vmatpush.msra.mxu0 %v3211_v6  ;;  %4405 = vmatpush.msra.mxu1 %v3275_v39  ;;  %v3423_v33 = vld [vmem:[#allocation11 + $0x6c0] sm:$0xff] }
 0x44f   : > { %4429 = vmatpush.msra.mxu2 %v3335_v51  ;;  %4440 = vmatpush.msra.mxu3 %v3447_v56  ;;  %v3503_v54 = vld [vmem:[#allocation11 + $0x940] sm:$0xff]  ;;  %v3228_v51 = vld [vmem:[#allocation11 + $0xa8] sm:$0xff] }
 0x450   : > { %4383 = vmatpush.msra.mxu0 %v3207_v0  ;;  %4430 = vmatmul.f32.vlgmr.msra.gmra.mxu2 %v7665_v43  ;;  %v3419_v15 = vld [vmem:[#allocation11 + $0x6a0] sm:$0xff]  ;;  %v3288_v56 = vld [vmem:[#allocation11 + $0x288] sm:$0xff] }
 0x451   : > { %4506 = vmatpush.msrb.mxu2 %v3332_v59  ;;  %4364 = vmatmul.f32.gmra.mxu3 %v7636_v49  ;;  %v3264_v49 = vld [vmem:[#allocation11 + $0x1c8] sm:$0xff]  ;;  %v3499_v30 = vld [vmem:[#allocation11 + $0x920] sm:$0xff] }
 0x452   : > { %4384 = vmatmul.f32.vlgmr.msra.gmra.mxu0 %v7669_v46  ;;  %4406 = vmatpush.msra.mxu1 %v3271_v2  ;;  %v3415_v21 = vld [vmem:[#allocation11 + $0x680] sm:$0xff]  ;;  %v3224_v2 = vld [vmem:[#allocation11 + $0x88] sm:$0xff] }
 0x453   : > { %4441 = vmatpush.msra.mxu3 %v3443_v12  ;;  %4460 = vmatpush.msrb.mxu0 %v3523_v29  ;;  %v3495_v11 = vld [vmem:[#allocation11 + $0x900] sm:$0xff]  ;;  %v3284_v12 = vld [vmem:[#allocation11 + $0x268] sm:$0xff] }
 0x454   : > { %4407 = vmatmul.f32.vlgmr.msra.gmra.mxu1 %v7676_v60  ;;  %4507 = vmatpush.msrb.mxu2 %v3328_v31  ;;  %v3411_v44 = vld [vmem:[#allocation11 + $0x660] sm:$0xff]  ;;  %v3396_v29 = vld [vmem:[#allocation11 + $0x5e8] sm:$0xff] }
 0x455   : > { %4483 = vmatpush.msrb.mxu1 %v3268_v8  ;;  %4442 = vmatpush.msra.mxu3 %v3439_v53  ;;  %v3491_v14 = vld [vmem:[#allocation11 + $0x8e0] sm:$0xff]  ;;  %v7708_v8 = vld [vmem:[#allocation2 + $0x18] sm:$0xff] }
 0x456   : > { %4461 = vmatpush.msrb.mxu0 %v3519_v10  ;;  %4508 = vmatpush.msrb.mxu2 %v3324_v55  ;;  %v3407_v32 = vld [vmem:[#allocation11 + $0x640] sm:$0xff]  ;;  %v3220_v10 = vld [vmem:[#allocation11 + $0x68] sm:$0xff] }
 0x457   : > { %4484 = vmatpush.msrb.mxu1 %v3264_v49  ;;  %4443 = vmatpush.msra.mxu3 %v3435_v9  ;;  %v7686_v35 = vpop.f32.mrf.mxu2  ;;  %v3487_v40 = vld [vmem:[#allocation11 + $0x8c0] sm:$0xff]  ;;  %v3280_v55 = vld [vmem:[#allocation11 + $0x248] sm:$0xff] }
 0x458   : > { %4462 = vmatpush.msrb.mxu0 %v3515_v41  ;;  %4509 = vmatpush.msrb.mxu2 %v3320_v57  ;;  %v3403_v27 = vld [vmem:[#allocation11 + $0x620] sm:$0xff]  ;;  %v3392_v49 = vld [vmem:[#allocation11 + $0x5c8] sm:$0xff] }
 0x459   : > { %4485 = vmatpush.msrb.mxu1 %v3260_v3  ;;  %4444 = vmatpush.msra.mxu3 %v3431_v42  ;;  %v3483_v6 = vld [vmem:[#allocation11 + $0x8a0] sm:$0xff]  ;;  %v3216_v57 = vld [vmem:[#allocation11 + $0x48] sm:$0xff] }
 0x45a   : > { %4463 = vmatpush.msrb.mxu0 %v3511_v62  ;;  %4433 = vmatmul.f32.gmra.mxu2 %v7681_v58  ;;  %v7684_v22 = vpop.f32.mrf.mxu0  ;;  %v3399_v0 = vld [vmem:[#allocation11 + $0x600] sm:$0xff]  ;;  %v3276_v3 = vld [vmem:[#allocation11 + $0x228] sm:$0xff] }
 0x45b   : > { %4486 = vmatpush.msrb.mxu1 %v3256_v24  ;;  %4510 = vmatpush.msrb.mxu2 %v3316_v20  ;;  %v7688_v17 = vpop.f32.mrf.mxu1  ;;  %v3479_v59 = vld [vmem:[#allocation11 + $0x880] sm:$0xff]  ;;  %v3388_v42 = vld [vmem:[#allocation11 + $0x5a8] sm:$0xff] }
 0x45c   : > { %4387 = vmatmul.f32.gmra.mxu0 %v7690_v26  ;;  %4445 = vmatpush.msra.mxu3 %v3427_v16  ;;  %v3475_v53 = vld [vmem:[#allocation11 + $0x860] sm:$0xff]  ;;  %v3212_v24 = vld [vmem:[#allocation11 + $0x28] sm:$0xff] }
 0x45d   : > { %4464 = vmatpush.msrb.mxu0 %v3507_v4  ;;  %4410 = vmatmul.f32.gmra.mxu1 %v7693_v61  ;;  %v3471_v41 = vld [vmem:[#allocation11 + $0x840] sm:$0xff]  ;;  %v3272_v16 = vld [vmem:[#allocation11 + $0x208] sm:$0xff] }
 0x45e   : > { %4487 = vmatpush.msrb.mxu1 %v3252_v23  ;;  %4511 = vmatpush.msrb.mxu2 %v3312_v63  ;;  %v7696_v45 = vpop.f32.mrf.mxu3  ;;  %v3467_v62 = vld [vmem:[#allocation11 + $0x820] sm:$0xff]  ;;  %v3384_v4 = vld [vmem:[#allocation11 + $0x588] sm:$0xff] }
 0x45f   : > { %4446 = vmatpush.msra.mxu3 %v3423_v33  ;;  %4465 = vmatpush.msrb.mxu0 %v3503_v54  ;;  %v7702_v1 = vpop.f32.mrf.mxu2  ;;  %v3463_v63 = vld [vmem:[#allocation11 + $0x800] sm:$0xff]  ;;  %v3269_v33 = vld [vmem:[#allocation11 + $0x1f0] sm:$0xff] }
 0x460   : > { %4488 = vmatpush.msrb.mxu1 %v3248_v36  ;;  %4512 = vmatpush.msrb.mxu2 %v3308_v28  ;;  %v7717_v54 = vld [vmem:[#allocation2 + $0x20] sm:$0xff]  ;;  %v3208_v36 = vld [vmem:[#allocation11 + $0x8] sm:$0xff] }
 0x461   : > { %4447 = vmatpush.msra.mxu3 %v3419_v15  ;;  %4466 = vmatpush.msrb.mxu0 %v3499_v30  ;;  %v3380_v28 = vld [vmem:[#allocation11 + $0x568] sm:$0xff] }
 0x462   : > { %4489 = vmatpush.msrb.mxu1 %v3244_v7  ;;  %4513 = vmatpush.msrb.mxu2 %v3304_v37  ;;  %v7698_v38 = vpop.f32.mrf.mxu0  ;;  %v3460_v15 = vld [vmem:[#allocation11 + $0x7e8] sm:$0xff]  ;;  %v7722_v7 = vld [vmem:[#allocation2 + $0x40] sm:$0xff]  ;;  %v3265_v37 = vld [vmem:[#allocation11 + $0x1d0] sm:$0xff] }
 0x463   : > { %4448 = vmatpush.msra.mxu3 %v3415_v21  ;;  %4467 = vmatpush.msrb.mxu0 %v3495_v11  ;;  %v7700_v5 = vpop.f32.mrf.mxu1  ;;  %v3524_v21 = vld [vmem:[#allocation11 + $0x9e8] sm:$0xff] }
 0x464   : > { %4490 = vmatpush.msrb.mxu1 %v3240_v13  ;;  %4514 = vmatpush.msrb.mxu2 %v3300_v48  ;;  %v3376_v11 = vld [vmem:[#allocation11 + $0x548] sm:$0xff] }
 0x465   : > { %4449 = vmatpush.msra.mxu3 %v3411_v44  ;;  %4468 = vmatpush.msrb.mxu0 %v3491_v14  ;;  %v3456_v48 = vld [vmem:[#allocation11 + $0x7c8] sm:$0xff]  ;;  %v3261_v44 = vld [vmem:[#allocation11 + $0x1b0] sm:$0xff] }
 0x466   : > { %4491 = vmatpush.msrb.mxu1 %v3236_v25  ;;  %4515 = vmatpush.msrb.mxu2 %v3296_v19  ;;  %v7704_v39 = vpop.f32.mrf.mxu3  ;;  %v3520_v14 = vld [vmem:[#allocation11 + $0x9c8] sm:$0xff] }
 0x467   : > { %4450 = vmatpush.msra.mxu3 %v3407_v32  ;;  %4469 = vmatpush.msrb.mxu0 %v3487_v40  ;;  %v7713_v20 = vpop.f32.mrf.mxu2  ;;  %v3372_v25 = vld [vmem:[#allocation11 + $0x528] sm:$0xff]  ;;  %v3257_v32 = vld [vmem:[#allocation11 + $0x190] sm:$0xff] }
 0x468   : > { %4492 = vmatpush.msrb.mxu1 %v3232_v34  ;;  %4516 = vmatpush.msrb.mxu2 %v3292_v18  ;;  %v3452_v19 = vld [vmem:[#allocation11 + $0x7a8] sm:$0xff] }
 0x469   : > { %4451 = vmatpush.msra.mxu3 %v3403_v27  ;;  %4470 = vmatpush.msrb.mxu0 %v3483_v6  ;;  %v3516_v34 = vld [vmem:[#allocation11 + $0x9a8] sm:$0xff] }
 0x46a   : > { %4493 = vmatpush.msrb.mxu1 %v3228_v51  ;;  %4517 = vmatpush.msrb.mxu2 %v3288_v56  ;;  %v7706_v31 = vpop.f32.mrf.mxu0  ;;  %v3368_v18 = vld [vmem:[#allocation11 + $0x508] sm:$0xff]  ;;  %v3253_v56 = vld [vmem:[#allocation11 + $0x170] sm:$0xff] }
 0x46b   : > { %4452 = vmatpush.msra.mxu3 %v3399_v0  ;;  %4471 = vmatpush.msrb.mxu0 %v3479_v59  ;;  %v3448_v6 = vld [vmem:[#allocation11 + $0x788] sm:$0xff] }
 0x46c   : > { %4453 = vmatmul.f32.vlgmr.msra.gmra.mxu3 %v7708_v8  ;;  %4494 = vmatpush.msrb.mxu1 %v3224_v2  ;;  %v7711_v9 = vpop.f32.mrf.mxu1  ;;  %v3512_v51 = vld [vmem:[#allocation11 + $0x988] sm:$0xff] }
 0x46d   : > { %4518 = vmatpush.msrb.mxu2 %v3284_v12  ;;  %4529 = vmatpush.msrb.mxu3 %v3396_v29  ;;  %v3364_v0 = vld [vmem:[#allocation11 + $0x4e8] sm:$0xff]  ;;  %v3249_v29 = vld [vmem:[#allocation11 + $0x150] sm:$0xff] }
 0x46e   : > { %4472 = vmatpush.msrb.mxu0 %v3475_v53  ;;  %4495 = vmatpush.msrb.mxu1 %v3220_v10  ;;  %v3444_v59 = vld [vmem:[#allocation11 + $0x768] sm:$0xff] }
 0x46f   : > { %4519 = vmatpush.msrb.mxu2 %v3280_v55  ;;  %4530 = vmatpush.msrb.mxu3 %v3392_v49  ;;  %v7715_v23 = vpop.f32.mrf.mxu3  ;;  %v3508_v12 = vld [vmem:[#allocation11 + $0x968] sm:$0xff] }
 0x470   : > { %4473 = vmatpush.msrb.mxu0 %v3471_v41  ;;  %4496 = vmatpush.msrb.mxu1 %v3216_v57  ;;  %v7734_v53 = vld [vmem:[#allocation2 + $0x48] sm:$0xff]  ;;  %v3245_v57 = vld [vmem:[#allocation11 + $0x130] sm:$0xff] }
 0x471   : > { %4520 = vmatpush.msrb.mxu2 %v3276_v3  ;;  %4531 = vmatpush.msrb.mxu3 %v3388_v42  ;;  %v3360_v10 = vld [vmem:[#allocation11 + $0x4c8] sm:$0xff] }
 0x472   : > { %4474 = vmatpush.msrb.mxu0 %v3467_v62  ;;  %4497 = vmatpush.msrb.mxu1 %v3212_v24  ;;  %v4155_v40 = vpop.f32.mrf.mxu2  ;;  %v3440_v55 = vld [vmem:[#allocation11 + $0x748] sm:$0xff]  ;;  %v3241_v24 = vld [vmem:[#allocation11 + $0x110] sm:$0xff] }
 0x473   : > { %4521 = vmatpush.msrb.mxu2 %v3272_v16  ;;  %4532 = vmatpush.msrb.mxu3 %v3384_v4  ;;  %v7720_v30 = vpop.f32.mrf.mxu0  ;;  %v3504_v41 = vld [vmem:[#allocation11 + $0x948] sm:$0xff] }
 0x474   : > { %4475 = vmatpush.msrb.mxu0 %v3463_v63  ;;  %4522 = vmatmul.f32.vlgmr.msrb.gmra.mxu2 %v7676_v60  ;;  %v3356_v3 = vld [vmem:[#allocation11 + $0x4a8] sm:$0xff] }
 0x475   : > { %4598 = vmatpush.msra.mxu2 %v3269_v33  ;;  %4456 = vmatmul.f32.gmra.mxu3 %v7722_v7  ;;  %v7726_v13 = vpop.f32.mrf.mxu1  ;;  %v3436_v42 = vld [vmem:[#allocation11 + $0x728] sm:$0xff] }
 0x476   : > { %4476 = vmatmul.f32.vlgmr.msrb.gmra.mxu0 %v7717_v54  ;;  %4498 = vmatpush.msrb.mxu1 %v3208_v36  ;;  %v3500_v62 = vld [vmem:[#allocation11 + $0x928] sm:$0xff] }
 0x477   : > { %4533 = vmatpush.msrb.mxu3 %v3380_v28  ;;  %4552 = vmatpush.msra.mxu0 %v3460_v15  ;;  %v3352_v4 = vld [vmem:[#allocation11 + $0x488] sm:$0xff]  ;;  %v3237_v28 = vld [vmem:[#allocation11 + $0xf0] sm:$0xff] }
 0x478   : > { %4499 = vmatmul.f32.vlgmr.msrb.gmra.mxu1 %v7669_v46  ;;  %4599 = vmatpush.msra.mxu2 %v3265_v37  ;;  %v7729_v27 = vpop.f32.mrf.mxu3  ;;  %v3432_v63 = vld [vmem:[#allocation11 + $0x708] sm:$0xff] }
 0x479   : > { %4575 = vmatpush.msra.mxu1 %v3524_v21  ;;  %4534 = vmatpush.msrb.mxu3 %v3376_v11  ;;  %v3496_v36 = vld [vmem:[#allocation11 + $0x908] sm:$0xff] }
 0x47a   : > { %4553 = vmatpush.msra.mxu0 %v3456_v48  ;;  %4600 = vmatpush.msra.mxu2 %v3261_v44  ;;  %v3348_v37 = vld [vmem:[#allocation11 + $0x468] sm:$0xff]  ;;  %v3233_v48 = vld [vmem:[#allocation11 + $0xd0] sm:$0xff] }
 0x47b   : > { %4576 = vmatpush.msra.mxu1 %v3520_v14  ;;  %4535 = vmatpush.msrb.mxu3 %v3372_v25  ;;  %v4158_v16 = vpop.f32.mrf.mxu2  ;;  %v3428_v21 = vld [vmem:[#allocation11 + $0x6e8] sm:$0xff] }
 0x47c   : > { %4554 = vmatpush.msra.mxu0 %v3452_v19  ;;  %4601 = vmatpush.msra.mxu2 %v3257_v32  ;;  %v3492_v11 = vld [vmem:[#allocation11 + $0x8e8] sm:$0xff]  ;;  %v3229_v32 = vld [vmem:[#allocation11 + $0xb0] sm:$0xff] }
 0x47d   : > { %4577 = vmatpush.msra.mxu1 %v3516_v34  ;;  %4536 = vmatpush.msrb.mxu3 %v3368_v18  ;;  %v7732_v2 = vpop.f32.mrf.mxu0  ;;  %v3344_v44 = vld [vmem:[#allocation11 + $0x448] sm:$0xff] }
 0x47e   : > { %4555 = vmatpush.msra.mxu0 %v3448_v6  ;;  %4525 = vmatmul.f32.gmra.mxu2 %v7693_v61  ;;  %v3424_v14 = vld [vmem:[#allocation11 + $0x6c8] sm:$0xff] }
 0x47f   : > { %4578 = vmatpush.msra.mxu1 %v3512_v51  ;;  %4602 = vmatpush.msra.mxu2 %v3253_v56  ;;  %v7737_v49 = vpop.f32.mrf.mxu1  ;;  %v3488_v19 = vld [vmem:[#allocation11 + $0x8c8] sm:$0xff]  ;;  %v3225_v56 = vld [vmem:[#allocation11 + $0x90] sm:$0xff] }
 0x480   : > { %4479 = vmatmul.f32.gmra.mxu0 %v7734_v53  ;;  %4537 = vmatpush.msrb.mxu3 %v3364_v0  ;;  %v3420_v18 = vld [vmem:[#allocation11 + $0x6a8] sm:$0xff] }
 0x481   : > { %4556 = vmatpush.msra.mxu0 %v3444_v59  ;;  %4502 = vmatmul.f32.gmra.mxu1 %v7690_v26  ;;  %v3484_v51 = vld [vmem:[#allocation11 + $0x8a8] sm:$0xff] }
 0x482   : > { %4579 = vmatpush.msra.mxu1 %v3508_v12  ;;  %4603 = vmatpush.msra.mxu2 %v3249_v29  ;;  %v3336_v12 = vld [vmem:[#allocation11 + $0x408] sm:$0xff] }
 0x483   : > { %4538 = vmatpush.msrb.mxu3 %v3360_v10  ;;  %4557 = vmatpush.msra.mxu0 %v3440_v55  ;;  %v3416_v29 = vld [vmem:[#allocation11 + $0x688] sm:$0xff] }
 0x484   : > { %4580 = vmatpush.msra.mxu1 %v3504_v41  ;;  %4604 = vmatpush.msra.mxu2 %v3245_v57  ;;  %v4178_v33 = vpop.f32.mrf.mxu3  ;;  %v3480_v10 = vld [vmem:[#allocation11 + $0x888] sm:$0xff]  ;;  %v3221_v41 = vld [vmem:[#allocation11 + $0x70] sm:$0xff] }
 0x485   : > { %4539 = vmatpush.msrb.mxu3 %v3356_v3  ;;  %4558 = vmatpush.msra.mxu0 %v3436_v42  ;;  %v4179_v15 = vadd.f32 %v4178_v33, %v4155_v40  ;;  %v3340_v40 = vld [vmem:[#allocation11 + $0x428] sm:$0xff]  ;;  %v3333_v57 = vld [vmem:[#allocation11 + $0x3f0] sm:$0xff] }
 0x486   : > { %4581 = vmatpush.msra.mxu1 %v3500_v62  ;;  %4605 = vmatpush.msra.mxu2 %v3241_v24  ;;  %v3412_v42 = vld [vmem:[#allocation11 + $0x668] sm:$0xff] }
 0x487   : > { %4540 = vmatpush.msrb.mxu3 %v3352_v4  ;;  %4559 = vmatpush.msra.mxu0 %v3432_v63  ;;  %v3476_v62 = vld [vmem:[#allocation11 + $0x868] sm:$0xff]  ;;  %v3217_v4 = vld [vmem:[#allocation11 + $0x50] sm:$0xff] }
 0x488   : > { %4582 = vmatpush.msra.mxu1 %v3496_v36  ;;  %4606 = vmatpush.msra.mxu2 %v3237_v28  ;;  %v4201_v25 = vpop.f32.mrf.mxu0  ;;  %v3329_v63 = vld [vmem:[#allocation11 + $0x3d0] sm:$0xff]  ;;  %v3408_v33 = vld [vmem:[#allocation11 + $0x648] sm:$0xff] }
 0x489   : > { %4541 = vmatpush.msrb.mxu3 %v3348_v37  ;;  %4560 = vmatpush.msra.mxu0 %v3428_v21  ;;  %v4202_v34 = vadd.f32 %v4201_v25, %v4179_v15  ;;  %v3472_v36 = vld [vmem:[#allocation11 + $0x848] sm:$0xff]  ;;  %v3213_v28 = vld [vmem:[#allocation11 + $0x30] sm:$0xff] }
 0x48a   : > { %4583 = vmatpush.msra.mxu1 %v3492_v11  ;;  %4607 = vmatpush.msra.mxu2 %v3233_v48  ;;  %v4224_v6 = vpop.f32.mrf.mxu1  ;;  %v3325_v15 = vld [vmem:[#allocation11 + $0x3b0] sm:$0xff]  ;;  %v3404_v21 = vld [vmem:[#allocation11 + $0x628] sm:$0xff] }
 0x48b   : > { %4542 = vmatpush.msrb.mxu3 %v3344_v44  ;;  %4561 = vmatpush.msra.mxu0 %v3424_v14  ;;  %v4225_v0 = vadd.f32 %v4224_v6, %v4202_v34  ;;  %v4247_v59 = vpop.f32.mrf.mxu2  ;;  %v3468_v11 = vld [vmem:[#allocation11 + $0x828] sm:$0xff]  ;;  %v3209_v44 = vld [vmem:[#allocation11 + $0x10] sm:$0xff] }
 0x48c   : > { %4584 = vmatpush.msra.mxu1 %v3488_v19  ;;  %4608 = vmatpush.msra.mxu2 %v3229_v32  ;;  %v3321_v14 = vld [vmem:[#allocation11 + $0x390] sm:$0xff]  ;;  %v3400_v25 = vld [vmem:[#allocation11 + $0x608] sm:$0xff] }
 0x48d   : > { %4543 = vmatpush.msrb.mxu3 %v3340_v40  ;;  %4562 = vmatpush.msra.mxu0 %v3420_v18  ;;  %v7740_v55 = vadd.f32 %v4247_v59, %v4225_v0  ;;  %v3525_v34 = vld [vmem:[#allocation11 + $0x9f0] sm:$0xff]  ;;  %v3464_v40 = vld [vmem:[#allocation11 + $0x808] sm:$0xff] }
 0x48e   : > { %4585 = vmatpush.msra.mxu1 %v3484_v51  ;;  %4609 = vmatpush.msra.mxu2 %v3225_v56  ;;  %v4181_v3 = vpop.f32.mrf.mxu3  ;;  %v3317_v6 = vld [vmem:[#allocation11 + $0x370] sm:$0xff] }
 0x48f   : > { %4544 = vmatpush.msrb.mxu3 %v3336_v12  ;;  %4563 = vmatpush.msra.mxu0 %v3416_v29  ;;  %v4182_v24 = vadd.f32 %v4181_v3, %v4158_v16  ;;  %v3397_v51 = vld [vmem:[#allocation11 + $0x5f0] sm:$0xff] }
 0x490   : > { %4545 = vmatmul.f32.vlgmr.msrb.gmra.mxu3 %v7665_v43  ;;  %4586 = vmatpush.msra.mxu1 %v3480_v10  ;;  %v3461_v56 = vld [vmem:[#allocation11 + $0x7f0] sm:$0xff] }
 0x491   : > { %4610 = vmatpush.msra.mxu2 %v3221_v41  ;;  %4621 = vmatpush.msra.mxu3 %v3333_v57  ;;  %v3521_v0 = vld [vmem:[#allocation11 + $0x9d0] sm:$0xff] }
 0x492   : > { %4564 = vmatpush.msra.mxu0 %v3412_v42  ;;  %4587 = vmatpush.msra.mxu1 %v3476_v62  ;;  %v4204_v37 = vpop.f32.mrf.mxu0  ;;  %v3313_v59 = vld [vmem:[#allocation11 + $0x350] sm:$0xff] }
 0x493   : > { %4611 = vmatpush.msra.mxu2 %v3217_v4  ;;  %4622 = vmatpush.msra.mxu3 %v3329_v63  ;;  %v4205_v48 = vadd.f32 %v4204_v37, %v4182_v24  ;;  %v4227_v16 = vpop.f32.mrf.mxu1  ;;  %v3393_v12 = vld [vmem:[#allocation11 + $0x5d0] sm:$0xff] }
 0x494   : > { %4565 = vmatpush.msra.mxu0 %v3408_v33  ;;  %4588 = vmatpush.msra.mxu1 %v3472_v36  ;;  %v3457_v29 = vld [vmem:[#allocation11 + $0x7d0] sm:$0xff] }
 0x495   : > { %4612 = vmatpush.msra.mxu2 %v3213_v28  ;;  %4623 = vmatpush.msra.mxu3 %v3325_v15  ;;  %v4228_v19 = vadd.f32 %v4227_v16, %v4205_v48  ;;  %v4250_v32 = vpop.f32.mrf.mxu2  ;;  %v3517_v10 = vld [vmem:[#allocation11 + $0x9b0] sm:$0xff] }
 0x496   : > { %4566 = vmatpush.msra.mxu0 %v3404_v21  ;;  %4589 = vmatpush.msra.mxu1 %v3468_v11  ;;  %v3309_v41 = vld [vmem:[#allocation11 + $0x330] sm:$0xff] }
 0x497   : > { %4613 = vmatpush.msra.mxu2 %v3209_v44  ;;  %4624 = vmatpush.msra.mxu3 %v3321_v14  ;;  %v7743_v18 = vadd.f32 %v4250_v32, %v4228_v19  ;;  %v3453_v57 = vld [vmem:[#allocation11 + $0x7b0] sm:$0xff] }
 0x498   : > { %4567 = vmatpush.msra.mxu0 %v3400_v25  ;;  %4614 = vmatmul.f32.vlgmr.msra.gmra.mxu2 %v7669_v46  ;;  %v3389_v46 = vld [vmem:[#allocation11 + $0x5b0] sm:$0xff] }
 0x499   : > { %4690 = vmatpush.msrb.mxu2 %v3525_v34  ;;  %4548 = vmatmul.f32.gmra.mxu3 %v7681_v58  ;;  %v3513_v3 = vld [vmem:[#allocation11 + $0x990] sm:$0xff] }
 0x49a   : > { %4568 = vmatmul.f32.vlgmr.msra.gmra.mxu0 %v7708_v8  ;;  %4590 = vmatpush.msra.mxu1 %v3464_v40  ;;  %v3305_v42 = vld [vmem:[#allocation11 + $0x310] sm:$0xff] }
 0x49b   : > { %4625 = vmatpush.msra.mxu3 %v3317_v6  ;;  %4644 = vmatpush.msrb.mxu0 %v3397_v51  ;;  %v3385_v62 = vld [vmem:[#allocation11 + $0x590] sm:$0xff] }
 0x49c   : > { %4667 = vmatpush.msrb.mxu1 %v3461_v56  ;;  %4691 = vmatpush.msrb.mxu2 %v3521_v0  ;;  %v3449_v24 = vld [vmem:[#allocation11 + $0x790] sm:$0xff] }
 0x49d   : > { %4591 = vmatmul.f32.vlgmr.msra.gmra.mxu1 %v7717_v54  ;;  %4626 = vmatpush.msra.mxu3 %v3313_v59  ;;  %v3509_v4 = vld [vmem:[#allocation11 + $0x970] sm:$0xff] }
 0x49e   : > { %4645 = vmatpush.msrb.mxu0 %v3393_v12  ;;  %4668 = vmatpush.msrb.mxu1 %v3457_v29  ;;  %v3301_v63 = vld [vmem:[#allocation11 + $0x2f0] sm:$0xff] }
 0x49f   : > { %4692 = vmatpush.msrb.mxu2 %v3517_v10  ;;  %4627 = vmatpush.msra.mxu3 %v3309_v41  ;;  %v3381_v33 = vld [vmem:[#allocation11 + $0x570] sm:$0xff] }
 0x4a0   : > { %4646 = vmatpush.msrb.mxu0 %v3389_v46  ;;  %4669 = vmatpush.msrb.mxu1 %v3453_v57  ;;  %v3445_v36 = vld [vmem:[#allocation11 + $0x770] sm:$0xff] }
 0x4a1   : > { %4693 = vmatpush.msrb.mxu2 %v3513_v3  ;;  %4628 = vmatpush.msra.mxu3 %v3305_v42  ;;  %v3505_v28 = vld [vmem:[#allocation11 + $0x950] sm:$0xff] }
 0x4a2   : > { %4647 = vmatpush.msrb.mxu0 %v3385_v62  ;;  %4617 = vmatmul.f32.gmra.mxu2 %v7690_v26  ;;  %v3297_v15 = vld [vmem:[#allocation11 + $0x2d0] sm:$0xff] }
 0x4a3   : > { %4670 = vmatpush.msrb.mxu1 %v3449_v24  ;;  %4694 = vmatpush.msrb.mxu2 %v3509_v4  ;;  %v3377_v37 = vld [vmem:[#allocation11 + $0x550] sm:$0xff] }
 0x4a4   : > { %4571 = vmatmul.f32.gmra.mxu0 %v7722_v7  ;;  %4629 = vmatpush.msra.mxu3 %v3301_v63  ;;  %v3441_v21 = vld [vmem:[#allocation11 + $0x750] sm:$0xff] }
 0x4a5   : > { %4648 = vmatpush.msrb.mxu0 %v3381_v33  ;;  %4671 = vmatpush.msrb.mxu1 %v3445_v36  ;;  %v3501_v11 = vld [vmem:[#allocation11 + $0x930] sm:$0xff] }
 0x4a6   : > { %4695 = vmatpush.msrb.mxu2 %v3505_v28  ;;  %4594 = vmatmul.f32.gmra.mxu1 %v7734_v53  ;;  %v3293_v48 = vld [vmem:[#allocation11 + $0x2b0] sm:$0xff] }
 0x4a7   : > { %v3373_v16 = vld [vmem:[#allocation11 + $0x530] sm:$0xff]  ;;  %4630 = vmatpush.msra.mxu3 %v3297_v15  ;;  %4649 = vmatpush.msrb.mxu0 %v3377_v37  ;;  %v4270_v56 = vpop.f32.mrf.mxu3  ;;  %v3270_v37 = vld [vmem:[#allocation11 + $0x1f8] sm:$0xff] }
 0x4a8   : > { %v3437_v26 = vld [vmem:[#allocation11 + $0x730] sm:$0xff]  ;;  %4672 = vmatpush.msrb.mxu1 %v3441_v21  ;;  %4696 = vmatpush.msrb.mxu2 %v3501_v11 }
 0x4a9   : > { %v3497_v44 = vld [vmem:[#allocation11 + $0x910] sm:$0xff]  ;;  %4631 = vmatpush.msra.mxu3 %v3293_v48  ;;  %4650 = vmatpush.msrb.mxu0 %v3373_v16  ;;  %v3266_v16 = vld [vmem:[#allocation11 + $0x1d8] sm:$0xff] }
 0x4aa   : > { %v3289_v14 = vld [vmem:[#allocation11 + $0x290] sm:$0xff]  ;;  %4673 = vmatpush.msrb.mxu1 %v3437_v26  ;;  %4697 = vmatpush.msrb.mxu2 %v3497_v44 }
 0x4ab   : > { %v3369_v25 = vld [vmem:[#allocation11 + $0x510] sm:$0xff]  ;;  %4632 = vmatpush.msra.mxu3 %v3289_v14  ;;  %v4293_v0 = vpop.f32.mrf.mxu0 }
 0x4ac   : > { %v3433_v19 = vld [vmem:[#allocation11 + $0x710] sm:$0xff]  ;;  %4651 = vmatpush.msrb.mxu0 %v3369_v25  ;;  %v4294_v29 = vadd.f32 %v4293_v0, %v4270_v56  ;;  %v3258_v56 = vld [vmem:[#allocation11 + $0x198] sm:$0xff] }
 0x4ad   : > { %v3493_v32 = vld [vmem:[#allocation11 + $0x8f0] sm:$0xff]  ;;  %4674 = vmatpush.msrb.mxu1 %v3433_v19  ;;  %v4316_v46 = vpop.f32.mrf.mxu1 }
 0x4ae   : > { %v3285_v34 = vld [vmem:[#allocation11 + $0x270] sm:$0xff]  ;;  %4698 = vmatpush.msrb.mxu2 %v3493_v32  ;;  %v4317_v42 = vadd.f32 %v4316_v46, %v4294_v29  ;;  %v3262_v32 = vld [vmem:[#allocation11 + $0x1b8] sm:$0xff] }
 0x4af   : > { %v3365_v40 = vld [vmem:[#allocation11 + $0x4f0] sm:$0xff]  ;;  %4633 = vmatpush.msra.mxu3 %v3285_v34  ;;  %v4339_v4 = vpop.f32.mrf.mxu2  ;;  %v3462_v29 = vld [vmem:[#allocation11 + $0x7f8] sm:$0xff] }
 0x4b0   : > { %v3429_v6 = vld [vmem:[#allocation11 + $0x6f0] sm:$0xff]  ;;  %4652 = vmatpush.msrb.mxu0 %v3365_v40  ;;  %v7752_v36 = vadd.f32 %v4339_v4, %v4317_v42  ;;  %v4273_v14 = vpop.f32.mrf.mxu3  ;;  %v3254_v46 = vld [vmem:[#allocation11 + $0x178] sm:$0xff] }
 0x4b1   : > { %v3489_v51 = vld [vmem:[#allocation11 + $0x8d0] sm:$0xff]  ;;  %4675 = vmatpush.msrb.mxu1 %v3429_v6  ;;  %v3398_v42 = vld [vmem:[#allocation11 + $0x5f8] sm:$0xff] }
 0x4b2   : > { %v3281_v59 = vld [vmem:[#allocation11 + $0x250] sm:$0xff]  ;;  %4699 = vmatpush.msrb.mxu2 %v3489_v51  ;;  %v3454_v4 = vld [vmem:[#allocation11 + $0x7b8] sm:$0xff] }
 0x4b3   : > { %v3361_v12 = vld [vmem:[#allocation11 + $0x4d0] sm:$0xff]  ;;  %4634 = vmatpush.msra.mxu3 %v3281_v59 }
 0x4b4   : > { %v3425_v10 = vld [vmem:[#allocation11 + $0x6d0] sm:$0xff]  ;;  %4653 = vmatpush.msrb.mxu0 %v3361_v12 }
 0x4b5   : > { %v3485_v41 = vld [vmem:[#allocation11 + $0x8b0] sm:$0xff]  ;;  %4676 = vmatpush.msrb.mxu1 %v3425_v10  ;;  %v4296_v25 = vpop.f32.mrf.mxu0 }
 0x4b6   : > { %v3277_v57 = vld [vmem:[#allocation11 + $0x230] sm:$0xff]  ;;  %4700 = vmatpush.msrb.mxu2 %v3485_v41  ;;  %v4297_v34 = vadd.f32 %v4296_v25, %v4273_v14  ;;  %v4319_v40 = vpop.f32.mrf.mxu1  ;;  %v3234_v25 = vld [vmem:[#allocation11 + $0xd8] sm:$0xff] }
 0x4b7   : > { %v3357_v3 = vld [vmem:[#allocation11 + $0x4b0] sm:$0xff]  ;;  %4635 = vmatpush.msra.mxu3 %v3277_v57  ;;  %v3334_v57 = vld [vmem:[#allocation11 + $0x3f8] sm:$0xff] }
 0x4b8   : > { %v3421_v62 = vld [vmem:[#allocation11 + $0x6b0] sm:$0xff]  ;;  %4654 = vmatpush.msrb.mxu0 %v3357_v3  ;;  %v4320_v0 = vadd.f32 %v4319_v40, %v4297_v34  ;;  %v3458_v3 = vld [vmem:[#allocation11 + $0x7d8] sm:$0xff] }
 0x4b9   : > { %v3481_v24 = vld [vmem:[#allocation11 + $0x890] sm:$0xff]  ;;  %4677 = vmatpush.msrb.mxu1 %v3421_v62  ;;  %v4342_v12 = vpop.f32.mrf.mxu2  ;;  %v3250_v62 = vld [vmem:[#allocation11 + $0x158] sm:$0xff] }
 0x4ba   : > { %v3273_v63 = vld [vmem:[#allocation11 + $0x210] sm:$0xff]  ;;  %4701 = vmatpush.msrb.mxu2 %v3481_v24  ;;  %v7755_v10 = vadd.f32 %v4342_v12, %v4320_v0  ;;  %v3330_v24 = vld [vmem:[#allocation11 + $0x3d8] sm:$0xff]  ;;  %v3952_v0 = vadd.f32 %v7688_v17, %v7684_v22 }
 0x4bb   : > { %v3353_v33 = vld [vmem:[#allocation11 + $0x490] sm:$0xff]  ;;  %4636 = vmatpush.msra.mxu3 %v3273_v63  ;;  %v3394_v63 = vld [vmem:[#allocation11 + $0x5d8] sm:$0xff] }
 0x4bc   : > { %v3417_v28 = vld [vmem:[#allocation11 + $0x690] sm:$0xff]  ;;  %4655 = vmatpush.msrb.mxu0 %v3353_v33  ;;  %4637 = vmatmul.f32.vlgmr.msra.gmra.mxu3 %v7676_v60  ;;  %v3326_v33 = vld [vmem:[#allocation11 + $0x3b8] sm:$0xff] }
 0x4bd   : > { %v3477_v15 = vld [vmem:[#allocation11 + $0x870] sm:$0xff]  ;;  %4678 = vmatpush.msrb.mxu1 %v3417_v28  ;;  %4713 = vmatpush.msrb.mxu3 %v3270_v37  ;;  %v3450_v28 = vld [vmem:[#allocation11 + $0x798] sm:$0xff] }
 0x4be   : > { %v3349_v21 = vld [vmem:[#allocation11 + $0x470] sm:$0xff]  ;;  %4702 = vmatpush.msrb.mxu2 %v3477_v15  ;;  %v3322_v15 = vld [vmem:[#allocation11 + $0x398] sm:$0xff] }
 0x4bf   : > { %v3413_v11 = vld [vmem:[#allocation11 + $0x670] sm:$0xff]  ;;  %4656 = vmatpush.msrb.mxu0 %v3349_v21  ;;  %4714 = vmatpush.msrb.mxu3 %v3266_v16  ;;  %v3386_v37 = vld [vmem:[#allocation11 + $0x598] sm:$0xff] }
 0x4c0   : > { %v3473_v48 = vld [vmem:[#allocation11 + $0x850] sm:$0xff]  ;;  %4679 = vmatpush.msrb.mxu1 %v3413_v11  ;;  %v3446_v21 = vld [vmem:[#allocation11 + $0x778] sm:$0xff] }
 0x4c1   : > { %v3345_v26 = vld [vmem:[#allocation11 + $0x450] sm:$0xff]  ;;  %4703 = vmatpush.msrb.mxu2 %v3473_v48  ;;  %4715 = vmatpush.msrb.mxu3 %v3262_v32  ;;  %v3238_v11 = vld [vmem:[#allocation11 + $0xf8] sm:$0xff]  ;;  %v3949_v48 = vadd.f32 %v7674_v50, %v7671_v47 }
 0x4c2   : > { %v3409_v44 = vld [vmem:[#allocation11 + $0x650] sm:$0xff]  ;;  %4657 = vmatpush.msrb.mxu0 %v3345_v26  ;;  %v3318_v16 = vld [vmem:[#allocation11 + $0x378] sm:$0xff] }
 0x4c3   : > { %v3469_v19 = vld [vmem:[#allocation11 + $0x830] sm:$0xff]  ;;  %4680 = vmatpush.msrb.mxu1 %v3409_v44  ;;  %4716 = vmatpush.msrb.mxu3 %v3258_v56  ;;  %v3382_v26 = vld [vmem:[#allocation11 + $0x578] sm:$0xff]  ;;  %v3972_v14 = vadd.f32 %v7678_v52, %v3949_v48 }
 0x4c4   : > { %v3341_v6 = vld [vmem:[#allocation11 + $0x430] sm:$0xff]  ;;  %4704 = vmatpush.msrb.mxu2 %v3469_v19  ;;  %4640 = vmatmul.f32.gmra.mxu3 %v7693_v61  ;;  %v3390_v61 = vld [vmem:[#allocation11 + $0x5b8] sm:$0xff] }
 0x4c5   : > { %v3405_v51 = vld [vmem:[#allocation11 + $0x630] sm:$0xff]  ;;  %4658 = vmatpush.msrb.mxu0 %v3341_v6  ;;  %4717 = vmatpush.msrb.mxu3 %v3254_v46  ;;  %v3442_v44 = vld [vmem:[#allocation11 + $0x758] sm:$0xff]  ;;  %v3995_v50 = vadd.f32 %v7696_v45, %v3972_v14  ;;  %v6313_v14 = vld [vmem:[#allocation2] sm:$0xff] }
 0x4c6   : > { %v3465_v60 = vld [vmem:[#allocation11 + $0x810] sm:$0xff]  ;;  %4681 = vmatpush.msrb.mxu1 %v3405_v51  ;;  %v3314_v19 = vld [vmem:[#allocation11 + $0x358] sm:$0xff] }
 0x4c7   : > { %v3337_v59 = vld [vmem:[#allocation11 + $0x410] sm:$0xff]  ;;  %4705 = vmatpush.msrb.mxu2 %v3465_v60  ;;  %4718 = vmatpush.msrb.mxu3 %v3250_v62  ;;  %v3378_v32 = vld [vmem:[#allocation11 + $0x558] sm:$0xff] }
 0x4c8   : > { %v3401_v41 = vld [vmem:[#allocation11 + $0x610] sm:$0xff]  ;;  %4659 = vmatpush.msrb.mxu0 %v3337_v59  ;;  %4706 = vmatmul.f32.vlgmr.msrb.gmra.mxu2 %v7717_v54  ;;  %v3246_v54 = vld [vmem:[#allocation11 + $0x138] sm:$0xff]  ;;  %v4018_v59 = vadd.f32 %v7698_v38, %v3995_v50  ;;  %v3975_v38 = vadd.f32 %v7686_v35, %v3952_v0  ;;  %v5027_v0 = vld [vmem:[#allocation11 + $0x19e0] sm:$0xff] }
 0x4c9   : > { %4782 = vmatpush.msra.mxu2 %v3462_v29  ;;  %4660 = vmatmul.f32.vlgmr.msrb.gmra.mxu0 %v7665_v43  ;;  %v3242_v43 = vld [vmem:[#allocation11 + $0x118] sm:$0xff] }
 0x4ca   : > { %4682 = vmatpush.msrb.mxu1 %v3401_v41  ;;  %4736 = vmatpush.msra.mxu0 %v3334_v57  ;;  %v3438_v47 = vld [vmem:[#allocation11 + $0x738] sm:$0xff] }
 0x4cb   : > { %4683 = vmatmul.f32.vlgmr.msrb.gmra.mxu1 %v7708_v8  ;;  %4783 = vmatpush.msra.mxu2 %v3458_v3  ;;  %v3310_v34 = vld [vmem:[#allocation11 + $0x338] sm:$0xff]  ;;  %v4362_v6 = vpop.f32.mrf.mxu3 }
 0x4cc   : > { %4759 = vmatpush.msra.mxu1 %v3398_v42  ;;  %4737 = vmatpush.msra.mxu0 %v3330_v24  ;;  %v3374_v40 = vld [vmem:[#allocation11 + $0x538] sm:$0xff]  ;;  %v7769_v60 = vadd.f32 %v4362_v6, %v7752_v36 }
 0x4cd   : > { %4784 = vmatpush.msra.mxu2 %v3454_v4  ;;  %4719 = vmatpush.msrb.mxu3 %v3246_v54  ;;  %v3434_v52 = vld [vmem:[#allocation11 + $0x718] sm:$0xff] }
 0x4ce   : > { %4760 = vmatpush.msra.mxu1 %v3394_v63  ;;  %4738 = vmatpush.msra.mxu0 %v3326_v33  ;;  %v3306_v51 = vld [vmem:[#allocation11 + $0x318] sm:$0xff] }
 0x4cf   : > { %4785 = vmatpush.msra.mxu2 %v3450_v28  ;;  %4720 = vmatpush.msrb.mxu3 %v3242_v43  ;;  %v3370_v56 = vld [vmem:[#allocation11 + $0x518] sm:$0xff]  ;;  %v4385_v57 = vpop.f32.mrf.mxu0 }
 0x4d0   : > { %4761 = vmatpush.msra.mxu1 %v3390_v61  ;;  %4739 = vmatpush.msra.mxu0 %v3322_v15  ;;  %v3430_v45 = vld [vmem:[#allocation11 + $0x6f8] sm:$0xff]  ;;  %v4386_v42 = vadd.f32 %v4385_v57, %v4018_v59  ;;  %v3998_v61 = vadd.f32 %v7704_v39, %v3975_v38  ;;  %v5023_v57 = vld [vmem:[#allocation11 + $0x19c0] sm:$0xff] }
 0x4d1   : > { %4709 = vmatmul.f32.gmra.mxu2 %v7734_v53  ;;  %4663 = vmatmul.f32.gmra.mxu0 %v7681_v58  ;;  %v3230_v53 = vld [vmem:[#allocation11 + $0xb8] sm:$0xff]  ;;  %v4408_v17 = vpop.f32.mrf.mxu1 }
 0x4d2   : > { %4762 = vmatpush.msra.mxu1 %v3386_v37  ;;  %4786 = vmatpush.msra.mxu2 %v3446_v21  ;;  %v3226_v58 = vld [vmem:[#allocation11 + $0x98] sm:$0xff]  ;;  %v4409_v63 = vadd.f32 %v4408_v17, %v4386_v42  ;;  %v6316_v17 = vld [vmem:[#allocation2 + $0x10] sm:$0xff] }
 0x4d3   : > { %4721 = vmatpush.msrb.mxu3 %v3238_v11  ;;  %4740 = vmatpush.msra.mxu0 %v3318_v16  ;;  %v3222_v12 = vld [vmem:[#allocation11 + $0x78] sm:$0xff]  ;;  %v4431_v28 = vpop.f32.mrf.mxu2 }
 0x4d4   : > { %4686 = vmatmul.f32.gmra.mxu1 %v7722_v7  ;;  %4787 = vmatpush.msra.mxu2 %v3442_v44  ;;  %v3302_v29 = vld [vmem:[#allocation11 + $0x2f8] sm:$0xff]  ;;  %v7776_v37 = vadd.f32 %v4431_v28, %v4409_v63  ;;  %v4365_v21 = vpop.f32.mrf.mxu3  ;;  %v4021_v44 = vadd.f32 %v7706_v31, %v3998_v61  ;;  %v4955_v63 = vld [vmem:[#allocation11 + $0x17a0] sm:$0xff] }
 0x4d5   : > { %4763 = vmatpush.msra.mxu1 %v3382_v26  ;;  %4722 = vmatpush.msrb.mxu3 %v3234_v25  ;;  %v3366_v41 = vld [vmem:[#allocation11 + $0x4f8] sm:$0xff]  ;;  %v7779_v11 = vadd.f32 %v4365_v21, %v7755_v10  ;;  %v4951_v28 = vld [vmem:[#allocation11 + $0x1780] sm:$0xff] }
 0x4d6   : > { %4741 = vmatpush.msra.mxu0 %v3314_v19  ;;  %4788 = vmatpush.msra.mxu2 %v3438_v47  ;;  %v3426_v46 = vld [vmem:[#allocation11 + $0x6d8] sm:$0xff]  ;;  %v5011_v61 = vld [vmem:[#allocation11 + $0x1960] sm:$0xff] }
 0x4d7   : > { %4764 = vmatpush.msra.mxu1 %v3378_v32  ;;  %4723 = vmatpush.msrb.mxu3 %v3230_v53  ;;  %v3218_v36 = vld [vmem:[#allocation11 + $0x58] sm:$0xff]  ;;  %v4883_v21 = vld [vmem:[#allocation11 + $0x1560] sm:$0xff] }
 0x4d8   : > { %4742 = vmatpush.msra.mxu0 %v3310_v34  ;;  %4789 = vmatpush.msra.mxu2 %v3434_v52  ;;  %v3298_v3 = vld [vmem:[#allocation11 + $0x2d8] sm:$0xff] }
 0x4d9   : > { %4765 = vmatpush.msra.mxu1 %v3374_v40  ;;  %4724 = vmatpush.msrb.mxu3 %v3226_v58  ;;  %v3362_v62 = vld [vmem:[#allocation11 + $0x4d8] sm:$0xff]  ;;  %v4388_v47 = vpop.f32.mrf.mxu0 }
 0x4da   : > { %4743 = vmatpush.msra.mxu0 %v3306_v51  ;;  %4790 = vmatpush.msra.mxu2 %v3430_v45  ;;  %v3422_v22 = vld [vmem:[#allocation11 + $0x6b8] sm:$0xff]  ;;  %v4389_v34 = vadd.f32 %v4388_v47, %v4021_v44  ;;  %v4411_v40 = vpop.f32.mrf.mxu1  ;;  %v4879_v44 = vld [vmem:[#allocation11 + $0x1540] sm:$0xff] }
 0x4db   : > { %4766 = vmatpush.msra.mxu1 %v3370_v56  ;;  %4725 = vmatpush.msrb.mxu3 %v3222_v12  ;;  %v3214_v24 = vld [vmem:[#allocation11 + $0x38] sm:$0xff] }
 0x4dc   : > { %4744 = vmatpush.msra.mxu0 %v3302_v29  ;;  %4791 = vmatpush.msra.mxu2 %v3426_v46  ;;  %v3294_v4 = vld [vmem:[#allocation11 + $0x2b8] sm:$0xff]  ;;  %v4412_v51 = vadd.f32 %v4411_v40, %v4389_v34  ;;  %v7785_v46 = vld [vmem:[#allocation2 + $0x28] sm:$0xff]  ;;  %v4935_v34 = vld [vmem:[#allocation11 + $0x1700] sm:$0xff] }
 0x4dd   : > { %4767 = vmatpush.msra.mxu1 %v3366_v41  ;;  %4726 = vmatpush.msrb.mxu3 %v3218_v36  ;;  %v3358_v54 = vld [vmem:[#allocation11 + $0x4b8] sm:$0xff]  ;;  %v4434_v45 = vpop.f32.mrf.mxu2  ;;  %v4899_v41 = vld [vmem:[#allocation11 + $0x15e0] sm:$0xff]  ;;  %v6315_v36 = vld [vmem:[#allocation2 + $0x8] sm:$0xff] }
 0x4de   : > { %4745 = vmatpush.msra.mxu0 %v3298_v3  ;;  %v3418_v33 = vld [vmem:[#allocation11 + $0x698] sm:$0xff]  ;;  %4792 = vmatpush.msra.mxu2 %v3422_v22  ;;  %v7782_v59 = vadd.f32 %v4434_v45, %v4412_v51  ;;  %v4963_v3 = vld [vmem:[#allocation11 + $0x17e0] sm:$0xff] }
 0x4df   : > { %4768 = vmatpush.msra.mxu1 %v3362_v62  ;;  %v3210_v43 = vld [vmem:[#allocation11 + $0x18] sm:$0xff]  ;;  %4727 = vmatpush.msrb.mxu3 %v3214_v24  ;;  %v4895_v62 = vld [vmem:[#allocation11 + $0x15c0] sm:$0xff] }
 0x4e0   : > { %v3290_v15 = vld [vmem:[#allocation11 + $0x298] sm:$0xff]  ;;  %4746 = vmatpush.msra.mxu0 %v3294_v4  ;;  %4793 = vmatpush.msra.mxu2 %v3418_v33  ;;  %v5019_v22 = vld [vmem:[#allocation11 + $0x19a0] sm:$0xff] }
 0x4e1   : > { %v3354_v35 = vld [vmem:[#allocation11 + $0x498] sm:$0xff]  ;;  %4769 = vmatpush.msra.mxu1 %v3358_v54  ;;  %4728 = vmatpush.msrb.mxu3 %v3210_v43  ;;  %v4891_v24 = vld [vmem:[#allocation11 + $0x15a0] sm:$0xff] }
 0x4e2   : > { %v3414_v48 = vld [vmem:[#allocation11 + $0x678] sm:$0xff]  ;;  %4747 = vmatpush.msra.mxu0 %v3290_v15  ;;  %4729 = vmatmul.f32.vlgmr.msrb.gmra.mxu3 %v6313_v14  ;;  %v5015_v4 = vld [vmem:[#allocation11 + $0x1980] sm:$0xff]  ;;  %v4064_v15 = vadd.f32 %v7702_v1, %v7700_v5 }
 0x4e3   : > { %v3526_v16 = vld [vmem:[#allocation11 + $0x9f8] sm:$0xff]  ;;  %4770 = vmatpush.msra.mxu1 %v3354_v35  ;;  %4794 = vmatpush.msra.mxu2 %v3414_v48  ;;  %v4887_v33 = vld [vmem:[#allocation11 + $0x1580] sm:$0xff] }
 0x4e4   : > { %v3286_v39 = vld [vmem:[#allocation11 + $0x278] sm:$0xff]  ;;  %4805 = vmatpush.msra.mxu3 %v3526_v16  ;;  %v4947_v35 = vld [vmem:[#allocation11 + $0x1760] sm:$0xff]  ;;  %v4087_v16 = vadd.f32 %v7715_v23, %v4064_v15  ;;  %v4830_v15 = vld [vmem:[#allocation2 + $0x10] sm:$0xf0] }
 0x4e5   : > { %v3350_v26 = vld [vmem:[#allocation11 + $0x478] sm:$0xff]  ;;  %4748 = vmatpush.msra.mxu0 %v3286_v39  ;;  %v5007_v48 = vld [vmem:[#allocation11 + $0x1940] sm:$0xff]  ;;  %v7792_v39 = vld [vmem:[#allocation2 + $0x30] sm:$0xff] }
 0x4e6   : > { %v3410_v25 = vld [vmem:[#allocation11 + $0x658] sm:$0xff]  ;;  %4771 = vmatpush.msra.mxu1 %v3350_v26  ;;  %v4943_v5 = vld [vmem:[#allocation11 + $0x1740] sm:$0xff] }
 0x4e7   : > { %v3522_v19 = vld [vmem:[#allocation11 + $0x9d8] sm:$0xff]  ;;  %4795 = vmatpush.msra.mxu2 %v3410_v25  ;;  %v5003_v1 = vld [vmem:[#allocation11 + $0x1920] sm:$0xff] }
 0x4e8   : > { %v3282_v32 = vld [vmem:[#allocation11 + $0x258] sm:$0xff]  ;;  %4806 = vmatpush.msra.mxu3 %v3522_v19  ;;  %v4875_v25 = vld [vmem:[#allocation11 + $0x1520] sm:$0xff] }
 0x4e9   : > { %v3346_v10 = vld [vmem:[#allocation11 + $0x458] sm:$0xff]  ;;  %4749 = vmatpush.msra.mxu0 %v3282_v32  ;;  %v4939_v23 = vld [vmem:[#allocation11 + $0x1720] sm:$0xff] }
 0x4ea   : > { %v3406_v50 = vld [vmem:[#allocation11 + $0x638] sm:$0xff]  ;;  %4772 = vmatpush.msra.mxu1 %v3346_v10  ;;  %4732 = vmatmul.f32.gmra.mxu3 %v7785_v46  ;;  %v4999_v19 = vld [vmem:[#allocation11 + $0x1900] sm:$0xff]  ;;  %v4110_v10 = vadd.f32 %v7720_v30, %v4087_v16 }
 0x4eb   : > { %v3518_v53 = vld [vmem:[#allocation11 + $0x9b8] sm:$0xff]  ;;  %4796 = vmatpush.msra.mxu2 %v3406_v50  ;;  %v4871_v50 = vld [vmem:[#allocation11 + $0x1500] sm:$0xff] }
 0x4ec   : > { %v3278_v52 = vld [vmem:[#allocation11 + $0x238] sm:$0xff]  ;;  %4807 = vmatpush.msra.mxu3 %v3518_v53  ;;  %v4995_v40 = vld [vmem:[#allocation11 + $0x18e0] sm:$0xff] }
 0x4ed   : > { %v3342_v31 = vld [vmem:[#allocation11 + $0x438] sm:$0xff]  ;;  %4750 = vmatpush.msra.mxu0 %v3278_v52  ;;  %v4931_v30 = vld [vmem:[#allocation11 + $0x16e0] sm:$0xff] }
 0x4ee   : > { %v3402_v6 = vld [vmem:[#allocation11 + $0x618] sm:$0xff]  ;;  %4773 = vmatpush.msra.mxu1 %v3342_v31  ;;  %v4867_v31 = vld [vmem:[#allocation11 + $0x14e0] sm:$0xff] }
 0x4ef   : > { %v3514_v58 = vld [vmem:[#allocation11 + $0x998] sm:$0xff]  ;;  %4797 = vmatpush.msra.mxu2 %v3402_v6  ;;  %v4454_v32 = vpop.f32.mrf.mxu3  ;;  %v4067_v6 = vadd.f32 %v7713_v20, %v7711_v9  ;;  %v4863_v45 = vld [vmem:[#allocation11 + $0x14c0] sm:$0xff] }
 0x4f0   : > { %v3274_v56 = vld [vmem:[#allocation11 + $0x218] sm:$0xff]  ;;  %4808 = vmatpush.msra.mxu3 %v3514_v58  ;;  %4798 = vmatmul.f32.vlgmr.msra.gmra.mxu2 %v7708_v8  ;;  %v4959_v8 = vld [vmem:[#allocation11 + $0x17c0] sm:$0xff]  ;;  %v4455_v53 = vadd.f32 %v4454_v32, %v7776_v37 }
 0x4f1   : > { %v3338_v12 = vld [vmem:[#allocation11 + $0x418] sm:$0xff]  ;;  %4751 = vmatpush.msra.mxu0 %v3274_v56  ;;  %5250 = vmatpush.msrb.mxu2 %v5027_v0  ;;  %v4991_v58 = vld [vmem:[#allocation11 + $0x18c0] sm:$0xff]  ;;  %v4133_v56 = vadd.f32 %v7726_v13, %v4110_v10  ;;  %v4829_v10 = vld [vmem:[#allocation2 + $0x8] sm:$0xf0] }
 0x4f2   : > { %v3510_v29 = vld [vmem:[#allocation11 + $0x978] sm:$0xff]  ;;  %4752 = vmatmul.f32.vlgmr.msra.gmra.mxu0 %v6315_v36  ;;  %4774 = vmatpush.msra.mxu1 %v3338_v12  ;;  %v4090_v12 = vadd.f32 %v7729_v27, %v4067_v6  ;;  %v4923_v13 = vld [vmem:[#allocation11 + $0x16a0] sm:$0xff] }
 0x4f3   : > { %v3506_v42 = vld [vmem:[#allocation11 + $0x958] sm:$0xff]  ;;  %4809 = vmatpush.msra.mxu3 %v3510_v29  ;;  %5204 = vmatpush.msrb.mxu0 %v4899_v41  ;;  %v4477_v51 = vpop.f32.mrf.mxu0  ;;  %v4927_v29 = vld [vmem:[#allocation11 + $0x16c0] sm:$0xff] }
 0x4f4   : > { %4775 = vmatmul.f32.vlgmr.msra.gmra.mxu1 %v6316_v17  ;;  %5251 = vmatpush.msrb.mxu2 %v5023_v57  ;;  %v3502_v38 = vld [vmem:[#allocation11 + $0x938] sm:$0xff]  ;;  %v7803_v0 = vadd.f32 %v4477_v51, %v4455_v53  ;;  %v4987_v41 = vld [vmem:[#allocation11 + $0x18a0] sm:$0xff] }
 0x4f5   : > { %5227 = vmatpush.msrb.mxu1 %v4963_v3  ;;  %4810 = vmatpush.msra.mxu3 %v3506_v42  ;;  %v3498_v54 = vld [vmem:[#allocation11 + $0x918] sm:$0xff]  ;;  %v4500_v9 = vpop.f32.mrf.mxu1  ;;  %v4859_v57 = vld [vmem:[#allocation11 + $0x14a0] sm:$0xff] }
 0x4f6   : > { %5205 = vmatpush.msrb.mxu0 %v4895_v62  ;;  %5252 = vmatpush.msrb.mxu2 %v5019_v22  ;;  %v3494_v43 = vld [vmem:[#allocation11 + $0x8f8] sm:$0xff]  ;;  %v4501_v36 = vadd.f32 %v4500_v9, %v4133_v56  ;;  %v4983_v3 = vld [vmem:[#allocation11 + $0x1880] sm:$0xff]  ;;  %v7823_v56 = vld [vmem:[#allocation2 + $0x48] sm:$0xff] }
 0x4f7   : > { %5228 = vmatpush.msrb.mxu1 %v4959_v8  ;;  %4811 = vmatpush.msra.mxu3 %v3502_v38  ;;  %v3490_v26 = vld [vmem:[#allocation11 + $0x8d8] sm:$0xff]  ;;  %v4523_v42 = vpop.f32.mrf.mxu2  ;;  %v4855_v22 = vld [vmem:[#allocation11 + $0x1480] sm:$0xff]  ;;  %v4113_v8 = vadd.f32 %v7732_v2, %v4090_v12  ;;  %v4960_v12 = vld [vmem:[#allocation11 + $0x17c8] sm:$0xff] }
 0x4f8   : > { %5206 = vmatpush.msrb.mxu0 %v4891_v24  ;;  %5253 = vmatpush.msrb.mxu2 %v5015_v4  ;;  %v7795_v14 = vld [vmem:[#allocation2 + $0x38] sm:$0xff]  ;;  %v7806_v27 = vadd.f32 %v4523_v42, %v4501_v36  ;;  %v4457_v17 = vpop.f32.mrf.mxu3  ;;  %v4919_v38 = vld [vmem:[#allocation11 + $0x1680] sm:$0xff]  ;;  %v4956_v36 = vld [vmem:[#allocation11 + $0x17a8] sm:$0xff] }
 0x4f9   : > { %5229 = vmatpush.msrb.mxu1 %v4955_v63  ;;  %4812 = vmatpush.msra.mxu3 %v3498_v54  ;;  %v3482_v47 = vld [vmem:[#allocation11 + $0x898] sm:$0xff]  ;;  %v4458_v24 = vadd.f32 %v4457_v17, %v7782_v59  ;;  %v4979_v4 = vld [vmem:[#allocation11 + $0x1860] sm:$0xff]  ;;  %v4136_v2 = vadd.f32 %v7737_v49, %v4113_v8  ;;  %v4892_v8 = vld [vmem:[#allocation11 + $0x15a8] sm:$0xff] }
 0x4fa   : > { %5207 = vmatpush.msrb.mxu0 %v4887_v33  ;;  %4801 = vmatmul.f32.gmra.mxu2 %v7722_v7  ;;  %v3486_v7 = vld [vmem:[#allocation11 + $0x8b8] sm:$0xff]  ;;  %v5091_v63 = vld [vmem:[#allocation11 + $0x1be0] sm:$0xff] }
 0x4fb   : > { %5230 = vmatpush.msrb.mxu1 %v4951_v28  ;;  %5254 = vmatpush.msrb.mxu2 %v5011_v61  ;;  %v3478_v52 = vld [vmem:[#allocation11 + $0x878] sm:$0xff]  ;;  %v4851_v54 = vld [vmem:[#allocation11 + $0x1460] sm:$0xff] }
 0x4fc   : > { %4755 = vmatmul.f32.gmra.mxu0 %v7792_v39  ;;  %4813 = vmatpush.msra.mxu3 %v3494_v43  ;;  %v3474_v37 = vld [vmem:[#allocation11 + $0x858] sm:$0xff]  ;;  %v4915_v33 = vld [vmem:[#allocation11 + $0x1660] sm:$0xff] }
 0x4fd   : > { %5208 = vmatpush.msrb.mxu0 %v4883_v21  ;;  %4778 = vmatmul.f32.gmra.mxu1 %v7795_v14  ;;  %v3470_v20 = vld [vmem:[#allocation11 + $0x838] sm:$0xff]  ;;  %v6319_v28 = vld [vmem:[#allocation2 + $0x20] sm:$0xff] }
 0x4fe   : > { %5231 = vmatpush.msrb.mxu1 %v4947_v35  ;;  %5255 = vmatpush.msrb.mxu2 %v5007_v48  ;;  %v3466_v62 = vld [vmem:[#allocation11 + $0x818] sm:$0xff]  ;;  %v4975_v61 = vld [vmem:[#allocation11 + $0x1840] sm:$0xff]  ;;  %v4480_v35 = vpop.f32.mrf.mxu0 }
 0x4ff   : > { %4814 = vmatpush.msra.mxu3 %v3490_v26  ;;  %5209 = vmatpush.msrb.mxu0 %v4879_v44  ;;  %v5087_v43 = vld [vmem:[#allocation11 + $0x1bc0] sm:$0xff]  ;;  %v7811_v26 = vadd.f32 %v4480_v35, %v4458_v24  ;;  %v4503_v44 = vpop.f32.mrf.mxu1  ;;  %v4834_v17 = vld [vmem:[#allocation2 + $0x58] sm:$0xf] }
 0x500   : > { %5232 = vmatpush.msrb.mxu1 %v4943_v5  ;;  %5256 = vmatpush.msrb.mxu2 %v5003_v1  ;;  %v4847_v21 = vld [vmem:[#allocation11 + $0x1440] sm:$0xff] }
 0x501   : > { %4815 = vmatpush.msra.mxu3 %v3486_v7  ;;  %5210 = vmatpush.msrb.mxu0 %v4875_v25  ;;  %v4911_v59 = vld [vmem:[#allocation11 + $0x1640] sm:$0xff]  ;;  %v5175_v7 = vrot.slane %v4830_v15, 4  ;;  %v5176_v25 = vrot.slane %v7795_v14, 4  ;;  %v4526_v53 = vpop.f32.mrf.mxu2 }
 0x502   : > { %5233 = vmatpush.msrb.mxu1 %v4939_v23  ;;  %5257 = vmatpush.msrb.mxu2 %v4999_v19  ;;  %v4971_v48 = vld [vmem:[#allocation11 + $0x1820] sm:$0xff]  ;;  %v4504_v23 = vadd.f32 %v4503_v44, %v4136_v2  ;;  %v4884_v2 = vld [vmem:[#allocation11 + $0x1568] sm:$0xff] }
 0x503   : > { %4816 = vmatpush.msra.mxu3 %v3482_v47  ;;  %5211 = vmatpush.msrb.mxu0 %v4871_v50  ;;  %v5083_v16 = vld [vmem:[#allocation11 + $0x1ba0] sm:$0xff]  ;;  %v5170_v50 = vrot.slane %v7785_v46, 4 }
 0x504   : > { %5234 = vmatpush.msrb.mxu1 %v4935_v34  ;;  %5258 = vmatpush.msrb.mxu2 %v4995_v40  ;;  %v4843_v5 = vld [vmem:[#allocation11 + $0x1420] sm:$0xff]  ;;  %v4964_v34 = vld [vmem:[#allocation11 + $0x17e8] sm:$0xff]  ;;  %v7815_v40 = vadd.f32 %v4526_v53, %v4504_v23 }
 0x505   : > { %4817 = vmatpush.msra.mxu3 %v3478_v52  ;;  %5212 = vmatpush.msrb.mxu0 %v4867_v31  ;;  %v4907_v1 = vld [vmem:[#allocation11 + $0x1620] sm:$0xff]  ;;  %v7820_v52 = vsel %vm2560_vm8, %v5175_v7, %v5176_v25  ;;  %v4928_v53 = vld [vmem:[#allocation11 + $0x16c8] sm:$0xff] }
 0x506   : > { %5235 = vmatpush.msrb.mxu1 %v4931_v30  ;;  %5259 = vmatpush.msrb.mxu2 %v4991_v58  ;;  %v4828_v49 = vld [vmem:[#allocation2] sm:$0xf0]  ;;  %v5172_v30 = vrot.slane %v4829_v10, 4  ;;  %v4835_v9 = vld [vmem:[#allocation2 + $0x60] sm:$0xf] }
 0x507   : > { %4818 = vmatpush.msra.mxu3 %v3474_v37  ;;  %5213 = vmatpush.msrb.mxu0 %v4863_v45  ;;  %v4967_v19 = vld [vmem:[#allocation11 + $0x1800] sm:$0xff]  ;;  %v5169_v31 = vrot.slane %v4828_v49, 4  ;;  %v5173_v45 = vrot.slane %v7792_v39, 4  ;;  %v4833_v39 = vld [vmem:[#allocation2 + $0x50] sm:$0xf] }
 0x508   : > { %5236 = vmatpush.msrb.mxu1 %v4927_v29  ;;  %5260 = vmatpush.msrb.mxu2 %v4987_v41  ;;  %v5079_v32 = vld [vmem:[#allocation11 + $0x1b80] sm:$0xff]  ;;  %v4900_v29 = vld [vmem:[#allocation11 + $0x15e8] sm:$0xff] }
 0x509   : > { %4819 = vmatpush.msra.mxu3 %v3470_v20  ;;  %5214 = vmatpush.msrb.mxu0 %v4859_v57  ;;  %v4839_v47 = vld [vmem:[#allocation11 + $0x1400] sm:$0xff]  ;;  %v7829_v37 = vsel %vm2560_vm8, %v5169_v31, %v5170_v50  ;;  %v7834_v20 = vsel %vm2560_vm8, %v5172_v30, %v5173_v45  ;;  %v4831_v30 = vld [vmem:[#allocation2 + $0x18] sm:$0xf0] }
 0x50a   : > { %5237 = vmatpush.msrb.mxu1 %v4923_v13  ;;  %5261 = vmatpush.msrb.mxu2 %v4983_v3  ;;  %v4903_v6 = vld [vmem:[#allocation11 + $0x1600] sm:$0xff]  ;;  %v4896_v13 = vld [vmem:[#allocation11 + $0x15c8] sm:$0xff] }
 0x50b   : > { %4820 = vmatpush.msra.mxu3 %v3466_v62  ;;  %5215 = vmatpush.msrb.mxu0 %v4855_v22  ;;  %v5075_v58 = vld [vmem:[#allocation11 + $0x1b60] sm:$0xff]  ;;  %v4952_v62 = vld [vmem:[#allocation11 + $0x1788] sm:$0xff]  ;;  %v5188_v22 = vrot.slane %v4835_v9, 4 }
 0x50c   : > { %4821 = vmatmul.f32.vlgmr.msra.gmra.mxu3 %v6319_v28  ;;  %5238 = vmatpush.msrb.mxu1 %v4919_v38  ;;  %v5155_v51 = vld [vmem:[#allocation11 + $0x1de0] sm:$0xff]  ;;  %v4920_v9 = vld [vmem:[#allocation11 + $0x1688] sm:$0xff] }
 0x50d   : > { %5262 = vmatpush.msrb.mxu2 %v4979_v4  ;;  %5273 = vmatpush.msrb.mxu3 %v5091_v63  ;;  %v5071_v41 = vld [vmem:[#allocation11 + $0x1b40] sm:$0xff]  ;;  %v5184_v4 = vrot.slane %v4833_v39, 4  ;;  %v4888_v63 = vld [vmem:[#allocation11 + $0x1588] sm:$0xff]  ;;  %v7840_v28 = vsel %vm2560_vm8, %v5176_v25, %v5188_v22 }
 0x50e   : > { %5216 = vmatpush.msrb.mxu0 %v4851_v54  ;;  %5239 = vmatpush.msrb.mxu1 %v4915_v33  ;;  %v5151_v57 = vld [vmem:[#allocation11 + $0x1dc0] sm:$0xff]  ;;  %v4948_v54 = vld [vmem:[#allocation11 + $0x1768] sm:$0xff]  ;;  %v5186_v33 = vrot.slane %v4834_v17, 4 }
 0x50f   : > { %5263 = vmatpush.msrb.mxu2 %v4975_v61  ;;  %5274 = vmatpush.msrb.mxu3 %v5087_v43  ;;  %v5067_v3 = vld [vmem:[#allocation11 + $0x1b20] sm:$0xff]  ;;  %v7846_v15 = vsel %vm2560_vm8, %v5170_v50, %v5184_v4  ;;  %v4868_v50 = vld [vmem:[#allocation11 + $0x14e8] sm:$0xff] }
 0x510   : > { %5217 = vmatpush.msrb.mxu0 %v4847_v21  ;;  %5240 = vmatpush.msrb.mxu1 %v4911_v59  ;;  %v5147_v42 = vld [vmem:[#allocation11 + $0x1da0] sm:$0xff]  ;;  %v4944_v21 = vld [vmem:[#allocation11 + $0x1748] sm:$0xff]  ;;  %v7850_v14 = vsel %vm2560_vm8, %v5173_v45, %v5186_v33 }
 0x511   : > { %5264 = vmatpush.msrb.mxu2 %v4971_v48  ;;  %5275 = vmatpush.msrb.mxu3 %v5083_v16  ;;  %v5063_v38 = vld [vmem:[#allocation11 + $0x1b00] sm:$0xff]  ;;  %v4880_v48 = vld [vmem:[#allocation11 + $0x1548] sm:$0xff] }
 0x512   : > { %5218 = vmatpush.msrb.mxu0 %v4843_v5  ;;  %5241 = vmatpush.msrb.mxu1 %v4907_v1  ;;  %v5143_v24 = vld [vmem:[#allocation11 + $0x1d80] sm:$0xff]  ;;  %v4940_v16 = vld [vmem:[#allocation11 + $0x1728] sm:$0xff] }
 0x513   : > { %5265 = vmatpush.msrb.mxu2 %v4967_v19  ;;  %5276 = vmatpush.msrb.mxu3 %v5079_v32  ;;  %v5059_v61 = vld [vmem:[#allocation11 + $0x1ae0] sm:$0xff]  ;;  %v4876_v5 = vld [vmem:[#allocation11 + $0x1528] sm:$0xff]  ;;  %v4546_v7 = vpop.f32.mrf.mxu3 }
 0x514   : > { %5219 = vmatpush.msrb.mxu0 %v4839_v47  ;;  %5266 = vmatmul.f32.vlgmr.msrb.gmra.mxu2 %v7820_v52  ;;  %v5139_v43 = vld [vmem:[#allocation11 + $0x1d60] sm:$0xff]  ;;  %v4936_v1 = vld [vmem:[#allocation11 + $0x1708] sm:$0xff]  ;;  %v4547_v23 = vadd.f32 %v4546_v7, %v7806_v27 }
 0x515   : > { %5342 = vmatpush.msra.mxu2 %v4964_v34  ;;  %4824 = vmatmul.f32.gmra.mxu3 %v7823_v56  ;;  %v5055_v59 = vld [vmem:[#allocation11 + $0x1ac0] sm:$0xff]  ;;  %v4872_v19 = vld [vmem:[#allocation11 + $0x1508] sm:$0xff] }
 0x516   : > { %5220 = vmatmul.f32.vlgmr.msrb.gmra.mxu0 %v7829_v37  ;;  %5242 = vmatpush.msrb.mxu1 %v4903_v6  ;;  %v5135_v35 = vld [vmem:[#allocation11 + $0x1d40] sm:$0xff]  ;;  %v4932_v32 = vld [vmem:[#allocation11 + $0x16e8] sm:$0xff] }
 0x517   : > { %5277 = vmatpush.msrb.mxu3 %v5075_v58  ;;  %5296 = vmatpush.msra.mxu0 %v5155_v51  ;;  %v5051_v46 = vld [vmem:[#allocation11 + $0x1aa0] sm:$0xff]  ;;  %v4569_v34 = vpop.f32.mrf.mxu0  ;;  %v4864_v27 = vld [vmem:[#allocation11 + $0x14c8] sm:$0xff] }
 0x518   : > { %5243 = vmatmul.f32.vlgmr.msrb.gmra.mxu1 %v7834_v20  ;;  %5343 = vmatpush.msra.mxu2 %v4960_v12  ;;  %v5131_v44 = vld [vmem:[#allocation11 + $0x1d20] sm:$0xff]  ;;  %v4570_v58 = vadd.f32 %v4569_v34, %v4547_v23  ;;  %v4924_v51 = vld [vmem:[#allocation11 + $0x16a8] sm:$0xff] }
 0x519   : > { %5319 = vmatpush.msra.mxu1 %v4900_v29  ;;  %5278 = vmatpush.msrb.mxu3 %v5071_v41  ;;  %v5047_v25 = vld [vmem:[#allocation11 + $0x1a80] sm:$0xff]  ;;  %v4860_v41 = vld [vmem:[#allocation11 + $0x14a8] sm:$0xff] }
 0x51a   : > { %5297 = vmatpush.msra.mxu0 %v5151_v57  ;;  %5344 = vmatpush.msra.mxu2 %v4956_v36  ;;  %v5127_v49 = vld [vmem:[#allocation11 + $0x1d00] sm:$0xff]  ;;  %v4592_v29 = vpop.f32.mrf.mxu1  ;;  %v5178_v57 = vrot.slane %v4831_v30, 4  ;;  %v5028_v4 = vld [vmem:[#allocation11 + $0x19e8] sm:$0xff]  ;;  %v4897_v30 = vld [vmem:[#allocation11 + $0x15d0] sm:$0xff] }
 0x51b   : > { %5320 = vmatpush.msra.mxu1 %v4896_v13  ;;  %5279 = vmatpush.msrb.mxu3 %v5067_v3  ;;  %v5043_v10 = vld [vmem:[#allocation11 + $0x1a60] sm:$0xff]  ;;  %v7854_v36 = vadd.f32 %v4592_v29, %v4570_v58  ;;  %v4615_v13 = vpop.f32.mrf.mxu2  ;;  %v4912_v33 = vld [vmem:[#allocation11 + $0x1648] sm:$0xff] }
 0x51c   : > { %5298 = vmatpush.msra.mxu0 %v5147_v42  ;;  %5345 = vmatpush.msra.mxu2 %v4952_v62  ;;  %v5123_v47 = vld [vmem:[#allocation11 + $0x1ce0] sm:$0xff]  ;;  %v7857_v42 = vadd.f32 %v4615_v13, %v7740_v55  ;;  %v4549_v62 = vpop.f32.mrf.mxu3  ;;  %v4852_v55 = vld [vmem:[#allocation11 + $0x1468] sm:$0xff] }
 0x51d   : > { %5321 = vmatpush.msra.mxu1 %v4892_v8  ;;  %5280 = vmatpush.msrb.mxu3 %v5063_v38  ;;  %v5039_v31 = vld [vmem:[#allocation11 + $0x1a40] sm:$0xff]  ;;  %v4856_v8 = vld [vmem:[#allocation11 + $0x1488] sm:$0xff]  ;;  %v4550_v38 = vadd.f32 %v4549_v62, %v7815_v40 }
 0x51e   : > { %5299 = vmatpush.msra.mxu0 %v5143_v24  ;;  %5269 = vmatmul.f32.gmra.mxu2 %v7840_v28  ;;  %v5119_v6 = vld [vmem:[#allocation11 + $0x1cc0] sm:$0xff]  ;;  %v4916_v24 = vld [vmem:[#allocation11 + $0x1668] sm:$0xff] }
 0x51f   : > { %5322 = vmatpush.msra.mxu1 %v4888_v63  ;;  %5346 = vmatpush.msra.mxu2 %v4948_v54  ;;  %v5035_v45 = vld [vmem:[#allocation11 + $0x1a20] sm:$0xff]  ;;  %v5008_v58 = vld [vmem:[#allocation11 + $0x1948] sm:$0xff] }
 0x520   : > { %5223 = vmatmul.f32.gmra.mxu0 %v7846_v15  ;;  %5281 = vmatpush.msrb.mxu3 %v5059_v61  ;;  %v5115_v12 = vld [vmem:[#allocation11 + $0x1ca0] sm:$0xff]  ;;  %v5024_v61 = vld [vmem:[#allocation11 + $0x19c8] sm:$0xff] }
 0x521   : > { %5300 = vmatpush.msra.mxu0 %v5139_v43  ;;  %5246 = vmatmul.f32.gmra.mxu1 %v7850_v14  ;;  %v5031_v3 = vld [vmem:[#allocation11 + $0x1a00] sm:$0xff]  ;;  %v5004_v29 = vld [vmem:[#allocation11 + $0x1928] sm:$0xff] }
 0x522   : > { %5323 = vmatpush.msra.mxu1 %v4884_v2  ;;  %5347 = vmatpush.msra.mxu2 %v4944_v21  ;;  %v5111_v39 = vld [vmem:[#allocation11 + $0x1c80] sm:$0xff]  ;;  %v4848_v2 = vld [vmem:[#allocation11 + $0x1448] sm:$0xff] }
 0x523   : > { %5282 = vmatpush.msrb.mxu3 %v5055_v59  ;;  %5301 = vmatpush.msra.mxu0 %v5135_v35  ;;  %v6321_v22 = vld [vmem:[#allocation2 + $0x40] sm:$0xff]  ;;  %v4836_v21 = vld [vmem:[#allocation2 + $0x68] sm:$0xf]  ;;  %v4572_v59 = vpop.f32.mrf.mxu0  ;;  %v4595_v7 = vpop.f32.mrf.mxu1 }
 0x524   : > { %5324 = vmatpush.msra.mxu1 %v4880_v48  ;;  %5348 = vmatpush.msra.mxu2 %v4940_v16  ;;  %v5179_v17 = vrot.slane %v6321_v22, 4  ;;  %v5107_v54 = vld [vmem:[#allocation11 + $0x1c60] sm:$0xff]  ;;  %v4908_v35 = vld [vmem:[#allocation11 + $0x1628] sm:$0xff]  ;;  %v4573_v16 = vadd.f32 %v4572_v59, %v4550_v38  ;;  %v5190_v23 = vrot.slane %v4836_v21, 4  ;;  %v4885_v22 = vld [vmem:[#allocation11 + $0x1570] sm:$0xff] }
 0x525   : > { %5283 = vmatpush.msrb.mxu3 %v5051_v46  ;;  %5302 = vmatpush.msra.mxu0 %v5131_v44  ;;  %v4832_v43 = vld [vmem:[#allocation2 + $0x20] sm:$0xf0]  ;;  %v5020_v48 = vld [vmem:[#allocation11 + $0x19a8] sm:$0xff]  ;;  %v4873_v21 = vld [vmem:[#allocation11 + $0x1510] sm:$0xff] }
 0x526   : > { %5325 = vmatpush.msra.mxu1 %v4876_v5  ;;  %5349 = vmatpush.msra.mxu2 %v4936_v1  ;;  %v7861_v63 = vsel %vm2560_vm8, %v5178_v57, %v5179_v17  ;;  %v5103_v40 = vld [vmem:[#allocation11 + $0x1c40] sm:$0xff]  ;;  %v4844_v44 = vld [vmem:[#allocation11 + $0x1428] sm:$0xff]  ;;  %v5181_v5 = vrot.slane %v4832_v43, 4  ;;  %v5182_v1 = vrot.slane %v7823_v56, 4  ;;  %v7875_v34 = vsel %vm2560_vm8, %v5179_v17, %v5190_v23 }
 0x527   : > { %5284 = vmatpush.msrb.mxu3 %v5047_v25  ;;  %5303 = vmatpush.msra.mxu0 %v5127_v49  ;;  %v5099_v46 = vld [vmem:[#allocation11 + $0x1c20] sm:$0xff]  ;;  %v4904_v25 = vld [vmem:[#allocation11 + $0x1608] sm:$0xff] }
 0x528   : > { %5326 = vmatpush.msra.mxu1 %v4872_v19  ;;  %5350 = vmatpush.msra.mxu2 %v4932_v32  ;;  %v5016_v49 = vld [vmem:[#allocation11 + $0x1988] sm:$0xff]  ;;  %v7865_v19 = vadd.f32 %v4595_v7, %v4573_v16  ;;  %v5095_v32 = vld [vmem:[#allocation11 + $0x1c00] sm:$0xff]  ;;  %v7871_v56 = vsel %vm2560_vm8, %v5181_v5, %v5182_v1 }
 0x529   : > { %5285 = vmatpush.msrb.mxu3 %v5043_v10  ;;  %5304 = vmatpush.msra.mxu0 %v5123_v47  ;;  %v4618_v10 = vpop.f32.mrf.mxu2  ;;  %v4901_v47 = vld [vmem:[#allocation11 + $0x15f0] sm:$0xff]  ;;  %v5148_v13 = vld [vmem:[#allocation11 + $0x1da8] sm:$0xff] }
 0x52a   : > { %5327 = vmatpush.msra.mxu1 %v4868_v50  ;;  %5351 = vmatpush.msra.mxu2 %v4928_v53  ;;  %v7868_v50 = vadd.f32 %v4618_v10, %v7743_v18  ;;  %v4840_v53 = vld [vmem:[#allocation11 + $0x1408] sm:$0xff] }
 0x52b   : > { %5286 = vmatpush.msrb.mxu3 %v5039_v31  ;;  %5305 = vmatpush.msra.mxu0 %v5119_v6  ;;  %v5012_v31 = vld [vmem:[#allocation11 + $0x1968] sm:$0xff] }
 0x52c   : > { %5328 = vmatpush.msra.mxu1 %v4864_v27  ;;  %5352 = vmatpush.msra.mxu2 %v4924_v51  ;;  %v5092_v6 = vld [vmem:[#allocation11 + $0x1be8] sm:$0xff]  ;;  %v4837_v27 = vld [vmem:[#allocation2 + $0x70] sm:$0xf] }
 0x52d   : > { %5287 = vmatpush.msrb.mxu3 %v5035_v45  ;;  %5306 = vmatpush.msra.mxu0 %v5115_v12  ;;  %v5156_v18 = vld [vmem:[#allocation11 + $0x1de8] sm:$0xff]  ;;  %v4893_v45 = vld [vmem:[#allocation11 + $0x15b0] sm:$0xff]  ;;  %v5192_v57 = vrot.slane %v4837_v27, 4 }
 0x52e   : > { %5329 = vmatpush.msra.mxu1 %v4860_v41  ;;  %5353 = vmatpush.msra.mxu2 %v4920_v9  ;;  %v5088_v51 = vld [vmem:[#allocation11 + $0x1bc8] sm:$0xff]  ;;  %v4889_v9 = vld [vmem:[#allocation11 + $0x1590] sm:$0xff] }
 0x52f   : > { %5288 = vmatpush.msrb.mxu3 %v5031_v3  ;;  %5307 = vmatpush.msra.mxu0 %v5111_v39  ;;  %v5152_v12 = vld [vmem:[#allocation11 + $0x1dc8] sm:$0xff]  ;;  %v7881_v17 = vsel %vm2560_vm8, %v5182_v1, %v5192_v57  ;;  %v4853_v57 = vld [vmem:[#allocation11 + $0x1470] sm:$0xff] }
 0x530   : > { %5289 = vmatmul.f32.vlgmr.msrb.gmra.mxu3 %v7861_v63  ;;  %5330 = vmatpush.msra.mxu1 %v4856_v8  ;;  %v5084_v41 = vld [vmem:[#allocation11 + $0x1ba8] sm:$0xff] }
 0x531   : > { %5354 = vmatpush.msra.mxu2 %v4916_v24  ;;  %5365 = vmatpush.msra.mxu3 %v5028_v4  ;;  %v5000_v3 = vld [vmem:[#allocation11 + $0x1908] sm:$0xff]  ;;  %v4881_v4 = vld [vmem:[#allocation11 + $0x1550] sm:$0xff] }
 0x532   : > { %5308 = vmatpush.msra.mxu0 %v5107_v54  ;;  %5331 = vmatpush.msra.mxu1 %v4852_v55  ;;  %v5080_v39 = vld [vmem:[#allocation11 + $0x1b88] sm:$0xff] }
 0x533   : > { %5355 = vmatpush.msra.mxu2 %v4912_v33  ;;  %5366 = vmatpush.msra.mxu3 %v5024_v61  ;;  %v5144_v62 = vld [vmem:[#allocation11 + $0x1d88] sm:$0xff]  ;;  %v4877_v61 = vld [vmem:[#allocation11 + $0x1530] sm:$0xff] }
 0x534   : > { %5309 = vmatpush.msra.mxu0 %v5103_v40  ;;  %5332 = vmatpush.msra.mxu1 %v4848_v2  ;;  %v4996_v8 = vld [vmem:[#allocation11 + $0x18e8] sm:$0xff] }
 0x535   : > { %5356 = vmatpush.msra.mxu2 %v4908_v35  ;;  %5367 = vmatpush.msra.mxu3 %v5020_v48  ;;  %v5076_v38 = vld [vmem:[#allocation11 + $0x1b68] sm:$0xff] }
 0x536   : > { %5310 = vmatpush.msra.mxu0 %v5099_v46  ;;  %5333 = vmatpush.msra.mxu1 %v4844_v44  ;;  %v5140_v24 = vld [vmem:[#allocation11 + $0x1d68] sm:$0xff]  ;;  %v4869_v44 = vld [vmem:[#allocation11 + $0x14f0] sm:$0xff] }
 0x537   : > { %5357 = vmatpush.msra.mxu2 %v4904_v25  ;;  %5368 = vmatpush.msra.mxu3 %v5016_v49  ;;  %v4992_v54 = vld [vmem:[#allocation11 + $0x18c8] sm:$0xff]  ;;  %v4865_v25 = vld [vmem:[#allocation11 + $0x14d0] sm:$0xff] }
 0x538   : > { %5311 = vmatpush.msra.mxu0 %v5095_v32  ;;  %5358 = vmatmul.f32.vlgmr.msra.gmra.mxu2 %v7834_v20  ;;  %v5072_v55 = vld [vmem:[#allocation11 + $0x1b48] sm:$0xff] }
 0x539   : > { %5434 = vmatpush.msrb.mxu2 %v4901_v47  ;;  %5292 = vmatmul.f32.gmra.mxu3 %v7875_v34  ;;  %v5136_v33 = vld [vmem:[#allocation11 + $0x1d48] sm:$0xff]  ;;  %v4861_v47 = vld [vmem:[#allocation11 + $0x14b0] sm:$0xff] }
 0x53a   : > { %5312 = vmatmul.f32.vlgmr.msra.gmra.mxu0 %v7871_v56  ;;  %5334 = vmatpush.msra.mxu1 %v4840_v53  ;;  %v4988_v43 = vld [vmem:[#allocation11 + $0x18a8] sm:$0xff] }
 0x53b   : > { %5369 = vmatpush.msra.mxu3 %v5012_v31  ;;  %5388 = vmatpush.msrb.mxu0 %v5092_v6  ;;  %v5068_v40 = vld [vmem:[#allocation11 + $0x1b28] sm:$0xff] }
 0x53c   : > { %5335 = vmatmul.f32.vlgmr.msra.gmra.mxu1 %v7829_v37  ;;  %5435 = vmatpush.msrb.mxu2 %v4897_v30  ;;  %v5132_v2 = vld [vmem:[#allocation11 + $0x1d28] sm:$0xff] }
 0x53d   : > { %5411 = vmatpush.msrb.mxu1 %v5156_v18  ;;  %5370 = vmatpush.msra.mxu3 %v5008_v58  ;;  %v4984_v35 = vld [vmem:[#allocation11 + $0x1888] sm:$0xff]  ;;  %v4857_v58 = vld [vmem:[#allocation11 + $0x1490] sm:$0xff] }
 0x53e   : > { %5389 = vmatpush.msrb.mxu0 %v5088_v51  ;;  %5436 = vmatpush.msrb.mxu2 %v4893_v45  ;;  %v5064_v48 = vld [vmem:[#allocation11 + $0x1b08] sm:$0xff] }
 0x53f   : > { %5412 = vmatpush.msrb.mxu1 %v5152_v12  ;;  %5371 = vmatpush.msra.mxu3 %v5004_v29  ;;  %v4638_v59 = vpop.f32.mrf.mxu3  ;;  %v5128_v46 = vld [vmem:[#allocation11 + $0x1d08] sm:$0xff] }
 0x540   : > { %5390 = vmatpush.msrb.mxu0 %v5084_v41  ;;  %5437 = vmatpush.msrb.mxu2 %v4889_v9  ;;  %v4639_v16 = vadd.f32 %v4638_v59, %v7857_v42  ;;  %v4980_v5 = vld [vmem:[#allocation11 + $0x1868] sm:$0xff] }
 0x541   : > { %5413 = vmatpush.msrb.mxu1 %v5148_v13  ;;  %5372 = vmatpush.msra.mxu3 %v5000_v3  ;;  %v5060_v1 = vld [vmem:[#allocation11 + $0x1ae8] sm:$0xff]  ;;  %v4965_v13 = vld [vmem:[#allocation11 + $0x17f0] sm:$0xff] }
 0x542   : > { %5391 = vmatpush.msrb.mxu0 %v5080_v39  ;;  %5361 = vmatmul.f32.gmra.mxu2 %v7850_v14  ;;  %v5124_v7 = vld [vmem:[#allocation11 + $0x1ce8] sm:$0xff] }
 0x543   : > { %5414 = vmatpush.msrb.mxu1 %v5144_v62  ;;  %5438 = vmatpush.msrb.mxu2 %v4885_v22  ;;  %v4976_v23 = vld [vmem:[#allocation11 + $0x1848] sm:$0xff]  ;;  %v4849_v62 = vld [vmem:[#allocation11 + $0x1450] sm:$0xff] }
 0x544   : > { %5315 = vmatmul.f32.gmra.mxu0 %v7881_v17  ;;  %5373 = vmatpush.msra.mxu3 %v4996_v8  ;;  %v5056_v32 = vld [vmem:[#allocation11 + $0x1ac8] sm:$0xff]  ;;  %v4961_v22 = vld [vmem:[#allocation11 + $0x17d0] sm:$0xff] }
 0x545   : > { %5392 = vmatpush.msrb.mxu0 %v5076_v38  ;;  %5338 = vmatmul.f32.gmra.mxu1 %v7846_v15  ;;  %v5120_v42 = vld [vmem:[#allocation11 + $0x1cc8] sm:$0xff] }
 0x546   : > { %5415 = vmatpush.msrb.mxu1 %v5140_v24  ;;  %5439 = vmatpush.msrb.mxu2 %v4881_v4  ;;  %v4661_v49 = vpop.f32.mrf.mxu0  ;;  %v4972_v31 = vld [vmem:[#allocation11 + $0x1828] sm:$0xff]  ;;  %v4957_v4 = vld [vmem:[#allocation11 + $0x17b0] sm:$0xff] }
 0x547   : > { %5374 = vmatpush.msra.mxu3 %v4992_v54  ;;  %5393 = vmatpush.msrb.mxu0 %v5072_v55  ;;  %v4662_v10 = vadd.f32 %v4661_v49, %v4639_v16  ;;  %v5052_v6 = vld [vmem:[#allocation11 + $0x1aa8] sm:$0xff]  ;;  %v4641_v29 = vpop.f32.mrf.mxu3  ;;  %v5089_v49 = vld [vmem:[#allocation11 + $0x1bd0] sm:$0xff] }
 0x548   : > { %5416 = vmatpush.msrb.mxu1 %v5136_v33  ;;  %5440 = vmatpush.msrb.mxu2 %v4877_v61  ;;  %v4684_v53 = vpop.f32.mrf.mxu1  ;;  %v5116_v18 = vld [vmem:[#allocation11 + $0x1ca8] sm:$0xff]  ;;  %v4642_v9 = vadd.f32 %v4641_v29, %v7868_v50  ;;  %v4845_v50 = vld [vmem:[#allocation11 + $0x1430] sm:$0xff] }
 0x549   : > { %5375 = vmatpush.msra.mxu3 %v4988_v43  ;;  %5394 = vmatpush.msrb.mxu0 %v5068_v40  ;;  %v4685_v30 = vadd.f32 %v4684_v53, %v4662_v10  ;;  %v4968_v51 = vld [vmem:[#allocation11 + $0x1808] sm:$0xff]  ;;  %v4841_v43 = vld [vmem:[#allocation11 + $0x1410] sm:$0xff] }
 0x54a   : > { %5417 = vmatpush.msrb.mxu1 %v5132_v2  ;;  %5441 = vmatpush.msrb.mxu2 %v4873_v21  ;;  %v5048_v45 = vld [vmem:[#allocation11 + $0x1a88] sm:$0xff]  ;;  %v4953_v40 = vld [vmem:[#allocation11 + $0x1790] sm:$0xff] }
 0x54b   : > { %5376 = vmatpush.msra.mxu3 %v4984_v35  ;;  %5395 = vmatpush.msrb.mxu0 %v5064_v48  ;;  %v4707_v27 = vpop.f32.mrf.mxu2  ;;  %v5112_v41 = vld [vmem:[#allocation11 + $0x1c88] sm:$0xff]  ;;  %v5157_v35 = vld [vmem:[#allocation11 + $0x1df0] sm:$0xff] }
 0x54c   : > { %5418 = vmatpush.msrb.mxu1 %v5128_v46  ;;  %5442 = vmatpush.msrb.mxu2 %v4869_v44  ;;  %v7887_v12 = vadd.f32 %v4707_v27, %v4685_v30  ;;  %v5044_v3 = vld [vmem:[#allocation11 + $0x1a68] sm:$0xff]  ;;  %v4949_v46 = vld [vmem:[#allocation11 + $0x1770] sm:$0xff] }
 0x54d   : > { %5377 = vmatpush.msra.mxu3 %v4980_v5  ;;  %5396 = vmatpush.msrb.mxu0 %v5060_v1  ;;  %v5108_v39 = vld [vmem:[#allocation11 + $0x1c68] sm:$0xff]  ;;  %v5029_v44 = vld [vmem:[#allocation11 + $0x19f0] sm:$0xff] }
 0x54e   : > { %5419 = vmatpush.msrb.mxu1 %v5124_v7  ;;  %5443 = vmatpush.msrb.mxu2 %v4865_v25  ;;  %v5040_v8 = vld [vmem:[#allocation11 + $0x1a48] sm:$0xff]  ;;  %v4664_v24 = vpop.f32.mrf.mxu0  ;;  %v5093_v5 = vld [vmem:[#allocation11 + $0x1bf0] sm:$0xff] }
 0x54f   : > { %5378 = vmatpush.msra.mxu3 %v4976_v23  ;;  %5397 = vmatpush.msrb.mxu0 %v5056_v32  ;;  %v5104_v38 = vld [vmem:[#allocation11 + $0x1c48] sm:$0xff]  ;;  %v4665_v54 = vadd.f32 %v4664_v24, %v4642_v9  ;;  %v5153_v1 = vld [vmem:[#allocation11 + $0x1dd0] sm:$0xff] }
 0x550   : > { %5420 = vmatpush.msrb.mxu1 %v5120_v42  ;;  %5444 = vmatpush.msrb.mxu2 %v4861_v47  ;;  %v5036_v33 = vld [vmem:[#allocation11 + $0x1a28] sm:$0xff]  ;;  %v4945_v7 = vld [vmem:[#allocation11 + $0x1750] sm:$0xff] }
 0x551   : > { %5379 = vmatpush.msra.mxu3 %v4972_v31  ;;  %5398 = vmatpush.msrb.mxu0 %v5052_v6  ;;  %v4687_v55 = vpop.f32.mrf.mxu1  ;;  %v5100_v61 = vld [vmem:[#allocation11 + $0x1c28] sm:$0xff]  ;;  %v5025_v25 = vld [vmem:[#allocation11 + $0x19d0] sm:$0xff] }
 0x552   : > { %5421 = vmatpush.msrb.mxu1 %v5116_v18  ;;  %5445 = vmatpush.msrb.mxu2 %v4857_v58  ;;  %v4688_v2 = vadd.f32 %v4687_v55, %v4665_v54  ;;  %v5032_v21 = vld [vmem:[#allocation11 + $0x1a08] sm:$0xff]  ;;  %v5149_v23 = vld [vmem:[#allocation11 + $0x1db0] sm:$0xff] }
 0x553   : > { %5380 = vmatpush.msra.mxu3 %v4968_v51  ;;  %5399 = vmatpush.msrb.mxu0 %v5048_v45  ;;  %v5096_v16 = vld [vmem:[#allocation11 + $0x1c08] sm:$0xff]  ;;  %v4941_v32 = vld [vmem:[#allocation11 + $0x1730] sm:$0xff] }
 0x554   : > { %5381 = vmatmul.f32.vlgmr.msra.gmra.mxu3 %v7820_v52  ;;  %5422 = vmatpush.msrb.mxu1 %v5112_v41  ;;  %v4710_v59 = vpop.f32.mrf.mxu2  ;;  %v5021_v10 = vld [vmem:[#allocation11 + $0x19b0] sm:$0xff] }
 0x555   : > { %5446 = vmatpush.msrb.mxu2 %v4853_v57  ;;  %5457 = vmatpush.msrb.mxu3 %v4965_v13  ;;  %v7891_v48 = vadd.f32 %v4710_v59, %v4688_v2  ;;  %v5085_v42 = vld [vmem:[#allocation11 + $0x1bb0] sm:$0xff] }
 0x556   : > { %5400 = vmatpush.msrb.mxu0 %v5044_v3  ;;  %5423 = vmatpush.msrb.mxu1 %v5108_v39  ;;  %v5145_v47 = vld [vmem:[#allocation11 + $0x1d90] sm:$0xff] }
 0x557   : > { %5447 = vmatpush.msrb.mxu2 %v4849_v62  ;;  %5458 = vmatpush.msrb.mxu3 %v4961_v22  ;;  %v4937_v53 = vld [vmem:[#allocation11 + $0x1710] sm:$0xff] }
 0x558   : > { %5401 = vmatpush.msrb.mxu0 %v5040_v8  ;;  %5424 = vmatpush.msrb.mxu1 %v5104_v38  ;;  %v5017_v31 = vld [vmem:[#allocation11 + $0x1990] sm:$0xff] }
 0x559   : > { %5448 = vmatpush.msrb.mxu2 %v4845_v50  ;;  %5459 = vmatpush.msrb.mxu3 %v4957_v4  ;;  %v5081_v6 = vld [vmem:[#allocation11 + $0x1b90] sm:$0xff] }
 0x55a   : > { %5402 = vmatpush.msrb.mxu0 %v5036_v33  ;;  %5425 = vmatpush.msrb.mxu1 %v5100_v61  ;;  %v5141_v30 = vld [vmem:[#allocation11 + $0x1d70] sm:$0xff] }
 0x55b   : > { %5449 = vmatpush.msrb.mxu2 %v4841_v43  ;;  %5460 = vmatpush.msrb.mxu3 %v4953_v40  ;;  %v4933_v18 = vld [vmem:[#allocation11 + $0x16f0] sm:$0xff] }
 0x55c   : > { %5403 = vmatpush.msrb.mxu0 %v5032_v21  ;;  %5450 = vmatmul.f32.vlgmr.msrb.gmra.mxu2 %v7829_v37  ;;  %v5013_v58 = vld [vmem:[#allocation11 + $0x1970] sm:$0xff] }
 0x55d   : > { %5526 = vmatpush.msra.mxu2 %v5157_v35  ;;  %5384 = vmatmul.f32.gmra.mxu3 %v7840_v28  ;;  %v5077_v27 = vld [vmem:[#allocation11 + $0x1b70] sm:$0xff] }
 0x55e   : > { %5404 = vmatmul.f32.vlgmr.msrb.gmra.mxu0 %v7861_v63  ;;  %5426 = vmatpush.msrb.mxu1 %v5096_v16  ;;  %v5137_v51 = vld [vmem:[#allocation11 + $0x1d50] sm:$0xff] }
 0x55f   : > { %5461 = vmatpush.msrb.mxu3 %v4949_v46  ;;  %5480 = vmatpush.msra.mxu0 %v5029_v44  ;;  %v4929_v45 = vld [vmem:[#allocation11 + $0x16d0] sm:$0xff] }
 0x560   : > { %5503 = vmatpush.msra.mxu1 %v5093_v5  ;;  %5527 = vmatpush.msra.mxu2 %v5153_v1  ;;  %v5009_v29 = vld [vmem:[#allocation11 + $0x1950] sm:$0xff] }
 0x561   : > { %5427 = vmatmul.f32.vlgmr.msrb.gmra.mxu1 %v7871_v56  ;;  %5462 = vmatpush.msrb.mxu3 %v4945_v7  ;;  %v5073_v41 = vld [vmem:[#allocation11 + $0x1b50] sm:$0xff] }
 0x562   : > { %5481 = vmatpush.msra.mxu0 %v5025_v25  ;;  %5504 = vmatpush.msra.mxu1 %v5089_v49  ;;  %v5133_v9 = vld [vmem:[#allocation11 + $0x1d30] sm:$0xff] }
 0x563   : > { %5528 = vmatpush.msra.mxu2 %v5149_v23  ;;  %5463 = vmatpush.msrb.mxu3 %v4941_v32  ;;  %v4925_v57 = vld [vmem:[#allocation11 + $0x16b0] sm:$0xff] }
 0x564   : > { %5482 = vmatpush.msra.mxu0 %v5021_v10  ;;  %5505 = vmatpush.msra.mxu1 %v5085_v42  ;;  %v5005_v13 = vld [vmem:[#allocation11 + $0x1930] sm:$0xff] }
 0x565   : > { %5529 = vmatpush.msra.mxu2 %v5145_v47  ;;  %5464 = vmatpush.msrb.mxu3 %v4937_v53  ;;  %v5069_v3 = vld [vmem:[#allocation11 + $0x1b30] sm:$0xff]  ;;  %v4730_v62 = vpop.f32.mrf.mxu3  ;;  %v4902_v47 = vld [vmem:[#allocation11 + $0x15f8] sm:$0xff] }
 0x566   : > { %5483 = vmatpush.msra.mxu0 %v5017_v31  ;;  %5453 = vmatmul.f32.gmra.mxu2 %v7846_v15  ;;  %v5129_v39 = vld [vmem:[#allocation11 + $0x1d10] sm:$0xff]  ;;  %v4731_v38 = vadd.f32 %v4730_v62, %v7769_v60 }
 0x567   : > { %5506 = vmatpush.msra.mxu1 %v5081_v6  ;;  %5530 = vmatpush.msra.mxu2 %v5141_v30  ;;  %v4921_v22 = vld [vmem:[#allocation11 + $0x1690] sm:$0xff]  ;;  %v4898_v30 = vld [vmem:[#allocation11 + $0x15d8] sm:$0xff] }
 0x568   : > { %5407 = vmatmul.f32.gmra.mxu0 %v7875_v34  ;;  %5465 = vmatpush.msrb.mxu3 %v4933_v18  ;;  %v5001_v8 = vld [vmem:[#allocation11 + $0x1910] sm:$0xff] }
 0x569   : > { %5484 = vmatpush.msra.mxu0 %v5013_v58  ;;  %5507 = vmatpush.msra.mxu1 %v5077_v27  ;;  %v5065_v24 = vld [vmem:[#allocation11 + $0x1b10] sm:$0xff] }
 0x56a   : > { %5531 = vmatpush.msra.mxu2 %v5137_v51  ;;  %5430 = vmatmul.f32.gmra.mxu1 %v7881_v17  ;;  %v5125_v50 = vld [vmem:[#allocation11 + $0x1cf0] sm:$0xff]  ;;  %v4894_v51 = vld [vmem:[#allocation11 + $0x15b8] sm:$0xff] }
 0x56b   : > { %5466 = vmatpush.msrb.mxu3 %v4929_v45  ;;  %5485 = vmatpush.msra.mxu0 %v5009_v29  ;;  %v4917_v4 = vld [vmem:[#allocation11 + $0x1670] sm:$0xff] }
 0x56c   : > { %5508 = vmatpush.msra.mxu1 %v5073_v41  ;;  %5532 = vmatpush.msra.mxu2 %v5133_v9  ;;  %v4997_v54 = vld [vmem:[#allocation11 + $0x18f0] sm:$0xff] }
 0x56d   : > { %5467 = vmatpush.msrb.mxu3 %v4925_v57  ;;  %5486 = vmatpush.msra.mxu0 %v5005_v13  ;;  %v5061_v55 = vld [vmem:[#allocation11 + $0x1af0] sm:$0xff]  ;;  %v4733_v23 = vpop.f32.mrf.mxu3  ;;  %v4890_v13 = vld [vmem:[#allocation11 + $0x1598] sm:$0xff] }
 0x56e   : > { %5509 = vmatpush.msra.mxu1 %v5069_v3  ;;  %5533 = vmatpush.msra.mxu2 %v5129_v39  ;;  %v5121_v33 = vld [vmem:[#allocation11 + $0x1cd0] sm:$0xff]  ;;  %v4734_v10 = vadd.f32 %v4733_v23, %v7779_v11  ;;  %v4946_v23 = vld [vmem:[#allocation11 + $0x1758] sm:$0xff] }
 0x56f   : > { %5468 = vmatpush.msrb.mxu3 %v4921_v22  ;;  %5487 = vmatpush.msra.mxu0 %v5001_v8  ;;  %v4753_v61 = vpop.f32.mrf.mxu0  ;;  %v4913_v43 = vld [vmem:[#allocation11 + $0x1650] sm:$0xff]  ;;  %v5094_v22 = vld [vmem:[#allocation11 + $0x1bf8] sm:$0xff] }
 0x570   : > { %5510 = vmatpush.msra.mxu1 %v5065_v24  ;;  %5534 = vmatpush.msra.mxu2 %v5125_v50  ;;  %v4993_v40 = vld [vmem:[#allocation11 + $0x18d0] sm:$0xff]  ;;  %v4754_v2 = vadd.f32 %v4753_v61, %v4731_v38  ;;  %v4886_v24 = vld [vmem:[#allocation11 + $0x1578] sm:$0xff] }
 0x571   : > { %5469 = vmatpush.msrb.mxu3 %v4917_v4  ;;  %5488 = vmatpush.msra.mxu0 %v4997_v54  ;;  %v5057_v60 = vld [vmem:[#allocation11 + $0x1ad0] sm:$0xff]  ;;  %v4776_v59 = vpop.f32.mrf.mxu1  ;;  %v4966_v50 = vld [vmem:[#allocation11 + $0x17f8] sm:$0xff] }
 0x572   : > { %v5117_v21 = vld [vmem:[#allocation11 + $0x1cb0] sm:$0xff]  ;;  %5511 = vmatpush.msra.mxu1 %v5061_v55  ;;  %5535 = vmatpush.msra.mxu2 %v5121_v33  ;;  %v4777_v46 = vadd.f32 %v4776_v59, %v4754_v2  ;;  %v5090_v4 = vld [vmem:[#allocation11 + $0x1bd8] sm:$0xff] }
 0x573   : > { %v4909_v35 = vld [vmem:[#allocation11 + $0x1630] sm:$0xff]  ;;  %5470 = vmatpush.msrb.mxu3 %v4913_v43  ;;  %5489 = vmatpush.msra.mxu0 %v4993_v40  ;;  %v4799_v1 = vpop.f32.mrf.mxu2  ;;  %v5030_v54 = vld [vmem:[#allocation11 + $0x19f8] sm:$0xff] }
 0x574   : > { %v4989_v16 = vld [vmem:[#allocation11 + $0x18b0] sm:$0xff]  ;;  %5512 = vmatpush.msra.mxu1 %v5057_v60  ;;  %5536 = vmatpush.msra.mxu2 %v5117_v21  ;;  %v7901_v49 = vadd.f32 %v4799_v1, %v4777_v46  ;;  %v4882_v55 = vld [vmem:[#allocation11 + $0x1558] sm:$0xff] }
 0x575   : > { %v5053_v44 = vld [vmem:[#allocation11 + $0x1ab0] sm:$0xff]  ;;  %5471 = vmatpush.msrb.mxu3 %v4909_v35  ;;  %5490 = vmatpush.msra.mxu0 %v4989_v16  ;;  %v4962_v33 = vld [vmem:[#allocation11 + $0x17d8] sm:$0xff] }
 0x576   : > { %v5113_v5 = vld [vmem:[#allocation11 + $0x1c90] sm:$0xff]  ;;  %5513 = vmatpush.msra.mxu1 %v5053_v44  ;;  %v5086_v61 = vld [vmem:[#allocation11 + $0x1bb8] sm:$0xff] }
 0x577   : > { %v4905_v7 = vld [vmem:[#allocation11 + $0x1610] sm:$0xff]  ;;  %5537 = vmatpush.msra.mxu2 %v5113_v5  ;;  %v5026_v43 = vld [vmem:[#allocation11 + $0x19d8] sm:$0xff] }
 0x578   : > { %v4985_v25 = vld [vmem:[#allocation11 + $0x1890] sm:$0xff]  ;;  %5472 = vmatpush.msrb.mxu3 %v4905_v7  ;;  %v4878_v40 = vld [vmem:[#allocation11 + $0x1538] sm:$0xff] }
 0x579   : > { %v5049_v32 = vld [vmem:[#allocation11 + $0x1a90] sm:$0xff]  ;;  %5491 = vmatpush.msra.mxu0 %v4985_v25  ;;  %5473 = vmatmul.f32.vlgmr.msrb.gmra.mxu3 %v7834_v20  ;;  %v4756_v27 = vpop.f32.mrf.mxu0  ;;  %v4958_v2 = vld [vmem:[#allocation11 + $0x17b8] sm:$0xff] }
 0x57a   : > { %v5109_v42 = vld [vmem:[#allocation11 + $0x1c70] sm:$0xff]  ;;  %5514 = vmatpush.msra.mxu1 %v5049_v32  ;;  %5549 = vmatpush.msra.mxu3 %v4902_v47  ;;  %v4757_v45 = vadd.f32 %v4756_v27, %v4734_v10  ;;  %v4779_v29 = vpop.f32.mrf.mxu1  ;;  %v5082_v60 = vld [vmem:[#allocation11 + $0x1b98] sm:$0xff] }
 0x57b   : > { %v4981_v53 = vld [vmem:[#allocation11 + $0x1870] sm:$0xff]  ;;  %5538 = vmatpush.msra.mxu2 %v5109_v42  ;;  %v5022_v21 = vld [vmem:[#allocation11 + $0x19b8] sm:$0xff] }
 0x57c   : > { %v5045_v31 = vld [vmem:[#allocation11 + $0x1a70] sm:$0xff]  ;;  %5492 = vmatpush.msra.mxu0 %v4981_v53  ;;  %5550 = vmatpush.msra.mxu3 %v4898_v30  ;;  %v4780_v3 = vadd.f32 %v4779_v29, %v4757_v45  ;;  %v4874_v59 = vld [vmem:[#allocation11 + $0x1518] sm:$0xff] }
 0x57d   : > { %v5105_v6 = vld [vmem:[#allocation11 + $0x1c50] sm:$0xff]  ;;  %5515 = vmatpush.msra.mxu1 %v5045_v31  ;;  %v4802_v62 = vpop.f32.mrf.mxu2  ;;  %v4954_v35 = vld [vmem:[#allocation11 + $0x1798] sm:$0xff] }
 0x57e   : > { %v4977_v18 = vld [vmem:[#allocation11 + $0x1850] sm:$0xff]  ;;  %5539 = vmatpush.msra.mxu2 %v5105_v6  ;;  %5551 = vmatpush.msra.mxu3 %v4894_v51  ;;  %v7905_v8 = vadd.f32 %v4802_v62, %v4780_v3  ;;  %v5018_v16 = vld [vmem:[#allocation11 + $0x1998] sm:$0xff] }
 0x57f   : > { %v5041_v58 = vld [vmem:[#allocation11 + $0x1a50] sm:$0xff]  ;;  %5493 = vmatpush.msra.mxu0 %v4977_v18  ;;  %v5078_v46 = vld [vmem:[#allocation11 + $0x1b78] sm:$0xff] }
 0x580   : > { %v5101_v11 = vld [vmem:[#allocation11 + $0x1c30] sm:$0xff]  ;;  %5516 = vmatpush.msra.mxu1 %v5041_v58  ;;  %5552 = vmatpush.msra.mxu3 %v4890_v13  ;;  %v4870_v44 = vld [vmem:[#allocation11 + $0x14f8] sm:$0xff] }
 0x581   : > { %v4973_v41 = vld [vmem:[#allocation11 + $0x1830] sm:$0xff]  ;;  %5540 = vmatpush.msra.mxu2 %v5101_v11  ;;  %5476 = vmatmul.f32.gmra.mxu3 %v7850_v14  ;;  %v4950_v5 = vld [vmem:[#allocation11 + $0x1778] sm:$0xff] }
 0x582   : > { %v5037_v9 = vld [vmem:[#allocation11 + $0x1a30] sm:$0xff]  ;;  %5494 = vmatpush.msra.mxu0 %v4973_v41  ;;  %5553 = vmatpush.msra.mxu3 %v4886_v24  ;;  %v5014_v1 = vld [vmem:[#allocation11 + $0x1978] sm:$0xff] }
 0x583   : > { %v5097_v57 = vld [vmem:[#allocation11 + $0x1c10] sm:$0xff]  ;;  %5517 = vmatpush.msra.mxu1 %v5037_v9  ;;  %v5074_v7 = vld [vmem:[#allocation11 + $0x1b58] sm:$0xff] }
 0x584   : > { %v4969_v39 = vld [vmem:[#allocation11 + $0x1810] sm:$0xff]  ;;  %5541 = vmatpush.msra.mxu2 %v5097_v57  ;;  %5554 = vmatpush.msra.mxu3 %v4882_v55  ;;  %v4866_v25 = vld [vmem:[#allocation11 + $0x14d8] sm:$0xff] }
 0x585   : > { %v5033_v38 = vld [vmem:[#allocation11 + $0x1a10] sm:$0xff]  ;;  %5495 = vmatpush.msra.mxu0 %v4969_v39  ;;  %5542 = vmatmul.f32.vlgmr.msra.gmra.mxu2 %v7871_v56  ;;  %v5010_v32 = vld [vmem:[#allocation11 + $0x1958] sm:$0xff] }
 0x586   : > { %5618 = vmatpush.msrb.mxu2 %v5094_v22  ;;  %5496 = vmatmul.f32.vlgmr.msra.gmra.mxu0 %v7820_v52  ;;  %v5070_v10 = vld [vmem:[#allocation11 + $0x1b38] sm:$0xff] }
 0x587   : > { %5518 = vmatpush.msra.mxu1 %v5033_v38  ;;  %5572 = vmatpush.msrb.mxu0 %v4966_v50  ;;  %v4862_v42 = vld [vmem:[#allocation11 + $0x14b8] sm:$0xff] }
 0x588   : > { %5519 = vmatmul.f32.vlgmr.msra.gmra.mxu1 %v7861_v63  ;;  %5619 = vmatpush.msrb.mxu2 %v5090_v4  ;;  %v4942_v47 = vld [vmem:[#allocation11 + $0x1738] sm:$0xff] }
 0x589   : > { %5595 = vmatpush.msrb.mxu1 %v5030_v54  ;;  %5573 = vmatpush.msrb.mxu0 %v4962_v33  ;;  %v5006_v53 = vld [vmem:[#allocation11 + $0x1938] sm:$0xff] }
 0x58a   : > { %5620 = vmatpush.msrb.mxu2 %v5086_v61  ;;  %5555 = vmatpush.msra.mxu3 %v4878_v40  ;;  %v5066_v31 = vld [vmem:[#allocation11 + $0x1b18] sm:$0xff] }
 0x58b   : > { %5596 = vmatpush.msrb.mxu1 %v5026_v43  ;;  %5574 = vmatpush.msrb.mxu0 %v4958_v2  ;;  %v4858_v30 = vld [vmem:[#allocation11 + $0x1498] sm:$0xff] }
 0x58c   : > { %5621 = vmatpush.msrb.mxu2 %v5082_v60  ;;  %5556 = vmatpush.msra.mxu3 %v4874_v59  ;;  %v4938_v18 = vld [vmem:[#allocation11 + $0x1718] sm:$0xff] }
 0x58d   : > { %5597 = vmatpush.msrb.mxu1 %v5022_v21  ;;  %5575 = vmatpush.msrb.mxu0 %v4954_v35  ;;  %v5002_v27 = vld [vmem:[#allocation11 + $0x1918] sm:$0xff] }
 0x58e   : > { %5545 = vmatmul.f32.gmra.mxu2 %v7881_v17  ;;  %5499 = vmatmul.f32.gmra.mxu0 %v7840_v28  ;;  %v5062_v11 = vld [vmem:[#allocation11 + $0x1af8] sm:$0xff] }
 0x58f   : > { %5598 = vmatpush.msrb.mxu1 %v5018_v16  ;;  %5622 = vmatpush.msrb.mxu2 %v5078_v46  ;;  %v4822_v6 = vpop.f32.mrf.mxu3  ;;  %v4854_v51 = vld [vmem:[#allocation11 + $0x1478] sm:$0xff] }
 0x590   : > { %5557 = vmatpush.msra.mxu3 %v4870_v44  ;;  %5576 = vmatpush.msrb.mxu0 %v4950_v5  ;;  %v7915_v58 = vadd.f32 %v4822_v6, %v7901_v49  ;;  %v4934_v45 = vld [vmem:[#allocation11 + $0x16f8] sm:$0xff] }
 0x591   : > { %5522 = vmatmul.f32.gmra.mxu1 %v7875_v34  ;;  %5623 = vmatpush.msrb.mxu2 %v5074_v7  ;;  %v4998_v29 = vld [vmem:[#allocation11 + $0x18f8] sm:$0xff] }
 0x592   : > { %5599 = vmatpush.msrb.mxu1 %v5014_v1  ;;  %5558 = vmatpush.msra.mxu3 %v4866_v25  ;;  %v5058_v41 = vld [vmem:[#allocation11 + $0x1ad8] sm:$0xff] }
 0x593   : > { %5577 = vmatpush.msrb.mxu0 %v4946_v23  ;;  %5624 = vmatpush.msrb.mxu2 %v5070_v10  ;;  %v4850_v9 = vld [vmem:[#allocation11 + $0x1458] sm:$0xff]  ;;  %v5221_v7 = vpop.f32.mrf.mxu0 }
 0x594   : > { %5600 = vmatpush.msrb.mxu1 %v5010_v32  ;;  %5559 = vmatpush.msra.mxu3 %v4862_v42  ;;  %v4930_v57 = vld [vmem:[#allocation11 + $0x16d8] sm:$0xff] }
 0x595   : > { %5578 = vmatpush.msrb.mxu0 %v4942_v47  ;;  %5625 = vmatpush.msrb.mxu2 %v5066_v31  ;;  %v4994_v49 = vld [vmem:[#allocation11 + $0x18d8] sm:$0xff]  ;;  %v5244_v10 = vpop.f32.mrf.mxu1 }
 0x596   : > { %5601 = vmatpush.msrb.mxu1 %v5006_v53  ;;  %5560 = vmatpush.msra.mxu3 %v4858_v30  ;;  %v5054_v13 = vld [vmem:[#allocation11 + $0x1ab8] sm:$0xff]  ;;  %v5245_v53 = vadd.f32 %v5244_v10, %v5221_v7 }
 0x597   : > { %5579 = vmatpush.msrb.mxu0 %v4938_v18  ;;  %5626 = vmatpush.msrb.mxu2 %v5062_v11  ;;  %v4846_v3 = vld [vmem:[#allocation11 + $0x1438] sm:$0xff]  ;;  %v5267_v47 = vpop.f32.mrf.mxu2 }
 0x598   : > { %5602 = vmatpush.msrb.mxu1 %v5002_v27  ;;  %5561 = vmatpush.msra.mxu3 %v4854_v51  ;;  %v4926_v39 = vld [vmem:[#allocation11 + $0x16b8] sm:$0xff]  ;;  %v4825_v50 = vpop.f32.mrf.mxu3  ;;  %v5268_v27 = vadd.f32 %v5267_v47, %v5245_v53 }
 0x599   : > { %5580 = vmatpush.msrb.mxu0 %v4934_v45  ;;  %5627 = vmatpush.msrb.mxu2 %v5058_v41  ;;  %v4990_v62 = vld [vmem:[#allocation11 + $0x18b8] sm:$0xff]  ;;  %v7918_v54 = vadd.f32 %v4825_v50, %v7905_v8 }
 0x59a   : > { %5603 = vmatpush.msrb.mxu1 %v4998_v29  ;;  %5562 = vmatpush.msra.mxu3 %v4850_v9  ;;  %v5050_v22 = vld [vmem:[#allocation11 + $0x1a98] sm:$0xff] }
 0x59b   : > { %5581 = vmatpush.msrb.mxu0 %v4930_v57  ;;  %5628 = vmatpush.msrb.mxu2 %v5054_v13  ;;  %v4842_v38 = vld [vmem:[#allocation11 + $0x1418] sm:$0xff]  ;;  %v7929_v57 = vld [vmem:[#allocation12] sm:$0xf] }
 0x59c   : > { %5604 = vmatpush.msrb.mxu1 %v4994_v49  ;;  %v4922_v24 = vld [vmem:[#allocation11 + $0x1698] sm:$0xff]  ;;  %5563 = vmatpush.msra.mxu3 %v4846_v3  ;;  %v5674_v3 = vperm.slane %v7929_v57, 0  ;;  %v5675_v10 = vperm.slane %v7929_v57, 1 }
 0x59d   : > { %5582 = vmatpush.msrb.mxu0 %v4926_v39  ;;  %v4986_v4 = vld [vmem:[#allocation11 + $0x1898] sm:$0xff]  ;;  %5629 = vmatpush.msrb.mxu2 %v5050_v22  ;;  %v7933_v39 = vld [vmem:[#allocation14] sm:$0xf] }
 0x59e   : > { %5605 = vmatpush.msrb.mxu1 %v4990_v62  ;;  %v5046_v55 = vld [vmem:[#allocation11 + $0x1a78] sm:$0xff]  ;;  %5564 = vmatpush.msra.mxu3 %v4842_v38  ;;  %v5247_v30 = vpop.f32.mrf.mxu1  ;;  %v5693_v47 = vperm.slane %v7933_v39, 1 }
 0x59f   : > { %v5158_v33 = vld [vmem:[#allocation11 + $0x1df8] sm:$0xff]  ;;  %5583 = vmatpush.msrb.mxu0 %v4922_v24  ;;  %5565 = vmatmul.f32.vlgmr.msra.gmra.mxu3 %v7829_v37  ;;  %v5692_v24 = vperm.slane %v7933_v39, 0 }
 0x5a0   : > { %v4918_v61 = vld [vmem:[#allocation11 + $0x1678] sm:$0xff]  ;;  %5606 = vmatpush.msrb.mxu1 %v4986_v4  ;;  %5630 = vmatpush.msrb.mxu2 %v5046_v55 }
 0x5a1   : > { %v4982_v43 = vld [vmem:[#allocation11 + $0x1878] sm:$0xff]  ;;  %5641 = vmatpush.msrb.mxu3 %v5158_v33  ;;  %5584 = vmatpush.msrb.mxu0 %v4918_v61 }
 0x5a2   : > { %v5042_v40 = vld [vmem:[#allocation11 + $0x1a58] sm:$0xff]  ;;  %5607 = vmatpush.msrb.mxu1 %v4982_v43 }
 0x5a3   : > { %v5154_v2 = vld [vmem:[#allocation11 + $0x1dd8] sm:$0xff]  ;;  %5631 = vmatpush.msrb.mxu2 %v5042_v40 }
 0x5a4   : > { %v4914_v60 = vld [vmem:[#allocation11 + $0x1658] sm:$0xff]  ;;  %5642 = vmatpush.msrb.mxu3 %v5154_v2 }
 0x5a5   : > { %v4978_v21 = vld [vmem:[#allocation11 + $0x1858] sm:$0xff]  ;;  %5585 = vmatpush.msrb.mxu0 %v4914_v60 }
 0x5a6   : > { %v5038_v8 = vld [vmem:[#allocation11 + $0x1a38] sm:$0xff]  ;;  %5608 = vmatpush.msrb.mxu1 %v4978_v21 }
 0x5a7   : > { %v5150_v59 = vld [vmem:[#allocation11 + $0x1db8] sm:$0xff]  ;;  %5632 = vmatpush.msrb.mxu2 %v5038_v8  ;;  %5568 = vmatmul.f32.gmra.mxu3 %v7846_v15 }
 0x5a8   : > { %v4910_v35 = vld [vmem:[#allocation11 + $0x1638] sm:$0xff]  ;;  %5643 = vmatpush.msrb.mxu3 %v5150_v59 }
 0x5a9   : > { %v4974_v16 = vld [vmem:[#allocation11 + $0x1838] sm:$0xff]  ;;  %5586 = vmatpush.msrb.mxu0 %v4910_v35 }
 0x5aa   : > { %v5034_v46 = vld [vmem:[#allocation11 + $0x1a18] sm:$0xff]  ;;  %5609 = vmatpush.msrb.mxu1 %v4974_v16 }
 0x5ab   : > { %v5146_v44 = vld [vmem:[#allocation11 + $0x1d98] sm:$0xff]  ;;  %5633 = vmatpush.msrb.mxu2 %v5034_v46 }
 0x5ac   : > { %v4906_v37 = vld [vmem:[#allocation11 + $0x1618] sm:$0xff]  ;;  %5644 = vmatpush.msrb.mxu3 %v5146_v44  ;;  %5634 = vmatmul.f32.vlgmr.msrb.gmra.mxu2 %v7861_v63 }
 0x5ad   : > { %v4970_v5 = vld [vmem:[#allocation11 + $0x1818] sm:$0xff]  ;;  %5587 = vmatpush.msrb.mxu0 %v4906_v37 }
 0x5ae   : > { %v5142_v1 = vld [vmem:[#allocation11 + $0x1d78] sm:$0xff]  ;;  %5588 = vmatmul.f32.vlgmr.msrb.gmra.mxu0 %v7834_v20  ;;  %5610 = vmatpush.msrb.mxu1 %v4970_v5  ;;  %v5224_v20 = vpop.f32.mrf.mxu0 }
 0x5af   : > { %v5138_v25 = vld [vmem:[#allocation11 + $0x1d58] sm:$0xff]  ;;  %5645 = vmatpush.msrb.mxu3 %v5142_v1  ;;  %5611 = vmatmul.f32.vlgmr.msrb.gmra.mxu1 %v7820_v52  ;;  %v5248_v11 = vadd.f32 %v5247_v30, %v5224_v20 }
 0x5b0   : > { %v5134_v23 = vld [vmem:[#allocation11 + $0x1d38] sm:$0xff] }
 0x5b1   : > { %5646 = vmatpush.msrb.mxu3 %v5138_v25  ;;  %v5130_v32 = vld [vmem:[#allocation11 + $0x1d18] sm:$0xff] }
 0x5b2   : > { %v5126_v42 = vld [vmem:[#allocation11 + $0x1cf8] sm:$0xff] }
 0x5b3   : > { %5647 = vmatpush.msrb.mxu3 %v5134_v23  ;;  %v5122_v15 = vld [vmem:[#allocation11 + $0x1cd8] sm:$0xff]  ;;  %v5290_v6 = vpop.f32.mrf.mxu3 }
 0x5b4   : > { %5637 = vmatmul.f32.gmra.mxu2 %v7875_v34  ;;  %v5118_v63 = vld [vmem:[#allocation11 + $0x1cb8] sm:$0xff]  ;;  %v5291_v51 = vadd.f32 %v5290_v6, %v5268_v27 }
 0x5b5   : > { %5648 = vmatpush.msrb.mxu3 %v5130_v32  ;;  %v5114_v52 = vld [vmem:[#allocation11 + $0x1c98] sm:$0xff] }
 0x5b6   : > { %5591 = vmatmul.f32.gmra.mxu0 %v7850_v14  ;;  %v5110_v31 = vld [vmem:[#allocation11 + $0x1c78] sm:$0xff] }
 0x5b7   : > { %5649 = vmatpush.msrb.mxu3 %v5126_v42  ;;  %5614 = vmatmul.f32.gmra.mxu1 %v7840_v28  ;;  %v5106_v18 = vld [vmem:[#allocation11 + $0x1c58] sm:$0xff]  ;;  %v5313_v14 = vpop.f32.mrf.mxu0  ;;  %v5270_v28 = vpop.f32.mrf.mxu2 }
 0x5b8   : > { %v5102_v34 = vld [vmem:[#allocation11 + $0x1c38] sm:$0xff]  ;;  %v5271_v29 = vadd.f32 %v5270_v28, %v5248_v11  ;;  %v5314_v41 = vadd.f32 %v5313_v14, %v5291_v51 }
 0x5b9   : > { %5650 = vmatpush.msrb.mxu3 %v5122_v15  ;;  %v5098_v45 = vld [vmem:[#allocation11 + $0x1c18] sm:$0xff]  ;;  %v5336_v33 = vpop.f32.mrf.mxu1 }
 0x5ba   : > { %v5664_v13 = vadd.f32 %v5314_v41, %v7803_v0 }
 0x5bb   : > { %5651 = vmatpush.msrb.mxu3 %v5118_v63 }
 0x5bc   : > { %v5293_v9 = vpop.f32.mrf.mxu3  ;;  %v5682_v38 = vmul.f32 %v5674_v3, %v5664_v13 }
 0x5bd   : > { %5652 = vmatpush.msrb.mxu3 %v5114_v52  ;;  %v5294_v49 = vadd.f32 %v5293_v9, %v5271_v29 }
 0x5bf   : > { %5653 = vmatpush.msrb.mxu3 %v5110_v31  ;;  %v5359_v21 = vpop.f32.mrf.mxu2 }
 0x5c1   : > { %5654 = vmatpush.msrb.mxu3 %v5106_v18  ;;  %v5316_v62 = vpop.f32.mrf.mxu0 }
 0x5c2   : > { %v5317_v22 = vadd.f32 %v5316_v62, %v5294_v49  ;;  %v5339_v8 = vpop.f32.mrf.mxu1 }
 0x5c3   : > { %5655 = vmatpush.msrb.mxu3 %v5102_v34 }
 0x5c4   : > { %v5668_v50 = vadd.f32 %v5317_v22, %v7811_v26 }
 0x5c5   : > { %5656 = vmatpush.msrb.mxu3 %v5098_v45 }
 0x5c6   : > { %5657 = vmatmul.f32.vlgmr.msrb.gmra.mxu3 %v7871_v56  ;;  %v5686_v4 = vmul.f32 %v5674_v3, %v5668_v50  ;;  %v7938_v56 = vadd.f32 %v5692_v24, %v5682_v38 }
 0x5c7   : > { %v5362_v37 = vpop.f32.mrf.mxu2 }
 0x5c8   : > { %v7940_v55 = vadd.f32 %v5692_v24, %v5686_v4  ;;  %v5363_v5 = vadd.f32 %v5362_v37, %v5339_v8 }
 0x5ca   : > { %v5708_v0 = vadd.f32 %v7940_v55, %v7938_v56 }
 0x5cc   : > { %v5709_v61 = vrot.slane %v5708_v0, 4 }
 0x5ce   : > { %5660 = vmatmul.f32.gmra.mxu3 %v7881_v17  ;;  %v5710_v43 = vadd.f32 %v5709_v61, %v5708_v0  ;;  %v5360_v17 = vadd.f32 %v5359_v21, %v5336_v33  ;;  %v5676_v0 = vperm.slane %v7929_v57, 2 }
 0x5d0   : > { %v5711_v40 = vrot.slane %v5710_v43, 2 }
 0x5d2   : > { %v5712_v2 = vadd.f32 %v5711_v40, %v5710_v43 }
 0x5d4   : > { %v5713_v60 = vrot.slane %v5712_v2, 1 }
 0x5d6   : > { %v7944_v59 = vadd.f32 %v5713_v60, %v5712_v2  ;;  %v5694_v2 = vperm.slane %v7933_v39, 2 }
 0x5d7   : > { %v5382_v26 = vpop.f32.mrf.mxu3 }
 0x5d8   : > { %5746 = vrot.lane.b32.xlu2 %v7944_v59, %s6688_s29  ;;  %5742 = vrot.lane.b32.xlu1 %v7944_v59, %s6686_s17  ;;  %v5383_v35 = vadd.f32 %v5382_v26, %v5360_v17 }
 0x5d9   : > { %5738 = vrot.lane.b32.xlu0 %v7944_v59, %s6689_s13 }
 0x5db   : > { %v5405_v16 = vpop.f32.mrf.mxu0 }
 0x5dc   : > { %v5406_v46 = vadd.f32 %v5405_v16, %v5383_v35 }
 0x5de   : > { %v5428_v44 = vpop.f32.mrf.mxu1 }
 0x5df   : > { %v5429_v7 = vadd.f32 %v5428_v44, %v5406_v46  ;;  %v5451_v18 = vpop.f32.mrf.mxu2 }
 0x5e0   : > { %v5385_v1 = vpop.f32.mrf.mxu3 }
 0x5e1   : > { %v5386_v25 = vadd.f32 %v5385_v1, %v5363_v5  ;;  %v5665_v32 = vadd.f32 %v5429_v7, %v7854_v36 }
 0x5e3   : > { %v5683_v63 = vmul.f32 %v5675_v10, %v5665_v32 }
 0x5e5   : > { %v5408_v23 = vpop.f32.mrf.mxu0  ;;  %v7956_v31 = vadd.f32 %v5693_v47, %v5683_v63 }
 0x5e6   : > { %v5409_v42 = vadd.f32 %v5408_v23, %v5386_v25 }
 0x5e7   : > { %v5431_v15 = vpop.f32.mrf.mxu1 }
 0x5e8   : > { %v5432_v20 = vadd.f32 %v5431_v15, %v5409_v42 }
 0x5e9   : > { %v5454_v51 = vpop.f32.mrf.mxu2 }
 0x5ea   : > { %v5669_v52 = vadd.f32 %v5432_v20, %v7865_v19 }
 0x5ec   : > { %v5687_v53 = vmul.f32 %v5675_v10, %v5669_v52 }
 0x5ee   : > { %v7958_v6 = vadd.f32 %v5693_v47, %v5687_v53 }
 0x5f0   : > { %v5715_v30 = vadd.f32 %v7958_v6, %v7956_v31 }
 0x5f2   : > { %v5716_v36 = vrot.slane %v5715_v30, 4 }
 0x5f4   : > { %v5717_v27 = vadd.f32 %v5716_v36, %v5715_v30  ;;  %v5677_v36 = vperm.slane %v7929_v57, 3 }
 0x5f6   : > { %v5718_v34 = vrot.slane %v5717_v27, 2 }
 0x5f8   : > { %v5719_v14 = vadd.f32 %v5718_v34, %v5717_v27 }
 0x5fa   : > { %v5720_v11 = vrot.slane %v5719_v14, 1 }
 0x5fc   : > { %v5474_v45 = vpop.f32.mrf.mxu3  ;;  %v7962_v29 = vadd.f32 %v5720_v11, %v5719_v14  ;;  %v5695_v11 = vperm.slane %v7933_v39, 3 }
 0x5fd   : > { %v5475_v28 = vadd.f32 %v5474_v45, %v5451_v18 }
 0x5fe   : > { %5760 = vrot.lane.b32.xlu2 %v7962_v29, %s6688_s29  ;;  %5756 = vrot.lane.b32.xlu1 %v7962_v29, %s6686_s17 }
 0x5ff   : > { %5752 = vrot.lane.b32.xlu0 %v7962_v29, %s6689_s13 }
 0x603   : > { %v5497_v19 = vpop.f32.mrf.mxu0 }
 0x604   : > { %v5498_v41 = vadd.f32 %v5497_v19, %v5475_v28  ;;  %v5477_v3 = vpop.f32.mrf.mxu3 }
 0x605   : > { %v5520_v9 = vpop.f32.mrf.mxu1  ;;  %v5478_v62 = vadd.f32 %v5477_v3, %v5454_v51 }
 0x606   : > { %v5521_v13 = vadd.f32 %v5520_v9, %v5498_v41 }
 0x608   : > { %v5543_v49 = vpop.f32.mrf.mxu2 }
 0x609   : > { %v5544_v22 = vadd.f32 %v5543_v49, %v5521_v13 }
 0x60b   : > { %v5500_v38 = vpop.f32.mrf.mxu0  ;;  %v5666_v4 = vadd.f32 %v5544_v22, %v7887_v12 }
 0x60c   : > { %v5501_v24 = vadd.f32 %v5500_v38, %v5478_v62 }
 0x60d   : > { %v5684_v40 = vmul.f32 %v5676_v0, %v5666_v4 }
 0x60e   : > { %v5523_v50 = vpop.f32.mrf.mxu1 }
 0x60f   : > { %v5524_v33 = vadd.f32 %v5523_v50, %v5501_v24  ;;  %v7974_v8 = vadd.f32 %v5694_v2, %v5684_v40 }
 0x611   : > { %v5546_v61 = vpop.f32.mrf.mxu2 }
 0x612   : > { %v5547_v43 = vadd.f32 %v5546_v61, %v5524_v33 }
 0x614   : > { %v5670_v60 = vadd.f32 %v5547_v43, %v7891_v48 }
 0x616   : > { %v5688_v21 = vmul.f32 %v5676_v0, %v5670_v60 }
 0x618   : > { %v7976_v26 = vadd.f32 %v5694_v2, %v5688_v21  ;;  %v5801_v2 = vld [vmem:[#allocation17] sm:$0xff] }
 0x619   : > { %5803 = vst [vmem:[#allocation1] ss:$4 sm:$0xff] %v5801_v2 }
 0x61a   : > { %v5722_v17 = vadd.f32 %v7976_v26, %v7974_v8 }
 0x61c   : > { %v5723_v35 = vrot.slane %v5722_v17, 4 }
 0x61e   : > { %v5724_v12 = vadd.f32 %v5723_v35, %v5722_v17 }
 0x620   : > { %v5725_v16 = vrot.slane %v5724_v12, 2 }
 0x622   : > { %v5726_v46 = vadd.f32 %v5725_v16, %v5724_v12  ;;  %v5566_v48 = vpop.f32.mrf.mxu3 }
 0x624   : > { %v5727_v44 = vrot.slane %v5726_v46, 1 }
 0x626   : > { %v5728_v37 = vadd.f32 %v5727_v44, %v5726_v46 }
 0x628   : > { %5774 = vrot.lane.b32.xlu2 %v5728_v37, %s6688_s29  ;;  %5770 = vrot.lane.b32.xlu1 %v5728_v37, %s6686_s17 }
 0x629   : > { %5766 = vrot.lane.b32.xlu0 %v5728_v37, %s6689_s13 }
 0x62a   : > { %v5569_v7 = vpop.f32.mrf.mxu3 }
 0x62b   : > { %v5589_v5 = vpop.f32.mrf.mxu0 }
 0x62c   : > { %v5612_v1 = vpop.f32.mrf.mxu1  ;;  %v5590_v25 = vadd.f32 %v5589_v5, %v5566_v48 }
 0x62e   : > { %v5613_v10 = vadd.f32 %v5612_v1, %v5590_v25 }
 0x62f   : > { %v5635_v23 = vpop.f32.mrf.mxu2 }
 0x630   : > { %v5636_v63 = vadd.f32 %v5635_v23, %v5613_v10  ;;  %v5793_v23 = vld [vmem:[#allocation15] sm:$0x3] }
 0x632   : > { %v5747_v38 = vpop.permute.xlu2 %5746 }
 0x633   : > { %v5592_v32 = vpop.f32.mrf.mxu0 }
 0x634   : > { %v5593_v42 = vadd.f32 %v5592_v32, %v5569_v7  ;;  %v5615_v15 = vpop.f32.mrf.mxu1 }
 0x636   : > { %v5616_v47 = vadd.f32 %v5615_v15, %v5593_v42  ;;  %v5805_v15 = vld.sshfl [vmem:[#allocation1 + $0x8] sm:$0xff pattern:$0x73625140] }
 0x637   : > { %v5638_v53 = vpop.f32.mrf.mxu2 }
 0x638   : > { %v5639_v30 = vadd.f32 %v5638_v53, %v5616_v47 }
 0x649   : > { %v5658_v20 = vpop.f32.mrf.mxu3 }
 0x64a   : > { %v5659_v52 = vadd.f32 %v5658_v20, %v5636_v63  ;;  %v5743_v62 = vpop.permute.xlu1 %5742  ;;  %v5806_v20 = vld.sshfl [vmem:[#allocation1 + $0x10] sm:$0xff pattern:$0x73625140]  ;;  %v5807_v63 = vld.sshfl [vmem:[#allocation1 + $0x18] sm:$0xff pattern:$0x73625140] }
 0x64c   : > { %v5667_v18 = vadd.f32 %v5659_v52, %v7915_v58 }
 0x64e   : > { %v5685_v14 = vmul.f32 %v5677_v36, %v5667_v18 }
 0x650   : > { %v7987_v28 = vadd.f32 %v5695_v11, %v5685_v14 }
 0x651   : > { %v5661_v27 = vpop.f32.mrf.mxu3 }
 0x652   : > { %v5662_v34 = vadd.f32 %v5661_v27, %v5639_v30 }
 0x654   : > { %v5671_v51 = vadd.f32 %v5662_v34, %v7918_v54  ;;  %v5739_v54 = vpop.permute.xlu0 %5738 }
 0x655   : > { %v5741_v39 = vadd.f32 %v5739_v54, %v7944_v59 }
 0x656   : > { %v5689_v45 = vmul.f32 %v5677_v36, %v5671_v51 }
 0x657   : > { %v5745_v22 = vadd.f32 %v5743_v62, %v5741_v39 }
 0x658   : > { %v7989_v19 = vadd.f32 %v5695_v11, %v5689_v45  ;;  %v5761_v43 = vpop.permute.xlu2 %5760 }
 0x659   : > { %v5749_v24 = vadd.f32 %v5747_v38, %v5745_v22 }
 0x65a   : > { %v5729_v41 = vadd.f32 %v7989_v19, %v7987_v28 }
 0x65b   : > { %v5750_v4 = vadd.f32 %v5749_v24, %v7962_v29 }
 0x65c   : > { %v5730_v9 = vrot.slane %v5729_v41, 4 }
 0x65e   : > { %v5731_v49 = vadd.f32 %v5730_v9, %v5729_v41 }
 0x660   : > { %v5732_v58 = vrot.slane %v5731_v49, 2 }
 0x662   : > { %v5733_v13 = vadd.f32 %v5732_v58, %v5731_v49 }
 0x664   : > { %v5734_v57 = vrot.slane %v5733_v13, 1 }
 0x666   : > { %v5735_v3 = vadd.f32 %v5734_v57, %v5733_v13 }
 0x668   : > { %5788 = vrot.lane.b32.xlu2 %v5735_v3, %s6688_s29  ;;  %5784 = vrot.lane.b32.xlu1 %v5735_v3, %s6686_s17 }
 0x669   : > { %5780 = vrot.lane.b32.xlu0 %v5735_v3, %s6689_s13 }
 0x670   : > { %v5757_v33 = vpop.permute.xlu1 %5756 }
 0x671   : > { %v5753_v50 = vpop.permute.xlu0 %5752 }
 0x672   : > { %v5755_v0 = vadd.f32 %v5753_v50, %v5750_v4 }
 0x674   : > { %v5759_v61 = vadd.f32 %v5757_v33, %v5755_v0 }
 0x676   : > { %v5763_v40 = vadd.f32 %v5761_v43, %v5759_v61 }
 0x678   : > { %v5764_v21 = vadd.f32 %v5763_v40, %v5728_v37  ;;  %v5804_v37 = vld.sshfl [vmem:[#allocation1] sm:$0xff pattern:$0x73625140] }
 0x682   : > { %v5775_v59 = vpop.permute.xlu2 %5774 }
 0x69a   : > { %v5771_v35 = vpop.permute.xlu1 %5770 }
 0x69b   : > { %v5767_v60 = vpop.permute.xlu0 %5766 }
 0x69c   : > { %v5769_v17 = vadd.f32 %v5767_v60, %v5764_v21 }
 0x69e   : > { %v5773_v12 = vadd.f32 %v5771_v35, %v5769_v17 }
 0x6a0   : > { %v5777_v16 = vadd.f32 %v5775_v59, %v5773_v12 }
 0x6a2   : > { %v5778_v46 = vadd.f32 %v5777_v16, %v5735_v3 }
 0x6c2   : > { %v5789_v29 = vpop.permute.xlu2 %5788 }
 0x6da   : > { %v5785_v5 = vpop.permute.xlu1 %5784 }
 0x6db   : > { %v5781_v44 = vpop.permute.xlu0 %5780 }
 0x6dc   : > { %v5783_v48 = vadd.f32 %v5781_v44, %v5778_v46 }
 0x6de   : > { %v5787_v1 = vadd.f32 %v5785_v5, %v5783_v48 }
 0x6e0   : > { %v5791_v7 = vadd.f32 %v5789_v29, %v5787_v1 }
 0x6e2   : > { %v5792_v25 = vmul.f32 0.00390625, %v5791_v7 }
 0x6e4   : > { %v5794_v32 = vperm.slane %v5792_v25, 0 }
 0x6e6   : > { %v5795_v10 = vmul.f32 %v5794_v32, %v5793_v23 }
 0x6e8   : > { %v5797_v42 = vsel %vm5796_vm9, %v5795_v10, 0.0 }
 0x6e9   : > { %5798 = vadd.xlane.f32.xlu0 %v5797_v42 }
 0x75c   : > { %v5799_v47 = vpop.xlane.xlu0 %5798 }
 0x75d   : > { %v5800_v52 = vmax.f32 %v5799_v47, 0.0 }
 0x75f   : > { %v5812_v53 = vmul.f32 %v5804_v37, %v5800_v52  ;;  %v5813_v30 = vmul.f32 %v5805_v15, %v5800_v52  ;;  %v5814_v18 = vmul.f32 %v5806_v20, %v5800_v52  ;;  %v5815_v36 = vmul.f32 %v5807_v63, %v5800_v52 }
 0x761   : > { %v5816_v27 = vsel %vm505_vm0, %v5812_v53, 0.0  ;;  %v5823_v34 = vsel %vm505_vm0, %v5813_v30, 0.0  ;;  %v5830_v14 = vsel %vm505_vm0, %v5814_v18, 0.0  ;;  %v5837_v11 = vsel %vm505_vm0, %v5815_v36, 0.0 }
 0x762   : > { %v5817_v51 = vrot.slane %v5816_v27, 4  ;;  %v5824_v45 = vrot.slane %v5823_v34, 4  ;;  %v5831_v41 = vrot.slane %v5830_v14, 4  ;;  %v5838_v9 = vrot.slane %v5837_v11, 4 }
 0x764   : > { %v5818_v49 = vadd.f32 %v5817_v51, %v5816_v27  ;;  %v5825_v58 = vadd.f32 %v5824_v45, %v5823_v34  ;;  %v5832_v13 = vadd.f32 %v5831_v41, %v5830_v14  ;;  %v5839_v57 = vadd.f32 %v5838_v9, %v5837_v11 }
 0x766   : > { %v5819_v3 = vrot.slane %v5818_v49, 2  ;;  %v5826_v54 = vrot.slane %v5825_v58, 2  ;;  %v5833_v39 = vrot.slane %v5832_v13, 2  ;;  %v5840_v62 = vrot.slane %v5839_v57, 2 }
 0x768   : > { %v5820_v22 = vadd.f32 %v5819_v3, %v5818_v49  ;;  %v5827_v38 = vadd.f32 %v5826_v54, %v5825_v58  ;;  %v5834_v24 = vadd.f32 %v5833_v39, %v5832_v13  ;;  %v5841_v50 = vadd.f32 %v5840_v62, %v5839_v57 }
 0x76a   : > { %v5821_v4 = vrot.slane %v5820_v22, 1  ;;  %v5828_v0 = vrot.slane %v5827_v38, 1  ;;  %v5835_v33 = vrot.slane %v5834_v24, 1  ;;  %v5842_v61 = vrot.slane %v5841_v50, 1 }
 0x76c   : > { %v5822_v43 = vadd.f32 %v5821_v4, %v5820_v22  ;;  %v5829_v40 = vadd.f32 %v5828_v0, %v5827_v38  ;;  %v5836_v2 = vadd.f32 %v5835_v33, %v5834_v24  ;;  %v5843_v60 = vadd.f32 %v5842_v61, %v5841_v50  ;;  %v5928_v24 = vld [vmem:[%s6894_s27] sm:$0xff]  ;;  %v5929_v61 = vld [vmem:[%s6894_s27 + $0x8] sm:$0xff] }
 0x76e   : > { %v6142_v21 = vmul.f32 -1.442695, %v5822_v43  ;;  %v6143_v17 = vmul.f32 -1.442695, %v5829_v40  ;;  %v6144_v35 = vmul.f32 -1.442695, %v5836_v2 }
 0x76f   : > { %v6145_v12 = vmul.f32 -1.442695, %v5843_v60  ;;  %v5932_v43 = vld [vmem:[%s6894_s27 + $0x20] sm:$0xff] }
 0x770   : > { %6287 = vpow2.f32 %v6142_v21 }
 0x771   : > { %6289 = vpow2.f32 %v6143_v17  ;;  %v5930_v17 = vld [vmem:[%s6894_s27 + $0x10] sm:$0xff] }
 0x772   : > { %6291 = vpow2.f32 %v6144_v35 }
 0x773   : > { %6293 = vpow2.f32 %v6145_v12 }
 0x776   : > { %v6288_v59 = vpop.eup %6287 }
 0x777   : > { %v6290_v16 = vpop.eup %6289  ;;  %v5856_v46 = vadd.f32 1.0, %v6288_v59 }
 0x778   : > { %v6292_v44 = vpop.eup %6291  ;;  %v5857_v48 = vadd.f32 1.0, %v6290_v16 }
 0x779   : > { %v6294_v5 = vpop.eup %6293  ;;  %v5858_v1 = vadd.f32 1.0, %v6292_v44  ;;  %6295 = vrcp.f32 %v5856_v46  ;;  %v5869_v7 = vand.u32 2147483647, %v5856_v46  ;;  %v5871_v25 = vand.u32 2147483648, %v5856_v46 }
 0x77a   : > { %v8002_v29 = vadd.f32 1.0, %v6294_v5  ;;  %6297 = vrcp.f32 %v5857_v48  ;;  %v5884_v32 = vand.u32 2147483647, %v5857_v48  ;;  %v5886_v10 = vand.u32 2147483648, %v5857_v48 }
 0x77b   : > { %6299 = vrcp.f32 %v5858_v1  ;;  %vm5865_vm10 = vweird.f32 %v5856_v46  ;;  %vm8005_vm11 = vcmp.eq.f32.partialorder %v5869_v7, 8.507059e+37  ;;  %v5872_v63 = vor.u32 1.1754944e-38, %v5871_v25  ;;  %v5934_v7 = vld [vmem:[%s6894_s27 + $0x30] sm:$0xff] }
 0x77c   : > { %6301 = vrcp.f32 %v8002_v29  ;;  %vm5880_vm12 = vweird.f32 %v5857_v48  ;;  %vm5895_vm13 = vweird.f32 %v5858_v1  ;;  %v5899_v30 = vand.u32 2147483647, %v5858_v1 }
 0x77d   : > { %vm8009_vm14 = vcmp.eq.f32.partialorder %v5884_v32, 8.507059e+37  ;;  %v5887_v34 = vor.u32 1.1754944e-38, %v5886_v10  ;;  %v5901_v14 = vand.u32 2147483648, %v5858_v1  ;;  %v5914_v9 = vand.u32 2147483647, %v8002_v29 }
 0x77e   : > { %v5916_v49 = vand.u32 2147483648, %v8002_v29  ;;  %vm8017_vm3 = vcmp.eq.f32.partialorder %v5899_v30, 8.507059e+37  ;;  %vm5910_vm4 = vweird.f32 %v8002_v29 }
 0x77f   : > { %v6296_v23 = vpop.eup %6295  ;;  %v5902_v39 = vor.u32 1.1754944e-38, %v5901_v14  ;;  %vm8028_vm8 = vcmp.eq.f32.partialorder %v5914_v9, 8.507059e+37 }
 0x780   : > { %v6298_v42 = vpop.eup %6297  ;;  %v5861_v37 = vmul.f32 %v6296_v23, %v5856_v46  ;;  %vm5866_vm15 = vweird.f32 %v6296_v23  ;;  %v5917_v33 = vor.u32 1.1754944e-38, %v5916_v49  ;;  %v5933_v46 = vld [vmem:[%s6894_s27 + $0x28] sm:$0xff] }
 0x781   : > { %v6300_v15 = vpop.eup %6299  ;;  %v5876_v47 = vmul.f32 %v6298_v42, %v5857_v48  ;;  %vm5881_vm0 = vweird.f32 %v6298_v42  ;;  %vm5867_vm2 = vmor %vm5865_vm10, %vm5866_vm15 }
 0x782   : > { %v5862_v52 = vsub.f32 1.0, %v5861_v37  ;;  %v5891_v53 = vmul.f32 %v6300_v15, %v5858_v1  ;;  %v6302_v18 = vpop.eup %6301  ;;  %vm5896_vm1 = vweird.f32 %v6300_v15  ;;  %vm5882_vm5 = vmor %vm5880_vm12, %vm5881_vm0  ;;  %v5931_v1 = vld [vmem:[%s6894_s27 + $0x18] sm:$0xff] }
 0x783   : > { %v5877_v36 = vsub.f32 1.0, %v5876_v47  ;;  %v5906_v45 = vmul.f32 %v6302_v18, %v8002_v29  ;;  %vm5911_vm6 = vweird.f32 %v6302_v18  ;;  %vm5897_vm7 = vmor %vm5895_vm13, %vm5896_vm1 }
 0x784   : > { %v5863_v11 = vmul.f32 %v6296_v23, %v5862_v52  ;;  %v5892_v51 = vsub.f32 1.0, %v5891_v53  ;;  %vm5912_vm9 = vmor %vm5910_vm4, %vm5911_vm6 }
 0x785   : > { %v5878_v41 = vmul.f32 %v6298_v42, %v5877_v36  ;;  %v5907_v57 = vsub.f32 1.0, %v5906_v45 }
 0x786   : > { %v5864_v58 = vadd.f32 %v6296_v23, %v5863_v11  ;;  %v5893_v13 = vmul.f32 %v6300_v15, %v5892_v51 }
 0x787   : > { %v5879_v3 = vadd.f32 %v6298_v42, %v5878_v41  ;;  %v5908_v38 = vmul.f32 %v6302_v18, %v5907_v57 }
 0x788   : > { %v5868_v62 = vsel %vm5867_vm2, %v6296_v23, %v5864_v58  ;;  %v5894_v22 = vadd.f32 %v6300_v15, %v5893_v13 }
 0x789   : > { %v5873_v50 = vsel %vm8005_vm11, %v5872_v63, %v5868_v62  ;;  %v5883_v4 = vsel %vm5882_vm5, %v6298_v42, %v5879_v3  ;;  %v5909_v60 = vadd.f32 %v6302_v18, %v5908_v38 }
 0x78a   : > { %v5888_v40 = vsel %vm8009_vm14, %v5887_v34, %v5883_v4  ;;  %v5898_v2 = vsel %vm5897_vm7, %v6300_v15, %v5894_v22  ;;  %v5920_v21 = vmul.f32 %v5873_v50, %v7938_v56  ;;  %v5924_v59 = vmul.f32 %v5873_v50, %v7940_v55  ;;  %v5935_v55 = vld [vmem:[%s6894_s27 + $0x38] sm:$0xff]  ;;  %s6612_s27 = scalar_lea.hbm %s8101_s9, 128 }
 0x78b   : > { %v5903_v35 = vsel %vm8017_vm3, %v5902_v39, %v5898_v2  ;;  %v5921_v12 = vmul.f32 %v5888_v40, %v7956_v31  ;;  %v5925_v16 = vmul.f32 %v5888_v40, %v7958_v6  ;;  %v5913_v44 = vsel %vm5912_vm9, %v6302_v18, %v5909_v60  ;;  %p6614_p7 = scmp.lt.s32.totalorder %s6612_s27, %s6608_s28 }
 0x78c   : > { %v5922_v56 = vmul.f32 %v5903_v35, %v7974_v8  ;;  %v5926_v48 = vmul.f32 %v5903_v35, %v7976_v26  ;;  %v5936_v5 = vadd.f32 %v5928_v24, %v5920_v21  ;;  %v5918_v29 = vsel %vm8028_vm8, %v5917_v33, %v5913_v44 }
 0x78d   : > { %v5937_v25 = vadd.f32 %v5929_v61, %v5921_v12  ;;  %v5940_v23 = vadd.f32 %v5932_v43, %v5924_v59  ;;  %v5923_v31 = vmul.f32 %v5918_v29, %v7987_v28  ;;  %v5927_v6 = vmul.f32 %v5918_v29, %v7989_v19  ;;  %p6615_p8 = por %p6614_p7, %p6613_p12 }
 0x78e   : > { %v5938_v8 = vadd.f32 %v5930_v17, %v5922_v56  ;;  %5944 = vst [vmem:[%s472_s15] sm:$0xff] %v5936_v5  ;;  %v5941_v26 = vadd.f32 %v5933_v46, %v5925_v16  ;;  %v5942_v10 = vadd.f32 %v5934_v7, %v5926_v48 }
 0x78f   : > { %5945 = vst [vmem:[%s472_s15 + $0x8] sm:$0xff] %v5937_v25  ;;  %v5939_v32 = vadd.f32 %v5931_v1, %v5923_v31  ;;  %v5943_v42 = vadd.f32 %v5935_v55, %v5927_v6  ;;  %p6616_p9 = pnand %p6615_p8, %p6611_p5 }
 0x790   : > { %5946 = vst [vmem:[%s472_s15 + $0x10] sm:$0xff] %v5938_v8 }
 0x791   : > { %5948 = vst [vmem:[%s472_s15 + $0x20] sm:$0xff] %v5940_v23 }
 0x792   : > { %5947 = vst [vmem:[%s472_s15 + $0x18] sm:$0xff] %v5939_v32 }
 0x793   : > { %5949 = vst [vmem:[%s472_s15 + $0x28] sm:$0xff] %v5941_v26 }
 0x794   : > { %5950 = vst [vmem:[%s472_s15 + $0x30] sm:$0xff] %v5942_v10 }
 0x795   : > { %5951 = vst [vmem:[%s472_s15 + $0x38] sm:$0xff] %v5943_v42 }
 0x796   : > { %6619 = shalt.err (!%p6616_p9)
}
 0x797   : > { %s6690_s26 = smov 512  }
 0x798   : > { %6187 = dma.vmem_to_hbm [thread:$0]  (%p6854_p4), %s5966_s19, 1024, %s5968_s22, %s5953_s21, %s6690_s26, %s6690_s26, %s6688_s29  }
 0x799 PF: > { %s5982_s23 = sand.u32 1, %s6662_s30   ;;  %p8196_p10 = scmp.ge.s32.totalorder %s6674_s12, 2 }
 0x79a   : > { %s5983_s16 = scalar_lea.sflag [#allocation5], %s5982_s23 }
 0x79b   : > { %p6219_p13 = pnand %p8196_p10, %p6858_p6 }
 0x79d   : > { %p6220_p11 = pneg %p6219_p13 }
 0x79f   : > { %6657 = dma.done.wait (%p6220_p11), %s5983_s16, 1024  }
 0x7a0   : > { %6659 = vsyncadd (%p6220_p11), %s5983_s16, 4294966272  ;;  %p26_p0 = scmp.ge.s32.totalorder %s6828_s18, 4   ;;  %s8197_s30 = smov %s6666_s10 }
 0x7a1   : > { %s8198_s10 = smov %s6670_s11  ;;  %s8199_s11 = smov %s6839_s3 }
 0x7a2   : > { %s8200_s12 = smov %s6828_s18  ;;  %28 = sbr.rel (!%p26_p0) target bundleno = 14 (0xe), region = 137 }
 0x7a7   :  { %5989 = vsyncpa [#allocation4], 1 }
 0x7a8   :  { %5991 = vsyncpa [#allocation4 + $0x1], 1 }
 0x7a9   :  { %5992 = vsyncpa [#allocation7], 1 }
 0x7aa   :  { %5993 = vsyncpa [#allocation10], 1 }
 0x7ab   :  { %5994 = vsyncpa [#allocation13], 1 }
 0x7ac   :  { %5995 = vsyncpa [#allocation16], 1 }
 0x7ad   :  { %5996 = vsyncpa [#allocation5], 1 }
 0x7ae   :  { %5998 = vsyncpa [#allocation5 + $0x1], 1 }

</bundles_post_ra>
